<compile_context>
chip_gen: v6e
topology: v6e:2x2x1
jax: 0.10.0
libtpu: 0.0.40
codegen_flags: <defaults>
</compile_context>

<pallas_src>
import functools
import math

import jax
import jax.numpy as jnp
from jax import lax
from jax.experimental import pallas as pl
from jax.experimental.pallas import tpu as pltpu


# =====================================================================
# Config (scaled-down but structurally faithful to HMNeTNERModel)
# =====================================================================
class Config:
    vocab_size = 100
    max_position = 40
    type_vocab = 2
    hidden = 64            # scaled from 768
    num_heads = 4          # scaled from 12
    head_dim = 16          # scaled from 64
    intermediate = 256     # 4 * hidden
    num_layers = 2         # scaled from 12 (one gate Linear per layer)
    num_labels = 9
    prompt_len = 4         # hardcoded 4 in the original (4 stages, 2x2-pooled)
    num_prompt_chunks = 4  # encoder_conv output split into 4 chunks of 2*hidden
    num_aux = 3
    img_size = 32
    image_channels = (8, 16, 32, 64)   # scaled from resnet50 (256,512,1024,2048)
    encoder_mid = 64       # scaled from 800
    seq_len = 8
    batch = 2
    ln_eps = 1e-12


def _round_up(x, m):
    return ((x + m - 1) // m) * m


# =====================================================================
# Pallas kernels
# =====================================================================
def _conv_mm_kernel(x_ref, w_ref, b_ref, o_ref):
    """im2col conv matmul + bias + ReLU."""
    y = jnp.dot(x_ref[...], w_ref[...], preferred_element_type=jnp.float32) + b_ref[...]
    o_ref[...] = jnp.maximum(y, 0.0).astype(o_ref.dtype)


def conv3x3_s2_relu(x, st, cout):
    """3x3 conv, stride 2, pad 1, ReLU.  x: NCHW.
    st['w']: (Kpad, Npad) bf16 pre-flattened/padded at init; st['b']: (1, Npad) f32.
    TODO(synk): patch construction (im2col) stays in XLA glue under jit; an in-kernel
    strided-slice patch builder would remove the HBM round-trip of the patch matrix."""
    N, C, H, W = x.shape
    Ho, Wo = H // 2, W // 2
    xp = jnp.pad(x, ((0, 0), (0, 0), (1, 1), (1, 1)))
    cols = []
    for i in range(3):
        for j in range(3):
            cols.append(xp[:, :, i:i + 2 * Ho - 1:2, j:j + 2 * Wo - 1:2])
    patches = jnp.stack(cols, axis=2).transpose(0, 3, 4, 1, 2).reshape(N * Ho * Wo, C * 9)
    kpad, npad = st["w"].shape
    patches = jnp.pad(patches, ((0, 0), (0, kpad - C * 9))).astype(jnp.bfloat16)

    M = N * Ho * Wo
    tm = M
    for t in (1024, 512, 256, 128):        # stage-1: tm=1024 -> grid=2 (both v7x cores)
        if M % t == 0:
            tm = t
            break

    out = pl.pallas_call(
        _conv_mm_kernel,
        out_shape=jax.ShapeDtypeStruct((M, npad), jnp.float32),
        grid=(M // tm,),
        in_specs=[pl.BlockSpec((tm, kpad), lambda i: (i, 0)),
                  pl.BlockSpec((kpad, npad), lambda i: (0, 0)),
                  pl.BlockSpec((1, npad), lambda i: (0, 0))],
        out_specs=pl.BlockSpec((tm, npad), lambda i: (i, 0)),
        compiler_params=pltpu.CompilerParams(dimension_semantics=("parallel",)),
        cost_estimate=pl.CostEstimate(
            flops=2 * M * kpad * npad, transcendentals=0,
            bytes_accessed=2 * (M * kpad + kpad * npad) + 4 * M * npad),
    )(patches, st["w"], st["b"])
    return out[:, :cout].reshape(N, Ho, Wo, cout).transpose(0, 3, 1, 2)


def avg_pool_nchw(x, k):
    """AvgPool2d(kernel=k, stride=k) for evenly-divisible spatial dims (XLA glue)."""
    N, C, H, W = x.shape
    return x.reshape(N, C, H // k, k, W // k, k).mean(axis=(3, 5))


# ---------------------------------------------------------------------
# Fused visual-prompt kernel: encoder_conv (Linear->Tanh->Linear) + ALL gate
# projections / leaky_relu / softmax / gated chunk sums for every layer.
# ---------------------------------------------------------------------
def _prompt_kernel(pg_ref, w1_ref, b1_ref, w2_ref, b2_ref, gw_ref, gb_ref, o_ref,
                   *, num_layers, num_chunks, prompt_len, two_h, rows):
    # pg_ref: (prompt_len*rows, Fpad) bf16; row index = p*rows + r
    h = jnp.dot(pg_ref[...], w1_ref[...], preferred_element_type=jnp.float32) + b1_ref[...]
    h = jnp.tanh(h)
    pgenc = jnp.dot(h.astype(jnp.bfloat16), w2_ref[...],
                    preferred_element_type=jnp.float32) + b2_ref[...]     # (P*rows, C*2H)

    # sum of chunks / 4 (torch: stack(split).sum(0) / 4)
    s3 = pgenc[:, :two_h]
    for c in range(1, num_chunks):
        s3 = s3 + pgenc[:, c * two_h:(c + 1) * two_h]
    s3 = s3 * 0.25

    # gate logits for ALL layers at once: (rows, L*C)
    ncol = num_layers * num_chunks
    logits = jnp.zeros((rows, ncol), jnp.float32)
    for p in range(prompt_len):
        logits = logits + jnp.dot(s3[p * rows:(p + 1) * rows, :].astype(jnp.bfloat16),
                                  gw_ref[p], preferred_element_type=jnp.float32)
    logits = logits + gb_ref[...]
    logits = jnp.where(logits >= 0.0, logits, 0.01 * logits)             # leaky_relu

    for l in range(num_layers):
        lg = logits[:, l * num_chunks:(l + 1) * num_chunks]
        lg = lg - jnp.max(lg, axis=-1, keepdims=True)
        e = jnp.exp(lg)
        gate = e * pl.reciprocal(jnp.sum(e, axis=-1, keepdims=True), approx=True)
        for p in range(prompt_len):
            blk = pgenc[p * rows:(p + 1) * rows, :]
            kv = gate[:, 0:1] * blk[:, :two_h]
            for c in range(1, num_chunks):
                kv = kv + gate[:, c:c + 1] * blk[:, c * two_h:(c + 1) * two_h]
            o_ref[l, p] = kv                                             # (rows, 2H)


def visual_prompt_kv(pg_pooled, prm, cfg):
    """pg_pooled: (NS*bsz, prompt_len, F) -> (num_layers, NS*bsz, prompt_len, 2H)."""
    NSB, Lp, F = pg_pooled.shape
    two_h = 2 * cfg.hidden
    fpad = prm["w1"].shape[0]
    pg = pg_pooled.transpose(1, 0, 2).reshape(Lp * NSB, F)
    pg = jnp.pad(pg, ((0, 0), (0, fpad - F))).astype(jnp.bfloat16)
    out = pl.pallas_call(
        functools.partial(_prompt_kernel, num_layers=cfg.num_layers,
                          num_chunks=cfg.num_prompt_chunks, prompt_len=Lp,
                          two_h=two_h, rows=NSB),
        out_shape=jax.ShapeDtypeStruct((cfg.num_layers, Lp, NSB, two_h), jnp.float32),
    )(pg, prm["w1"], prm["b1"], prm["w2"], prm["b2"], prm["gw"], prm["gb"])
    return out.transpose(0, 2, 1, 3)            # (L, NS*bsz, prompt_len, 2H)


# ---------------------------------------------------------------------
# Fused BERT encoder (all layers) + emission head in ONE pallas_call.
# ---------------------------------------------------------------------
def _bert_kernel(x_ref, mask_ref, pk_ref, pv_ref,
                 wqkv_ref, bqkv_ref, wo_ref, bo_ref, ln1g_ref, ln1b_ref,
                 wi_ref, bi_ref, wo2_ref, bo2_ref, ln2g_ref, ln2b_ref,
                 fcw_ref, fcb_ref, o_ref, ctx_sc,
                 *, B, S, H, nh, dh, L, P, eps, scale):
    x = x_ref[...]                                            # (B*S, H) f32

    for l in range(L):
        # fused QKV projection (one 3H-lane matmul)
        qkv = jnp.dot(x.astype(jnp.bfloat16), wqkv_ref[l],
                      preferred_element_type=jnp.float32) + bqkv_ref[l]   # (B*S, 3H)

        # per (batch, head) attention over [visual-prompt past KV ; new KV]
        for b in range(B):
            m_b = mask_ref[b]                                 # (1, P+S) additive
            m_past = m_b[:, :P]
            m_new = m_b[:, P:]
            for h in range(nh):
                q = qkv[b * S:(b + 1) * S, h * dh:(h + 1) * dh].astype(jnp.bfloat16)
                kn = qkv[b * S:(b + 1) * S, H + h * dh:H + (h + 1) * dh].astype(jnp.bfloat16)
                vn = qkv[b * S:(b + 1) * S, 2 * H + h * dh:2 * H + (h + 1) * dh].astype(jnp.bfloat16)
                kp = pk_ref[l, b, h].astype(jnp.bfloat16)     # (P, dh)
                vp = pv_ref[l, b, h].astype(jnp.bfloat16)

                sp = lax.dot_general(q, kp, (((1,), (1,)), ((), ())),
                                     preferred_element_type=jnp.float32) * scale + m_past
                sn = lax.dot_general(q, kn, (((1,), (1,)), ((), ())),
                                     preferred_element_type=jnp.float32) * scale + m_new
                mrow = jnp.maximum(jnp.max(sp, axis=-1, keepdims=True),
                                   jnp.max(sn, axis=-1, keepdims=True))
                ep = jnp.exp(sp - mrow)
                en = jnp.exp(sn - mrow)
                denom = jnp.sum(ep, axis=-1, keepdims=True) + jnp.sum(en, axis=-1, keepdims=True)
                ctx = (jnp.dot(ep.astype(jnp.bfloat16), vp, preferred_element_type=jnp.float32)
                       + jnp.dot(en.astype(jnp.bfloat16), vn, preferred_element_type=jnp.float32))
                ctx = ctx * pl.reciprocal(denom, approx=True)
                ctx_sc[b * S:(b + 1) * S, h * dh:(h + 1) * dh] = ctx

        ctx_all = ctx_sc[...]                                 # (B*S, H) lane-dense

        # output projection + residual + LN (fused)
        y = jnp.dot(ctx_all.astype(jnp.bfloat16), wo_ref[l],
                    preferred_element_type=jnp.float32) + bo_ref[l] + x
        mean = jnp.mean(y, axis=-1, keepdims=True)
        var = jnp.mean((y - mean) ** 2, axis=-1, keepdims=True)
        x1 = (y - mean) * lax.rsqrt(var + eps) * ln1g_ref[l] + ln1b_ref[l]

        # FFN + residual + LN (fused)
        hh = jnp.dot(x1.astype(jnp.bfloat16), wi_ref[l],
                     preferred_element_type=jnp.float32) + bi_ref[l]
        hh = jax.nn.gelu(hh, approximate=True)                # tanh-approx GELU
        y2 = jnp.dot(hh.astype(jnp.bfloat16), wo2_ref[l],
                     preferred_element_type=jnp.float32) + bo2_ref[l] + x1
        mean2 = jnp.mean(y2, axis=-1, keepdims=True)
        var2 = jnp.mean((y2 - mean2) ** 2, axis=-1, keepdims=True)
        x = (y2 - mean2) * lax.rsqrt(var2 + eps) * ln2g_ref[l] + ln2b_ref[l]

    # emission head (fc), 128-lane padded output (dropout = identity in eval)
    em = jnp.dot(x.astype(jnp.bfloat16), fcw_ref[...],
                 preferred_element_type=jnp.float32) + fcb_ref[...]
    o_ref[...] = em.astype(o_ref.dtype)


# =====================================================================
# Small glue (jitted XLA): embeddings, layer norm, pooling, CRF
# =====================================================================
def _jnp_layer_norm(x, g, b, eps):
    mean = jnp.mean(x, axis=-1, keepdims=True)
    var = jnp.mean((x - mean) ** 2, axis=-1, keepdims=True)
    return (x - mean) * lax.rsqrt(var + eps) * g + b


# TODO(synk): CRF Viterbi/forward recursions are inherently sequential; kept
# in plain JAX lax.scan rather than a Pallas kernel.
def crf_decode(emissions, crf):
    start, end, trans = crf["start"], crf["end"], crf["trans"]
    B, T, L = emissions.shape
    score = start[None, :] + emissions[:, 0]
    em_rest = jnp.swapaxes(emissions[:, 1:], 0, 1)

    def fwd(score, em_t):
        nxt = score[:, :, None] + trans[None] + em_t[:, None, :]
        best_prev = jnp.argmax(nxt, axis=1).astype(jnp.int32)
        return jnp.max(nxt, axis=1), best_prev

    score, hist = lax.scan(fwd, score, em_rest)
    score = score + end[None, :]
    last = jnp.argmax(score, axis=1).astype(jnp.int32)

    def bwd(tag, hist_t):
        prev = jnp.take_along_axis(hist_t, tag[:, None], axis=1)[:, 0]
        return prev, prev

    _, prevs = lax.scan(bwd, last, hist, reverse=True)
    tags = jnp.concatenate([prevs, last[None, :]], axis=0)
    # NOTE: positions past each sequence's mask carry dummy tags; mask before use.
    return jnp.swapaxes(tags, 0, 1)


def crf_log_likelihood_mean(emissions, tags, mask, crf):
    start, end, trans = crf["start"], crf["end"], crf["trans"]
    B, T, L = emissions.shape
    maskf = mask.astype(jnp.float32)
    barange = jnp.arange(B)

    num = start[tags[:, 0]] + emissions[barange, 0, tags[:, 0]]
    xs = (jnp.swapaxes(emissions[:, 1:], 0, 1),
          jnp.swapaxes(tags[:, :-1], 0, 1),
          jnp.swapaxes(tags[:, 1:], 0, 1),
          jnp.swapaxes(maskf[:, 1:], 0, 1))

    def num_step(carry, x):
        em_t, tag_prev, tag_t, m_t = x
        carry = carry + (trans[tag_prev, tag_t] + em_t[barange, tag_t]) * m_t
        return carry, None

    num, _ = lax.scan(num_step, num, xs)
    seq_ends = jnp.sum(mask, axis=1).astype(jnp.int32) - 1
    last_tags = tags[barange, seq_ends]
    num = num + end[last_tags]

    den = start[None] + emissions[:, 0]

    def den_step(score, x):
        em_t, m_t = x
        nxt = score[:, :, None] + trans[None] + em_t[:, None, :]
        nxt = jax.nn.logsumexp(nxt, axis=1)
        return jnp.where(m_t[:, None] > 0, nxt, score), None

    den, _ = lax.scan(den_step, den,
                      (jnp.swapaxes(emissions[:, 1:], 0, 1),
                       jnp.swapaxes(maskf[:, 1:], 0, 1)))
    den = jax.nn.logsumexp(den + end[None], axis=1)
    return jnp.mean(num - den)


# =====================================================================
# Full HMNeTNERModel forward (wrapped in jax.jit at the call site)
# =====================================================================
def hmnet_ner_forward(pp, input_ids, attention_mask, token_type_ids,
                      labels, images, aux_imgs, cfg):
    H = cfg.hidden
    bsz = images.shape[0]
    num_sets = 1 + cfg.num_aux

    # -------- ImageModel.get_resnet_prompt (batched: main + aux in one pass) --------
    # TODO(synk): pretrained ResNet50 replaced by a deterministic scaled 4-stage conv
    # backbone; stage-pooling / concat semantics are preserved.
    aux_perm = jnp.transpose(aux_imgs, (1, 0, 2, 3, 4))
    all_imgs = jnp.concatenate([images, aux_perm.reshape((-1,) + images.shape[1:])], axis=0)

    x = all_imgs
    guids = []
    for si, st in enumerate(pp["image"]):
        x = conv3x3_s2_relu(x, st, cfg.image_channels[si])
        ft = x.shape[2]
        guids.append(avg_pool_nchw(x, ft // 2))               # -> (NS*bsz, C, 2, 2)

    pg_pooled = jnp.concatenate(guids, axis=1).reshape(num_sets * bsz, cfg.prompt_len, -1)

    # -------- CoreModel.get_visual_prompt (fully fused kernel) --------
    kvs = visual_prompt_kv(pg_pooled, pp["prompt"], cfg)       # (L, NS*bsz, 4, 2H)

    kv_all = (kvs.reshape(cfg.num_layers, num_sets, bsz, cfg.prompt_len, 2 * H)
                 .transpose(0, 2, 1, 3, 4)
                 .reshape(cfg.num_layers, bsz, num_sets * cfg.prompt_len, 2 * H))
    past_k = kv_all[..., :H].reshape(cfg.num_layers, bsz, cfg.num_heads, -1, cfg.head_dim)
    past_v = kv_all[..., H:].reshape(cfg.num_layers, bsz, cfg.num_heads, -1, cfg.head_dim)
    P = past_k.shape[3]                                        # visual prompt KV length

    # -------- BERT embeddings + mask (XLA glue under jit) --------
    B, S = input_ids.shape
    bw = pp["bert"]
    # position ids offset by past length (matches HF BertModel with past_key_values)
    pos_ids = P + jnp.arange(S)
    emb = (bw["word_emb"][input_ids] + bw["pos_emb"][pos_ids][None, :, :]
           + bw["type_emb"][token_type_ids])
    x_emb = _jnp_layer_norm(emb, bw["emb_ln_g"], bw["emb_ln_b"], cfg.ln_eps).reshape(B * S, H)

    full_mask = jnp.concatenate(
        [jnp.ones((B, P), attention_mask.dtype), attention_mask], axis=1)
    ext = ((1.0 - full_mask.astype(jnp.float32)) * -10000.0)[:, None, :]   # (B,1,P+S)

    # -------- fused BERT encoder + emission head (ONE pallas_call) --------
    Npad = pp["fc"]["w"].shape[1]
    scale = 1.0 / math.sqrt(cfg.head_dim)
    flops = cfg.num_layers * (
        2 * B * S * H * 3 * H
        + 4 * B * cfg.num_heads * S * (P + S) * cfg.head_dim
        + 2 * B * S * H * H
        + 4 * B * S * H * cfg.intermediate) + 2 * B * S * H * Npad
    em_pad = pl.pallas_call(
        functools.partial(_bert_kernel, B=B, S=S, H=H, nh=cfg.num_heads,
                          dh=cfg.head_dim, L=cfg.num_layers, P=P,
                          eps=cfg.ln_eps, scale=scale),
        out_shape=jax.ShapeDtypeStruct((B * S, Npad), jnp.float32),
        scratch_shapes=[pltpu.VMEM((B * S, H), jnp.float32)],
        cost_estimate=pl.CostEstimate(
            flops=int(flops),
            transcendentals=int(cfg.num_layers * B * cfg.num_heads * S * (P + S)
                                + cfg.num_layers * B * S * cfg.intermediate),
            bytes_accessed=int(64 * 1024)),
    )(x_emb, ext, past_k, past_v,
      bw["wqkv"], bw["bqkv"], bw["wo"], bw["bo"], bw["ln1g"], bw["ln1b"],
      bw["wi"], bw["bi"], bw["wo2"], bw["bo2"], bw["ln2g"], bw["ln2b"],
      pp["fc"]["w"], pp["fc"]["b"])

    emissions = em_pad[:, :cfg.num_labels].reshape(B, S, cfg.num_labels)

    logits = crf_decode(emissions, pp["crf"])
    loss = -crf_log_likelihood_mean(emissions, labels, attention_mask, pp["crf"])
    probs = jax.nn.softmax(emissions, axis=-1)                 # tiny; plain jnp
    return loss, logits, probs


# =====================================================================
# Deterministic parameter init (raw, PyTorch-like layout)
# =====================================================================
def init_params(cfg, seed=0):
    key = jax.random.PRNGKey(seed)

    def nxt():
        nonlocal key
        key, sub = jax.random.split(key)
        return sub

    def dense(shape, scale=0.02):
        return scale * jax.random.normal(nxt(), shape, jnp.float32)

    params = {}
    stages, cin = [], 3
    for cout in cfg.image_channels:
        stages.append({"w": dense((cout, cin, 3, 3), 0.1),
                       "b": jnp.zeros((cout,), jnp.float32)})
        cin = cout
    params["image"] = stages

    feat_in = sum(cfg.image_channels) * 4 // cfg.prompt_len
    prompt_out = cfg.num_prompt_chunks * 2 * cfg.hidden
    params["encoder_conv"] = {
        "w1": dense((feat_in, cfg.encoder_mid)), "b1": jnp.zeros((cfg.encoder_mid,), jnp.float32),
        "w2": dense((cfg.encoder_mid, prompt_out)), "b2": jnp.zeros((prompt_out,), jnp.float32),
    }
    params["gates"] = [{"w": dense((prompt_out, cfg.num_prompt_chunks)),
                        "b": jnp.zeros((cfg.num_prompt_chunks,), jnp.float32)}
                       for _ in range(cfg.num_layers)]

    H, I = cfg.hidden, cfg.intermediate
    layers = []
    for _ in range(cfg.num_layers):
        layers.append({
            "wq": dense((H, H)), "bq": jnp.zeros((H,), jnp.float32),
            "wk": dense((H, H)), "bk": jnp.zeros((H,), jnp.float32),
            "wv": dense((H, H)), "bv": jnp.zeros((H,), jnp.float32),
            "wo": dense((H, H)), "bo": jnp.zeros((H,), jnp.float32),
            "ln1_g": jnp.ones((H,), jnp.float32), "ln1_b": jnp.zeros((H,), jnp.float32),
            "wi": dense((H, I)), "bi": jnp.zeros((I,), jnp.float32),
            "wo2": dense((I, H)), "bo2": jnp.zeros((H,), jnp.float32),
            "ln2_g": jnp.ones((H,), jnp.float32), "ln2_b": jnp.zeros((H,), jnp.float32),
        })
    params["bert"] = {
        "word_emb": dense((cfg.vocab_size, H)),
        "pos_emb": dense((cfg.max_position, H)),
        "type_emb": dense((cfg.type_vocab, H)),
        "emb_ln_g": jnp.ones((H,), jnp.float32),
        "emb_ln_b": jnp.zeros((H,), jnp.float32),
        "layers": layers,
    }
    params["fc"] = {"w": dense((H, cfg.num_labels)),
                    "b": jnp.zeros((cfg.num_labels,), jnp.float32)}
    params["crf"] = {
        "start": jax.random.uniform(nxt(), (cfg.num_labels,), jnp.float32, -0.1, 0.1),
        "end": jax.random.uniform(nxt(), (cfg.num_labels,), jnp.float32, -0.1, 0.1),
        "trans": jax.random.uniform(nxt(), (cfg.num_labels, cfg.num_labels),
                                    jnp.float32, -0.1, 0.1),
    }
    return params


# =====================================================================
# One-time weight preparation (hoisted out of the traced forward)
# =====================================================================
def prepare_params(params, cfg):
    H, I, L = cfg.hidden, cfg.intermediate, cfg.num_layers
    two_h = 2 * H
    C = cfg.num_prompt_chunks
    pp = {}

    # conv stages: flatten to (Cin*9, Cout), pad K -> mult of 128, N -> 128, cast bf16
    stages = []
    for st in params["image"]:
        cout, cin = st["w"].shape[0], st["w"].shape[1]
        k = cin * 9
        kpad = _round_up(k, 128)
        npad = _round_up(cout, 128)
        wf = st["w"].reshape(cout, k).T
        wf = jnp.pad(wf, ((0, kpad - k), (0, npad - cout))).astype(jnp.bfloat16)
        bf = jnp.pad(st["b"], (0, npad - cout)).reshape(1, npad).astype(jnp.float32)
        stages.append({"w": wf, "b": bf})
    pp["image"] = stages

    # prompt path: encoder_conv MLP (pad feat_in -> 128) + stacked gate weights
    enc = params["encoder_conv"]
    fin = enc["w1"].shape[0]
    fpad = _round_up(fin, 128)
    gw = jnp.stack([g["w"] for g in params["gates"]], axis=0)            # (L, 4*2H, C)
    gw = (gw.reshape(L, cfg.prompt_len, two_h, C)
            .transpose(1, 2, 0, 3).reshape(cfg.prompt_len, two_h, L * C))
    gb = jnp.stack([g["b"] for g in params["gates"]], axis=0).reshape(1, L * C)
    pp["prompt"] = {
        "w1": jnp.pad(enc["w1"], ((0, fpad - fin), (0, 0))).astype(jnp.bfloat16),
        "b1": enc["b1"].reshape(1, -1).astype(jnp.float32),
        "w2": enc["w2"].astype(jnp.bfloat16),
        "b2": enc["b2"].reshape(1, -1).astype(jnp.float32),
        "gw": gw.astype(jnp.bfloat16),
        "gb": gb.astype(jnp.float32),
    }

    # BERT: stacked per-layer weights, pre-fused QKV, bf16 casts
    ls = params["bert"]["layers"]

    def stk(f, dt):
        return jnp.stack([f(lp) for lp in ls], axis=0).astype(dt)

    pp["bert"] = {
        "word_emb": params["bert"]["word_emb"],
        "pos_emb": params["bert"]["pos_emb"],
        "type_emb": params["bert"]["type_emb"],
        "emb_ln_g": params["bert"]["emb_ln_g"],
        "emb_ln_b": params["bert"]["emb_ln_b"],
        "wqkv": stk(lambda lp: jnp.concatenate([lp["wq"], lp["wk"], lp["wv"]], axis=1),
                    jnp.bfloat16),
        "bqkv": stk(lambda lp: jnp.concatenate([lp["bq"], lp["bk"], lp["bv"]]).reshape(1, 3 * H),
                    jnp.float32),
        "wo": stk(lambda lp: lp["wo"], jnp.bfloat16),
        "bo": stk(lambda lp: lp["bo"].reshape(1, H), jnp.float32),
        "ln1g": stk(lambda lp: lp["ln1_g"].reshape(1, H), jnp.float32),
        "ln1b": stk(lambda lp: lp["ln1_b"].reshape(1, H), jnp.float32),
        "wi": stk(lambda lp: lp["wi"], jnp.bfloat16),
        "bi": stk(lambda lp: lp["bi"].reshape(1, I), jnp.float32),
        "wo2": stk(lambda lp: lp["wo2"], jnp.bfloat16),
        "bo2": stk(lambda lp: lp["bo2"].reshape(1, H), jnp.float32),
        "ln2g": stk(lambda lp: lp["ln2_g"].reshape(1, H), jnp.float32),
        "ln2b": stk(lambda lp: lp["ln2_b"].reshape(1, H), jnp.float32),
    }

    npad = _round_up(cfg.num_labels, 128)
    pp["fc"] = {
        "w": jnp.pad(params["fc"]["w"],
                     ((0, 0), (0, npad - cfg.num_labels))).astype(jnp.bfloat16),
        "b": jnp.pad(params["fc"]["b"],
                     (0, npad - cfg.num_labels)).reshape(1, npad).astype(jnp.float32),
    }
    pp["crf"] = params["crf"]
    return pp


# =====================================================================
# Main
# =====================================================================
if __name__ == "__main__":
    cfg = Config()
    params = init_params(cfg, seed=0)
    pp = prepare_params(params, cfg)        # one-time weight prep (hoisted out of forward)

    key = jax.random.PRNGKey(0)
    k1, k2, k3, k4 = jax.random.split(key, 4)
    input_ids = jax.random.randint(k1, (cfg.batch, cfg.seq_len), 0, cfg.vocab_size, dtype=jnp.int32)
    attention_mask = jnp.ones((cfg.batch, cfg.seq_len), dtype=jnp.int32)
    attention_mask = attention_mask.at[1, cfg.seq_len - 2:].set(0)   # exercise CRF masking
    token_type_ids = jnp.zeros((cfg.batch, cfg.seq_len), dtype=jnp.int32)
    labels = jax.random.randint(k2, (cfg.batch, cfg.seq_len), 0, cfg.num_labels, dtype=jnp.int32)
    images = jax.random.normal(k3, (cfg.batch, 3, cfg.img_size, cfg.img_size), jnp.float32)
    aux_imgs = jax.random.normal(k4, (cfg.batch, cfg.num_aux, 3, cfg.img_size, cfg.img_size),
                                 jnp.float32)

    forward_jit = jax.jit(functools.partial(hmnet_ner_forward, cfg=cfg))
    loss, logits, probs = forward_jit(pp, input_ids, attention_mask, token_type_ids,
                                      labels, images, aux_imgs)
    jax.block_until_ready((loss, logits, probs))
    print("KERNEL_OK")
</pallas_src>

<mosaic_0001>
module attributes {stable_mosaic.version = 11 : i64} {
  func.func @_conv_mm_kernel(%arg0: i32, %arg1: memref<1024x128xbf16, #tpu.memory_space<vmem>>, %arg2: memref<128x128xbf16, #tpu.memory_space<vmem>>, %arg3: memref<1x128xf32, #tpu.memory_space<vmem>>, %arg4: memref<1024x128xf32, #tpu.memory_space<vmem>>) attributes {dimension_semantics = [#tpu.dimension_semantics<parallel>], iteration_bounds = array<i64: 2>, scalar_prefetch = 0 : i64, scratch_operands = 0 : i64, tpu.core_type = #tpu.core_type<tc>, window_params = [{transform_indices = @transform_0, window_bounds = array<i64: 1024, 128>}, {pipeline_mode = #tpu.pipeline_mode<synchronous>, transform_indices = @transform_1, window_bounds = array<i64: 128, 128>}, {pipeline_mode = #tpu.pipeline_mode<synchronous>, transform_indices = @transform_2, window_bounds = array<i64: 1, 128>}, {transform_indices = @transform_3, window_bounds = array<i64: 1024, 128>}]} {
    %c0 = arith.constant 0 : index
    %c0_0 = arith.constant 0 : index
    %0 = vector.load %arg1[%c0, %c0_0] : memref<1024x128xbf16, #tpu.memory_space<vmem>>, vector<1024x128xbf16>
    %c0_1 = arith.constant 0 : index
    %c0_2 = arith.constant 0 : index
    %1 = vector.load %arg2[%c0_1, %c0_2] : memref<128x128xbf16, #tpu.memory_space<vmem>>, vector<128x128xbf16>
    %cst = arith.constant dense<0.000000e+00> : vector<1024x128xf32>
    %2 = tpu.matmul %0, %1, %cst {dimension_numbers = #tpu.dot_dimension_numbers<[1], [0], [0], [1], [0, 0, 1, 1], [], []>} : vector<1024x128xbf16>, vector<128x128xbf16>, vector<1024x128xf32> -> vector<1024x128xf32>
    %c0_3 = arith.constant 0 : index
    %c0_4 = arith.constant 0 : index
    %3 = vector.load %arg3[%c0_3, %c0_4] : memref<1x128xf32, #tpu.memory_space<vmem>>, vector<1x128xf32>
    %4 = vector.broadcast %3 : vector<1x128xf32> to vector<1024x128xf32>
    %5 = arith.addf %2, %4 : vector<1024x128xf32>
    %cst_5 = arith.constant 0.000000e+00 : f32
    %6 = vector.broadcast %cst_5 : f32 to vector<1024x128xf32>
    %7 = arith.maximumf %5, %6 : vector<1024x128xf32>
    %c0_6 = arith.constant 0 : index
    %c0_7 = arith.constant 0 : index
    %8 = vector.load %arg4[%c0_6, %c0_7] : memref<1024x128xf32, #tpu.memory_space<vmem>>, vector<1024x128xf32>
    tpu.vector_store %arg4[%c0_6, %c0_7], %7 {strides = array<i32>} : memref<1024x128xf32, #tpu.memory_space<vmem>>, vector<1024x128xf32>,
    return
  }
  func.func @transform_0(%arg0: i32) -> (i32, i32) {
    %c0_i32 = arith.constant 0 : i32
    %c0_i32_0 = arith.constant 0 : i32
    return %arg0, %c0_i32 : i32, i32
  }
  func.func @transform_1(%arg0: i32) -> (i32, i32) {
    %c0_i32 = arith.constant 0 : i32
    %c0_i32_0 = arith.constant 0 : i32
    %c0_i32_1 = arith.constant 0 : i32
    return %c0_i32, %c0_i32_0 : i32, i32
  }
  func.func @transform_2(%arg0: i32) -> (i32, i32) {
    %c0_i32 = arith.constant 0 : i32
    %c0_i32_0 = arith.constant 0 : i32
    %c0_i32_1 = arith.constant 0 : i32
    return %c0_i32, %c0_i32_0 : i32, i32
  }
  func.func @transform_3(%arg0: i32) -> (i32, i32) {
    %c0_i32 = arith.constant 0 : i32
    %c0_i32_0 = arith.constant 0 : i32
    return %arg0, %c0_i32 : i32, i32
  }
}

module attributes {stable_mosaic.version = 11 : i64} {
  func.func @_conv_mm_kernel(%arg0: i32, %arg1: memref<512x128xbf16, #tpu.memory_space<vmem>>, %arg2: memref<128x128xbf16, #tpu.memory_space<vmem>>, %arg3: memref<1x128xf32, #tpu.memory_space<vmem>>, %arg4: memref<512x128xf32, #tpu.memory_space<vmem>>) attributes {dimension_semantics = [#tpu.dimension_semantics<parallel>], iteration_bounds = array<i64: 1>, scalar_prefetch = 0 : i64, scratch_operands = 0 : i64, tpu.core_type = #tpu.core_type<tc>, window_params = [{transform_indices = @transform_0, window_bounds = array<i64: 512, 128>}, {pipeline_mode = #tpu.pipeline_mode<synchronous>, transform_indices = @transform_1, window_bounds = array<i64: 128, 128>}, {pipeline_mode = #tpu.pipeline_mode<synchronous>, transform_indices = @transform_2, window_bounds = array<i64: 1, 128>}, {transform_indices = @transform_3, window_bounds = array<i64: 512, 128>}]} {
    %c0 = arith.constant 0 : index
    %c0_0 = arith.constant 0 : index
    %0 = vector.load %arg1[%c0, %c0_0] : memref<512x128xbf16, #tpu.memory_space<vmem>>, vector<512x128xbf16>
    %c0_1 = arith.constant 0 : index
    %c0_2 = arith.constant 0 : index
    %1 = vector.load %arg2[%c0_1, %c0_2] : memref<128x128xbf16, #tpu.memory_space<vmem>>, vector<128x128xbf16>
    %cst = arith.constant dense<0.000000e+00> : vector<512x128xf32>
    %2 = tpu.matmul %0, %1, %cst {dimension_numbers = #tpu.dot_dimension_numbers<[1], [0], [0], [1], [0, 0, 1, 1], [], []>} : vector<512x128xbf16>, vector<128x128xbf16>, vector<512x128xf32> -> vector<512x128xf32>
    %c0_3 = arith.constant 0 : index
    %c0_4 = arith.constant 0 : index
    %3 = vector.load %arg3[%c0_3, %c0_4] : memref<1x128xf32, #tpu.memory_space<vmem>>, vector<1x128xf32>
    %4 = vector.broadcast %3 : vector<1x128xf32> to vector<512x128xf32>
    %5 = arith.addf %2, %4 : vector<512x128xf32>
    %cst_5 = arith.constant 0.000000e+00 : f32
    %6 = vector.broadcast %cst_5 : f32 to vector<512x128xf32>
    %7 = arith.maximumf %5, %6 : vector<512x128xf32>
    %c0_6 = arith.constant 0 : index
    %c0_7 = arith.constant 0 : index
    %8 = vector.load %arg4[%c0_6, %c0_7] : memref<512x128xf32, #tpu.memory_space<vmem>>, vector<512x128xf32>
    tpu.vector_store %arg4[%c0_6, %c0_7], %7 {strides = array<i32>} : memref<512x128xf32, #tpu.memory_space<vmem>>, vector<512x128xf32>,
    return
  }
  func.func @transform_0(%arg0: i32) -> (i32, i32) {
    %c0_i32 = arith.constant 0 : i32
    %c0_i32_0 = arith.constant 0 : i32
    return %arg0, %c0_i32 : i32, i32
  }
  func.func @transform_1(%arg0: i32) -> (i32, i32) {
    %c0_i32 = arith.constant 0 : i32
    %c0_i32_0 = arith.constant 0 : i32
    %c0_i32_1 = arith.constant 0 : i32
    return %c0_i32, %c0_i32_0 : i32, i32
  }
  func.func @transform_2(%arg0: i32) -> (i32, i32) {
    %c0_i32 = arith.constant 0 : i32
    %c0_i32_0 = arith.constant 0 : i32
    %c0_i32_1 = arith.constant 0 : i32
    return %c0_i32, %c0_i32_0 : i32, i32
  }
  func.func @transform_3(%arg0: i32) -> (i32, i32) {
    %c0_i32 = arith.constant 0 : i32
    %c0_i32_0 = arith.constant 0 : i32
    return %arg0, %c0_i32 : i32, i32
  }
}

module attributes {stable_mosaic.version = 11 : i64} {
  func.func @_conv_mm_kernel(%arg0: i32, %arg1: memref<128x256xbf16, #tpu.memory_space<vmem>>, %arg2: memref<256x128xbf16, #tpu.memory_space<vmem>>, %arg3: memref<1x128xf32, #tpu.memory_space<vmem>>, %arg4: memref<128x128xf32, #tpu.memory_space<vmem>>) attributes {dimension_semantics = [#tpu.dimension_semantics<parallel>], iteration_bounds = array<i64: 1>, scalar_prefetch = 0 : i64, scratch_operands = 0 : i64, tpu.core_type = #tpu.core_type<tc>, window_params = [{transform_indices = @transform_0, window_bounds = array<i64: 128, 256>}, {pipeline_mode = #tpu.pipeline_mode<synchronous>, transform_indices = @transform_1, window_bounds = array<i64: 256, 128>}, {pipeline_mode = #tpu.pipeline_mode<synchronous>, transform_indices = @transform_2, window_bounds = array<i64: 1, 128>}, {transform_indices = @transform_3, window_bounds = array<i64: 128, 128>}]} {
    %c0 = arith.constant 0 : index
    %c0_0 = arith.constant 0 : index
    %0 = vector.load %arg1[%c0, %c0_0] : memref<128x256xbf16, #tpu.memory_space<vmem>>, vector<128x256xbf16>
    %c0_1 = arith.constant 0 : index
    %c0_2 = arith.constant 0 : index
    %1 = vector.load %arg2[%c0_1, %c0_2] : memref<256x128xbf16, #tpu.memory_space<vmem>>, vector<256x128xbf16>
    %cst = arith.constant dense<0.000000e+00> : vector<128x128xf32>
    %2 = tpu.matmul %0, %1, %cst {dimension_numbers = #tpu.dot_dimension_numbers<[1], [0], [0], [1], [0, 0, 1, 1], [], []>} : vector<128x256xbf16>, vector<256x128xbf16>, vector<128x128xf32> -> vector<128x128xf32>
    %c0_3 = arith.constant 0 : index
    %c0_4 = arith.constant 0 : index
    %3 = vector.load %arg3[%c0_3, %c0_4] : memref<1x128xf32, #tpu.memory_space<vmem>>, vector<1x128xf32>
    %4 = vector.broadcast %3 : vector<1x128xf32> to vector<128x128xf32>
    %5 = arith.addf %2, %4 : vector<128x128xf32>
    %cst_5 = arith.constant 0.000000e+00 : f32
    %6 = vector.broadcast %cst_5 : f32 to vector<128x128xf32>
    %7 = arith.maximumf %5, %6 : vector<128x128xf32>
    %c0_6 = arith.constant 0 : index
    %c0_7 = arith.constant 0 : index
    %8 = vector.load %arg4[%c0_6, %c0_7] : memref<128x128xf32, #tpu.memory_space<vmem>>, vector<128x128xf32>
    tpu.vector_store %arg4[%c0_6, %c0_7], %7 {strides = array<i32>} : memref<128x128xf32, #tpu.memory_space<vmem>>, vector<128x128xf32>,
    return
  }
  func.func @transform_0(%arg0: i32) -> (i32, i32) {
    %c0_i32 = arith.constant 0 : i32
    %c0_i32_0 = arith.constant 0 : i32
    return %arg0, %c0_i32 : i32, i32
  }
  func.func @transform_1(%arg0: i32) -> (i32, i32) {
    %c0_i32 = arith.constant 0 : i32
    %c0_i32_0 = arith.constant 0 : i32
    %c0_i32_1 = arith.constant 0 : i32
    return %c0_i32, %c0_i32_0 : i32, i32
  }
  func.func @transform_2(%arg0: i32) -> (i32, i32) {
    %c0_i32 = arith.constant 0 : i32
    %c0_i32_0 = arith.constant 0 : i32
    %c0_i32_1 = arith.constant 0 : i32
    return %c0_i32, %c0_i32_0 : i32, i32
  }
  func.func @transform_3(%arg0: i32) -> (i32, i32) {
    %c0_i32 = arith.constant 0 : i32
    %c0_i32_0 = arith.constant 0 : i32
    return %arg0, %c0_i32 : i32, i32
  }
}

module attributes {stable_mosaic.version = 11 : i64} {
  func.func @_conv_mm_kernel(%arg0: i32, %arg1: memref<32x384xbf16, #tpu.memory_space<vmem>>, %arg2: memref<384x128xbf16, #tpu.memory_space<vmem>>, %arg3: memref<1x128xf32, #tpu.memory_space<vmem>>, %arg4: memref<32x128xf32, #tpu.memory_space<vmem>>) attributes {dimension_semantics = [#tpu.dimension_semantics<parallel>], iteration_bounds = array<i64: 1>, scalar_prefetch = 0 : i64, scratch_operands = 0 : i64, tpu.core_type = #tpu.core_type<tc>, window_params = [{transform_indices = @transform_0, window_bounds = array<i64: 32, 384>}, {pipeline_mode = #tpu.pipeline_mode<synchronous>, transform_indices = @transform_1, window_bounds = array<i64: 384, 128>}, {pipeline_mode = #tpu.pipeline_mode<synchronous>, transform_indices = @transform_2, window_bounds = array<i64: 1, 128>}, {transform_indices = @transform_3, window_bounds = array<i64: 32, 128>}]} {
    %c0 = arith.constant 0 : index
    %c0_0 = arith.constant 0 : index
    %0 = vector.load %arg1[%c0, %c0_0] : memref<32x384xbf16, #tpu.memory_space<vmem>>, vector<32x384xbf16>
    %c0_1 = arith.constant 0 : index
    %c0_2 = arith.constant 0 : index
    %1 = vector.load %arg2[%c0_1, %c0_2] : memref<384x128xbf16, #tpu.memory_space<vmem>>, vector<384x128xbf16>
    %cst = arith.constant dense<0.000000e+00> : vector<32x128xf32>
    %2 = tpu.matmul %0, %1, %cst {dimension_numbers = #tpu.dot_dimension_numbers<[1], [0], [0], [1], [0, 0, 1, 1], [], []>} : vector<32x384xbf16>, vector<384x128xbf16>, vector<32x128xf32> -> vector<32x128xf32>
    %c0_3 = arith.constant 0 : index
    %c0_4 = arith.constant 0 : index
    %3 = vector.load %arg3[%c0_3, %c0_4] : memref<1x128xf32, #tpu.memory_space<vmem>>, vector<1x128xf32>
    %4 = vector.broadcast %3 : vector<1x128xf32> to vector<32x128xf32>
    %5 = arith.addf %2, %4 : vector<32x128xf32>
    %cst_5 = arith.constant 0.000000e+00 : f32
    %6 = vector.broadcast %cst_5 : f32 to vector<32x128xf32>
    %7 = arith.maximumf %5, %6 : vector<32x128xf32>
    %c0_6 = arith.constant 0 : index
    %c0_7 = arith.constant 0 : index
    %8 = vector.load %arg4[%c0_6, %c0_7] : memref<32x128xf32, #tpu.memory_space<vmem>>, vector<32x128xf32>
    tpu.vector_store %arg4[%c0_6, %c0_7], %7 {strides = array<i32>} : memref<32x128xf32, #tpu.memory_space<vmem>>, vector<32x128xf32>,
    return
  }
  func.func @transform_0(%arg0: i32) -> (i32, i32) {
    %c0_i32 = arith.constant 0 : i32
    %c0_i32_0 = arith.constant 0 : i32
    return %arg0, %c0_i32 : i32, i32
  }
  func.func @transform_1(%arg0: i32) -> (i32, i32) {
    %c0_i32 = arith.constant 0 : i32
    %c0_i32_0 = arith.constant 0 : i32
    %c0_i32_1 = arith.constant 0 : i32
    return %c0_i32, %c0_i32_0 : i32, i32
  }
  func.func @transform_2(%arg0: i32) -> (i32, i32) {
    %c0_i32 = arith.constant 0 : i32
    %c0_i32_0 = arith.constant 0 : i32
    %c0_i32_1 = arith.constant 0 : i32
    return %c0_i32, %c0_i32_0 : i32, i32
  }
  func.func @transform_3(%arg0: i32) -> (i32, i32) {
    %c0_i32 = arith.constant 0 : i32
    %c0_i32_0 = arith.constant 0 : i32
    return %arg0, %c0_i32 : i32, i32
  }
}

module attributes {stable_mosaic.version = 11 : i64} {
  func.func @_prompt_kernel(%arg0: memref<32x128xbf16, #tpu.memory_space<vmem>>, %arg1: memref<128x64xbf16, #tpu.memory_space<vmem>>, %arg2: memref<1x64xf32, #tpu.memory_space<vmem>>, %arg3: memref<64x512xbf16, #tpu.memory_space<vmem>>, %arg4: memref<1x512xf32, #tpu.memory_space<vmem>>, %arg5: memref<4x128x8xbf16, #tpu.memory_space<vmem>>, %arg6: memref<1x8xf32, #tpu.memory_space<vmem>>, %arg7: memref<2x4x8x128xf32, #tpu.memory_space<vmem>>) attributes {dimension_semantics = [], scalar_prefetch = 0 : i64, scratch_operands = 0 : i64, tpu.core_type = #tpu.core_type<tc>} {
    %c0 = arith.constant 0 : index
    %c0_0 = arith.constant 0 : index
    %0 = vector.load %arg0[%c0, %c0_0] : memref<32x128xbf16, #tpu.memory_space<vmem>>, vector<32x128xbf16>
    %c0_1 = arith.constant 0 : index
    %c0_2 = arith.constant 0 : index
    %1 = vector.load %arg1[%c0_1, %c0_2] : memref<128x64xbf16, #tpu.memory_space<vmem>>, vector<128x64xbf16>
    %cst = arith.constant dense<0.000000e+00> : vector<32x64xf32>
    %2 = tpu.matmul %0, %1, %cst {dimension_numbers = #tpu.dot_dimension_numbers<[1], [0], [0], [1], [0, 0, 1, 1], [], []>} : vector<32x128xbf16>, vector<128x64xbf16>, vector<32x64xf32> -> vector<32x64xf32>
    %c0_3 = arith.constant 0 : index
    %c0_4 = arith.constant 0 : index
    %3 = vector.load %arg2[%c0_3, %c0_4] : memref<1x64xf32, #tpu.memory_space<vmem>>, vector<1x64xf32>
    %4 = vector.broadcast %3 : vector<1x64xf32> to vector<32x64xf32>
    %5 = arith.addf %2, %4 : vector<32x64xf32>
    %6 = math.tanh %5 : vector<32x64xf32>
    %7 = arith.truncf %6 : vector<32x64xf32> to vector<32x64xbf16>
    %c0_5 = arith.constant 0 : index
    %c0_6 = arith.constant 0 : index
    %8 = vector.load %arg3[%c0_5, %c0_6] : memref<64x512xbf16, #tpu.memory_space<vmem>>, vector<64x512xbf16>
    %cst_7 = arith.constant dense<0.000000e+00> : vector<32x512xf32>
    %9 = tpu.matmul %7, %8, %cst_7 {dimension_numbers = #tpu.dot_dimension_numbers<[1], [0], [0], [1], [0, 0, 1, 1], [], []>} : vector<32x64xbf16>, vector<64x512xbf16>, vector<32x512xf32> -> vector<32x512xf32>
    %c0_8 = arith.constant 0 : index
    %c0_9 = arith.constant 0 : index
    %10 = vector.load %arg4[%c0_8, %c0_9] : memref<1x512xf32, #tpu.memory_space<vmem>>, vector<1x512xf32>
    %11 = vector.broadcast %10 : vector<1x512xf32> to vector<32x512xf32>
    %12 = arith.addf %9, %11 : vector<32x512xf32>
    %13 = vector.extract_strided_slice %12 {offsets = [0, 0], sizes = [32, 128], strides = [1, 1]} : vector<32x512xf32> to vector<32x128xf32>
    %14 = vector.extract_strided_slice %12 {offsets = [0, 128], sizes = [32, 128], strides = [1, 1]} : vector<32x512xf32> to vector<32x128xf32>
    %15 = arith.addf %13, %14 : vector<32x128xf32>
    %16 = vector.extract_strided_slice %12 {offsets = [0, 256], sizes = [32, 128], strides = [1, 1]} : vector<32x512xf32> to vector<32x128xf32>
    %17 = arith.addf %15, %16 : vector<32x128xf32>
    %18 = vector.extract_strided_slice %12 {offsets = [0, 384], sizes = [32, 128], strides = [1, 1]} : vector<32x512xf32> to vector<32x128xf32>
    %19 = arith.addf %17, %18 : vector<32x128xf32>
    %cst_10 = arith.constant 2.500000e-01 : f32
    %20 = vector.broadcast %cst_10 : f32 to vector<32x128xf32>
    %21 = arith.mulf %19, %20 : vector<32x128xf32>
    %cst_11 = arith.constant 0.000000e+00 : f32
    %22 = vector.broadcast %cst_11 : f32 to vector<8x8xf32>
    %23 = vector.extract_strided_slice %21 {offsets = [0, 0], sizes = [8, 128], strides = [1, 1]} : vector<32x128xf32> to vector<8x128xf32>
    %24 = arith.truncf %23 : vector<8x128xf32> to vector<8x128xbf16>
    %c0_12 = arith.constant 0 : index
    %c0_13 = arith.constant 0 : index
    %c0_14 = arith.constant 0 : index
    %25 = vector.load %arg5[%c0_12, %c0_13, %c0_14] : memref<4x128x8xbf16, #tpu.memory_space<vmem>>, vector<1x128x8xbf16>
    %26 = vector.shape_cast %25 : vector<1x128x8xbf16> to vector<128x8xbf16>
    %cst_15 = arith.constant dense<0.000000e+00> : vector<8x8xf32>
    %27 = tpu.matmul %24, %26, %cst_15 {dimension_numbers = #tpu.dot_dimension_numbers<[1], [0], [0], [1], [0, 0, 1, 1], [], []>} : vector<8x128xbf16>, vector<128x8xbf16>, vector<8x8xf32> -> vector<8x8xf32>
    %28 = arith.addf %22, %27 : vector<8x8xf32>
    %29 = vector.extract_strided_slice %21 {offsets = [8, 0], sizes = [8, 128], strides = [1, 1]} : vector<32x128xf32> to vector<8x128xf32>
    %30 = arith.truncf %29 : vector<8x128xf32> to vector<8x128xbf16>
    %c1 = arith.constant 1 : index
    %c0_16 = arith.constant 0 : index
    %c0_17 = arith.constant 0 : index
    %31 = vector.load %arg5[%c1, %c0_16, %c0_17] : memref<4x128x8xbf16, #tpu.memory_space<vmem>>, vector<1x128x8xbf16>
    %32 = vector.shape_cast %31 : vector<1x128x8xbf16> to vector<128x8xbf16>
    %cst_18 = arith.constant dense<0.000000e+00> : vector<8x8xf32>
    %33 = tpu.matmul %30, %32, %cst_18 {dimension_numbers = #tpu.dot_dimension_numbers<[1], [0], [0], [1], [0, 0, 1, 1], [], []>} : vector<8x128xbf16>, vector<128x8xbf16>, vector<8x8xf32> -> vector<8x8xf32>
    %34 = arith.addf %28, %33 : vector<8x8xf32>
    %35 = vector.extract_strided_slice %21 {offsets = [16, 0], sizes = [8, 128], strides = [1, 1]} : vector<32x128xf32> to vector<8x128xf32>
    %36 = arith.truncf %35 : vector<8x128xf32> to vector<8x128xbf16>
    %c2 = arith.constant 2 : index
    %c0_19 = arith.constant 0 : index
    %c0_20 = arith.constant 0 : index
    %37 = vector.load %arg5[%c2, %c0_19, %c0_20] : memref<4x128x8xbf16, #tpu.memory_space<vmem>>, vector<1x128x8xbf16>
    %38 = vector.shape_cast %37 : vector<1x128x8xbf16> to vector<128x8xbf16>
    %cst_21 = arith.constant dense<0.000000e+00> : vector<8x8xf32>
    %39 = tpu.matmul %36, %38, %cst_21 {dimension_numbers = #tpu.dot_dimension_numbers<[1], [0], [0], [1], [0, 0, 1, 1], [], []>} : vector<8x128xbf16>, vector<128x8xbf16>, vector<8x8xf32> -> vector<8x8xf32>
    %40 = arith.addf %34, %39 : vector<8x8xf32>
    %41 = vector.extract_strided_slice %21 {offsets = [24, 0], sizes = [8, 128], strides = [1, 1]} : vector<32x128xf32> to vector<8x128xf32>
    %42 = arith.truncf %41 : vector<8x128xf32> to vector<8x128xbf16>
    %c3 = arith.constant 3 : index
    %c0_22 = arith.constant 0 : index
    %c0_23 = arith.constant 0 : index
    %43 = vector.load %arg5[%c3, %c0_22, %c0_23] : memref<4x128x8xbf16, #tpu.memory_space<vmem>>, vector<1x128x8xbf16>
    %44 = vector.shape_cast %43 : vector<1x128x8xbf16> to vector<128x8xbf16>
    %cst_24 = arith.constant dense<0.000000e+00> : vector<8x8xf32>
    %45 = tpu.matmul %42, %44, %cst_24 {dimension_numbers = #tpu.dot_dimension_numbers<[1], [0], [0], [1], [0, 0, 1, 1], [], []>} : vector<8x128xbf16>, vector<128x8xbf16>, vector<8x8xf32> -> vector<8x8xf32>
    %46 = arith.addf %40, %45 : vector<8x8xf32>
    %c0_25 = arith.constant 0 : index
    %c0_26 = arith.constant 0 : index
    %47 = vector.load %arg6[%c0_25, %c0_26] : memref<1x8xf32, #tpu.memory_space<vmem>>, vector<1x8xf32>
    %48 = vector.broadcast %47 : vector<1x8xf32> to vector<8x8xf32>
    %49 = arith.addf %46, %48 : vector<8x8xf32>
    %cst_27 = arith.constant 0.000000e+00 : f32
    %50 = vector.broadcast %cst_27 : f32 to vector<8x8xf32>
    %51 = arith.cmpf oge, %49, %50 : vector<8x8xf32>
    %cst_28 = arith.constant 0.00999999977 : f32
    %52 = vector.broadcast %cst_28 : f32 to vector<8x8xf32>
    %53 = arith.mulf %52, %49 : vector<8x8xf32>
    %54 = arith.select %51, %49, %53 : vector<8x8xi1>, vector<8x8xf32>
    %55 = vector.extract_strided_slice %54 {offsets = [0, 0], sizes = [8, 4], strides = [1, 1]} : vector<8x8xf32> to vector<8x4xf32>
    %cst_29 = arith.constant dense<0xFF800000> : vector<8xf32>
    %56 = vector.multi_reduction <maximumf>, %55, %cst_29 [1] : vector<8x4xf32> to vector<8xf32>
    %57 = vector.shape_cast %56 : vector<8xf32> to vector<8x1xf32>
    %58 = vector.broadcast %57 : vector<8x1xf32> to vector<8x4xf32>
    %59 = arith.subf %55, %58 : vector<8x4xf32>
    %60 = math.exp %59 : vector<8x4xf32>
    %cst_30 = arith.constant dense<0.000000e+00> : vector<8xf32>
    %61 = vector.multi_reduction <add>, %60, %cst_30 [1] : vector<8x4xf32> to vector<8xf32>
    %62 = vector.shape_cast %61 : vector<8xf32> to vector<8x1xf32>
    %63 = tpu.reciprocal %62 {approx = true} : vector<8x1xf32> -> vector<8x1xf32>
    %64 = vector.broadcast %63 : vector<8x1xf32> to vector<8x4xf32>
    %65 = arith.mulf %60, %64 : vector<8x4xf32>
    %66 = vector.extract_strided_slice %12 {offsets = [0, 0], sizes = [8, 512], strides = [1, 1]} : vector<32x512xf32> to vector<8x512xf32>
    %67 = vector.extract_strided_slice %65 {offsets = [0, 0], sizes = [8, 1], strides = [1, 1]} : vector<8x4xf32> to vector<8x1xf32>
    %68 = vector.extract_strided_slice %66 {offsets = [0, 0], sizes = [8, 128], strides = [1, 1]} : vector<8x512xf32> to vector<8x128xf32>
    %69 = vector.broadcast %67 : vector<8x1xf32> to vector<8x128xf32>
    %70 = arith.mulf %69, %68 : vector<8x128xf32>
    %71 = vector.extract_strided_slice %65 {offsets = [0, 1], sizes = [8, 1], strides = [1, 1]} : vector<8x4xf32> to vector<8x1xf32>
    %72 = vector.extract_strided_slice %66 {offsets = [0, 128], sizes = [8, 128], strides = [1, 1]} : vector<8x512xf32> to vector<8x128xf32>
    %73 = vector.broadcast %71 : vector<8x1xf32> to vector<8x128xf32>
    %74 = arith.mulf %73, %72 : vector<8x128xf32>
    %75 = arith.addf %70, %74 : vector<8x128xf32>
    %76 = vector.extract_strided_slice %65 {offsets = [0, 2], sizes = [8, 1], strides = [1, 1]} : vector<8x4xf32> to vector<8x1xf32>
    %77 = vector.extract_strided_slice %66 {offsets = [0, 256], sizes = [8, 128], strides = [1, 1]} : vector<8x512xf32> to vector<8x128xf32>
    %78 = vector.broadcast %76 : vector<8x1xf32> to vector<8x128xf32>
    %79 = arith.mulf %78, %77 : vector<8x128xf32>
    %80 = arith.addf %75, %79 : vector<8x128xf32>
    %81 = vector.extract_strided_slice %65 {offsets = [0, 3], sizes = [8, 1], strides = [1, 1]} : vector<8x4xf32> to vector<8x1xf32>
    %82 = vector.extract_strided_slice %66 {offsets = [0, 384], sizes = [8, 128], strides = [1, 1]} : vector<8x512xf32> to vector<8x128xf32>
    %83 = vector.broadcast %81 : vector<8x1xf32> to vector<8x128xf32>
    %84 = arith.mulf %83, %82 : vector<8x128xf32>
    %85 = arith.addf %80, %84 : vector<8x128xf32>
    %c0_31 = arith.constant 0 : index
    %c0_32 = arith.constant 0 : index
    %c0_33 = arith.constant 0 : index
    %c0_34 = arith.constant 0 : index
    %86 = vector.load %arg7[%c0_31, %c0_32, %c0_33, %c0_34] : memref<2x4x8x128xf32, #tpu.memory_space<vmem>>, vector<1x1x8x128xf32>
    %87 = vector.shape_cast %86 : vector<1x1x8x128xf32> to vector<8x128xf32>
    %88 = vector.shape_cast %85 : vector<8x128xf32> to vector<1x1x8x128xf32>
    tpu.vector_store %arg7[%c0_31, %c0_32, %c0_33, %c0_34], %88 {strides = array<i32>} : memref<2x4x8x128xf32, #tpu.memory_space<vmem>>, vector<1x1x8x128xf32>,
    %89 = vector.extract_strided_slice %12 {offsets = [8, 0], sizes = [8, 512], strides = [1, 1]} : vector<32x512xf32> to vector<8x512xf32>
    %90 = vector.extract_strided_slice %65 {offsets = [0, 0], sizes = [8, 1], strides = [1, 1]} : vector<8x4xf32> to vector<8x1xf32>
    %91 = vector.extract_strided_slice %89 {offsets = [0, 0], sizes = [8, 128], strides = [1, 1]} : vector<8x512xf32> to vector<8x128xf32>
    %92 = vector.broadcast %90 : vector<8x1xf32> to vector<8x128xf32>
    %93 = arith.mulf %92, %91 : vector<8x128xf32>
    %94 = vector.extract_strided_slice %65 {offsets = [0, 1], sizes = [8, 1], strides = [1, 1]} : vector<8x4xf32> to vector<8x1xf32>
    %95 = vector.extract_strided_slice %89 {offsets = [0, 128], sizes = [8, 128], strides = [1, 1]} : vector<8x512xf32> to vector<8x128xf32>
    %96 = vector.broadcast %94 : vector<8x1xf32> to vector<8x128xf32>
    %97 = arith.mulf %96, %95 : vector<8x128xf32>
    %98 = arith.addf %93, %97 : vector<8x128xf32>
    %99 = vector.extract_strided_slice %65 {offsets = [0, 2], sizes = [8, 1], strides = [1, 1]} : vector<8x4xf32> to vector<8x1xf32>
    %100 = vector.extract_strided_slice %89 {offsets = [0, 256], sizes = [8, 128], strides = [1, 1]} : vector<8x512xf32> to vector<8x128xf32>
    %101 = vector.broadcast %99 : vector<8x1xf32> to vector<8x128xf32>
    %102 = arith.mulf %101, %100 : vector<8x128xf32>
    %103 = arith.addf %98, %102 : vector<8x128xf32>
    %104 = vector.extract_strided_slice %65 {offsets = [0, 3], sizes = [8, 1], strides = [1, 1]} : vector<8x4xf32> to vector<8x1xf32>
    %105 = vector.extract_strided_slice %89 {offsets = [0, 384], sizes = [8, 128], strides = [1, 1]} : vector<8x512xf32> to vector<8x128xf32>
    %106 = vector.broadcast %104 : vector<8x1xf32> to vector<8x128xf32>
    %107 = arith.mulf %106, %105 : vector<8x128xf32>
    %108 = arith.addf %103, %107 : vector<8x128xf32>
    %c0_35 = arith.constant 0 : index
    %c1_36 = arith.constant 1 : index
    %c0_37 = arith.constant 0 : index
    %c0_38 = arith.constant 0 : index
    %109 = vector.load %arg7[%c0_35, %c1_36, %c0_37, %c0_38] : memref<2x4x8x128xf32, #tpu.memory_space<vmem>>, vector<1x1x8x128xf32>
    %110 = vector.shape_cast %109 : vector<1x1x8x128xf32> to vector<8x128xf32>
    %111 = vector.shape_cast %108 : vector<8x128xf32> to vector<1x1x8x128xf32>
    tpu.vector_store %arg7[%c0_35, %c1_36, %c0_37, %c0_38], %111 {strides = array<i32>} : memref<2x4x8x128xf32, #tpu.memory_space<vmem>>, vector<1x1x8x128xf32>,
    %112 = vector.extract_strided_slice %12 {offsets = [16, 0], sizes = [8, 512], strides = [1, 1]} : vector<32x512xf32> to vector<8x512xf32>
    %113 = vector.extract_strided_slice %65 {offsets = [0, 0], sizes = [8, 1], strides = [1, 1]} : vector<8x4xf32> to vector<8x1xf32>
    %114 = vector.extract_strided_slice %112 {offsets = [0, 0], sizes = [8, 128], strides = [1, 1]} : vector<8x512xf32> to vector<8x128xf32>
    %115 = vector.broadcast %113 : vector<8x1xf32> to vector<8x128xf32>
    %116 = arith.mulf %115, %114 : vector<8x128xf32>
    %117 = vector.extract_strided_slice %65 {offsets = [0, 1], sizes = [8, 1], strides = [1, 1]} : vector<8x4xf32> to vector<8x1xf32>
    %118 = vector.extract_strided_slice %112 {offsets = [0, 128], sizes = [8, 128], strides = [1, 1]} : vector<8x512xf32> to vector<8x128xf32>
    %119 = vector.broadcast %117 : vector<8x1xf32> to vector<8x128xf32>
    %120 = arith.mulf %119, %118 : vector<8x128xf32>
    %121 = arith.addf %116, %120 : vector<8x128xf32>
    %122 = vector.extract_strided_slice %65 {offsets = [0, 2], sizes = [8, 1], strides = [1, 1]} : vector<8x4xf32> to vector<8x1xf32>
    %123 = vector.extract_strided_slice %112 {offsets = [0, 256], sizes = [8, 128], strides = [1, 1]} : vector<8x512xf32> to vector<8x128xf32>
    %124 = vector.broadcast %122 : vector<8x1xf32> to vector<8x128xf32>
    %125 = arith.mulf %124, %123 : vector<8x128xf32>
    %126 = arith.addf %121, %125 : vector<8x128xf32>
    %127 = vector.extract_strided_slice %65 {offsets = [0, 3], sizes = [8, 1], strides = [1, 1]} : vector<8x4xf32> to vector<8x1xf32>
    %128 = vector.extract_strided_slice %112 {offsets = [0, 384], sizes = [8, 128], strides = [1, 1]} : vector<8x512xf32> to vector<8x128xf32>
    %129 = vector.broadcast %127 : vector<8x1xf32> to vector<8x128xf32>
    %130 = arith.mulf %129, %128 : vector<8x128xf32>
    %131 = arith.addf %126, %130 : vector<8x128xf32>
    %c0_39 = arith.constant 0 : index
    %c2_40 = arith.constant 2 : index
    %c0_41 = arith.constant 0 : index
    %c0_42 = arith.constant 0 : index
    %132 = vector.load %arg7[%c0_39, %c2_40, %c0_41, %c0_42] : memref<2x4x8x128xf32, #tpu.memory_space<vmem>>, vector<1x1x8x128xf32>
    %133 = vector.shape_cast %132 : vector<1x1x8x128xf32> to vector<8x128xf32>
    %134 = vector.shape_cast %131 : vector<8x128xf32> to vector<1x1x8x128xf32>
    tpu.vector_store %arg7[%c0_39, %c2_40, %c0_41, %c0_42], %134 {strides = array<i32>} : memref<2x4x8x128xf32, #tpu.memory_space<vmem>>, vector<1x1x8x128xf32>,
    %135 = vector.extract_strided_slice %12 {offsets = [24, 0], sizes = [8, 512], strides = [1, 1]} : vector<32x512xf32> to vector<8x512xf32>
    %136 = vector.extract_strided_slice %65 {offsets = [0, 0], sizes = [8, 1], strides = [1, 1]} : vector<8x4xf32> to vector<8x1xf32>
    %137 = vector.extract_strided_slice %135 {offsets = [0, 0], sizes = [8, 128], strides = [1, 1]} : vector<8x512xf32> to vector<8x128xf32>
    %138 = vector.broadcast %136 : vector<8x1xf32> to vector<8x128xf32>
    %139 = arith.mulf %138, %137 : vector<8x128xf32>
    %140 = vector.extract_strided_slice %65 {offsets = [0, 1], sizes = [8, 1], strides = [1, 1]} : vector<8x4xf32> to vector<8x1xf32>
    %141 = vector.extract_strided_slice %135 {offsets = [0, 128], sizes = [8, 128], strides = [1, 1]} : vector<8x512xf32> to vector<8x128xf32>
    %142 = vector.broadcast %140 : vector<8x1xf32> to vector<8x128xf32>
    %143 = arith.mulf %142, %141 : vector<8x128xf32>
    %144 = arith.addf %139, %143 : vector<8x128xf32>
    %145 = vector.extract_strided_slice %65 {offsets = [0, 2], sizes = [8, 1], strides = [1, 1]} : vector<8x4xf32> to vector<8x1xf32>
    %146 = vector.extract_strided_slice %135 {offsets = [0, 256], sizes = [8, 128], strides = [1, 1]} : vector<8x512xf32> to vector<8x128xf32>
    %147 = vector.broadcast %145 : vector<8x1xf32> to vector<8x128xf32>
    %148 = arith.mulf %147, %146 : vector<8x128xf32>
    %149 = arith.addf %144, %148 : vector<8x128xf32>
    %150 = vector.extract_strided_slice %65 {offsets = [0, 3], sizes = [8, 1], strides = [1, 1]} : vector<8x4xf32> to vector<8x1xf32>
    %151 = vector.extract_strided_slice %135 {offsets = [0, 384], sizes = [8, 128], strides = [1, 1]} : vector<8x512xf32> to vector<8x128xf32>
    %152 = vector.broadcast %150 : vector<8x1xf32> to vector<8x128xf32>
    %153 = arith.mulf %152, %151 : vector<8x128xf32>
    %154 = arith.addf %149, %153 : vector<8x128xf32>
    %c0_43 = arith.constant 0 : index
    %c3_44 = arith.constant 3 : index
    %c0_45 = arith.constant 0 : index
    %c0_46 = arith.constant 0 : index
    %155 = vector.load %arg7[%c0_43, %c3_44, %c0_45, %c0_46] : memref<2x4x8x128xf32, #tpu.memory_space<vmem>>, vector<1x1x8x128xf32>
    %156 = vector.shape_cast %155 : vector<1x1x8x128xf32> to vector<8x128xf32>
    %157 = vector.shape_cast %154 : vector<8x128xf32> to vector<1x1x8x128xf32>
    tpu.vector_store %arg7[%c0_43, %c3_44, %c0_45, %c0_46], %157 {strides = array<i32>} : memref<2x4x8x128xf32, #tpu.memory_space<vmem>>, vector<1x1x8x128xf32>,
    %158 = vector.extract_strided_slice %54 {offsets = [0, 4], sizes = [8, 4], strides = [1, 1]} : vector<8x8xf32> to vector<8x4xf32>
    %cst_47 = arith.constant dense<0xFF800000> : vector<8xf32>
    %159 = vector.multi_reduction <maximumf>, %158, %cst_47 [1] : vector<8x4xf32> to vector<8xf32>
    %160 = vector.shape_cast %159 : vector<8xf32> to vector<8x1xf32>
    %161 = vector.broadcast %160 : vector<8x1xf32> to vector<8x4xf32>
    %162 = arith.subf %158, %161 : vector<8x4xf32>
    %163 = math.exp %162 : vector<8x4xf32>
    %cst_48 = arith.constant dense<0.000000e+00> : vector<8xf32>
    %164 = vector.multi_reduction <add>, %163, %cst_48 [1] : vector<8x4xf32> to vector<8xf32>
    %165 = vector.shape_cast %164 : vector<8xf32> to vector<8x1xf32>
    %166 = tpu.reciprocal %165 {approx = true} : vector<8x1xf32> -> vector<8x1xf32>
    %167 = vector.broadcast %166 : vector<8x1xf32> to vector<8x4xf32>
    %168 = arith.mulf %163, %167 : vector<8x4xf32>
    %169 = vector.extract_strided_slice %12 {offsets = [0, 0], sizes = [8, 512], strides = [1, 1]} : vector<32x512xf32> to vector<8x512xf32>
    %170 = vector.extract_strided_slice %168 {offsets = [0, 0], sizes = [8, 1], strides = [1, 1]} : vector<8x4xf32> to vector<8x1xf32>
    %171 = vector.extract_strided_slice %169 {offsets = [0, 0], sizes = [8, 128], strides = [1, 1]} : vector<8x512xf32> to vector<8x128xf32>
    %172 = vector.broadcast %170 : vector<8x1xf32> to vector<8x128xf32>
    %173 = arith.mulf %172, %171 : vector<8x128xf32>
    %174 = vector.extract_strided_slice %168 {offsets = [0, 1], sizes = [8, 1], strides = [1, 1]} : vector<8x4xf32> to vector<8x1xf32>
    %175 = vector.extract_strided_slice %169 {offsets = [0, 128], sizes = [8, 128], strides = [1, 1]} : vector<8x512xf32> to vector<8x128xf32>
    %176 = vector.broadcast %174 : vector<8x1xf32> to vector<8x128xf32>
    %177 = arith.mulf %176, %175 : vector<8x128xf32>
    %178 = arith.addf %173, %177 : vector<8x128xf32>
    %179 = vector.extract_strided_slice %168 {offsets = [0, 2], sizes = [8, 1], strides = [1, 1]} : vector<8x4xf32> to vector<8x1xf32>
    %180 = vector.extract_strided_slice %169 {offsets = [0, 256], sizes = [8, 128], strides = [1, 1]} : vector<8x512xf32> to vector<8x128xf32>
    %181 = vector.broadcast %179 : vector<8x1xf32> to vector<8x128xf32>
    %182 = arith.mulf %181, %180 : vector<8x128xf32>
    %183 = arith.addf %178, %182 : vector<8x128xf32>
    %184 = vector.extract_strided_slice %168 {offsets = [0, 3], sizes = [8, 1], strides = [1, 1]} : vector<8x4xf32> to vector<8x1xf32>
    %185 = vector.extract_strided_slice %169 {offsets = [0, 384], sizes = [8, 128], strides = [1, 1]} : vector<8x512xf32> to vector<8x128xf32>
    %186 = vector.broadcast %184 : vector<8x1xf32> to vector<8x128xf32>
    %187 = arith.mulf %186, %185 : vector<8x128xf32>
    %188 = arith.addf %183, %187 : vector<8x128xf32>
    %c1_49 = arith.constant 1 : index
    %c0_50 = arith.constant 0 : index
    %c0_51 = arith.constant 0 : index
    %c0_52 = arith.constant 0 : index
    %189 = vector.load %arg7[%c1_49, %c0_50, %c0_51, %c0_52] : memref<2x4x8x128xf32, #tpu.memory_space<vmem>>, vector<1x1x8x128xf32>
    %190 = vector.shape_cast %189 : vector<1x1x8x128xf32> to vector<8x128xf32>
    %191 = vector.shape_cast %188 : vector<8x128xf32> to vector<1x1x8x128xf32>
    tpu.vector_store %arg7[%c1_49, %c0_50, %c0_51, %c0_52], %191 {strides = array<i32>} : memref<2x4x8x128xf32, #tpu.memory_space<vmem>>, vector<1x1x8x128xf32>,
    %192 = vector.extract_strided_slice %12 {offsets = [8, 0], sizes = [8, 512], strides = [1, 1]} : vector<32x512xf32> to vector<8x512xf32>
    %193 = vector.extract_strided_slice %168 {offsets = [0, 0], sizes = [8, 1], strides = [1, 1]} : vector<8x4xf32> to vector<8x1xf32>
    %194 = vector.extract_strided_slice %192 {offsets = [0, 0], sizes = [8, 128], strides = [1, 1]} : vector<8x512xf32> to vector<8x128xf32>
    %195 = vector.broadcast %193 : vector<8x1xf32> to vector<8x128xf32>
    %196 = arith.mulf %195, %194 : vector<8x128xf32>
    %197 = vector.extract_strided_slice %168 {offsets = [0, 1], sizes = [8, 1], strides = [1, 1]} : vector<8x4xf32> to vector<8x1xf32>
    %198 = vector.extract_strided_slice %192 {offsets = [0, 128], sizes = [8, 128], strides = [1, 1]} : vector<8x512xf32> to vector<8x128xf32>
    %199 = vector.broadcast %197 : vector<8x1xf32> to vector<8x128xf32>
    %200 = arith.mulf %199, %198 : vector<8x128xf32>
    %201 = arith.addf %196, %200 : vector<8x128xf32>
    %202 = vector.extract_strided_slice %168 {offsets = [0, 2], sizes = [8, 1], strides = [1, 1]} : vector<8x4xf32> to vector<8x1xf32>
    %203 = vector.extract_strided_slice %192 {offsets = [0, 256], sizes = [8, 128], strides = [1, 1]} : vector<8x512xf32> to vector<8x128xf32>
    %204 = vector.broadcast %202 : vector<8x1xf32> to vector<8x128xf32>
    %205 = arith.mulf %204, %203 : vector<8x128xf32>
    %206 = arith.addf %201, %205 : vector<8x128xf32>
    %207 = vector.extract_strided_slice %168 {offsets = [0, 3], sizes = [8, 1], strides = [1, 1]} : vector<8x4xf32> to vector<8x1xf32>
    %208 = vector.extract_strided_slice %192 {offsets = [0, 384], sizes = [8, 128], strides = [1, 1]} : vector<8x512xf32> to vector<8x128xf32>
    %209 = vector.broadcast %207 : vector<8x1xf32> to vector<8x128xf32>
    %210 = arith.mulf %209, %208 : vector<8x128xf32>
    %211 = arith.addf %206, %210 : vector<8x128xf32>
    %c1_53 = arith.constant 1 : index
    %c1_54 = arith.constant 1 : index
    %c0_55 = arith.constant 0 : index
    %c0_56 = arith.constant 0 : index
    %212 = vector.load %arg7[%c1_53, %c1_54, %c0_55, %c0_56] : memref<2x4x8x128xf32, #tpu.memory_space<vmem>>, vector<1x1x8x128xf32>
    %213 = vector.shape_cast %212 : vector<1x1x8x128xf32> to vector<8x128xf32>
    %214 = vector.shape_cast %211 : vector<8x128xf32> to vector<1x1x8x128xf32>
    tpu.vector_store %arg7[%c1_53, %c1_54, %c0_55, %c0_56], %214 {strides = array<i32>} : memref<2x4x8x128xf32, #tpu.memory_space<vmem>>, vector<1x1x8x128xf32>,
    %215 = vector.extract_strided_slice %12 {offsets = [16, 0], sizes = [8, 512], strides = [1, 1]} : vector<32x512xf32> to vector<8x512xf32>
    %216 = vector.extract_strided_slice %168 {offsets = [0, 0], sizes = [8, 1], strides = [1, 1]} : vector<8x4xf32> to vector<8x1xf32>
    %217 = vector.extract_strided_slice %215 {offsets = [0, 0], sizes = [8, 128], strides = [1, 1]} : vector<8x512xf32> to vector<8x128xf32>
    %218 = vector.broadcast %216 : vector<8x1xf32> to vector<8x128xf32>
    %219 = arith.mulf %218, %217 : vector<8x128xf32>
    %220 = vector.extract_strided_slice %168 {offsets = [0, 1], sizes = [8, 1], strides = [1, 1]} : vector<8x4xf32> to vector<8x1xf32>
    %221 = vector.extract_strided_slice %215 {offsets = [0, 128], sizes = [8, 128], strides = [1, 1]} : vector<8x512xf32> to vector<8x128xf32>
    %222 = vector.broadcast %220 : vector<8x1xf32> to vector<8x128xf32>
    %223 = arith.mulf %222, %221 : vector<8x128xf32>
    %224 = arith.addf %219, %223 : vector<8x128xf32>
    %225 = vector.extract_strided_slice %168 {offsets = [0, 2], sizes = [8, 1], strides = [1, 1]} : vector<8x4xf32> to vector<8x1xf32>
    %226 = vector.extract_strided_slice %215 {offsets = [0, 256], sizes = [8, 128], strides = [1, 1]} : vector<8x512xf32> to vector<8x128xf32>
    %227 = vector.broadcast %225 : vector<8x1xf32> to vector<8x128xf32>
    %228 = arith.mulf %227, %226 : vector<8x128xf32>
    %229 = arith.addf %224, %228 : vector<8x128xf32>
    %230 = vector.extract_strided_slice %168 {offsets = [0, 3], sizes = [8, 1], strides = [1, 1]} : vector<8x4xf32> to vector<8x1xf32>
    %231 = vector.extract_strided_slice %215 {offsets = [0, 384], sizes = [8, 128], strides = [1, 1]} : vector<8x512xf32> to vector<8x128xf32>
    %232 = vector.broadcast %230 : vector<8x1xf32> to vector<8x128xf32>
    %233 = arith.mulf %232, %231 : vector<8x128xf32>
    %234 = arith.addf %229, %233 : vector<8x128xf32>
    %c1_57 = arith.constant 1 : index
    %c2_58 = arith.constant 2 : index
    %c0_59 = arith.constant 0 : index
    %c0_60 = arith.constant 0 : index
    %235 = vector.load %arg7[%c1_57, %c2_58, %c0_59, %c0_60] : memref<2x4x8x128xf32, #tpu.memory_space<vmem>>, vector<1x1x8x128xf32>
    %236 = vector.shape_cast %235 : vector<1x1x8x128xf32> to vector<8x128xf32>
    %237 = vector.shape_cast %234 : vector<8x128xf32> to vector<1x1x8x128xf32>
    tpu.vector_store %arg7[%c1_57, %c2_58, %c0_59, %c0_60], %237 {strides = array<i32>} : memref<2x4x8x128xf32, #tpu.memory_space<vmem>>, vector<1x1x8x128xf32>,
    %238 = vector.extract_strided_slice %12 {offsets = [24, 0], sizes = [8, 512], strides = [1, 1]} : vector<32x512xf32> to vector<8x512xf32>
    %239 = vector.extract_strided_slice %168 {offsets = [0, 0], sizes = [8, 1], strides = [1, 1]} : vector<8x4xf32> to vector<8x1xf32>
    %240 = vector.extract_strided_slice %238 {offsets = [0, 0], sizes = [8, 128], strides = [1, 1]} : vector<8x512xf32> to vector<8x128xf32>
    %241 = vector.broadcast %239 : vector<8x1xf32> to vector<8x128xf32>
    %242 = arith.mulf %241, %240 : vector<8x128xf32>
    %243 = vector.extract_strided_slice %168 {offsets = [0, 1], sizes = [8, 1], strides = [1, 1]} : vector<8x4xf32> to vector<8x1xf32>
    %244 = vector.extract_strided_slice %238 {offsets = [0, 128], sizes = [8, 128], strides = [1, 1]} : vector<8x512xf32> to vector<8x128xf32>
    %245 = vector.broadcast %243 : vector<8x1xf32> to vector<8x128xf32>
    %246 = arith.mulf %245, %244 : vector<8x128xf32>
    %247 = arith.addf %242, %246 : vector<8x128xf32>
    %248 = vector.extract_strided_slice %168 {offsets = [0, 2], sizes = [8, 1], strides = [1, 1]} : vector<8x4xf32> to vector<8x1xf32>
    %249 = vector.extract_strided_slice %238 {offsets = [0, 256], sizes = [8, 128], strides = [1, 1]} : vector<8x512xf32> to vector<8x128xf32>
    %250 = vector.broadcast %248 : vector<8x1xf32> to vector<8x128xf32>
    %251 = arith.mulf %250, %249 : vector<8x128xf32>
    %252 = arith.addf %247, %251 : vector<8x128xf32>
    %253 = vector.extract_strided_slice %168 {offsets = [0, 3], sizes = [8, 1], strides = [1, 1]} : vector<8x4xf32> to vector<8x1xf32>
    %254 = vector.extract_strided_slice %238 {offsets = [0, 384], sizes = [8, 128], strides = [1, 1]} : vector<8x512xf32> to vector<8x128xf32>
    %255 = vector.broadcast %253 : vector<8x1xf32> to vector<8x128xf32>
    %256 = arith.mulf %255, %254 : vector<8x128xf32>
    %257 = arith.addf %252, %256 : vector<8x128xf32>
    %c1_61 = arith.constant 1 : index
    %c3_62 = arith.constant 3 : index
    %c0_63 = arith.constant 0 : index
    %c0_64 = arith.constant 0 : index
    %258 = vector.load %arg7[%c1_61, %c3_62, %c0_63, %c0_64] : memref<2x4x8x128xf32, #tpu.memory_space<vmem>>, vector<1x1x8x128xf32>
    %259 = vector.shape_cast %258 : vector<1x1x8x128xf32> to vector<8x128xf32>
    %260 = vector.shape_cast %257 : vector<8x128xf32> to vector<1x1x8x128xf32>
    tpu.vector_store %arg7[%c1_61, %c3_62, %c0_63, %c0_64], %260 {strides = array<i32>} : memref<2x4x8x128xf32, #tpu.memory_space<vmem>>, vector<1x1x8x128xf32>,
    return
  }
}

module attributes {stable_mosaic.version = 11 : i64} {
  func.func @_bert_kernel(%arg0: memref<16x64xf32, #tpu.memory_space<vmem>>, %arg1: memref<2x1x24xf32, #tpu.memory_space<vmem>>, %arg2: memref<2x2x4x16x16xf32, #tpu.memory_space<vmem>>, %arg3: memref<2x2x4x16x16xf32, #tpu.memory_space<vmem>>, %arg4: memref<2x64x192xbf16, #tpu.memory_space<vmem>>, %arg5: memref<2x1x192xf32, #tpu.memory_space<vmem>>, %arg6: memref<2x64x64xbf16, #tpu.memory_space<vmem>>, %arg7: memref<2x1x64xf32, #tpu.memory_space<vmem>>, %arg8: memref<2x1x64xf32, #tpu.memory_space<vmem>>, %arg9: memref<2x1x64xf32, #tpu.memory_space<vmem>>, %arg10: memref<2x64x256xbf16, #tpu.memory_space<vmem>>, %arg11: memref<2x1x256xf32, #tpu.memory_space<vmem>>, %arg12: memref<2x256x64xbf16, #tpu.memory_space<vmem>>, %arg13: memref<2x1x64xf32, #tpu.memory_space<vmem>>, %arg14: memref<2x1x64xf32, #tpu.memory_space<vmem>>, %arg15: memref<2x1x64xf32, #tpu.memory_space<vmem>>, %arg16: memref<64x128xbf16, #tpu.memory_space<vmem>>, %arg17: memref<1x128xf32, #tpu.memory_space<vmem>>, %arg18: memref<16x128xf32, #tpu.memory_space<vmem>>, %arg19: memref<16x64xf32, #tpu.memory_space<vmem>>) attributes {dimension_semantics = [], scalar_prefetch = 0 : i64, scratch_operands = 1 : i64, tpu.core_type = #tpu.core_type<tc>} {
    %c0 = arith.constant 0 : index
    %c0_0 = arith.constant 0 : index
    %0 = vector.load %arg0[%c0, %c0_0] : memref<16x64xf32, #tpu.memory_space<vmem>>, vector<16x64xf32>
    %1 = arith.truncf %0 : vector<16x64xf32> to vector<16x64xbf16>
    %c0_1 = arith.constant 0 : index
    %c0_2 = arith.constant 0 : index
    %c0_3 = arith.constant 0 : index
    %2 = vector.load %arg4[%c0_1, %c0_2, %c0_3] : memref<2x64x192xbf16, #tpu.memory_space<vmem>>, vector<1x64x192xbf16>
    %3 = vector.shape_cast %2 : vector<1x64x192xbf16> to vector<64x192xbf16>
    %cst = arith.constant dense<0.000000e+00> : vector<16x192xf32>
    %4 = tpu.matmul %1, %3, %cst {dimension_numbers = #tpu.dot_dimension_numbers<[1], [0], [0], [1], [0, 0, 1, 1], [], []>} : vector<16x64xbf16>, vector<64x192xbf16>, vector<16x192xf32> -> vector<16x192xf32>
    %c0_4 = arith.constant 0 : index
    %c0_5 = arith.constant 0 : index
    %c0_6 = arith.constant 0 : index
    %5 = vector.load %arg5[%c0_4, %c0_5, %c0_6] : memref<2x1x192xf32, #tpu.memory_space<vmem>>, vector<1x1x192xf32>
    %6 = vector.shape_cast %5 : vector<1x1x192xf32> to vector<1x192xf32>
    %7 = vector.broadcast %6 : vector<1x192xf32> to vector<16x192xf32>
    %8 = arith.addf %4, %7 : vector<16x192xf32>
    %c0_7 = arith.constant 0 : index
    %c0_8 = arith.constant 0 : index
    %c0_9 = arith.constant 0 : index
    %9 = vector.load %arg1[%c0_7, %c0_8, %c0_9] : memref<2x1x24xf32, #tpu.memory_space<vmem>>, vector<1x1x24xf32>
    %10 = vector.shape_cast %9 : vector<1x1x24xf32> to vector<1x24xf32>
    %11 = vector.extract_strided_slice %10 {offsets = [0, 0], sizes = [1, 16], strides = [1, 1]} : vector<1x24xf32> to vector<1x16xf32>
    %12 = vector.extract_strided_slice %10 {offsets = [0, 16], sizes = [1, 8], strides = [1, 1]} : vector<1x24xf32> to vector<1x8xf32>
    %13 = vector.extract_strided_slice %8 {offsets = [0, 0], sizes = [8, 16], strides = [1, 1]} : vector<16x192xf32> to vector<8x16xf32>
    %14 = arith.truncf %13 : vector<8x16xf32> to vector<8x16xbf16>
    %15 = vector.extract_strided_slice %8 {offsets = [0, 64], sizes = [8, 16], strides = [1, 1]} : vector<16x192xf32> to vector<8x16xf32>
    %16 = arith.truncf %15 : vector<8x16xf32> to vector<8x16xbf16>
    %17 = vector.extract_strided_slice %8 {offsets = [0, 128], sizes = [8, 16], strides = [1, 1]} : vector<16x192xf32> to vector<8x16xf32>
    %18 = arith.truncf %17 : vector<8x16xf32> to vector<8x16xbf16>
    %c0_10 = arith.constant 0 : index
    %c0_11 = arith.constant 0 : index
    %c0_12 = arith.constant 0 : index
    %c0_13 = arith.constant 0 : index
    %c0_14 = arith.constant 0 : index
    %19 = vector.load %arg2[%c0_10, %c0_11, %c0_12, %c0_13, %c0_14] : memref<2x2x4x16x16xf32, #tpu.memory_space<vmem>>, vector<1x1x1x16x16xf32>
    %20 = vector.shape_cast %19 : vector<1x1x1x16x16xf32> to vector<16x16xf32>
    %21 = arith.truncf %20 : vector<16x16xf32> to vector<16x16xbf16>
    %c0_15 = arith.constant 0 : index
    %c0_16 = arith.constant 0 : index
    %c0_17 = arith.constant 0 : index
    %c0_18 = arith.constant 0 : index
    %c0_19 = arith.constant 0 : index
    %22 = vector.load %arg3[%c0_15, %c0_16, %c0_17, %c0_18, %c0_19] : memref<2x2x4x16x16xf32, #tpu.memory_space<vmem>>, vector<1x1x1x16x16xf32>
    %23 = vector.shape_cast %22 : vector<1x1x1x16x16xf32> to vector<16x16xf32>
    %24 = arith.truncf %23 : vector<16x16xf32> to vector<16x16xbf16>
    %cst_20 = arith.constant dense<0.000000e+00> : vector<8x16xf32>
    %25 = tpu.matmul %14, %21, %cst_20 {dimension_numbers = #tpu.dot_dimension_numbers<[1], [1], [0], [0], [0, 0, 1, 0], [], []>} : vector<8x16xbf16>, vector<16x16xbf16>, vector<8x16xf32> -> vector<8x16xf32>
    %cst_21 = arith.constant 2.500000e-01 : f32
    %26 = vector.broadcast %cst_21 : f32 to vector<8x16xf32>
    %27 = arith.mulf %25, %26 : vector<8x16xf32>
    %28 = vector.broadcast %11 : vector<1x16xf32> to vector<8x16xf32>
    %29 = arith.addf %27, %28 : vector<8x16xf32>
    %cst_22 = arith.constant dense<0.000000e+00> : vector<8x8xf32>
    %30 = tpu.matmul %14, %16, %cst_22 {dimension_numbers = #tpu.dot_dimension_numbers<[1], [1], [0], [0], [0, 0, 1, 0], [], []>} : vector<8x16xbf16>, vector<8x16xbf16>, vector<8x8xf32> -> vector<8x8xf32>
    %cst_23 = arith.constant 2.500000e-01 : f32
    %31 = vector.broadcast %cst_23 : f32 to vector<8x8xf32>
    %32 = arith.mulf %30, %31 : vector<8x8xf32>
    %33 = vector.broadcast %12 : vector<1x8xf32> to vector<8x8xf32>
    %34 = arith.addf %32, %33 : vector<8x8xf32>
    %cst_24 = arith.constant dense<0xFF800000> : vector<8xf32>
    %35 = vector.multi_reduction <maximumf>, %29, %cst_24 [1] : vector<8x16xf32> to vector<8xf32>
    %36 = vector.shape_cast %35 : vector<8xf32> to vector<8x1xf32>
    %cst_25 = arith.constant dense<0xFF800000> : vector<8xf32>
    %37 = vector.multi_reduction <maximumf>, %34, %cst_25 [1] : vector<8x8xf32> to vector<8xf32>
    %38 = vector.shape_cast %37 : vector<8xf32> to vector<8x1xf32>
    %39 = arith.maximumf %36, %38 : vector<8x1xf32>
    %40 = vector.broadcast %39 : vector<8x1xf32> to vector<8x16xf32>
    %41 = arith.subf %29, %40 : vector<8x16xf32>
    %42 = math.exp %41 : vector<8x16xf32>
    %43 = vector.broadcast %39 : vector<8x1xf32> to vector<8x8xf32>
    %44 = arith.subf %34, %43 : vector<8x8xf32>
    %45 = math.exp %44 : vector<8x8xf32>
    %cst_26 = arith.constant dense<0.000000e+00> : vector<8xf32>
    %46 = vector.multi_reduction <add>, %42, %cst_26 [1] : vector<8x16xf32> to vector<8xf32>
    %47 = vector.shape_cast %46 : vector<8xf32> to vector<8x1xf32>
    %cst_27 = arith.constant dense<0.000000e+00> : vector<8xf32>
    %48 = vector.multi_reduction <add>, %45, %cst_27 [1] : vector<8x8xf32> to vector<8xf32>
    %49 = vector.shape_cast %48 : vector<8xf32> to vector<8x1xf32>
    %50 = arith.addf %47, %49 : vector<8x1xf32>
    %51 = arith.truncf %42 : vector<8x16xf32> to vector<8x16xbf16>
    %cst_28 = arith.constant dense<0.000000e+00> : vector<8x16xf32>
    %52 = tpu.matmul %51, %24, %cst_28 {dimension_numbers = #tpu.dot_dimension_numbers<[1], [0], [0], [1], [0, 0, 1, 1], [], []>} : vector<8x16xbf16>, vector<16x16xbf16>, vector<8x16xf32> -> vector<8x16xf32>
    %53 = arith.truncf %45 : vector<8x8xf32> to vector<8x8xbf16>
    %cst_29 = arith.constant dense<0.000000e+00> : vector<8x16xf32>
    %54 = tpu.matmul %53, %18, %cst_29 {dimension_numbers = #tpu.dot_dimension_numbers<[1], [0], [0], [1], [0, 0, 1, 1], [], []>} : vector<8x8xbf16>, vector<8x16xbf16>, vector<8x16xf32> -> vector<8x16xf32>
    %55 = arith.addf %52, %54 : vector<8x16xf32>
    %56 = tpu.reciprocal %50 {approx = true} : vector<8x1xf32> -> vector<8x1xf32>
    %57 = vector.broadcast %56 : vector<8x1xf32> to vector<8x16xf32>
    %58 = arith.mulf %55, %57 : vector<8x16xf32>
    %c0_30 = arith.constant 0 : index
    %c0_31 = arith.constant 0 : index
    %59 = vector.load %arg19[%c0_30, %c0_31] : memref<16x64xf32, #tpu.memory_space<vmem>>, vector<8x16xf32>
    tpu.vector_store %arg19[%c0_30, %c0_31], %58 {strides = array<i32>} : memref<16x64xf32, #tpu.memory_space<vmem>>, vector<8x16xf32>,
    %60 = vector.extract_strided_slice %8 {offsets = [0, 16], sizes = [8, 16], strides = [1, 1]} : vector<16x192xf32> to vector<8x16xf32>
    %61 = arith.truncf %60 : vector<8x16xf32> to vector<8x16xbf16>
    %62 = vector.extract_strided_slice %8 {offsets = [0, 80], sizes = [8, 16], strides = [1, 1]} : vector<16x192xf32> to vector<8x16xf32>
    %63 = arith.truncf %62 : vector<8x16xf32> to vector<8x16xbf16>
    %64 = vector.extract_strided_slice %8 {offsets = [0, 144], sizes = [8, 16], strides = [1, 1]} : vector<16x192xf32> to vector<8x16xf32>
    %65 = arith.truncf %64 : vector<8x16xf32> to vector<8x16xbf16>
    %c0_32 = arith.constant 0 : index
    %c0_33 = arith.constant 0 : index
    %c1 = arith.constant 1 : index
    %c0_34 = arith.constant 0 : index
    %c0_35 = arith.constant 0 : index
    %66 = vector.load %arg2[%c0_32, %c0_33, %c1, %c0_34, %c0_35] : memref<2x2x4x16x16xf32, #tpu.memory_space<vmem>>, vector<1x1x1x16x16xf32>
    %67 = vector.shape_cast %66 : vector<1x1x1x16x16xf32> to vector<16x16xf32>
    %68 = arith.truncf %67 : vector<16x16xf32> to vector<16x16xbf16>
    %c0_36 = arith.constant 0 : index
    %c0_37 = arith.constant 0 : index
    %c1_38 = arith.constant 1 : index
    %c0_39 = arith.constant 0 : index
    %c0_40 = arith.constant 0 : index
    %69 = vector.load %arg3[%c0_36, %c0_37, %c1_38, %c0_39, %c0_40] : memref<2x2x4x16x16xf32, #tpu.memory_space<vmem>>, vector<1x1x1x16x16xf32>
    %70 = vector.shape_cast %69 : vector<1x1x1x16x16xf32> to vector<16x16xf32>
    %71 = arith.truncf %70 : vector<16x16xf32> to vector<16x16xbf16>
    %cst_41 = arith.constant dense<0.000000e+00> : vector<8x16xf32>
    %72 = tpu.matmul %61, %68, %cst_41 {dimension_numbers = #tpu.dot_dimension_numbers<[1], [1], [0], [0], [0, 0, 1, 0], [], []>} : vector<8x16xbf16>, vector<16x16xbf16>, vector<8x16xf32> -> vector<8x16xf32>
    %cst_42 = arith.constant 2.500000e-01 : f32
    %73 = vector.broadcast %cst_42 : f32 to vector<8x16xf32>
    %74 = arith.mulf %72, %73 : vector<8x16xf32>
    %75 = vector.broadcast %11 : vector<1x16xf32> to vector<8x16xf32>
    %76 = arith.addf %74, %75 : vector<8x16xf32>
    %cst_43 = arith.constant dense<0.000000e+00> : vector<8x8xf32>
    %77 = tpu.matmul %61, %63, %cst_43 {dimension_numbers = #tpu.dot_dimension_numbers<[1], [1], [0], [0], [0, 0, 1, 0], [], []>} : vector<8x16xbf16>, vector<8x16xbf16>, vector<8x8xf32> -> vector<8x8xf32>
    %cst_44 = arith.constant 2.500000e-01 : f32
    %78 = vector.broadcast %cst_44 : f32 to vector<8x8xf32>
    %79 = arith.mulf %77, %78 : vector<8x8xf32>
    %80 = vector.broadcast %12 : vector<1x8xf32> to vector<8x8xf32>
    %81 = arith.addf %79, %80 : vector<8x8xf32>
    %cst_45 = arith.constant dense<0xFF800000> : vector<8xf32>
    %82 = vector.multi_reduction <maximumf>, %76, %cst_45 [1] : vector<8x16xf32> to vector<8xf32>
    %83 = vector.shape_cast %82 : vector<8xf32> to vector<8x1xf32>
    %cst_46 = arith.constant dense<0xFF800000> : vector<8xf32>
    %84 = vector.multi_reduction <maximumf>, %81, %cst_46 [1] : vector<8x8xf32> to vector<8xf32>
    %85 = vector.shape_cast %84 : vector<8xf32> to vector<8x1xf32>
    %86 = arith.maximumf %83, %85 : vector<8x1xf32>
    %87 = vector.broadcast %86 : vector<8x1xf32> to vector<8x16xf32>
    %88 = arith.subf %76, %87 : vector<8x16xf32>
    %89 = math.exp %88 : vector<8x16xf32>
    %90 = vector.broadcast %86 : vector<8x1xf32> to vector<8x8xf32>
    %91 = arith.subf %81, %90 : vector<8x8xf32>
    %92 = math.exp %91 : vector<8x8xf32>
    %cst_47 = arith.constant dense<0.000000e+00> : vector<8xf32>
    %93 = vector.multi_reduction <add>, %89, %cst_47 [1] : vector<8x16xf32> to vector<8xf32>
    %94 = vector.shape_cast %93 : vector<8xf32> to vector<8x1xf32>
    %cst_48 = arith.constant dense<0.000000e+00> : vector<8xf32>
    %95 = vector.multi_reduction <add>, %92, %cst_48 [1] : vector<8x8xf32> to vector<8xf32>
    %96 = vector.shape_cast %95 : vector<8xf32> to vector<8x1xf32>
    %97 = arith.addf %94, %96 : vector<8x1xf32>
    %98 = arith.truncf %89 : vector<8x16xf32> to vector<8x16xbf16>
    %cst_49 = arith.constant dense<0.000000e+00> : vector<8x16xf32>
    %99 = tpu.matmul %98, %71, %cst_49 {dimension_numbers = #tpu.dot_dimension_numbers<[1], [0], [0], [1], [0, 0, 1, 1], [], []>} : vector<8x16xbf16>, vector<16x16xbf16>, vector<8x16xf32> -> vector<8x16xf32>
    %100 = arith.truncf %92 : vector<8x8xf32> to vector<8x8xbf16>
    %cst_50 = arith.constant dense<0.000000e+00> : vector<8x16xf32>
    %101 = tpu.matmul %100, %65, %cst_50 {dimension_numbers = #tpu.dot_dimension_numbers<[1], [0], [0], [1], [0, 0, 1, 1], [], []>} : vector<8x8xbf16>, vector<8x16xbf16>, vector<8x16xf32> -> vector<8x16xf32>
    %102 = arith.addf %99, %101 : vector<8x16xf32>
    %103 = tpu.reciprocal %97 {approx = true} : vector<8x1xf32> -> vector<8x1xf32>
    %104 = vector.broadcast %103 : vector<8x1xf32> to vector<8x16xf32>
    %105 = arith.mulf %102, %104 : vector<8x16xf32>
    %c0_51 = arith.constant 0 : index
    %c16 = arith.constant 16 : index
    %106 = vector.load %arg19[%c0_51, %c16] : memref<16x64xf32, #tpu.memory_space<vmem>>, vector<8x16xf32>
    tpu.vector_store %arg19[%c0_51, %c16], %105 {strides = array<i32>} : memref<16x64xf32, #tpu.memory_space<vmem>>, vector<8x16xf32>,
    %107 = vector.extract_strided_slice %8 {offsets = [0, 32], sizes = [8, 16], strides = [1, 1]} : vector<16x192xf32> to vector<8x16xf32>
    %108 = arith.truncf %107 : vector<8x16xf32> to vector<8x16xbf16>
    %109 = vector.extract_strided_slice %8 {offsets = [0, 96], sizes = [8, 16], strides = [1, 1]} : vector<16x192xf32> to vector<8x16xf32>
    %110 = arith.truncf %109 : vector<8x16xf32> to vector<8x16xbf16>
    %111 = vector.extract_strided_slice %8 {offsets = [0, 160], sizes = [8, 16], strides = [1, 1]} : vector<16x192xf32> to vector<8x16xf32>
    %112 = arith.truncf %111 : vector<8x16xf32> to vector<8x16xbf16>
    %c0_52 = arith.constant 0 : index
    %c0_53 = arith.constant 0 : index
    %c2 = arith.constant 2 : index
    %c0_54 = arith.constant 0 : index
    %c0_55 = arith.constant 0 : index
    %113 = vector.load %arg2[%c0_52, %c0_53, %c2, %c0_54, %c0_55] : memref<2x2x4x16x16xf32, #tpu.memory_space<vmem>>, vector<1x1x1x16x16xf32>
    %114 = vector.shape_cast %113 : vector<1x1x1x16x16xf32> to vector<16x16xf32>
    %115 = arith.truncf %114 : vector<16x16xf32> to vector<16x16xbf16>
    %c0_56 = arith.constant 0 : index
    %c0_57 = arith.constant 0 : index
    %c2_58 = arith.constant 2 : index
    %c0_59 = arith.constant 0 : index
    %c0_60 = arith.constant 0 : index
    %116 = vector.load %arg3[%c0_56, %c0_57, %c2_58, %c0_59, %c0_60] : memref<2x2x4x16x16xf32, #tpu.memory_space<vmem>>, vector<1x1x1x16x16xf32>
    %117 = vector.shape_cast %116 : vector<1x1x1x16x16xf32> to vector<16x16xf32>
    %118 = arith.truncf %117 : vector<16x16xf32> to vector<16x16xbf16>
    %cst_61 = arith.constant dense<0.000000e+00> : vector<8x16xf32>
    %119 = tpu.matmul %108, %115, %cst_61 {dimension_numbers = #tpu.dot_dimension_numbers<[1], [1], [0], [0], [0, 0, 1, 0], [], []>} : vector<8x16xbf16>, vector<16x16xbf16>, vector<8x16xf32> -> vector<8x16xf32>
    %cst_62 = arith.constant 2.500000e-01 : f32
    %120 = vector.broadcast %cst_62 : f32 to vector<8x16xf32>
    %121 = arith.mulf %119, %120 : vector<8x16xf32>
    %122 = vector.broadcast %11 : vector<1x16xf32> to vector<8x16xf32>
    %123 = arith.addf %121, %122 : vector<8x16xf32>
    %cst_63 = arith.constant dense<0.000000e+00> : vector<8x8xf32>
    %124 = tpu.matmul %108, %110, %cst_63 {dimension_numbers = #tpu.dot_dimension_numbers<[1], [1], [0], [0], [0, 0, 1, 0], [], []>} : vector<8x16xbf16>, vector<8x16xbf16>, vector<8x8xf32> -> vector<8x8xf32>
    %cst_64 = arith.constant 2.500000e-01 : f32
    %125 = vector.broadcast %cst_64 : f32 to vector<8x8xf32>
    %126 = arith.mulf %124, %125 : vector<8x8xf32>
    %127 = vector.broadcast %12 : vector<1x8xf32> to vector<8x8xf32>
    %128 = arith.addf %126, %127 : vector<8x8xf32>
    %cst_65 = arith.constant dense<0xFF800000> : vector<8xf32>
    %129 = vector.multi_reduction <maximumf>, %123, %cst_65 [1] : vector<8x16xf32> to vector<8xf32>
    %130 = vector.shape_cast %129 : vector<8xf32> to vector<8x1xf32>
    %cst_66 = arith.constant dense<0xFF800000> : vector<8xf32>
    %131 = vector.multi_reduction <maximumf>, %128, %cst_66 [1] : vector<8x8xf32> to vector<8xf32>
    %132 = vector.shape_cast %131 : vector<8xf32> to vector<8x1xf32>
    %133 = arith.maximumf %130, %132 : vector<8x1xf32>
    %134 = vector.broadcast %133 : vector<8x1xf32> to vector<8x16xf32>
    %135 = arith.subf %123, %134 : vector<8x16xf32>
    %136 = math.exp %135 : vector<8x16xf32>
    %137 = vector.broadcast %133 : vector<8x1xf32> to vector<8x8xf32>
    %138 = arith.subf %128, %137 : vector<8x8xf32>
    %139 = math.exp %138 : vector<8x8xf32>
    %cst_67 = arith.constant dense<0.000000e+00> : vector<8xf32>
    %140 = vector.multi_reduction <add>, %136, %cst_67 [1] : vector<8x16xf32> to vector<8xf32>
    %141 = vector.shape_cast %140 : vector<8xf32> to vector<8x1xf32>
    %cst_68 = arith.constant dense<0.000000e+00> : vector<8xf32>
    %142 = vector.multi_reduction <add>, %139, %cst_68 [1] : vector<8x8xf32> to vector<8xf32>
    %143 = vector.shape_cast %142 : vector<8xf32> to vector<8x1xf32>
    %144 = arith.addf %141, %143 : vector<8x1xf32>
    %145 = arith.truncf %136 : vector<8x16xf32> to vector<8x16xbf16>
    %cst_69 = arith.constant dense<0.000000e+00> : vector<8x16xf32>
    %146 = tpu.matmul %145, %118, %cst_69 {dimension_numbers = #tpu.dot_dimension_numbers<[1], [0], [0], [1], [0, 0, 1, 1], [], []>} : vector<8x16xbf16>, vector<16x16xbf16>, vector<8x16xf32> -> vector<8x16xf32>
    %147 = arith.truncf %139 : vector<8x8xf32> to vector<8x8xbf16>
    %cst_70 = arith.constant dense<0.000000e+00> : vector<8x16xf32>
    %148 = tpu.matmul %147, %112, %cst_70 {dimension_numbers = #tpu.dot_dimension_numbers<[1], [0], [0], [1], [0, 0, 1, 1], [], []>} : vector<8x8xbf16>, vector<8x16xbf16>, vector<8x16xf32> -> vector<8x16xf32>
    %149 = arith.addf %146, %148 : vector<8x16xf32>
    %150 = tpu.reciprocal %144 {approx = true} : vector<8x1xf32> -> vector<8x1xf32>
    %151 = vector.broadcast %150 : vector<8x1xf32> to vector<8x16xf32>
    %152 = arith.mulf %149, %151 : vector<8x16xf32>
    %c0_71 = arith.constant 0 : index
    %c32 = arith.constant 32 : index
    %153 = vector.load %arg19[%c0_71, %c32] : memref<16x64xf32, #tpu.memory_space<vmem>>, vector<8x16xf32>
    tpu.vector_store %arg19[%c0_71, %c32], %152 {strides = array<i32>} : memref<16x64xf32, #tpu.memory_space<vmem>>, vector<8x16xf32>,
    %154 = vector.extract_strided_slice %8 {offsets = [0, 48], sizes = [8, 16], strides = [1, 1]} : vector<16x192xf32> to vector<8x16xf32>
    %155 = arith.truncf %154 : vector<8x16xf32> to vector<8x16xbf16>
    %156 = vector.extract_strided_slice %8 {offsets = [0, 112], sizes = [8, 16], strides = [1, 1]} : vector<16x192xf32> to vector<8x16xf32>
    %157 = arith.truncf %156 : vector<8x16xf32> to vector<8x16xbf16>
    %158 = vector.extract_strided_slice %8 {offsets = [0, 176], sizes = [8, 16], strides = [1, 1]} : vector<16x192xf32> to vector<8x16xf32>
    %159 = arith.truncf %158 : vector<8x16xf32> to vector<8x16xbf16>
    %c0_72 = arith.constant 0 : index
    %c0_73 = arith.constant 0 : index
    %c3 = arith.constant 3 : index
    %c0_74 = arith.constant 0 : index
    %c0_75 = arith.constant 0 : index
    %160 = vector.load %arg2[%c0_72, %c0_73, %c3, %c0_74, %c0_75] : memref<2x2x4x16x16xf32, #tpu.memory_space<vmem>>, vector<1x1x1x16x16xf32>
    %161 = vector.shape_cast %160 : vector<1x1x1x16x16xf32> to vector<16x16xf32>
    %162 = arith.truncf %161 : vector<16x16xf32> to vector<16x16xbf16>
    %c0_76 = arith.constant 0 : index
    %c0_77 = arith.constant 0 : index
    %c3_78 = arith.constant 3 : index
    %c0_79 = arith.constant 0 : index
    %c0_80 = arith.constant 0 : index
    %163 = vector.load %arg3[%c0_76, %c0_77, %c3_78, %c0_79, %c0_80] : memref<2x2x4x16x16xf32, #tpu.memory_space<vmem>>, vector<1x1x1x16x16xf32>
    %164 = vector.shape_cast %163 : vector<1x1x1x16x16xf32> to vector<16x16xf32>
    %165 = arith.truncf %164 : vector<16x16xf32> to vector<16x16xbf16>
    %cst_81 = arith.constant dense<0.000000e+00> : vector<8x16xf32>
    %166 = tpu.matmul %155, %162, %cst_81 {dimension_numbers = #tpu.dot_dimension_numbers<[1], [1], [0], [0], [0, 0, 1, 0], [], []>} : vector<8x16xbf16>, vector<16x16xbf16>, vector<8x16xf32> -> vector<8x16xf32>
    %cst_82 = arith.constant 2.500000e-01 : f32
    %167 = vector.broadcast %cst_82 : f32 to vector<8x16xf32>
    %168 = arith.mulf %166, %167 : vector<8x16xf32>
    %169 = vector.broadcast %11 : vector<1x16xf32> to vector<8x16xf32>
    %170 = arith.addf %168, %169 : vector<8x16xf32>
    %cst_83 = arith.constant dense<0.000000e+00> : vector<8x8xf32>
    %171 = tpu.matmul %155, %157, %cst_83 {dimension_numbers = #tpu.dot_dimension_numbers<[1], [1], [0], [0], [0, 0, 1, 0], [], []>} : vector<8x16xbf16>, vector<8x16xbf16>, vector<8x8xf32> -> vector<8x8xf32>
    %cst_84 = arith.constant 2.500000e-01 : f32
    %172 = vector.broadcast %cst_84 : f32 to vector<8x8xf32>
    %173 = arith.mulf %171, %172 : vector<8x8xf32>
    %174 = vector.broadcast %12 : vector<1x8xf32> to vector<8x8xf32>
    %175 = arith.addf %173, %174 : vector<8x8xf32>
    %cst_85 = arith.constant dense<0xFF800000> : vector<8xf32>
    %176 = vector.multi_reduction <maximumf>, %170, %cst_85 [1] : vector<8x16xf32> to vector<8xf32>
    %177 = vector.shape_cast %176 : vector<8xf32> to vector<8x1xf32>
    %cst_86 = arith.constant dense<0xFF800000> : vector<8xf32>
    %178 = vector.multi_reduction <maximumf>, %175, %cst_86 [1] : vector<8x8xf32> to vector<8xf32>
    %179 = vector.shape_cast %178 : vector<8xf32> to vector<8x1xf32>
    %180 = arith.maximumf %177, %179 : vector<8x1xf32>
    %181 = vector.broadcast %180 : vector<8x1xf32> to vector<8x16xf32>
    %182 = arith.subf %170, %181 : vector<8x16xf32>
    %183 = math.exp %182 : vector<8x16xf32>
    %184 = vector.broadcast %180 : vector<8x1xf32> to vector<8x8xf32>
    %185 = arith.subf %175, %184 : vector<8x8xf32>
    %186 = math.exp %185 : vector<8x8xf32>
    %cst_87 = arith.constant dense<0.000000e+00> : vector<8xf32>
    %187 = vector.multi_reduction <add>, %183, %cst_87 [1] : vector<8x16xf32> to vector<8xf32>
    %188 = vector.shape_cast %187 : vector<8xf32> to vector<8x1xf32>
    %cst_88 = arith.constant dense<0.000000e+00> : vector<8xf32>
    %189 = vector.multi_reduction <add>, %186, %cst_88 [1] : vector<8x8xf32> to vector<8xf32>
    %190 = vector.shape_cast %189 : vector<8xf32> to vector<8x1xf32>
    %191 = arith.addf %188, %190 : vector<8x1xf32>
    %192 = arith.truncf %183 : vector<8x16xf32> to vector<8x16xbf16>
    %cst_89 = arith.constant dense<0.000000e+00> : vector<8x16xf32>
    %193 = tpu.matmul %192, %165, %cst_89 {dimension_numbers = #tpu.dot_dimension_numbers<[1], [0], [0], [1], [0, 0, 1, 1], [], []>} : vector<8x16xbf16>, vector<16x16xbf16>, vector<8x16xf32> -> vector<8x16xf32>
    %194 = arith.truncf %186 : vector<8x8xf32> to vector<8x8xbf16>
    %cst_90 = arith.constant dense<0.000000e+00> : vector<8x16xf32>
    %195 = tpu.matmul %194, %159, %cst_90 {dimension_numbers = #tpu.dot_dimension_numbers<[1], [0], [0], [1], [0, 0, 1, 1], [], []>} : vector<8x8xbf16>, vector<8x16xbf16>, vector<8x16xf32> -> vector<8x16xf32>
    %196 = arith.addf %193, %195 : vector<8x16xf32>
    %197 = tpu.reciprocal %191 {approx = true} : vector<8x1xf32> -> vector<8x1xf32>
    %198 = vector.broadcast %197 : vector<8x1xf32> to vector<8x16xf32>
    %199 = arith.mulf %196, %198 : vector<8x16xf32>
    %c0_91 = arith.constant 0 : index
    %c48 = arith.constant 48 : index
    %200 = vector.load %arg19[%c0_91, %c48] : memref<16x64xf32, #tpu.memory_space<vmem>>, vector<8x16xf32>
    tpu.vector_store %arg19[%c0_91, %c48], %199 {strides = array<i32>} : memref<16x64xf32, #tpu.memory_space<vmem>>, vector<8x16xf32>,
    %c1_92 = arith.constant 1 : index
    %c0_93 = arith.constant 0 : index
    %c0_94 = arith.constant 0 : index
    %201 = vector.load %arg1[%c1_92, %c0_93, %c0_94] : memref<2x1x24xf32, #tpu.memory_space<vmem>>, vector<1x1x24xf32>
    %202 = vector.shape_cast %201 : vector<1x1x24xf32> to vector<1x24xf32>
    %203 = vector.extract_strided_slice %202 {offsets = [0, 0], sizes = [1, 16], strides = [1, 1]} : vector<1x24xf32> to vector<1x16xf32>
    %204 = vector.extract_strided_slice %202 {offsets = [0, 16], sizes = [1, 8], strides = [1, 1]} : vector<1x24xf32> to vector<1x8xf32>
    %205 = vector.extract_strided_slice %8 {offsets = [8, 0], sizes = [8, 16], strides = [1, 1]} : vector<16x192xf32> to vector<8x16xf32>
    %206 = arith.truncf %205 : vector<8x16xf32> to vector<8x16xbf16>
    %207 = vector.extract_strided_slice %8 {offsets = [8, 64], sizes = [8, 16], strides = [1, 1]} : vector<16x192xf32> to vector<8x16xf32>
    %208 = arith.truncf %207 : vector<8x16xf32> to vector<8x16xbf16>
    %209 = vector.extract_strided_slice %8 {offsets = [8, 128], sizes = [8, 16], strides = [1, 1]} : vector<16x192xf32> to vector<8x16xf32>
    %210 = arith.truncf %209 : vector<8x16xf32> to vector<8x16xbf16>
    %c0_95 = arith.constant 0 : index
    %c1_96 = arith.constant 1 : index
    %c0_97 = arith.constant 0 : index
    %c0_98 = arith.constant 0 : index
    %c0_99 = arith.constant 0 : index
    %211 = vector.load %arg2[%c0_95, %c1_96, %c0_97, %c0_98, %c0_99] : memref<2x2x4x16x16xf32, #tpu.memory_space<vmem>>, vector<1x1x1x16x16xf32>
    %212 = vector.shape_cast %211 : vector<1x1x1x16x16xf32> to vector<16x16xf32>
    %213 = arith.truncf %212 : vector<16x16xf32> to vector<16x16xbf16>
    %c0_100 = arith.constant 0 : index
    %c1_101 = arith.constant 1 : index
    %c0_102 = arith.constant 0 : index
    %c0_103 = arith.constant 0 : index
    %c0_104 = arith.constant 0 : index
    %214 = vector.load %arg3[%c0_100, %c1_101, %c0_102, %c0_103, %c0_104] : memref<2x2x4x16x16xf32, #tpu.memory_space<vmem>>, vector<1x1x1x16x16xf32>
    %215 = vector.shape_cast %214 : vector<1x1x1x16x16xf32> to vector<16x16xf32>
    %216 = arith.truncf %215 : vector<16x16xf32> to vector<16x16xbf16>
    %cst_105 = arith.constant dense<0.000000e+00> : vector<8x16xf32>
    %217 = tpu.matmul %206, %213, %cst_105 {dimension_numbers = #tpu.dot_dimension_numbers<[1], [1], [0], [0], [0, 0, 1, 0], [], []>} : vector<8x16xbf16>, vector<16x16xbf16>, vector<8x16xf32> -> vector<8x16xf32>
    %cst_106 = arith.constant 2.500000e-01 : f32
    %218 = vector.broadcast %cst_106 : f32 to vector<8x16xf32>
    %219 = arith.mulf %217, %218 : vector<8x16xf32>
    %220 = vector.broadcast %203 : vector<1x16xf32> to vector<8x16xf32>
    %221 = arith.addf %219, %220 : vector<8x16xf32>
    %cst_107 = arith.constant dense<0.000000e+00> : vector<8x8xf32>
    %222 = tpu.matmul %206, %208, %cst_107 {dimension_numbers = #tpu.dot_dimension_numbers<[1], [1], [0], [0], [0, 0, 1, 0], [], []>} : vector<8x16xbf16>, vector<8x16xbf16>, vector<8x8xf32> -> vector<8x8xf32>
    %cst_108 = arith.constant 2.500000e-01 : f32
    %223 = vector.broadcast %cst_108 : f32 to vector<8x8xf32>
    %224 = arith.mulf %222, %223 : vector<8x8xf32>
    %225 = vector.broadcast %204 : vector<1x8xf32> to vector<8x8xf32>
    %226 = arith.addf %224, %225 : vector<8x8xf32>
    %cst_109 = arith.constant dense<0xFF800000> : vector<8xf32>
    %227 = vector.multi_reduction <maximumf>, %221, %cst_109 [1] : vector<8x16xf32> to vector<8xf32>
    %228 = vector.shape_cast %227 : vector<8xf32> to vector<8x1xf32>
    %cst_110 = arith.constant dense<0xFF800000> : vector<8xf32>
    %229 = vector.multi_reduction <maximumf>, %226, %cst_110 [1] : vector<8x8xf32> to vector<8xf32>
    %230 = vector.shape_cast %229 : vector<8xf32> to vector<8x1xf32>
    %231 = arith.maximumf %228, %230 : vector<8x1xf32>
    %232 = vector.broadcast %231 : vector<8x1xf32> to vector<8x16xf32>
    %233 = arith.subf %221, %232 : vector<8x16xf32>
    %234 = math.exp %233 : vector<8x16xf32>
    %235 = vector.broadcast %231 : vector<8x1xf32> to vector<8x8xf32>
    %236 = arith.subf %226, %235 : vector<8x8xf32>
    %237 = math.exp %236 : vector<8x8xf32>
    %cst_111 = arith.constant dense<0.000000e+00> : vector<8xf32>
    %238 = vector.multi_reduction <add>, %234, %cst_111 [1] : vector<8x16xf32> to vector<8xf32>
    %239 = vector.shape_cast %238 : vector<8xf32> to vector<8x1xf32>
    %cst_112 = arith.constant dense<0.000000e+00> : vector<8xf32>
    %240 = vector.multi_reduction <add>, %237, %cst_112 [1] : vector<8x8xf32> to vector<8xf32>
    %241 = vector.shape_cast %240 : vector<8xf32> to vector<8x1xf32>
    %242 = arith.addf %239, %241 : vector<8x1xf32>
    %243 = arith.truncf %234 : vector<8x16xf32> to vector<8x16xbf16>
    %cst_113 = arith.constant dense<0.000000e+00> : vector<8x16xf32>
    %244 = tpu.matmul %243, %216, %cst_113 {dimension_numbers = #tpu.dot_dimension_numbers<[1], [0], [0], [1], [0, 0, 1, 1], [], []>} : vector<8x16xbf16>, vector<16x16xbf16>, vector<8x16xf32> -> vector<8x16xf32>
    %245 = arith.truncf %237 : vector<8x8xf32> to vector<8x8xbf16>
    %cst_114 = arith.constant dense<0.000000e+00> : vector<8x16xf32>
    %246 = tpu.matmul %245, %210, %cst_114 {dimension_numbers = #tpu.dot_dimension_numbers<[1], [0], [0], [1], [0, 0, 1, 1], [], []>} : vector<8x8xbf16>, vector<8x16xbf16>, vector<8x16xf32> -> vector<8x16xf32>
    %247 = arith.addf %244, %246 : vector<8x16xf32>
    %248 = tpu.reciprocal %242 {approx = true} : vector<8x1xf32> -> vector<8x1xf32>
    %249 = vector.broadcast %248 : vector<8x1xf32> to vector<8x16xf32>
    %250 = arith.mulf %247, %249 : vector<8x16xf32>
    %c8 = arith.constant 8 : index
    %c0_115 = arith.constant 0 : index
    %251 = vector.load %arg19[%c8, %c0_115] : memref<16x64xf32, #tpu.memory_space<vmem>>, vector<8x16xf32>
    tpu.vector_store %arg19[%c8, %c0_115], %250 {strides = array<i32>} : memref<16x64xf32, #tpu.memory_space<vmem>>, vector<8x16xf32>,
    %252 = vector.extract_strided_slice %8 {offsets = [8, 16], sizes = [8, 16], strides = [1, 1]} : vector<16x192xf32> to vector<8x16xf32>
    %253 = arith.truncf %252 : vector<8x16xf32> to vector<8x16xbf16>
    %254 = vector.extract_strided_slice %8 {offsets = [8, 80], sizes = [8, 16], strides = [1, 1]} : vector<16x192xf32> to vector<8x16xf32>
    %255 = arith.truncf %254 : vector<8x16xf32> to vector<8x16xbf16>
    %256 = vector.extract_strided_slice %8 {offsets = [8, 144], sizes = [8, 16], strides = [1, 1]} : vector<16x192xf32> to vector<8x16xf32>
    %257 = arith.truncf %256 : vector<8x16xf32> to vector<8x16xbf16>
    %c0_116 = arith.constant 0 : index
    %c1_117 = arith.constant 1 : index
    %c1_118 = arith.constant 1 : index
    %c0_119 = arith.constant 0 : index
    %c0_120 = arith.constant 0 : index
    %258 = vector.load %arg2[%c0_116, %c1_117, %c1_118, %c0_119, %c0_120] : memref<2x2x4x16x16xf32, #tpu.memory_space<vmem>>, vector<1x1x1x16x16xf32>
    %259 = vector.shape_cast %258 : vector<1x1x1x16x16xf32> to vector<16x16xf32>
    %260 = arith.truncf %259 : vector<16x16xf32> to vector<16x16xbf16>
    %c0_121 = arith.constant 0 : index
    %c1_122 = arith.constant 1 : index
    %c1_123 = arith.constant 1 : index
    %c0_124 = arith.constant 0 : index
    %c0_125 = arith.constant 0 : index
    %261 = vector.load %arg3[%c0_121, %c1_122, %c1_123, %c0_124, %c0_125] : memref<2x2x4x16x16xf32, #tpu.memory_space<vmem>>, vector<1x1x1x16x16xf32>
    %262 = vector.shape_cast %261 : vector<1x1x1x16x16xf32> to vector<16x16xf32>
    %263 = arith.truncf %262 : vector<16x16xf32> to vector<16x16xbf16>
    %cst_126 = arith.constant dense<0.000000e+00> : vector<8x16xf32>
    %264 = tpu.matmul %253, %260, %cst_126 {dimension_numbers = #tpu.dot_dimension_numbers<[1], [1], [0], [0], [0, 0, 1, 0], [], []>} : vector<8x16xbf16>, vector<16x16xbf16>, vector<8x16xf32> -> vector<8x16xf32>
    %cst_127 = arith.constant 2.500000e-01 : f32
    %265 = vector.broadcast %cst_127 : f32 to vector<8x16xf32>
    %266 = arith.mulf %264, %265 : vector<8x16xf32>
    %267 = vector.broadcast %203 : vector<1x16xf32> to vector<8x16xf32>
    %268 = arith.addf %266, %267 : vector<8x16xf32>
    %cst_128 = arith.constant dense<0.000000e+00> : vector<8x8xf32>
    %269 = tpu.matmul %253, %255, %cst_128 {dimension_numbers = #tpu.dot_dimension_numbers<[1], [1], [0], [0], [0, 0, 1, 0], [], []>} : vector<8x16xbf16>, vector<8x16xbf16>, vector<8x8xf32> -> vector<8x8xf32>
    %cst_129 = arith.constant 2.500000e-01 : f32
    %270 = vector.broadcast %cst_129 : f32 to vector<8x8xf32>
    %271 = arith.mulf %269, %270 : vector<8x8xf32>
    %272 = vector.broadcast %204 : vector<1x8xf32> to vector<8x8xf32>
    %273 = arith.addf %271, %272 : vector<8x8xf32>
    %cst_130 = arith.constant dense<0xFF800000> : vector<8xf32>
    %274 = vector.multi_reduction <maximumf>, %268, %cst_130 [1] : vector<8x16xf32> to vector<8xf32>
    %275 = vector.shape_cast %274 : vector<8xf32> to vector<8x1xf32>
    %cst_131 = arith.constant dense<0xFF800000> : vector<8xf32>
    %276 = vector.multi_reduction <maximumf>, %273, %cst_131 [1] : vector<8x8xf32> to vector<8xf32>
    %277 = vector.shape_cast %276 : vector<8xf32> to vector<8x1xf32>
    %278 = arith.maximumf %275, %277 : vector<8x1xf32>
    %279 = vector.broadcast %278 : vector<8x1xf32> to vector<8x16xf32>
    %280 = arith.subf %268, %279 : vector<8x16xf32>
    %281 = math.exp %280 : vector<8x16xf32>
    %282 = vector.broadcast %278 : vector<8x1xf32> to vector<8x8xf32>
    %283 = arith.subf %273, %282 : vector<8x8xf32>
    %284 = math.exp %283 : vector<8x8xf32>
    %cst_132 = arith.constant dense<0.000000e+00> : vector<8xf32>
    %285 = vector.multi_reduction <add>, %281, %cst_132 [1] : vector<8x16xf32> to vector<8xf32>
    %286 = vector.shape_cast %285 : vector<8xf32> to vector<8x1xf32>
    %cst_133 = arith.constant dense<0.000000e+00> : vector<8xf32>
    %287 = vector.multi_reduction <add>, %284, %cst_133 [1] : vector<8x8xf32> to vector<8xf32>
    %288 = vector.shape_cast %287 : vector<8xf32> to vector<8x1xf32>
    %289 = arith.addf %286, %288 : vector<8x1xf32>
    %290 = arith.truncf %281 : vector<8x16xf32> to vector<8x16xbf16>
    %cst_134 = arith.constant dense<0.000000e+00> : vector<8x16xf32>
    %291 = tpu.matmul %290, %263, %cst_134 {dimension_numbers = #tpu.dot_dimension_numbers<[1], [0], [0], [1], [0, 0, 1, 1], [], []>} : vector<8x16xbf16>, vector<16x16xbf16>, vector<8x16xf32> -> vector<8x16xf32>
    %292 = arith.truncf %284 : vector<8x8xf32> to vector<8x8xbf16>
    %cst_135 = arith.constant dense<0.000000e+00> : vector<8x16xf32>
    %293 = tpu.matmul %292, %257, %cst_135 {dimension_numbers = #tpu.dot_dimension_numbers<[1], [0], [0], [1], [0, 0, 1, 1], [], []>} : vector<8x8xbf16>, vector<8x16xbf16>, vector<8x16xf32> -> vector<8x16xf32>
    %294 = arith.addf %291, %293 : vector<8x16xf32>
    %295 = tpu.reciprocal %289 {approx = true} : vector<8x1xf32> -> vector<8x1xf32>
    %296 = vector.broadcast %295 : vector<8x1xf32> to vector<8x16xf32>
    %297 = arith.mulf %294, %296 : vector<8x16xf32>
    %c8_136 = arith.constant 8 : index
    %c16_137 = arith.constant 16 : index
    %298 = vector.load %arg19[%c8_136, %c16_137] : memref<16x64xf32, #tpu.memory_space<vmem>>, vector<8x16xf32>
    tpu.vector_store %arg19[%c8_136, %c16_137], %297 {strides = array<i32>} : memref<16x64xf32, #tpu.memory_space<vmem>>, vector<8x16xf32>,
    %299 = vector.extract_strided_slice %8 {offsets = [8, 32], sizes = [8, 16], strides = [1, 1]} : vector<16x192xf32> to vector<8x16xf32>
    %300 = arith.truncf %299 : vector<8x16xf32> to vector<8x16xbf16>
    %301 = vector.extract_strided_slice %8 {offsets = [8, 96], sizes = [8, 16], strides = [1, 1]} : vector<16x192xf32> to vector<8x16xf32>
    %302 = arith.truncf %301 : vector<8x16xf32> to vector<8x16xbf16>
    %303 = vector.extract_strided_slice %8 {offsets = [8, 160], sizes = [8, 16], strides = [1, 1]} : vector<16x192xf32> to vector<8x16xf32>
    %304 = arith.truncf %303 : vector<8x16xf32> to vector<8x16xbf16>
    %c0_138 = arith.constant 0 : index
    %c1_139 = arith.constant 1 : index
    %c2_140 = arith.constant 2 : index
    %c0_141 = arith.constant 0 : index
    %c0_142 = arith.constant 0 : index
    %305 = vector.load %arg2[%c0_138, %c1_139, %c2_140, %c0_141, %c0_142] : memref<2x2x4x16x16xf32, #tpu.memory_space<vmem>>, vector<1x1x1x16x16xf32>
    %306 = vector.shape_cast %305 : vector<1x1x1x16x16xf32> to vector<16x16xf32>
    %307 = arith.truncf %306 : vector<16x16xf32> to vector<16x16xbf16>
    %c0_143 = arith.constant 0 : index
    %c1_144 = arith.constant 1 : index
    %c2_145 = arith.constant 2 : index
    %c0_146 = arith.constant 0 : index
    %c0_147 = arith.constant 0 : index
    %308 = vector.load %arg3[%c0_143, %c1_144, %c2_145, %c0_146, %c0_147] : memref<2x2x4x16x16xf32, #tpu.memory_space<vmem>>, vector<1x1x1x16x16xf32>
    %309 = vector.shape_cast %308 : vector<1x1x1x16x16xf32> to vector<16x16xf32>
    %310 = arith.truncf %309 : vector<16x16xf32> to vector<16x16xbf16>
    %cst_148 = arith.constant dense<0.000000e+00> : vector<8x16xf32>
    %311 = tpu.matmul %300, %307, %cst_148 {dimension_numbers = #tpu.dot_dimension_numbers<[1], [1], [0], [0], [0, 0, 1, 0], [], []>} : vector<8x16xbf16>, vector<16x16xbf16>, vector<8x16xf32> -> vector<8x16xf32>
    %cst_149 = arith.constant 2.500000e-01 : f32
    %312 = vector.broadcast %cst_149 : f32 to vector<8x16xf32>
    %313 = arith.mulf %311, %312 : vector<8x16xf32>
    %314 = vector.broadcast %203 : vector<1x16xf32> to vector<8x16xf32>
    %315 = arith.addf %313, %314 : vector<8x16xf32>
    %cst_150 = arith.constant dense<0.000000e+00> : vector<8x8xf32>
    %316 = tpu.matmul %300, %302, %cst_150 {dimension_numbers = #tpu.dot_dimension_numbers<[1], [1], [0], [0], [0, 0, 1, 0], [], []>} : vector<8x16xbf16>, vector<8x16xbf16>, vector<8x8xf32> -> vector<8x8xf32>
    %cst_151 = arith.constant 2.500000e-01 : f32
    %317 = vector.broadcast %cst_151 : f32 to vector<8x8xf32>
    %318 = arith.mulf %316, %317 : vector<8x8xf32>
    %319 = vector.broadcast %204 : vector<1x8xf32> to vector<8x8xf32>
    %320 = arith.addf %318, %319 : vector<8x8xf32>
    %cst_152 = arith.constant dense<0xFF800000> : vector<8xf32>
    %321 = vector.multi_reduction <maximumf>, %315, %cst_152 [1] : vector<8x16xf32> to vector<8xf32>
    %322 = vector.shape_cast %321 : vector<8xf32> to vector<8x1xf32>
    %cst_153 = arith.constant dense<0xFF800000> : vector<8xf32>
    %323 = vector.multi_reduction <maximumf>, %320, %cst_153 [1] : vector<8x8xf32> to vector<8xf32>
    %324 = vector.shape_cast %323 : vector<8xf32> to vector<8x1xf32>
    %325 = arith.maximumf %322, %324 : vector<8x1xf32>
    %326 = vector.broadcast %325 : vector<8x1xf32> to vector<8x16xf32>
    %327 = arith.subf %315, %326 : vector<8x16xf32>
    %328 = math.exp %327 : vector<8x16xf32>
    %329 = vector.broadcast %325 : vector<8x1xf32> to vector<8x8xf32>
    %330 = arith.subf %320, %329 : vector<8x8xf32>
    %331 = math.exp %330 : vector<8x8xf32>
    %cst_154 = arith.constant dense<0.000000e+00> : vector<8xf32>
    %332 = vector.multi_reduction <add>, %328, %cst_154 [1] : vector<8x16xf32> to vector<8xf32>
    %333 = vector.shape_cast %332 : vector<8xf32> to vector<8x1xf32>
    %cst_155 = arith.constant dense<0.000000e+00> : vector<8xf32>
    %334 = vector.multi_reduction <add>, %331, %cst_155 [1] : vector<8x8xf32> to vector<8xf32>
    %335 = vector.shape_cast %334 : vector<8xf32> to vector<8x1xf32>
    %336 = arith.addf %333, %335 : vector<8x1xf32>
    %337 = arith.truncf %328 : vector<8x16xf32> to vector<8x16xbf16>
    %cst_156 = arith.constant dense<0.000000e+00> : vector<8x16xf32>
    %338 = tpu.matmul %337, %310, %cst_156 {dimension_numbers = #tpu.dot_dimension_numbers<[1], [0], [0], [1], [0, 0, 1, 1], [], []>} : vector<8x16xbf16>, vector<16x16xbf16>, vector<8x16xf32> -> vector<8x16xf32>
    %339 = arith.truncf %331 : vector<8x8xf32> to vector<8x8xbf16>
    %cst_157 = arith.constant dense<0.000000e+00> : vector<8x16xf32>
    %340 = tpu.matmul %339, %304, %cst_157 {dimension_numbers = #tpu.dot_dimension_numbers<[1], [0], [0], [1], [0, 0, 1, 1], [], []>} : vector<8x8xbf16>, vector<8x16xbf16>, vector<8x16xf32> -> vector<8x16xf32>
    %341 = arith.addf %338, %340 : vector<8x16xf32>
    %342 = tpu.reciprocal %336 {approx = true} : vector<8x1xf32> -> vector<8x1xf32>
    %343 = vector.broadcast %342 : vector<8x1xf32> to vector<8x16xf32>
    %344 = arith.mulf %341, %343 : vector<8x16xf32>
    %c8_158 = arith.constant 8 : index
    %c32_159 = arith.constant 32 : index
    %345 = vector.load %arg19[%c8_158, %c32_159] : memref<16x64xf32, #tpu.memory_space<vmem>>, vector<8x16xf32>
    tpu.vector_store %arg19[%c8_158, %c32_159], %344 {strides = array<i32>} : memref<16x64xf32, #tpu.memory_space<vmem>>, vector<8x16xf32>,
    %346 = vector.extract_strided_slice %8 {offsets = [8, 48], sizes = [8, 16], strides = [1, 1]} : vector<16x192xf32> to vector<8x16xf32>
    %347 = arith.truncf %346 : vector<8x16xf32> to vector<8x16xbf16>
    %348 = vector.extract_strided_slice %8 {offsets = [8, 112], sizes = [8, 16], strides = [1, 1]} : vector<16x192xf32> to vector<8x16xf32>
    %349 = arith.truncf %348 : vector<8x16xf32> to vector<8x16xbf16>
    %350 = vector.extract_strided_slice %8 {offsets = [8, 176], sizes = [8, 16], strides = [1, 1]} : vector<16x192xf32> to vector<8x16xf32>
    %351 = arith.truncf %350 : vector<8x16xf32> to vector<8x16xbf16>
    %c0_160 = arith.constant 0 : index
    %c1_161 = arith.constant 1 : index
    %c3_162 = arith.constant 3 : index
    %c0_163 = arith.constant 0 : index
    %c0_164 = arith.constant 0 : index
    %352 = vector.load %arg2[%c0_160, %c1_161, %c3_162, %c0_163, %c0_164] : memref<2x2x4x16x16xf32, #tpu.memory_space<vmem>>, vector<1x1x1x16x16xf32>
    %353 = vector.shape_cast %352 : vector<1x1x1x16x16xf32> to vector<16x16xf32>
    %354 = arith.truncf %353 : vector<16x16xf32> to vector<16x16xbf16>
    %c0_165 = arith.constant 0 : index
    %c1_166 = arith.constant 1 : index
    %c3_167 = arith.constant 3 : index
    %c0_168 = arith.constant 0 : index
    %c0_169 = arith.constant 0 : index
    %355 = vector.load %arg3[%c0_165, %c1_166, %c3_167, %c0_168, %c0_169] : memref<2x2x4x16x16xf32, #tpu.memory_space<vmem>>, vector<1x1x1x16x16xf32>
    %356 = vector.shape_cast %355 : vector<1x1x1x16x16xf32> to vector<16x16xf32>
    %357 = arith.truncf %356 : vector<16x16xf32> to vector<16x16xbf16>
    %cst_170 = arith.constant dense<0.000000e+00> : vector<8x16xf32>
    %358 = tpu.matmul %347, %354, %cst_170 {dimension_numbers = #tpu.dot_dimension_numbers<[1], [1], [0], [0], [0, 0, 1, 0], [], []>} : vector<8x16xbf16>, vector<16x16xbf16>, vector<8x16xf32> -> vector<8x16xf32>
    %cst_171 = arith.constant 2.500000e-01 : f32
    %359 = vector.broadcast %cst_171 : f32 to vector<8x16xf32>
    %360 = arith.mulf %358, %359 : vector<8x16xf32>
    %361 = vector.broadcast %203 : vector<1x16xf32> to vector<8x16xf32>
    %362 = arith.addf %360, %361 : vector<8x16xf32>
    %cst_172 = arith.constant dense<0.000000e+00> : vector<8x8xf32>
    %363 = tpu.matmul %347, %349, %cst_172 {dimension_numbers = #tpu.dot_dimension_numbers<[1], [1], [0], [0], [0, 0, 1, 0], [], []>} : vector<8x16xbf16>, vector<8x16xbf16>, vector<8x8xf32> -> vector<8x8xf32>
    %cst_173 = arith.constant 2.500000e-01 : f32
    %364 = vector.broadcast %cst_173 : f32 to vector<8x8xf32>
    %365 = arith.mulf %363, %364 : vector<8x8xf32>
    %366 = vector.broadcast %204 : vector<1x8xf32> to vector<8x8xf32>
    %367 = arith.addf %365, %366 : vector<8x8xf32>
    %cst_174 = arith.constant dense<0xFF800000> : vector<8xf32>
    %368 = vector.multi_reduction <maximumf>, %362, %cst_174 [1] : vector<8x16xf32> to vector<8xf32>
    %369 = vector.shape_cast %368 : vector<8xf32> to vector<8x1xf32>
    %cst_175 = arith.constant dense<0xFF800000> : vector<8xf32>
    %370 = vector.multi_reduction <maximumf>, %367, %cst_175 [1] : vector<8x8xf32> to vector<8xf32>
    %371 = vector.shape_cast %370 : vector<8xf32> to vector<8x1xf32>
    %372 = arith.maximumf %369, %371 : vector<8x1xf32>
    %373 = vector.broadcast %372 : vector<8x1xf32> to vector<8x16xf32>
    %374 = arith.subf %362, %373 : vector<8x16xf32>
    %375 = math.exp %374 : vector<8x16xf32>
    %376 = vector.broadcast %372 : vector<8x1xf32> to vector<8x8xf32>
    %377 = arith.subf %367, %376 : vector<8x8xf32>
    %378 = math.exp %377 : vector<8x8xf32>
    %cst_176 = arith.constant dense<0.000000e+00> : vector<8xf32>
    %379 = vector.multi_reduction <add>, %375, %cst_176 [1] : vector<8x16xf32> to vector<8xf32>
    %380 = vector.shape_cast %379 : vector<8xf32> to vector<8x1xf32>
    %cst_177 = arith.constant dense<0.000000e+00> : vector<8xf32>
    %381 = vector.multi_reduction <add>, %378, %cst_177 [1] : vector<8x8xf32> to vector<8xf32>
    %382 = vector.shape_cast %381 : vector<8xf32> to vector<8x1xf32>
    %383 = arith.addf %380, %382 : vector<8x1xf32>
    %384 = arith.truncf %375 : vector<8x16xf32> to vector<8x16xbf16>
    %cst_178 = arith.constant dense<0.000000e+00> : vector<8x16xf32>
    %385 = tpu.matmul %384, %357, %cst_178 {dimension_numbers = #tpu.dot_dimension_numbers<[1], [0], [0], [1], [0, 0, 1, 1], [], []>} : vector<8x16xbf16>, vector<16x16xbf16>, vector<8x16xf32> -> vector<8x16xf32>
    %386 = arith.truncf %378 : vector<8x8xf32> to vector<8x8xbf16>
    %cst_179 = arith.constant dense<0.000000e+00> : vector<8x16xf32>
    %387 = tpu.matmul %386, %351, %cst_179 {dimension_numbers = #tpu.dot_dimension_numbers<[1], [0], [0], [1], [0, 0, 1, 1], [], []>} : vector<8x8xbf16>, vector<8x16xbf16>, vector<8x16xf32> -> vector<8x16xf32>
    %388 = arith.addf %385, %387 : vector<8x16xf32>
    %389 = tpu.reciprocal %383 {approx = true} : vector<8x1xf32> -> vector<8x1xf32>
    %390 = vector.broadcast %389 : vector<8x1xf32> to vector<8x16xf32>
    %391 = arith.mulf %388, %390 : vector<8x16xf32>
    %c8_180 = arith.constant 8 : index
    %c48_181 = arith.constant 48 : index
    %392 = vector.load %arg19[%c8_180, %c48_181] : memref<16x64xf32, #tpu.memory_space<vmem>>, vector<8x16xf32>
    tpu.vector_store %arg19[%c8_180, %c48_181], %391 {strides = array<i32>} : memref<16x64xf32, #tpu.memory_space<vmem>>, vector<8x16xf32>,
    %c0_182 = arith.constant 0 : index
    %c0_183 = arith.constant 0 : index
    %393 = vector.load %arg19[%c0_182, %c0_183] : memref<16x64xf32, #tpu.memory_space<vmem>>, vector<16x64xf32>
    %394 = arith.truncf %393 : vector<16x64xf32> to vector<16x64xbf16>
    %c0_184 = arith.constant 0 : index
    %c0_185 = arith.constant 0 : index
    %c0_186 = arith.constant 0 : index
    %395 = vector.load %arg6[%c0_184, %c0_185, %c0_186] : memref<2x64x64xbf16, #tpu.memory_space<vmem>>, vector<1x64x64xbf16>
    %396 = vector.shape_cast %395 : vector<1x64x64xbf16> to vector<64x64xbf16>
    %cst_187 = arith.constant dense<0.000000e+00> : vector<16x64xf32>
    %397 = tpu.matmul %394, %396, %cst_187 {dimension_numbers = #tpu.dot_dimension_numbers<[1], [0], [0], [1], [0, 0, 1, 1], [], []>} : vector<16x64xbf16>, vector<64x64xbf16>, vector<16x64xf32> -> vector<16x64xf32>
    %c0_188 = arith.constant 0 : index
    %c0_189 = arith.constant 0 : index
    %c0_190 = arith.constant 0 : index
    %398 = vector.load %arg7[%c0_188, %c0_189, %c0_190] : memref<2x1x64xf32, #tpu.memory_space<vmem>>, vector<1x1x64xf32>
    %399 = vector.shape_cast %398 : vector<1x1x64xf32> to vector<1x64xf32>
    %400 = vector.broadcast %399 : vector<1x64xf32> to vector<16x64xf32>
    %401 = arith.addf %397, %400 : vector<16x64xf32>
    %402 = arith.addf %401, %0 : vector<16x64xf32>
    %cst_191 = arith.constant dense<0.000000e+00> : vector<16xf32>
    %403 = vector.multi_reduction <add>, %402, %cst_191 [1] : vector<16x64xf32> to vector<16xf32>
    %404 = vector.shape_cast %403 : vector<16xf32> to vector<16x1xf32>
    %cst_192 = arith.constant 6.400000e+01 : f32
    %405 = vector.broadcast %cst_192 : f32 to vector<16x1xf32>
    %406 = arith.divf %404, %405 : vector<16x1xf32>
    %407 = vector.broadcast %406 : vector<16x1xf32> to vector<16x64xf32>
    %408 = arith.subf %402, %407 : vector<16x64xf32>
    %409 = arith.mulf %408, %408 : vector<16x64xf32>
    %cst_193 = arith.constant dense<0.000000e+00> : vector<16xf32>
    %410 = vector.multi_reduction <add>, %409, %cst_193 [1] : vector<16x64xf32> to vector<16xf32>
    %411 = vector.shape_cast %410 : vector<16xf32> to vector<16x1xf32>
    %cst_194 = arith.constant 6.400000e+01 : f32
    %412 = vector.broadcast %cst_194 : f32 to vector<16x1xf32>
    %413 = arith.divf %411, %412 : vector<16x1xf32>
    %414 = vector.broadcast %406 : vector<16x1xf32> to vector<16x64xf32>
    %415 = arith.subf %402, %414 : vector<16x64xf32>
    %cst_195 = arith.constant 9.99999996E-13 : f32
    %416 = vector.broadcast %cst_195 : f32 to vector<16x1xf32>
    %417 = arith.addf %413, %416 : vector<16x1xf32>
    %418 = math.rsqrt %417 : vector<16x1xf32>
    %419 = vector.broadcast %418 : vector<16x1xf32> to vector<16x64xf32>
    %420 = arith.mulf %415, %419 : vector<16x64xf32>
    %c0_196 = arith.constant 0 : index
    %c0_197 = arith.constant 0 : index
    %c0_198 = arith.constant 0 : index
    %421 = vector.load %arg8[%c0_196, %c0_197, %c0_198] : memref<2x1x64xf32, #tpu.memory_space<vmem>>, vector<1x1x64xf32>
    %422 = vector.shape_cast %421 : vector<1x1x64xf32> to vector<1x64xf32>
    %423 = vector.broadcast %422 : vector<1x64xf32> to vector<16x64xf32>
    %424 = arith.mulf %420, %423 : vector<16x64xf32>
    %c0_199 = arith.constant 0 : index
    %c0_200 = arith.constant 0 : index
    %c0_201 = arith.constant 0 : index
    %425 = vector.load %arg9[%c0_199, %c0_200, %c0_201] : memref<2x1x64xf32, #tpu.memory_space<vmem>>, vector<1x1x64xf32>
    %426 = vector.shape_cast %425 : vector<1x1x64xf32> to vector<1x64xf32>
    %427 = vector.broadcast %426 : vector<1x64xf32> to vector<16x64xf32>
    %428 = arith.addf %424, %427 : vector<16x64xf32>
    %429 = arith.truncf %428 : vector<16x64xf32> to vector<16x64xbf16>
    %c0_202 = arith.constant 0 : index
    %c0_203 = arith.constant 0 : index
    %c0_204 = arith.constant 0 : index
    %430 = vector.load %arg10[%c0_202, %c0_203, %c0_204] : memref<2x64x256xbf16, #tpu.memory_space<vmem>>, vector<1x64x256xbf16>
    %431 = vector.shape_cast %430 : vector<1x64x256xbf16> to vector<64x256xbf16>
    %cst_205 = arith.constant dense<0.000000e+00> : vector<16x256xf32>
    %432 = tpu.matmul %429, %431, %cst_205 {dimension_numbers = #tpu.dot_dimension_numbers<[1], [0], [0], [1], [0, 0, 1, 1], [], []>} : vector<16x64xbf16>, vector<64x256xbf16>, vector<16x256xf32> -> vector<16x256xf32>
    %c0_206 = arith.constant 0 : index
    %c0_207 = arith.constant 0 : index
    %c0_208 = arith.constant 0 : index
    %433 = vector.load %arg11[%c0_206, %c0_207, %c0_208] : memref<2x1x256xf32, #tpu.memory_space<vmem>>, vector<1x1x256xf32>
    %434 = vector.shape_cast %433 : vector<1x1x256xf32> to vector<1x256xf32>
    %435 = vector.broadcast %434 : vector<1x256xf32> to vector<16x256xf32>
    %436 = arith.addf %432, %435 : vector<16x256xf32>
    %437 = arith.mulf %436, %436 : vector<16x256xf32>
    %438 = arith.mulf %436, %437 : vector<16x256xf32>
    %cst_209 = arith.constant 4.471500e-02 : f32
    %439 = vector.broadcast %cst_209 : f32 to vector<16x256xf32>
    %440 = arith.mulf %439, %438 : vector<16x256xf32>
    %441 = arith.addf %436, %440 : vector<16x256xf32>
    %cst_210 = arith.constant 0.797884583 : f32
    %442 = vector.broadcast %cst_210 : f32 to vector<16x256xf32>
    %443 = arith.mulf %442, %441 : vector<16x256xf32>
    %444 = math.tanh %443 : vector<16x256xf32>
    %cst_211 = arith.constant 1.000000e+00 : f32
    %445 = vector.broadcast %cst_211 : f32 to vector<16x256xf32>
    %446 = arith.addf %445, %444 : vector<16x256xf32>
    %cst_212 = arith.constant 5.000000e-01 : f32
    %447 = vector.broadcast %cst_212 : f32 to vector<16x256xf32>
    %448 = arith.mulf %447, %446 : vector<16x256xf32>
    %449 = arith.mulf %436, %448 : vector<16x256xf32>
    %450 = arith.truncf %449 : vector<16x256xf32> to vector<16x256xbf16>
    %c0_213 = arith.constant 0 : index
    %c0_214 = arith.constant 0 : index
    %c0_215 = arith.constant 0 : index
    %451 = vector.load %arg12[%c0_213, %c0_214, %c0_215] : memref<2x256x64xbf16, #tpu.memory_space<vmem>>, vector<1x256x64xbf16>
    %452 = vector.shape_cast %451 : vector<1x256x64xbf16> to vector<256x64xbf16>
    %cst_216 = arith.constant dense<0.000000e+00> : vector<16x64xf32>
    %453 = tpu.matmul %450, %452, %cst_216 {dimension_numbers = #tpu.dot_dimension_numbers<[1], [0], [0], [1], [0, 0, 1, 1], [], []>} : vector<16x256xbf16>, vector<256x64xbf16>, vector<16x64xf32> -> vector<16x64xf32>
    %c0_217 = arith.constant 0 : index
    %c0_218 = arith.constant 0 : index
    %c0_219 = arith.constant 0 : index
    %454 = vector.load %arg13[%c0_217, %c0_218, %c0_219] : memref<2x1x64xf32, #tpu.memory_space<vmem>>, vector<1x1x64xf32>
    %455 = vector.shape_cast %454 : vector<1x1x64xf32> to vector<1x64xf32>
    %456 = vector.broadcast %455 : vector<1x64xf32> to vector<16x64xf32>
    %457 = arith.addf %453, %456 : vector<16x64xf32>
    %458 = arith.addf %457, %428 : vector<16x64xf32>
    %cst_220 = arith.constant dense<0.000000e+00> : vector<16xf32>
    %459 = vector.multi_reduction <add>, %458, %cst_220 [1] : vector<16x64xf32> to vector<16xf32>
    %460 = vector.shape_cast %459 : vector<16xf32> to vector<16x1xf32>
    %cst_221 = arith.constant 6.400000e+01 : f32
    %461 = vector.broadcast %cst_221 : f32 to vector<16x1xf32>
    %462 = arith.divf %460, %461 : vector<16x1xf32>
    %463 = vector.broadcast %462 : vector<16x1xf32> to vector<16x64xf32>
    %464 = arith.subf %458, %463 : vector<16x64xf32>
    %465 = arith.mulf %464, %464 : vector<16x64xf32>
    %cst_222 = arith.constant dense<0.000000e+00> : vector<16xf32>
    %466 = vector.multi_reduction <add>, %465, %cst_222 [1] : vector<16x64xf32> to vector<16xf32>
    %467 = vector.shape_cast %466 : vector<16xf32> to vector<16x1xf32>
    %cst_223 = arith.constant 6.400000e+01 : f32
    %468 = vector.broadcast %cst_223 : f32 to vector<16x1xf32>
    %469 = arith.divf %467, %468 : vector<16x1xf32>
    %470 = vector.broadcast %462 : vector<16x1xf32> to vector<16x64xf32>
    %471 = arith.subf %458, %470 : vector<16x64xf32>
    %cst_224 = arith.constant 9.99999996E-13 : f32
    %472 = vector.broadcast %cst_224 : f32 to vector<16x1xf32>
    %473 = arith.addf %469, %472 : vector<16x1xf32>
    %474 = math.rsqrt %473 : vector<16x1xf32>
    %475 = vector.broadcast %474 : vector<16x1xf32> to vector<16x64xf32>
    %476 = arith.mulf %471, %475 : vector<16x64xf32>
    %c0_225 = arith.constant 0 : index
    %c0_226 = arith.constant 0 : index
    %c0_227 = arith.constant 0 : index
    %477 = vector.load %arg14[%c0_225, %c0_226, %c0_227] : memref<2x1x64xf32, #tpu.memory_space<vmem>>, vector<1x1x64xf32>
    %478 = vector.shape_cast %477 : vector<1x1x64xf32> to vector<1x64xf32>
    %479 = vector.broadcast %478 : vector<1x64xf32> to vector<16x64xf32>
    %480 = arith.mulf %476, %479 : vector<16x64xf32>
    %c0_228 = arith.constant 0 : index
    %c0_229 = arith.constant 0 : index
    %c0_230 = arith.constant 0 : index
    %481 = vector.load %arg15[%c0_228, %c0_229, %c0_230] : memref<2x1x64xf32, #tpu.memory_space<vmem>>, vector<1x1x64xf32>
    %482 = vector.shape_cast %481 : vector<1x1x64xf32> to vector<1x64xf32>
    %483 = vector.broadcast %482 : vector<1x64xf32> to vector<16x64xf32>
    %484 = arith.addf %480, %483 : vector<16x64xf32>
    %485 = arith.truncf %484 : vector<16x64xf32> to vector<16x64xbf16>
    %c1_231 = arith.constant 1 : index
    %c0_232 = arith.constant 0 : index
    %c0_233 = arith.constant 0 : index
    %486 = vector.load %arg4[%c1_231, %c0_232, %c0_233] : memref<2x64x192xbf16, #tpu.memory_space<vmem>>, vector<1x64x192xbf16>
    %487 = vector.shape_cast %486 : vector<1x64x192xbf16> to vector<64x192xbf16>
    %cst_234 = arith.constant dense<0.000000e+00> : vector<16x192xf32>
    %488 = tpu.matmul %485, %487, %cst_234 {dimension_numbers = #tpu.dot_dimension_numbers<[1], [0], [0], [1], [0, 0, 1, 1], [], []>} : vector<16x64xbf16>, vector<64x192xbf16>, vector<16x192xf32> -> vector<16x192xf32>
    %c1_235 = arith.constant 1 : index
    %c0_236 = arith.constant 0 : index
    %c0_237 = arith.constant 0 : index
    %489 = vector.load %arg5[%c1_235, %c0_236, %c0_237] : memref<2x1x192xf32, #tpu.memory_space<vmem>>, vector<1x1x192xf32>
    %490 = vector.shape_cast %489 : vector<1x1x192xf32> to vector<1x192xf32>
    %491 = vector.broadcast %490 : vector<1x192xf32> to vector<16x192xf32>
    %492 = arith.addf %488, %491 : vector<16x192xf32>
    %c0_238 = arith.constant 0 : index
    %c0_239 = arith.constant 0 : index
    %c0_240 = arith.constant 0 : index
    %493 = vector.load %arg1[%c0_238, %c0_239, %c0_240] : memref<2x1x24xf32, #tpu.memory_space<vmem>>, vector<1x1x24xf32>
    %494 = vector.shape_cast %493 : vector<1x1x24xf32> to vector<1x24xf32>
    %495 = vector.extract_strided_slice %494 {offsets = [0, 0], sizes = [1, 16], strides = [1, 1]} : vector<1x24xf32> to vector<1x16xf32>
    %496 = vector.extract_strided_slice %494 {offsets = [0, 16], sizes = [1, 8], strides = [1, 1]} : vector<1x24xf32> to vector<1x8xf32>
    %497 = vector.extract_strided_slice %492 {offsets = [0, 0], sizes = [8, 16], strides = [1, 1]} : vector<16x192xf32> to vector<8x16xf32>
    %498 = arith.truncf %497 : vector<8x16xf32> to vector<8x16xbf16>
    %499 = vector.extract_strided_slice %492 {offsets = [0, 64], sizes = [8, 16], strides = [1, 1]} : vector<16x192xf32> to vector<8x16xf32>
    %500 = arith.truncf %499 : vector<8x16xf32> to vector<8x16xbf16>
    %501 = vector.extract_strided_slice %492 {offsets = [0, 128], sizes = [8, 16], strides = [1, 1]} : vector<16x192xf32> to vector<8x16xf32>
    %502 = arith.truncf %501 : vector<8x16xf32> to vector<8x16xbf16>
    %c1_241 = arith.constant 1 : index
    %c0_242 = arith.constant 0 : index
    %c0_243 = arith.constant 0 : index
    %c0_244 = arith.constant 0 : index
    %c0_245 = arith.constant 0 : index
    %503 = vector.load %arg2[%c1_241, %c0_242, %c0_243, %c0_244, %c0_245] : memref<2x2x4x16x16xf32, #tpu.memory_space<vmem>>, vector<1x1x1x16x16xf32>
    %504 = vector.shape_cast %503 : vector<1x1x1x16x16xf32> to vector<16x16xf32>
    %505 = arith.truncf %504 : vector<16x16xf32> to vector<16x16xbf16>
    %c1_246 = arith.constant 1 : index
    %c0_247 = arith.constant 0 : index
    %c0_248 = arith.constant 0 : index
    %c0_249 = arith.constant 0 : index
    %c0_250 = arith.constant 0 : index
    %506 = vector.load %arg3[%c1_246, %c0_247, %c0_248, %c0_249, %c0_250] : memref<2x2x4x16x16xf32, #tpu.memory_space<vmem>>, vector<1x1x1x16x16xf32>
    %507 = vector.shape_cast %506 : vector<1x1x1x16x16xf32> to vector<16x16xf32>
    %508 = arith.truncf %507 : vector<16x16xf32> to vector<16x16xbf16>
    %cst_251 = arith.constant dense<0.000000e+00> : vector<8x16xf32>
    %509 = tpu.matmul %498, %505, %cst_251 {dimension_numbers = #tpu.dot_dimension_numbers<[1], [1], [0], [0], [0, 0, 1, 0], [], []>} : vector<8x16xbf16>, vector<16x16xbf16>, vector<8x16xf32> -> vector<8x16xf32>
    %cst_252 = arith.constant 2.500000e-01 : f32
    %510 = vector.broadcast %cst_252 : f32 to vector<8x16xf32>
    %511 = arith.mulf %509, %510 : vector<8x16xf32>
    %512 = vector.broadcast %495 : vector<1x16xf32> to vector<8x16xf32>
    %513 = arith.addf %511, %512 : vector<8x16xf32>
    %cst_253 = arith.constant dense<0.000000e+00> : vector<8x8xf32>
    %514 = tpu.matmul %498, %500, %cst_253 {dimension_numbers = #tpu.dot_dimension_numbers<[1], [1], [0], [0], [0, 0, 1, 0], [], []>} : vector<8x16xbf16>, vector<8x16xbf16>, vector<8x8xf32> -> vector<8x8xf32>
    %cst_254 = arith.constant 2.500000e-01 : f32
    %515 = vector.broadcast %cst_254 : f32 to vector<8x8xf32>
    %516 = arith.mulf %514, %515 : vector<8x8xf32>
    %517 = vector.broadcast %496 : vector<1x8xf32> to vector<8x8xf32>
    %518 = arith.addf %516, %517 : vector<8x8xf32>
    %cst_255 = arith.constant dense<0xFF800000> : vector<8xf32>
    %519 = vector.multi_reduction <maximumf>, %513, %cst_255 [1] : vector<8x16xf32> to vector<8xf32>
    %520 = vector.shape_cast %519 : vector<8xf32> to vector<8x1xf32>
    %cst_256 = arith.constant dense<0xFF800000> : vector<8xf32>
    %521 = vector.multi_reduction <maximumf>, %518, %cst_256 [1] : vector<8x8xf32> to vector<8xf32>
    %522 = vector.shape_cast %521 : vector<8xf32> to vector<8x1xf32>
    %523 = arith.maximumf %520, %522 : vector<8x1xf32>
    %524 = vector.broadcast %523 : vector<8x1xf32> to vector<8x16xf32>
    %525 = arith.subf %513, %524 : vector<8x16xf32>
    %526 = math.exp %525 : vector<8x16xf32>
    %527 = vector.broadcast %523 : vector<8x1xf32> to vector<8x8xf32>
    %528 = arith.subf %518, %527 : vector<8x8xf32>
    %529 = math.exp %528 : vector<8x8xf32>
    %cst_257 = arith.constant dense<0.000000e+00> : vector<8xf32>
    %530 = vector.multi_reduction <add>, %526, %cst_257 [1] : vector<8x16xf32> to vector<8xf32>
    %531 = vector.shape_cast %530 : vector<8xf32> to vector<8x1xf32>
    %cst_258 = arith.constant dense<0.000000e+00> : vector<8xf32>
    %532 = vector.multi_reduction <add>, %529, %cst_258 [1] : vector<8x8xf32> to vector<8xf32>
    %533 = vector.shape_cast %532 : vector<8xf32> to vector<8x1xf32>
    %534 = arith.addf %531, %533 : vector<8x1xf32>
    %535 = arith.truncf %526 : vector<8x16xf32> to vector<8x16xbf16>
    %cst_259 = arith.constant dense<0.000000e+00> : vector<8x16xf32>
    %536 = tpu.matmul %535, %508, %cst_259 {dimension_numbers = #tpu.dot_dimension_numbers<[1], [0], [0], [1], [0, 0, 1, 1], [], []>} : vector<8x16xbf16>, vector<16x16xbf16>, vector<8x16xf32> -> vector<8x16xf32>
    %537 = arith.truncf %529 : vector<8x8xf32> to vector<8x8xbf16>
    %cst_260 = arith.constant dense<0.000000e+00> : vector<8x16xf32>
    %538 = tpu.matmul %537, %502, %cst_260 {dimension_numbers = #tpu.dot_dimension_numbers<[1], [0], [0], [1], [0, 0, 1, 1], [], []>} : vector<8x8xbf16>, vector<8x16xbf16>, vector<8x16xf32> -> vector<8x16xf32>
    %539 = arith.addf %536, %538 : vector<8x16xf32>
    %540 = tpu.reciprocal %534 {approx = true} : vector<8x1xf32> -> vector<8x1xf32>
    %541 = vector.broadcast %540 : vector<8x1xf32> to vector<8x16xf32>
    %542 = arith.mulf %539, %541 : vector<8x16xf32>
    %c0_261 = arith.constant 0 : index
    %c0_262 = arith.constant 0 : index
    %543 = vector.load %arg19[%c0_261, %c0_262] : memref<16x64xf32, #tpu.memory_space<vmem>>, vector<8x16xf32>
    tpu.vector_store %arg19[%c0_261, %c0_262], %542 {strides = array<i32>} : memref<16x64xf32, #tpu.memory_space<vmem>>, vector<8x16xf32>,
    %544 = vector.extract_strided_slice %492 {offsets = [0, 16], sizes = [8, 16], strides = [1, 1]} : vector<16x192xf32> to vector<8x16xf32>
    %545 = arith.truncf %544 : vector<8x16xf32> to vector<8x16xbf16>
    %546 = vector.extract_strided_slice %492 {offsets = [0, 80], sizes = [8, 16], strides = [1, 1]} : vector<16x192xf32> to vector<8x16xf32>
    %547 = arith.truncf %546 : vector<8x16xf32> to vector<8x16xbf16>
    %548 = vector.extract_strided_slice %492 {offsets = [0, 144], sizes = [8, 16], strides = [1, 1]} : vector<16x192xf32> to vector<8x16xf32>
    %549 = arith.truncf %548 : vector<8x16xf32> to vector<8x16xbf16>
    %c1_263 = arith.constant 1 : index
    %c0_264 = arith.constant 0 : index
    %c1_265 = arith.constant 1 : index
    %c0_266 = arith.constant 0 : index
    %c0_267 = arith.constant 0 : index
    %550 = vector.load %arg2[%c1_263, %c0_264, %c1_265, %c0_266, %c0_267] : memref<2x2x4x16x16xf32, #tpu.memory_space<vmem>>, vector<1x1x1x16x16xf32>
    %551 = vector.shape_cast %550 : vector<1x1x1x16x16xf32> to vector<16x16xf32>
    %552 = arith.truncf %551 : vector<16x16xf32> to vector<16x16xbf16>
    %c1_268 = arith.constant 1 : index
    %c0_269 = arith.constant 0 : index
    %c1_270 = arith.constant 1 : index
    %c0_271 = arith.constant 0 : index
    %c0_272 = arith.constant 0 : index
    %553 = vector.load %arg3[%c1_268, %c0_269, %c1_270, %c0_271, %c0_272] : memref<2x2x4x16x16xf32, #tpu.memory_space<vmem>>, vector<1x1x1x16x16xf32>
    %554 = vector.shape_cast %553 : vector<1x1x1x16x16xf32> to vector<16x16xf32>
    %555 = arith.truncf %554 : vector<16x16xf32> to vector<16x16xbf16>
    %cst_273 = arith.constant dense<0.000000e+00> : vector<8x16xf32>
    %556 = tpu.matmul %545, %552, %cst_273 {dimension_numbers = #tpu.dot_dimension_numbers<[1], [1], [0], [0], [0, 0, 1, 0], [], []>} : vector<8x16xbf16>, vector<16x16xbf16>, vector<8x16xf32> -> vector<8x16xf32>
    %cst_274 = arith.constant 2.500000e-01 : f32
    %557 = vector.broadcast %cst_274 : f32 to vector<8x16xf32>
    %558 = arith.mulf %556, %557 : vector<8x16xf32>
    %559 = vector.broadcast %495 : vector<1x16xf32> to vector<8x16xf32>
    %560 = arith.addf %558, %559 : vector<8x16xf32>
    %cst_275 = arith.constant dense<0.000000e+00> : vector<8x8xf32>
    %561 = tpu.matmul %545, %547, %cst_275 {dimension_numbers = #tpu.dot_dimension_numbers<[1], [1], [0], [0], [0, 0, 1, 0], [], []>} : vector<8x16xbf16>, vector<8x16xbf16>, vector<8x8xf32> -> vector<8x8xf32>
    %cst_276 = arith.constant 2.500000e-01 : f32
    %562 = vector.broadcast %cst_276 : f32 to vector<8x8xf32>
    %563 = arith.mulf %561, %562 : vector<8x8xf32>
    %564 = vector.broadcast %496 : vector<1x8xf32> to vector<8x8xf32>
    %565 = arith.addf %563, %564 : vector<8x8xf32>
    %cst_277 = arith.constant dense<0xFF800000> : vector<8xf32>
    %566 = vector.multi_reduction <maximumf>, %560, %cst_277 [1] : vector<8x16xf32> to vector<8xf32>
    %567 = vector.shape_cast %566 : vector<8xf32> to vector<8x1xf32>
    %cst_278 = arith.constant dense<0xFF800000> : vector<8xf32>
    %568 = vector.multi_reduction <maximumf>, %565, %cst_278 [1] : vector<8x8xf32> to vector<8xf32>
    %569 = vector.shape_cast %568 : vector<8xf32> to vector<8x1xf32>
    %570 = arith.maximumf %567, %569 : vector<8x1xf32>
    %571 = vector.broadcast %570 : vector<8x1xf32> to vector<8x16xf32>
    %572 = arith.subf %560, %571 : vector<8x16xf32>
    %573 = math.exp %572 : vector<8x16xf32>
    %574 = vector.broadcast %570 : vector<8x1xf32> to vector<8x8xf32>
    %575 = arith.subf %565, %574 : vector<8x8xf32>
    %576 = math.exp %575 : vector<8x8xf32>
    %cst_279 = arith.constant dense<0.000000e+00> : vector<8xf32>
    %577 = vector.multi_reduction <add>, %573, %cst_279 [1] : vector<8x16xf32> to vector<8xf32>
    %578 = vector.shape_cast %577 : vector<8xf32> to vector<8x1xf32>
    %cst_280 = arith.constant dense<0.000000e+00> : vector<8xf32>
    %579 = vector.multi_reduction <add>, %576, %cst_280 [1] : vector<8x8xf32> to vector<8xf32>
    %580 = vector.shape_cast %579 : vector<8xf32> to vector<8x1xf32>
    %581 = arith.addf %578, %580 : vector<8x1xf32>
    %582 = arith.truncf %573 : vector<8x16xf32> to vector<8x16xbf16>
    %cst_281 = arith.constant dense<0.000000e+00> : vector<8x16xf32>
    %583 = tpu.matmul %582, %555, %cst_281 {dimension_numbers = #tpu.dot_dimension_numbers<[1], [0], [0], [1], [0, 0, 1, 1], [], []>} : vector<8x16xbf16>, vector<16x16xbf16>, vector<8x16xf32> -> vector<8x16xf32>
    %584 = arith.truncf %576 : vector<8x8xf32> to vector<8x8xbf16>
    %cst_282 = arith.constant dense<0.000000e+00> : vector<8x16xf32>
    %585 = tpu.matmul %584, %549, %cst_282 {dimension_numbers = #tpu.dot_dimension_numbers<[1], [0], [0], [1], [0, 0, 1, 1], [], []>} : vector<8x8xbf16>, vector<8x16xbf16>, vector<8x16xf32> -> vector<8x16xf32>
    %586 = arith.addf %583, %585 : vector<8x16xf32>
    %587 = tpu.reciprocal %581 {approx = true} : vector<8x1xf32> -> vector<8x1xf32>
    %588 = vector.broadcast %587 : vector<8x1xf32> to vector<8x16xf32>
    %589 = arith.mulf %586, %588 : vector<8x16xf32>
    %c0_283 = arith.constant 0 : index
    %c16_284 = arith.constant 16 : index
    %590 = vector.load %arg19[%c0_283, %c16_284] : memref<16x64xf32, #tpu.memory_space<vmem>>, vector<8x16xf32>
    tpu.vector_store %arg19[%c0_283, %c16_284], %589 {strides = array<i32>} : memref<16x64xf32, #tpu.memory_space<vmem>>, vector<8x16xf32>,
    %591 = vector.extract_strided_slice %492 {offsets = [0, 32], sizes = [8, 16], strides = [1, 1]} : vector<16x192xf32> to vector<8x16xf32>
    %592 = arith.truncf %591 : vector<8x16xf32> to vector<8x16xbf16>
    %593 = vector.extract_strided_slice %492 {offsets = [0, 96], sizes = [8, 16], strides = [1, 1]} : vector<16x192xf32> to vector<8x16xf32>
    %594 = arith.truncf %593 : vector<8x16xf32> to vector<8x16xbf16>
    %595 = vector.extract_strided_slice %492 {offsets = [0, 160], sizes = [8, 16], strides = [1, 1]} : vector<16x192xf32> to vector<8x16xf32>
    %596 = arith.truncf %595 : vector<8x16xf32> to vector<8x16xbf16>
    %c1_285 = arith.constant 1 : index
    %c0_286 = arith.constant 0 : index
    %c2_287 = arith.constant 2 : index
    %c0_288 = arith.constant 0 : index
    %c0_289 = arith.constant 0 : index
    %597 = vector.load %arg2[%c1_285, %c0_286, %c2_287, %c0_288, %c0_289] : memref<2x2x4x16x16xf32, #tpu.memory_space<vmem>>, vector<1x1x1x16x16xf32>
    %598 = vector.shape_cast %597 : vector<1x1x1x16x16xf32> to vector<16x16xf32>
    %599 = arith.truncf %598 : vector<16x16xf32> to vector<16x16xbf16>
    %c1_290 = arith.constant 1 : index
    %c0_291 = arith.constant 0 : index
    %c2_292 = arith.constant 2 : index
    %c0_293 = arith.constant 0 : index
    %c0_294 = arith.constant 0 : index
    %600 = vector.load %arg3[%c1_290, %c0_291, %c2_292, %c0_293, %c0_294] : memref<2x2x4x16x16xf32, #tpu.memory_space<vmem>>, vector<1x1x1x16x16xf32>
    %601 = vector.shape_cast %600 : vector<1x1x1x16x16xf32> to vector<16x16xf32>
    %602 = arith.truncf %601 : vector<16x16xf32> to vector<16x16xbf16>
    %cst_295 = arith.constant dense<0.000000e+00> : vector<8x16xf32>
    %603 = tpu.matmul %592, %599, %cst_295 {dimension_numbers = #tpu.dot_dimension_numbers<[1], [1], [0], [0], [0, 0, 1, 0], [], []>} : vector<8x16xbf16>, vector<16x16xbf16>, vector<8x16xf32> -> vector<8x16xf32>
    %cst_296 = arith.constant 2.500000e-01 : f32
    %604 = vector.broadcast %cst_296 : f32 to vector<8x16xf32>
    %605 = arith.mulf %603, %604 : vector<8x16xf32>
    %606 = vector.broadcast %495 : vector<1x16xf32> to vector<8x16xf32>
    %607 = arith.addf %605, %606 : vector<8x16xf32>
    %cst_297 = arith.constant dense<0.000000e+00> : vector<8x8xf32>
    %608 = tpu.matmul %592, %594, %cst_297 {dimension_numbers = #tpu.dot_dimension_numbers<[1], [1], [0], [0], [0, 0, 1, 0], [], []>} : vector<8x16xbf16>, vector<8x16xbf16>, vector<8x8xf32> -> vector<8x8xf32>
    %cst_298 = arith.constant 2.500000e-01 : f32
    %609 = vector.broadcast %cst_298 : f32 to vector<8x8xf32>
    %610 = arith.mulf %608, %609 : vector<8x8xf32>
    %611 = vector.broadcast %496 : vector<1x8xf32> to vector<8x8xf32>
    %612 = arith.addf %610, %611 : vector<8x8xf32>
    %cst_299 = arith.constant dense<0xFF800000> : vector<8xf32>
    %613 = vector.multi_reduction <maximumf>, %607, %cst_299 [1] : vector<8x16xf32> to vector<8xf32>
    %614 = vector.shape_cast %613 : vector<8xf32> to vector<8x1xf32>
    %cst_300 = arith.constant dense<0xFF800000> : vector<8xf32>
    %615 = vector.multi_reduction <maximumf>, %612, %cst_300 [1] : vector<8x8xf32> to vector<8xf32>
    %616 = vector.shape_cast %615 : vector<8xf32> to vector<8x1xf32>
    %617 = arith.maximumf %614, %616 : vector<8x1xf32>
    %618 = vector.broadcast %617 : vector<8x1xf32> to vector<8x16xf32>
    %619 = arith.subf %607, %618 : vector<8x16xf32>
    %620 = math.exp %619 : vector<8x16xf32>
    %621 = vector.broadcast %617 : vector<8x1xf32> to vector<8x8xf32>
    %622 = arith.subf %612, %621 : vector<8x8xf32>
    %623 = math.exp %622 : vector<8x8xf32>
    %cst_301 = arith.constant dense<0.000000e+00> : vector<8xf32>
    %624 = vector.multi_reduction <add>, %620, %cst_301 [1] : vector<8x16xf32> to vector<8xf32>
    %625 = vector.shape_cast %624 : vector<8xf32> to vector<8x1xf32>
    %cst_302 = arith.constant dense<0.000000e+00> : vector<8xf32>
    %626 = vector.multi_reduction <add>, %623, %cst_302 [1] : vector<8x8xf32> to vector<8xf32>
    %627 = vector.shape_cast %626 : vector<8xf32> to vector<8x1xf32>
    %628 = arith.addf %625, %627 : vector<8x1xf32>
    %629 = arith.truncf %620 : vector<8x16xf32> to vector<8x16xbf16>
    %cst_303 = arith.constant dense<0.000000e+00> : vector<8x16xf32>
    %630 = tpu.matmul %629, %602, %cst_303 {dimension_numbers = #tpu.dot_dimension_numbers<[1], [0], [0], [1], [0, 0, 1, 1], [], []>} : vector<8x16xbf16>, vector<16x16xbf16>, vector<8x16xf32> -> vector<8x16xf32>
    %631 = arith.truncf %623 : vector<8x8xf32> to vector<8x8xbf16>
    %cst_304 = arith.constant dense<0.000000e+00> : vector<8x16xf32>
    %632 = tpu.matmul %631, %596, %cst_304 {dimension_numbers = #tpu.dot_dimension_numbers<[1], [0], [0], [1], [0, 0, 1, 1], [], []>} : vector<8x8xbf16>, vector<8x16xbf16>, vector<8x16xf32> -> vector<8x16xf32>
    %633 = arith.addf %630, %632 : vector<8x16xf32>
    %634 = tpu.reciprocal %628 {approx = true} : vector<8x1xf32> -> vector<8x1xf32>
    %635 = vector.broadcast %634 : vector<8x1xf32> to vector<8x16xf32>
    %636 = arith.mulf %633, %635 : vector<8x16xf32>
    %c0_305 = arith.constant 0 : index
    %c32_306 = arith.constant 32 : index
    %637 = vector.load %arg19[%c0_305, %c32_306] : memref<16x64xf32, #tpu.memory_space<vmem>>, vector<8x16xf32>
    tpu.vector_store %arg19[%c0_305, %c32_306], %636 {strides = array<i32>} : memref<16x64xf32, #tpu.memory_space<vmem>>, vector<8x16xf32>,
    %638 = vector.extract_strided_slice %492 {offsets = [0, 48], sizes = [8, 16], strides = [1, 1]} : vector<16x192xf32> to vector<8x16xf32>
    %639 = arith.truncf %638 : vector<8x16xf32> to vector<8x16xbf16>
    %640 = vector.extract_strided_slice %492 {offsets = [0, 112], sizes = [8, 16], strides = [1, 1]} : vector<16x192xf32> to vector<8x16xf32>
    %641 = arith.truncf %640 : vector<8x16xf32> to vector<8x16xbf16>
    %642 = vector.extract_strided_slice %492 {offsets = [0, 176], sizes = [8, 16], strides = [1, 1]} : vector<16x192xf32> to vector<8x16xf32>
    %643 = arith.truncf %642 : vector<8x16xf32> to vector<8x16xbf16>
    %c1_307 = arith.constant 1 : index
    %c0_308 = arith.constant 0 : index
    %c3_309 = arith.constant 3 : index
    %c0_310 = arith.constant 0 : index
    %c0_311 = arith.constant 0 : index
    %644 = vector.load %arg2[%c1_307, %c0_308, %c3_309, %c0_310, %c0_311] : memref<2x2x4x16x16xf32, #tpu.memory_space<vmem>>, vector<1x1x1x16x16xf32>
    %645 = vector.shape_cast %644 : vector<1x1x1x16x16xf32> to vector<16x16xf32>
    %646 = arith.truncf %645 : vector<16x16xf32> to vector<16x16xbf16>
    %c1_312 = arith.constant 1 : index
    %c0_313 = arith.constant 0 : index
    %c3_314 = arith.constant 3 : index
    %c0_315 = arith.constant 0 : index
    %c0_316 = arith.constant 0 : index
    %647 = vector.load %arg3[%c1_312, %c0_313, %c3_314, %c0_315, %c0_316] : memref<2x2x4x16x16xf32, #tpu.memory_space<vmem>>, vector<1x1x1x16x16xf32>
    %648 = vector.shape_cast %647 : vector<1x1x1x16x16xf32> to vector<16x16xf32>
    %649 = arith.truncf %648 : vector<16x16xf32> to vector<16x16xbf16>
    %cst_317 = arith.constant dense<0.000000e+00> : vector<8x16xf32>
    %650 = tpu.matmul %639, %646, %cst_317 {dimension_numbers = #tpu.dot_dimension_numbers<[1], [1], [0], [0], [0, 0, 1, 0], [], []>} : vector<8x16xbf16>, vector<16x16xbf16>, vector<8x16xf32> -> vector<8x16xf32>
    %cst_318 = arith.constant 2.500000e-01 : f32
    %651 = vector.broadcast %cst_318 : f32 to vector<8x16xf32>
    %652 = arith.mulf %650, %651 : vector<8x16xf32>
    %653 = vector.broadcast %495 : vector<1x16xf32> to vector<8x16xf32>
    %654 = arith.addf %652, %653 : vector<8x16xf32>
    %cst_319 = arith.constant dense<0.000000e+00> : vector<8x8xf32>
    %655 = tpu.matmul %639, %641, %cst_319 {dimension_numbers = #tpu.dot_dimension_numbers<[1], [1], [0], [0], [0, 0, 1, 0], [], []>} : vector<8x16xbf16>, vector<8x16xbf16>, vector<8x8xf32> -> vector<8x8xf32>
    %cst_320 = arith.constant 2.500000e-01 : f32
    %656 = vector.broadcast %cst_320 : f32 to vector<8x8xf32>
    %657 = arith.mulf %655, %656 : vector<8x8xf32>
    %658 = vector.broadcast %496 : vector<1x8xf32> to vector<8x8xf32>
    %659 = arith.addf %657, %658 : vector<8x8xf32>
    %cst_321 = arith.constant dense<0xFF800000> : vector<8xf32>
    %660 = vector.multi_reduction <maximumf>, %654, %cst_321 [1] : vector<8x16xf32> to vector<8xf32>
    %661 = vector.shape_cast %660 : vector<8xf32> to vector<8x1xf32>
    %cst_322 = arith.constant dense<0xFF800000> : vector<8xf32>
    %662 = vector.multi_reduction <maximumf>, %659, %cst_322 [1] : vector<8x8xf32> to vector<8xf32>
    %663 = vector.shape_cast %662 : vector<8xf32> to vector<8x1xf32>
    %664 = arith.maximumf %661, %663 : vector<8x1xf32>
    %665 = vector.broadcast %664 : vector<8x1xf32> to vector<8x16xf32>
    %666 = arith.subf %654, %665 : vector<8x16xf32>
    %667 = math.exp %666 : vector<8x16xf32>
    %668 = vector.broadcast %664 : vector<8x1xf32> to vector<8x8xf32>
    %669 = arith.subf %659, %668 : vector<8x8xf32>
    %670 = math.exp %669 : vector<8x8xf32>
    %cst_323 = arith.constant dense<0.000000e+00> : vector<8xf32>
    %671 = vector.multi_reduction <add>, %667, %cst_323 [1] : vector<8x16xf32> to vector<8xf32>
    %672 = vector.shape_cast %671 : vector<8xf32> to vector<8x1xf32>
    %cst_324 = arith.constant dense<0.000000e+00> : vector<8xf32>
    %673 = vector.multi_reduction <add>, %670, %cst_324 [1] : vector<8x8xf32> to vector<8xf32>
    %674 = vector.shape_cast %673 : vector<8xf32> to vector<8x1xf32>
    %675 = arith.addf %672, %674 : vector<8x1xf32>
    %676 = arith.truncf %667 : vector<8x16xf32> to vector<8x16xbf16>
    %cst_325 = arith.constant dense<0.000000e+00> : vector<8x16xf32>
    %677 = tpu.matmul %676, %649, %cst_325 {dimension_numbers = #tpu.dot_dimension_numbers<[1], [0], [0], [1], [0, 0, 1, 1], [], []>} : vector<8x16xbf16>, vector<16x16xbf16>, vector<8x16xf32> -> vector<8x16xf32>
    %678 = arith.truncf %670 : vector<8x8xf32> to vector<8x8xbf16>
    %cst_326 = arith.constant dense<0.000000e+00> : vector<8x16xf32>
    %679 = tpu.matmul %678, %643, %cst_326 {dimension_numbers = #tpu.dot_dimension_numbers<[1], [0], [0], [1], [0, 0, 1, 1], [], []>} : vector<8x8xbf16>, vector<8x16xbf16>, vector<8x16xf32> -> vector<8x16xf32>
    %680 = arith.addf %677, %679 : vector<8x16xf32>
    %681 = tpu.reciprocal %675 {approx = true} : vector<8x1xf32> -> vector<8x1xf32>
    %682 = vector.broadcast %681 : vector<8x1xf32> to vector<8x16xf32>
    %683 = arith.mulf %680, %682 : vector<8x16xf32>
    %c0_327 = arith.constant 0 : index
    %c48_328 = arith.constant 48 : index
    %684 = vector.load %arg19[%c0_327, %c48_328] : memref<16x64xf32, #tpu.memory_space<vmem>>, vector<8x16xf32>
    tpu.vector_store %arg19[%c0_327, %c48_328], %683 {strides = array<i32>} : memref<16x64xf32, #tpu.memory_space<vmem>>, vector<8x16xf32>,
    %c1_329 = arith.constant 1 : index
    %c0_330 = arith.constant 0 : index
    %c0_331 = arith.constant 0 : index
    %685 = vector.load %arg1[%c1_329, %c0_330, %c0_331] : memref<2x1x24xf32, #tpu.memory_space<vmem>>, vector<1x1x24xf32>
    %686 = vector.shape_cast %685 : vector<1x1x24xf32> to vector<1x24xf32>
    %687 = vector.extract_strided_slice %686 {offsets = [0, 0], sizes = [1, 16], strides = [1, 1]} : vector<1x24xf32> to vector<1x16xf32>
    %688 = vector.extract_strided_slice %686 {offsets = [0, 16], sizes = [1, 8], strides = [1, 1]} : vector<1x24xf32> to vector<1x8xf32>
    %689 = vector.extract_strided_slice %492 {offsets = [8, 0], sizes = [8, 16], strides = [1, 1]} : vector<16x192xf32> to vector<8x16xf32>
    %690 = arith.truncf %689 : vector<8x16xf32> to vector<8x16xbf16>
    %691 = vector.extract_strided_slice %492 {offsets = [8, 64], sizes = [8, 16], strides = [1, 1]} : vector<16x192xf32> to vector<8x16xf32>
    %692 = arith.truncf %691 : vector<8x16xf32> to vector<8x16xbf16>
    %693 = vector.extract_strided_slice %492 {offsets = [8, 128], sizes = [8, 16], strides = [1, 1]} : vector<16x192xf32> to vector<8x16xf32>
    %694 = arith.truncf %693 : vector<8x16xf32> to vector<8x16xbf16>
    %c1_332 = arith.constant 1 : index
    %c1_333 = arith.constant 1 : index
    %c0_334 = arith.constant 0 : index
    %c0_335 = arith.constant 0 : index
    %c0_336 = arith.constant 0 : index
    %695 = vector.load %arg2[%c1_332, %c1_333, %c0_334, %c0_335, %c0_336] : memref<2x2x4x16x16xf32, #tpu.memory_space<vmem>>, vector<1x1x1x16x16xf32>
    %696 = vector.shape_cast %695 : vector<1x1x1x16x16xf32> to vector<16x16xf32>
    %697 = arith.truncf %696 : vector<16x16xf32> to vector<16x16xbf16>
    %c1_337 = arith.constant 1 : index
    %c1_338 = arith.constant 1 : index
    %c0_339 = arith.constant 0 : index
    %c0_340 = arith.constant 0 : index
    %c0_341 = arith.constant 0 : index
    %698 = vector.load %arg3[%c1_337, %c1_338, %c0_339, %c0_340, %c0_341] : memref<2x2x4x16x16xf32, #tpu.memory_space<vmem>>, vector<1x1x1x16x16xf32>
    %699 = vector.shape_cast %698 : vector<1x1x1x16x16xf32> to vector<16x16xf32>
    %700 = arith.truncf %699 : vector<16x16xf32> to vector<16x16xbf16>
    %cst_342 = arith.constant dense<0.000000e+00> : vector<8x16xf32>
    %701 = tpu.matmul %690, %697, %cst_342 {dimension_numbers = #tpu.dot_dimension_numbers<[1], [1], [0], [0], [0, 0, 1, 0], [], []>} : vector<8x16xbf16>, vector<16x16xbf16>, vector<8x16xf32> -> vector<8x16xf32>
    %cst_343 = arith.constant 2.500000e-01 : f32
    %702 = vector.broadcast %cst_343 : f32 to vector<8x16xf32>
    %703 = arith.mulf %701, %702 : vector<8x16xf32>
    %704 = vector.broadcast %687 : vector<1x16xf32> to vector<8x16xf32>
    %705 = arith.addf %703, %704 : vector<8x16xf32>
    %cst_344 = arith.constant dense<0.000000e+00> : vector<8x8xf32>
    %706 = tpu.matmul %690, %692, %cst_344 {dimension_numbers = #tpu.dot_dimension_numbers<[1], [1], [0], [0], [0, 0, 1, 0], [], []>} : vector<8x16xbf16>, vector<8x16xbf16>, vector<8x8xf32> -> vector<8x8xf32>
    %cst_345 = arith.constant 2.500000e-01 : f32
    %707 = vector.broadcast %cst_345 : f32 to vector<8x8xf32>
    %708 = arith.mulf %706, %707 : vector<8x8xf32>
    %709 = vector.broadcast %688 : vector<1x8xf32> to vector<8x8xf32>
    %710 = arith.addf %708, %709 : vector<8x8xf32>
    %cst_346 = arith.constant dense<0xFF800000> : vector<8xf32>
    %711 = vector.multi_reduction <maximumf>, %705, %cst_346 [1] : vector<8x16xf32> to vector<8xf32>
    %712 = vector.shape_cast %711 : vector<8xf32> to vector<8x1xf32>
    %cst_347 = arith.constant dense<0xFF800000> : vector<8xf32>
    %713 = vector.multi_reduction <maximumf>, %710, %cst_347 [1] : vector<8x8xf32> to vector<8xf32>
    %714 = vector.shape_cast %713 : vector<8xf32> to vector<8x1xf32>
    %715 = arith.maximumf %712, %714 : vector<8x1xf32>
    %716 = vector.broadcast %715 : vector<8x1xf32> to vector<8x16xf32>
    %717 = arith.subf %705, %716 : vector<8x16xf32>
    %718 = math.exp %717 : vector<8x16xf32>
    %719 = vector.broadcast %715 : vector<8x1xf32> to vector<8x8xf32>
    %720 = arith.subf %710, %719 : vector<8x8xf32>
    %721 = math.exp %720 : vector<8x8xf32>
    %cst_348 = arith.constant dense<0.000000e+00> : vector<8xf32>
    %722 = vector.multi_reduction <add>, %718, %cst_348 [1] : vector<8x16xf32> to vector<8xf32>
    %723 = vector.shape_cast %722 : vector<8xf32> to vector<8x1xf32>
    %cst_349 = arith.constant dense<0.000000e+00> : vector<8xf32>
    %724 = vector.multi_reduction <add>, %721, %cst_349 [1] : vector<8x8xf32> to vector<8xf32>
    %725 = vector.shape_cast %724 : vector<8xf32> to vector<8x1xf32>
    %726 = arith.addf %723, %725 : vector<8x1xf32>
    %727 = arith.truncf %718 : vector<8x16xf32> to vector<8x16xbf16>
    %cst_350 = arith.constant dense<0.000000e+00> : vector<8x16xf32>
    %728 = tpu.matmul %727, %700, %cst_350 {dimension_numbers = #tpu.dot_dimension_numbers<[1], [0], [0], [1], [0, 0, 1, 1], [], []>} : vector<8x16xbf16>, vector<16x16xbf16>, vector<8x16xf32> -> vector<8x16xf32>
    %729 = arith.truncf %721 : vector<8x8xf32> to vector<8x8xbf16>
    %cst_351 = arith.constant dense<0.000000e+00> : vector<8x16xf32>
    %730 = tpu.matmul %729, %694, %cst_351 {dimension_numbers = #tpu.dot_dimension_numbers<[1], [0], [0], [1], [0, 0, 1, 1], [], []>} : vector<8x8xbf16>, vector<8x16xbf16>, vector<8x16xf32> -> vector<8x16xf32>
    %731 = arith.addf %728, %730 : vector<8x16xf32>
    %732 = tpu.reciprocal %726 {approx = true} : vector<8x1xf32> -> vector<8x1xf32>
    %733 = vector.broadcast %732 : vector<8x1xf32> to vector<8x16xf32>
    %734 = arith.mulf %731, %733 : vector<8x16xf32>
    %c8_352 = arith.constant 8 : index
    %c0_353 = arith.constant 0 : index
    %735 = vector.load %arg19[%c8_352, %c0_353] : memref<16x64xf32, #tpu.memory_space<vmem>>, vector<8x16xf32>
    tpu.vector_store %arg19[%c8_352, %c0_353], %734 {strides = array<i32>} : memref<16x64xf32, #tpu.memory_space<vmem>>, vector<8x16xf32>,
    %736 = vector.extract_strided_slice %492 {offsets = [8, 16], sizes = [8, 16], strides = [1, 1]} : vector<16x192xf32> to vector<8x16xf32>
    %737 = arith.truncf %736 : vector<8x16xf32> to vector<8x16xbf16>
    %738 = vector.extract_strided_slice %492 {offsets = [8, 80], sizes = [8, 16], strides = [1, 1]} : vector<16x192xf32> to vector<8x16xf32>
    %739 = arith.truncf %738 : vector<8x16xf32> to vector<8x16xbf16>
    %740 = vector.extract_strided_slice %492 {offsets = [8, 144], sizes = [8, 16], strides = [1, 1]} : vector<16x192xf32> to vector<8x16xf32>
    %741 = arith.truncf %740 : vector<8x16xf32> to vector<8x16xbf16>
    %c1_354 = arith.constant 1 : index
    %c1_355 = arith.constant 1 : index
    %c1_356 = arith.constant 1 : index
    %c0_357 = arith.constant 0 : index
    %c0_358 = arith.constant 0 : index
    %742 = vector.load %arg2[%c1_354, %c1_355, %c1_356, %c0_357, %c0_358] : memref<2x2x4x16x16xf32, #tpu.memory_space<vmem>>, vector<1x1x1x16x16xf32>
    %743 = vector.shape_cast %742 : vector<1x1x1x16x16xf32> to vector<16x16xf32>
    %744 = arith.truncf %743 : vector<16x16xf32> to vector<16x16xbf16>
    %c1_359 = arith.constant 1 : index
    %c1_360 = arith.constant 1 : index
    %c1_361 = arith.constant 1 : index
    %c0_362 = arith.constant 0 : index
    %c0_363 = arith.constant 0 : index
    %745 = vector.load %arg3[%c1_359, %c1_360, %c1_361, %c0_362, %c0_363] : memref<2x2x4x16x16xf32, #tpu.memory_space<vmem>>, vector<1x1x1x16x16xf32>
    %746 = vector.shape_cast %745 : vector<1x1x1x16x16xf32> to vector<16x16xf32>
    %747 = arith.truncf %746 : vector<16x16xf32> to vector<16x16xbf16>
    %cst_364 = arith.constant dense<0.000000e+00> : vector<8x16xf32>
    %748 = tpu.matmul %737, %744, %cst_364 {dimension_numbers = #tpu.dot_dimension_numbers<[1], [1], [0], [0], [0, 0, 1, 0], [], []>} : vector<8x16xbf16>, vector<16x16xbf16>, vector<8x16xf32> -> vector<8x16xf32>
    %cst_365 = arith.constant 2.500000e-01 : f32
    %749 = vector.broadcast %cst_365 : f32 to vector<8x16xf32>
    %750 = arith.mulf %748, %749 : vector<8x16xf32>
    %751 = vector.broadcast %687 : vector<1x16xf32> to vector<8x16xf32>
    %752 = arith.addf %750, %751 : vector<8x16xf32>
    %cst_366 = arith.constant dense<0.000000e+00> : vector<8x8xf32>
    %753 = tpu.matmul %737, %739, %cst_366 {dimension_numbers = #tpu.dot_dimension_numbers<[1], [1], [0], [0], [0, 0, 1, 0], [], []>} : vector<8x16xbf16>, vector<8x16xbf16>, vector<8x8xf32> -> vector<8x8xf32>
    %cst_367 = arith.constant 2.500000e-01 : f32
    %754 = vector.broadcast %cst_367 : f32 to vector<8x8xf32>
    %755 = arith.mulf %753, %754 : vector<8x8xf32>
    %756 = vector.broadcast %688 : vector<1x8xf32> to vector<8x8xf32>
    %757 = arith.addf %755, %756 : vector<8x8xf32>
    %cst_368 = arith.constant dense<0xFF800000> : vector<8xf32>
    %758 = vector.multi_reduction <maximumf>, %752, %cst_368 [1] : vector<8x16xf32> to vector<8xf32>
    %759 = vector.shape_cast %758 : vector<8xf32> to vector<8x1xf32>
    %cst_369 = arith.constant dense<0xFF800000> : vector<8xf32>
    %760 = vector.multi_reduction <maximumf>, %757, %cst_369 [1] : vector<8x8xf32> to vector<8xf32>
    %761 = vector.shape_cast %760 : vector<8xf32> to vector<8x1xf32>
    %762 = arith.maximumf %759, %761 : vector<8x1xf32>
    %763 = vector.broadcast %762 : vector<8x1xf32> to vector<8x16xf32>
    %764 = arith.subf %752, %763 : vector<8x16xf32>
    %765 = math.exp %764 : vector<8x16xf32>
    %766 = vector.broadcast %762 : vector<8x1xf32> to vector<8x8xf32>
    %767 = arith.subf %757, %766 : vector<8x8xf32>
    %768 = math.exp %767 : vector<8x8xf32>
    %cst_370 = arith.constant dense<0.000000e+00> : vector<8xf32>
    %769 = vector.multi_reduction <add>, %765, %cst_370 [1] : vector<8x16xf32> to vector<8xf32>
    %770 = vector.shape_cast %769 : vector<8xf32> to vector<8x1xf32>
    %cst_371 = arith.constant dense<0.000000e+00> : vector<8xf32>
    %771 = vector.multi_reduction <add>, %768, %cst_371 [1] : vector<8x8xf32> to vector<8xf32>
    %772 = vector.shape_cast %771 : vector<8xf32> to vector<8x1xf32>
    %773 = arith.addf %770, %772 : vector<8x1xf32>
    %774 = arith.truncf %765 : vector<8x16xf32> to vector<8x16xbf16>
    %cst_372 = arith.constant dense<0.000000e+00> : vector<8x16xf32>
    %775 = tpu.matmul %774, %747, %cst_372 {dimension_numbers = #tpu.dot_dimension_numbers<[1], [0], [0], [1], [0, 0, 1, 1], [], []>} : vector<8x16xbf16>, vector<16x16xbf16>, vector<8x16xf32> -> vector<8x16xf32>
    %776 = arith.truncf %768 : vector<8x8xf32> to vector<8x8xbf16>
    %cst_373 = arith.constant dense<0.000000e+00> : vector<8x16xf32>
    %777 = tpu.matmul %776, %741, %cst_373 {dimension_numbers = #tpu.dot_dimension_numbers<[1], [0], [0], [1], [0, 0, 1, 1], [], []>} : vector<8x8xbf16>, vector<8x16xbf16>, vector<8x16xf32> -> vector<8x16xf32>
    %778 = arith.addf %775, %777 : vector<8x16xf32>
    %779 = tpu.reciprocal %773 {approx = true} : vector<8x1xf32> -> vector<8x1xf32>
    %780 = vector.broadcast %779 : vector<8x1xf32> to vector<8x16xf32>
    %781 = arith.mulf %778, %780 : vector<8x16xf32>
    %c8_374 = arith.constant 8 : index
    %c16_375 = arith.constant 16 : index
    %782 = vector.load %arg19[%c8_374, %c16_375] : memref<16x64xf32, #tpu.memory_space<vmem>>, vector<8x16xf32>
    tpu.vector_store %arg19[%c8_374, %c16_375], %781 {strides = array<i32>} : memref<16x64xf32, #tpu.memory_space<vmem>>, vector<8x16xf32>,
    %783 = vector.extract_strided_slice %492 {offsets = [8, 32], sizes = [8, 16], strides = [1, 1]} : vector<16x192xf32> to vector<8x16xf32>
    %784 = arith.truncf %783 : vector<8x16xf32> to vector<8x16xbf16>
    %785 = vector.extract_strided_slice %492 {offsets = [8, 96], sizes = [8, 16], strides = [1, 1]} : vector<16x192xf32> to vector<8x16xf32>
    %786 = arith.truncf %785 : vector<8x16xf32> to vector<8x16xbf16>
    %787 = vector.extract_strided_slice %492 {offsets = [8, 160], sizes = [8, 16], strides = [1, 1]} : vector<16x192xf32> to vector<8x16xf32>
    %788 = arith.truncf %787 : vector<8x16xf32> to vector<8x16xbf16>
    %c1_376 = arith.constant 1 : index
    %c1_377 = arith.constant 1 : index
    %c2_378 = arith.constant 2 : index
    %c0_379 = arith.constant 0 : index
    %c0_380 = arith.constant 0 : index
    %789 = vector.load %arg2[%c1_376, %c1_377, %c2_378, %c0_379, %c0_380] : memref<2x2x4x16x16xf32, #tpu.memory_space<vmem>>, vector<1x1x1x16x16xf32>
    %790 = vector.shape_cast %789 : vector<1x1x1x16x16xf32> to vector<16x16xf32>
    %791 = arith.truncf %790 : vector<16x16xf32> to vector<16x16xbf16>
    %c1_381 = arith.constant 1 : index
    %c1_382 = arith.constant 1 : index
    %c2_383 = arith.constant 2 : index
    %c0_384 = arith.constant 0 : index
    %c0_385 = arith.constant 0 : index
    %792 = vector.load %arg3[%c1_381, %c1_382, %c2_383, %c0_384, %c0_385] : memref<2x2x4x16x16xf32, #tpu.memory_space<vmem>>, vector<1x1x1x16x16xf32>
    %793 = vector.shape_cast %792 : vector<1x1x1x16x16xf32> to vector<16x16xf32>
    %794 = arith.truncf %793 : vector<16x16xf32> to vector<16x16xbf16>
    %cst_386 = arith.constant dense<0.000000e+00> : vector<8x16xf32>
    %795 = tpu.matmul %784, %791, %cst_386 {dimension_numbers = #tpu.dot_dimension_numbers<[1], [1], [0], [0], [0, 0, 1, 0], [], []>} : vector<8x16xbf16>, vector<16x16xbf16>, vector<8x16xf32> -> vector<8x16xf32>
    %cst_387 = arith.constant 2.500000e-01 : f32
    %796 = vector.broadcast %cst_387 : f32 to vector<8x16xf32>
    %797 = arith.mulf %795, %796 : vector<8x16xf32>
    %798 = vector.broadcast %687 : vector<1x16xf32> to vector<8x16xf32>
    %799 = arith.addf %797, %798 : vector<8x16xf32>
    %cst_388 = arith.constant dense<0.000000e+00> : vector<8x8xf32>
    %800 = tpu.matmul %784, %786, %cst_388 {dimension_numbers = #tpu.dot_dimension_numbers<[1], [1], [0], [0], [0, 0, 1, 0], [], []>} : vector<8x16xbf16>, vector<8x16xbf16>, vector<8x8xf32> -> vector<8x8xf32>
    %cst_389 = arith.constant 2.500000e-01 : f32
    %801 = vector.broadcast %cst_389 : f32 to vector<8x8xf32>
    %802 = arith.mulf %800, %801 : vector<8x8xf32>
    %803 = vector.broadcast %688 : vector<1x8xf32> to vector<8x8xf32>
    %804 = arith.addf %802, %803 : vector<8x8xf32>
    %cst_390 = arith.constant dense<0xFF800000> : vector<8xf32>
    %805 = vector.multi_reduction <maximumf>, %799, %cst_390 [1] : vector<8x16xf32> to vector<8xf32>
    %806 = vector.shape_cast %805 : vector<8xf32> to vector<8x1xf32>
    %cst_391 = arith.constant dense<0xFF800000> : vector<8xf32>
    %807 = vector.multi_reduction <maximumf>, %804, %cst_391 [1] : vector<8x8xf32> to vector<8xf32>
    %808 = vector.shape_cast %807 : vector<8xf32> to vector<8x1xf32>
    %809 = arith.maximumf %806, %808 : vector<8x1xf32>
    %810 = vector.broadcast %809 : vector<8x1xf32> to vector<8x16xf32>
    %811 = arith.subf %799, %810 : vector<8x16xf32>
    %812 = math.exp %811 : vector<8x16xf32>
    %813 = vector.broadcast %809 : vector<8x1xf32> to vector<8x8xf32>
    %814 = arith.subf %804, %813 : vector<8x8xf32>
    %815 = math.exp %814 : vector<8x8xf32>
    %cst_392 = arith.constant dense<0.000000e+00> : vector<8xf32>
    %816 = vector.multi_reduction <add>, %812, %cst_392 [1] : vector<8x16xf32> to vector<8xf32>
    %817 = vector.shape_cast %816 : vector<8xf32> to vector<8x1xf32>
    %cst_393 = arith.constant dense<0.000000e+00> : vector<8xf32>
    %818 = vector.multi_reduction <add>, %815, %cst_393 [1] : vector<8x8xf32> to vector<8xf32>
    %819 = vector.shape_cast %818 : vector<8xf32> to vector<8x1xf32>
    %820 = arith.addf %817, %819 : vector<8x1xf32>
    %821 = arith.truncf %812 : vector<8x16xf32> to vector<8x16xbf16>
    %cst_394 = arith.constant dense<0.000000e+00> : vector<8x16xf32>
    %822 = tpu.matmul %821, %794, %cst_394 {dimension_numbers = #tpu.dot_dimension_numbers<[1], [0], [0], [1], [0, 0, 1, 1], [], []>} : vector<8x16xbf16>, vector<16x16xbf16>, vector<8x16xf32> -> vector<8x16xf32>
    %823 = arith.truncf %815 : vector<8x8xf32> to vector<8x8xbf16>
    %cst_395 = arith.constant dense<0.000000e+00> : vector<8x16xf32>
    %824 = tpu.matmul %823, %788, %cst_395 {dimension_numbers = #tpu.dot_dimension_numbers<[1], [0], [0], [1], [0, 0, 1, 1], [], []>} : vector<8x8xbf16>, vector<8x16xbf16>, vector<8x16xf32> -> vector<8x16xf32>
    %825 = arith.addf %822, %824 : vector<8x16xf32>
    %826 = tpu.reciprocal %820 {approx = true} : vector<8x1xf32> -> vector<8x1xf32>
    %827 = vector.broadcast %826 : vector<8x1xf32> to vector<8x16xf32>
    %828 = arith.mulf %825, %827 : vector<8x16xf32>
    %c8_396 = arith.constant 8 : index
    %c32_397 = arith.constant 32 : index
    %829 = vector.load %arg19[%c8_396, %c32_397] : memref<16x64xf32, #tpu.memory_space<vmem>>, vector<8x16xf32>
    tpu.vector_store %arg19[%c8_396, %c32_397], %828 {strides = array<i32>} : memref<16x64xf32, #tpu.memory_space<vmem>>, vector<8x16xf32>,
    %830 = vector.extract_strided_slice %492 {offsets = [8, 48], sizes = [8, 16], strides = [1, 1]} : vector<16x192xf32> to vector<8x16xf32>
    %831 = arith.truncf %830 : vector<8x16xf32> to vector<8x16xbf16>
    %832 = vector.extract_strided_slice %492 {offsets = [8, 112], sizes = [8, 16], strides = [1, 1]} : vector<16x192xf32> to vector<8x16xf32>
    %833 = arith.truncf %832 : vector<8x16xf32> to vector<8x16xbf16>
    %834 = vector.extract_strided_slice %492 {offsets = [8, 176], sizes = [8, 16], strides = [1, 1]} : vector<16x192xf32> to vector<8x16xf32>
    %835 = arith.truncf %834 : vector<8x16xf32> to vector<8x16xbf16>
    %c1_398 = arith.constant 1 : index
    %c1_399 = arith.constant 1 : index
    %c3_400 = arith.constant 3 : index
    %c0_401 = arith.constant 0 : index
    %c0_402 = arith.constant 0 : index
    %836 = vector.load %arg2[%c1_398, %c1_399, %c3_400, %c0_401, %c0_402] : memref<2x2x4x16x16xf32, #tpu.memory_space<vmem>>, vector<1x1x1x16x16xf32>
    %837 = vector.shape_cast %836 : vector<1x1x1x16x16xf32> to vector<16x16xf32>
    %838 = arith.truncf %837 : vector<16x16xf32> to vector<16x16xbf16>
    %c1_403 = arith.constant 1 : index
    %c1_404 = arith.constant 1 : index
    %c3_405 = arith.constant 3 : index
    %c0_406 = arith.constant 0 : index
    %c0_407 = arith.constant 0 : index
    %839 = vector.load %arg3[%c1_403, %c1_404, %c3_405, %c0_406, %c0_407] : memref<2x2x4x16x16xf32, #tpu.memory_space<vmem>>, vector<1x1x1x16x16xf32>
    %840 = vector.shape_cast %839 : vector<1x1x1x16x16xf32> to vector<16x16xf32>
    %841 = arith.truncf %840 : vector<16x16xf32> to vector<16x16xbf16>
    %cst_408 = arith.constant dense<0.000000e+00> : vector<8x16xf32>
    %842 = tpu.matmul %831, %838, %cst_408 {dimension_numbers = #tpu.dot_dimension_numbers<[1], [1], [0], [0], [0, 0, 1, 0], [], []>} : vector<8x16xbf16>, vector<16x16xbf16>, vector<8x16xf32> -> vector<8x16xf32>
    %cst_409 = arith.constant 2.500000e-01 : f32
    %843 = vector.broadcast %cst_409 : f32 to vector<8x16xf32>
    %844 = arith.mulf %842, %843 : vector<8x16xf32>
    %845 = vector.broadcast %687 : vector<1x16xf32> to vector<8x16xf32>
    %846 = arith.addf %844, %845 : vector<8x16xf32>
    %cst_410 = arith.constant dense<0.000000e+00> : vector<8x8xf32>
    %847 = tpu.matmul %831, %833, %cst_410 {dimension_numbers = #tpu.dot_dimension_numbers<[1], [1], [0], [0], [0, 0, 1, 0], [], []>} : vector<8x16xbf16>, vector<8x16xbf16>, vector<8x8xf32> -> vector<8x8xf32>
    %cst_411 = arith.constant 2.500000e-01 : f32
    %848 = vector.broadcast %cst_411 : f32 to vector<8x8xf32>
    %849 = arith.mulf %847, %848 : vector<8x8xf32>
    %850 = vector.broadcast %688 : vector<1x8xf32> to vector<8x8xf32>
    %851 = arith.addf %849, %850 : vector<8x8xf32>
    %cst_412 = arith.constant dense<0xFF800000> : vector<8xf32>
    %852 = vector.multi_reduction <maximumf>, %846, %cst_412 [1] : vector<8x16xf32> to vector<8xf32>
    %853 = vector.shape_cast %852 : vector<8xf32> to vector<8x1xf32>
    %cst_413 = arith.constant dense<0xFF800000> : vector<8xf32>
    %854 = vector.multi_reduction <maximumf>, %851, %cst_413 [1] : vector<8x8xf32> to vector<8xf32>
    %855 = vector.shape_cast %854 : vector<8xf32> to vector<8x1xf32>
    %856 = arith.maximumf %853, %855 : vector<8x1xf32>
    %857 = vector.broadcast %856 : vector<8x1xf32> to vector<8x16xf32>
    %858 = arith.subf %846, %857 : vector<8x16xf32>
    %859 = math.exp %858 : vector<8x16xf32>
    %860 = vector.broadcast %856 : vector<8x1xf32> to vector<8x8xf32>
    %861 = arith.subf %851, %860 : vector<8x8xf32>
    %862 = math.exp %861 : vector<8x8xf32>
    %cst_414 = arith.constant dense<0.000000e+00> : vector<8xf32>
    %863 = vector.multi_reduction <add>, %859, %cst_414 [1] : vector<8x16xf32> to vector<8xf32>
    %864 = vector.shape_cast %863 : vector<8xf32> to vector<8x1xf32>
    %cst_415 = arith.constant dense<0.000000e+00> : vector<8xf32>
    %865 = vector.multi_reduction <add>, %862, %cst_415 [1] : vector<8x8xf32> to vector<8xf32>
    %866 = vector.shape_cast %865 : vector<8xf32> to vector<8x1xf32>
    %867 = arith.addf %864, %866 : vector<8x1xf32>
    %868 = arith.truncf %859 : vector<8x16xf32> to vector<8x16xbf16>
    %cst_416 = arith.constant dense<0.000000e+00> : vector<8x16xf32>
    %869 = tpu.matmul %868, %841, %cst_416 {dimension_numbers = #tpu.dot_dimension_numbers<[1], [0], [0], [1], [0, 0, 1, 1], [], []>} : vector<8x16xbf16>, vector<16x16xbf16>, vector<8x16xf32> -> vector<8x16xf32>
    %870 = arith.truncf %862 : vector<8x8xf32> to vector<8x8xbf16>
    %cst_417 = arith.constant dense<0.000000e+00> : vector<8x16xf32>
    %871 = tpu.matmul %870, %835, %cst_417 {dimension_numbers = #tpu.dot_dimension_numbers<[1], [0], [0], [1], [0, 0, 1, 1], [], []>} : vector<8x8xbf16>, vector<8x16xbf16>, vector<8x16xf32> -> vector<8x16xf32>
    %872 = arith.addf %869, %871 : vector<8x16xf32>
    %873 = tpu.reciprocal %867 {approx = true} : vector<8x1xf32> -> vector<8x1xf32>
    %874 = vector.broadcast %873 : vector<8x1xf32> to vector<8x16xf32>
    %875 = arith.mulf %872, %874 : vector<8x16xf32>
    %c8_418 = arith.constant 8 : index
    %c48_419 = arith.constant 48 : index
    %876 = vector.load %arg19[%c8_418, %c48_419] : memref<16x64xf32, #tpu.memory_space<vmem>>, vector<8x16xf32>
    tpu.vector_store %arg19[%c8_418, %c48_419], %875 {strides = array<i32>} : memref<16x64xf32, #tpu.memory_space<vmem>>, vector<8x16xf32>,
    %c0_420 = arith.constant 0 : index
    %c0_421 = arith.constant 0 : index
    %877 = vector.load %arg19[%c0_420, %c0_421] : memref<16x64xf32, #tpu.memory_space<vmem>>, vector<16x64xf32>
    %878 = arith.truncf %877 : vector<16x64xf32> to vector<16x64xbf16>
    %c1_422 = arith.constant 1 : index
    %c0_423 = arith.constant 0 : index
    %c0_424 = arith.constant 0 : index
    %879 = vector.load %arg6[%c1_422, %c0_423, %c0_424] : memref<2x64x64xbf16, #tpu.memory_space<vmem>>, vector<1x64x64xbf16>
    %880 = vector.shape_cast %879 : vector<1x64x64xbf16> to vector<64x64xbf16>
    %cst_425 = arith.constant dense<0.000000e+00> : vector<16x64xf32>
    %881 = tpu.matmul %878, %880, %cst_425 {dimension_numbers = #tpu.dot_dimension_numbers<[1], [0], [0], [1], [0, 0, 1, 1], [], []>} : vector<16x64xbf16>, vector<64x64xbf16>, vector<16x64xf32> -> vector<16x64xf32>
    %c1_426 = arith.constant 1 : index
    %c0_427 = arith.constant 0 : index
    %c0_428 = arith.constant 0 : index
    %882 = vector.load %arg7[%c1_426, %c0_427, %c0_428] : memref<2x1x64xf32, #tpu.memory_space<vmem>>, vector<1x1x64xf32>
    %883 = vector.shape_cast %882 : vector<1x1x64xf32> to vector<1x64xf32>
    %884 = vector.broadcast %883 : vector<1x64xf32> to vector<16x64xf32>
    %885 = arith.addf %881, %884 : vector<16x64xf32>
    %886 = arith.addf %885, %484 : vector<16x64xf32>
    %cst_429 = arith.constant dense<0.000000e+00> : vector<16xf32>
    %887 = vector.multi_reduction <add>, %886, %cst_429 [1] : vector<16x64xf32> to vector<16xf32>
    %888 = vector.shape_cast %887 : vector<16xf32> to vector<16x1xf32>
    %cst_430 = arith.constant 6.400000e+01 : f32
    %889 = vector.broadcast %cst_430 : f32 to vector<16x1xf32>
    %890 = arith.divf %888, %889 : vector<16x1xf32>
    %891 = vector.broadcast %890 : vector<16x1xf32> to vector<16x64xf32>
    %892 = arith.subf %886, %891 : vector<16x64xf32>
    %893 = arith.mulf %892, %892 : vector<16x64xf32>
    %cst_431 = arith.constant dense<0.000000e+00> : vector<16xf32>
    %894 = vector.multi_reduction <add>, %893, %cst_431 [1] : vector<16x64xf32> to vector<16xf32>
    %895 = vector.shape_cast %894 : vector<16xf32> to vector<16x1xf32>
    %cst_432 = arith.constant 6.400000e+01 : f32
    %896 = vector.broadcast %cst_432 : f32 to vector<16x1xf32>
    %897 = arith.divf %895, %896 : vector<16x1xf32>
    %898 = vector.broadcast %890 : vector<16x1xf32> to vector<16x64xf32>
    %899 = arith.subf %886, %898 : vector<16x64xf32>
    %cst_433 = arith.constant 9.99999996E-13 : f32
    %900 = vector.broadcast %cst_433 : f32 to vector<16x1xf32>
    %901 = arith.addf %897, %900 : vector<16x1xf32>
    %902 = math.rsqrt %901 : vector<16x1xf32>
    %903 = vector.broadcast %902 : vector<16x1xf32> to vector<16x64xf32>
    %904 = arith.mulf %899, %903 : vector<16x64xf32>
    %c1_434 = arith.constant 1 : index
    %c0_435 = arith.constant 0 : index
    %c0_436 = arith.constant 0 : index
    %905 = vector.load %arg8[%c1_434, %c0_435, %c0_436] : memref<2x1x64xf32, #tpu.memory_space<vmem>>, vector<1x1x64xf32>
    %906 = vector.shape_cast %905 : vector<1x1x64xf32> to vector<1x64xf32>
    %907 = vector.broadcast %906 : vector<1x64xf32> to vector<16x64xf32>
    %908 = arith.mulf %904, %907 : vector<16x64xf32>
    %c1_437 = arith.constant 1 : index
    %c0_438 = arith.constant 0 : index
    %c0_439 = arith.constant 0 : index
    %909 = vector.load %arg9[%c1_437, %c0_438, %c0_439] : memref<2x1x64xf32, #tpu.memory_space<vmem>>, vector<1x1x64xf32>
    %910 = vector.shape_cast %909 : vector<1x1x64xf32> to vector<1x64xf32>
    %911 = vector.broadcast %910 : vector<1x64xf32> to vector<16x64xf32>
    %912 = arith.addf %908, %911 : vector<16x64xf32>
    %913 = arith.truncf %912 : vector<16x64xf32> to vector<16x64xbf16>
    %c1_440 = arith.constant 1 : index
    %c0_441 = arith.constant 0 : index
    %c0_442 = arith.constant 0 : index
    %914 = vector.load %arg10[%c1_440, %c0_441, %c0_442] : memref<2x64x256xbf16, #tpu.memory_space<vmem>>, vector<1x64x256xbf16>
    %915 = vector.shape_cast %914 : vector<1x64x256xbf16> to vector<64x256xbf16>
    %cst_443 = arith.constant dense<0.000000e+00> : vector<16x256xf32>
    %916 = tpu.matmul %913, %915, %cst_443 {dimension_numbers = #tpu.dot_dimension_numbers<[1], [0], [0], [1], [0, 0, 1, 1], [], []>} : vector<16x64xbf16>, vector<64x256xbf16>, vector<16x256xf32> -> vector<16x256xf32>
    %c1_444 = arith.constant 1 : index
    %c0_445 = arith.constant 0 : index
    %c0_446 = arith.constant 0 : index
    %917 = vector.load %arg11[%c1_444, %c0_445, %c0_446] : memref<2x1x256xf32, #tpu.memory_space<vmem>>, vector<1x1x256xf32>
    %918 = vector.shape_cast %917 : vector<1x1x256xf32> to vector<1x256xf32>
    %919 = vector.broadcast %918 : vector<1x256xf32> to vector<16x256xf32>
    %920 = arith.addf %916, %919 : vector<16x256xf32>
    %921 = arith.mulf %920, %920 : vector<16x256xf32>
    %922 = arith.mulf %920, %921 : vector<16x256xf32>
    %cst_447 = arith.constant 4.471500e-02 : f32
    %923 = vector.broadcast %cst_447 : f32 to vector<16x256xf32>
    %924 = arith.mulf %923, %922 : vector<16x256xf32>
    %925 = arith.addf %920, %924 : vector<16x256xf32>
    %cst_448 = arith.constant 0.797884583 : f32
    %926 = vector.broadcast %cst_448 : f32 to vector<16x256xf32>
    %927 = arith.mulf %926, %925 : vector<16x256xf32>
    %928 = math.tanh %927 : vector<16x256xf32>
    %cst_449 = arith.constant 1.000000e+00 : f32
    %929 = vector.broadcast %cst_449 : f32 to vector<16x256xf32>
    %930 = arith.addf %929, %928 : vector<16x256xf32>
    %cst_450 = arith.constant 5.000000e-01 : f32
    %931 = vector.broadcast %cst_450 : f32 to vector<16x256xf32>
    %932 = arith.mulf %931, %930 : vector<16x256xf32>
    %933 = arith.mulf %920, %932 : vector<16x256xf32>
    %934 = arith.truncf %933 : vector<16x256xf32> to vector<16x256xbf16>
    %c1_451 = arith.constant 1 : index
    %c0_452 = arith.constant 0 : index
    %c0_453 = arith.constant 0 : index
    %935 = vector.load %arg12[%c1_451, %c0_452, %c0_453] : memref<2x256x64xbf16, #tpu.memory_space<vmem>>, vector<1x256x64xbf16>
    %936 = vector.shape_cast %935 : vector<1x256x64xbf16> to vector<256x64xbf16>
    %cst_454 = arith.constant dense<0.000000e+00> : vector<16x64xf32>
    %937 = tpu.matmul %934, %936, %cst_454 {dimension_numbers = #tpu.dot_dimension_numbers<[1], [0], [0], [1], [0, 0, 1, 1], [], []>} : vector<16x256xbf16>, vector<256x64xbf16>, vector<16x64xf32> -> vector<16x64xf32>
    %c1_455 = arith.constant 1 : index
    %c0_456 = arith.constant 0 : index
    %c0_457 = arith.constant 0 : index
    %938 = vector.load %arg13[%c1_455, %c0_456, %c0_457] : memref<2x1x64xf32, #tpu.memory_space<vmem>>, vector<1x1x64xf32>
    %939 = vector.shape_cast %938 : vector<1x1x64xf32> to vector<1x64xf32>
    %940 = vector.broadcast %939 : vector<1x64xf32> to vector<16x64xf32>
    %941 = arith.addf %937, %940 : vector<16x64xf32>
    %942 = arith.addf %941, %912 : vector<16x64xf32>
    %cst_458 = arith.constant dense<0.000000e+00> : vector<16xf32>
    %943 = vector.multi_reduction <add>, %942, %cst_458 [1] : vector<16x64xf32> to vector<16xf32>
    %944 = vector.shape_cast %943 : vector<16xf32> to vector<16x1xf32>
    %cst_459 = arith.constant 6.400000e+01 : f32
    %945 = vector.broadcast %cst_459 : f32 to vector<16x1xf32>
    %946 = arith.divf %944, %945 : vector<16x1xf32>
    %947 = vector.broadcast %946 : vector<16x1xf32> to vector<16x64xf32>
    %948 = arith.subf %942, %947 : vector<16x64xf32>
    %949 = arith.mulf %948, %948 : vector<16x64xf32>
    %cst_460 = arith.constant dense<0.000000e+00> : vector<16xf32>
    %950 = vector.multi_reduction <add>, %949, %cst_460 [1] : vector<16x64xf32> to vector<16xf32>
    %951 = vector.shape_cast %950 : vector<16xf32> to vector<16x1xf32>
    %cst_461 = arith.constant 6.400000e+01 : f32
    %952 = vector.broadcast %cst_461 : f32 to vector<16x1xf32>
    %953 = arith.divf %951, %952 : vector<16x1xf32>
    %954 = vector.broadcast %946 : vector<16x1xf32> to vector<16x64xf32>
    %955 = arith.subf %942, %954 : vector<16x64xf32>
    %cst_462 = arith.constant 9.99999996E-13 : f32
    %956 = vector.broadcast %cst_462 : f32 to vector<16x1xf32>
    %957 = arith.addf %953, %956 : vector<16x1xf32>
    %958 = math.rsqrt %957 : vector<16x1xf32>
    %959 = vector.broadcast %958 : vector<16x1xf32> to vector<16x64xf32>
    %960 = arith.mulf %955, %959 : vector<16x64xf32>
    %c1_463 = arith.constant 1 : index
    %c0_464 = arith.constant 0 : index
    %c0_465 = arith.constant 0 : index
    %961 = vector.load %arg14[%c1_463, %c0_464, %c0_465] : memref<2x1x64xf32, #tpu.memory_space<vmem>>, vector<1x1x64xf32>
    %962 = vector.shape_cast %961 : vector<1x1x64xf32> to vector<1x64xf32>
    %963 = vector.broadcast %962 : vector<1x64xf32> to vector<16x64xf32>
    %964 = arith.mulf %960, %963 : vector<16x64xf32>
    %c1_466 = arith.constant 1 : index
    %c0_467 = arith.constant 0 : index
    %c0_468 = arith.constant 0 : index
    %965 = vector.load %arg15[%c1_466, %c0_467, %c0_468] : memref<2x1x64xf32, #tpu.memory_space<vmem>>, vector<1x1x64xf32>
    %966 = vector.shape_cast %965 : vector<1x1x64xf32> to vector<1x64xf32>
    %967 = vector.broadcast %966 : vector<1x64xf32> to vector<16x64xf32>
    %968 = arith.addf %964, %967 : vector<16x64xf32>
    %969 = arith.truncf %968 : vector<16x64xf32> to vector<16x64xbf16>
    %c0_469 = arith.constant 0 : index
    %c0_470 = arith.constant 0 : index
    %970 = vector.load %arg16[%c0_469, %c0_470] : memref<64x128xbf16, #tpu.memory_space<vmem>>, vector<64x128xbf16>
    %cst_471 = arith.constant dense<0.000000e+00> : vector<16x128xf32>
    %971 = tpu.matmul %969, %970, %cst_471 {dimension_numbers = #tpu.dot_dimension_numbers<[1], [0], [0], [1], [0, 0, 1, 1], [], []>} : vector<16x64xbf16>, vector<64x128xbf16>, vector<16x128xf32> -> vector<16x128xf32>
    %c0_472 = arith.constant 0 : index
    %c0_473 = arith.constant 0 : index
    %972 = vector.load %arg17[%c0_472, %c0_473] : memref<1x128xf32, #tpu.memory_space<vmem>>, vector<1x128xf32>
    %973 = vector.broadcast %972 : vector<1x128xf32> to vector<16x128xf32>
    %974 = arith.addf %971, %973 : vector<16x128xf32>
    %c0_474 = arith.constant 0 : index
    %c0_475 = arith.constant 0 : index
    %975 = vector.load %arg18[%c0_474, %c0_475] : memref<16x128xf32, #tpu.memory_space<vmem>>, vector<16x128xf32>
    tpu.vector_store %arg18[%c0_474, %c0_475], %974 {strides = array<i32>} : memref<16x128xf32, #tpu.memory_space<vmem>>, vector<16x128xf32>,
    return
  }
}

</mosaic_0001>

<bundles_post_ra>
// kernel: hmnet_ner_forward.6
= control target key start
LH: loop header
LB: loop body
LE: loop exit
PB: predicated region body
PF: predicated region fallthrough
CT: control target
= control target key end

     0   :  { %s2039_s12 = smov 0   ;;  %s2413_s0 = inlined_call_operand.vmem [shape: bf16[2048,128], index: 0, kind: input, shape index: {}]   ;;  %s2414_s1 = inlined_call_operand.vmem [shape: bf16[128,128], index: 1, kind: input, shape index: {}]   ;;  %s2415_s2 = inlined_call_operand.vmem [shape: f32[1,128], index: 2, kind: input, shape index: {}]   ;;  %s2416_s3 = inlined_call_operand.vmem [shape: f32[2048,128], index: 3, kind: output, shape index: {}]  }
   0x1 LB: > { %s1615_s13 = sadd.s32 4294967295, %s2017_s12   ;;  %p1619_p0 = scmp.ge.s32.totalorder %s2017_s12, 1  ;;  %s2017_s12 = sphi %s2039_s12, %s13_s12  }
   0x2   : > { %p138_p1 = scmp.lt.s32.totalorder %s2017_s12, 3 }
   0x4   : > { %p139_p2 = pnand %p1619_p0, %p138_p1 }
   0x5   : > { %s1620_s16 = sshll.u32 (!%p139_p2), %s1615_s13, 7 }
   0x6   : > { %142 = sbr.rel (%p139_p2) target bundleno = 368 (0x170), region = 32  ;;  %p163_p3 = scmp.lt.s32.totalorder (!%p139_p2), %s1620_s16, 255 }
   0xb   : > { %v1939_v0 = vld [vmem:[%s2414_s1 + $0x38] sm:$0xff]   ;;  %v1940_v1 = vld [vmem:[%s2414_s1 + $0x30] sm:$0xff]   ;;  %s2418_s16 = smov (!%p163_p3, %s1620_s16), 255  ;;  %v1941_v2 = vld [vmem:[%s2414_s1 + $0x28] sm:$0xff]  }
   0xc   : > { %1771 = vmatprep.subr.bf16.mxu0 %v1939_v0  ;;  %1915 = vmatprep.subr.bf16.mxu1 %v1939_v0  ;;  %s1621_s21 = sshll.u32 %s2418_s16, 2  ;;  %v1942_v3 = vld [vmem:[%s2414_s1 + $0x20] sm:$0xff]   ;;  %v1943_v6 = vld [vmem:[%s2414_s1 + $0x18] sm:$0xff]   ;;  %v1944_v7 = vld [vmem:[%s2414_s1 + $0x10] sm:$0xff]   ;;  %s1623_s10 = sshll.u32 %s2418_s16, 3 }
   0xd   : > { %1772 = vmatpush3.bf16.msra.mxu0 %v1939_v0  ;;  %1923 = vmatpush3.bf16.msra.mxu1 %v1939_v0  ;;  %s2062_s24 = scalar_lea.vmem %s2413_s0, %s1621_s21  ;;  %v1945_v8 = vld [vmem:[%s2414_s1 + $0x8] sm:$0xff]   ;;  %v1946_v9 = vld [vmem:[%s2414_s1] sm:$0xff]   ;;  %s2154_s14 = scalar_lea.vmem %s2416_s3, %s1623_s10 }
   0xe   : > { %1773 = vmatprep.subr.bf16.mxu0 %v1940_v1  ;;  %1916 = vmatprep.subr.bf16.mxu1 %v1940_v1  ;;  %v1947_v4 = vld [vmem:[%s2062_s24] sm:$0xff]   ;;  %v1949_v10 = vld [vmem:[%s2062_s24 + $0x8] sm:$0xff]   ;;  %v1951_v12 = vld [vmem:[%s2062_s24 + $0x10] sm:$0xff]  }
   0xf   : > { %v1948_v5 = vld [vmem:[%s2062_s24 + $0x100] sm:$0xff]   ;;  %1787 = vmatprep.mubr.bf16.mxu0 %v1947_v4  ;;  %v1950_v11 = vld [vmem:[%s2062_s24 + $0x108] sm:$0xff]   ;;  %v1952_v13 = vld [vmem:[%s2062_s24 + $0x110] sm:$0xff]  }
  0x10   : > { %1851 = vmatprep.mubr.bf16.mxu1 %v1948_v5  ;;  %v1953_v14 = vld [vmem:[%s2062_s24 + $0x18] sm:$0xff]   ;;  %v1955_v16 = vld [vmem:[%s2062_s24 + $0x20] sm:$0xff]   ;;  %v1957_v18 = vld [vmem:[%s2062_s24 + $0x28] sm:$0xff]  }
  0x11   : > { %1774 = vmatpush3.bf16.msra.mxu0 %v1940_v1  ;;  %1924 = vmatpush3.bf16.msra.mxu1 %v1940_v1  ;;  %v1954_v15 = vld [vmem:[%s2062_s24 + $0x118] sm:$0xff]   ;;  %v1956_v17 = vld [vmem:[%s2062_s24 + $0x120] sm:$0xff]   ;;  %v1958_v19 = vld [vmem:[%s2062_s24 + $0x128] sm:$0xff]  }
  0x12   : > { %1775 = vmatprep.subr.bf16.mxu0 %v1941_v2  ;;  %1917 = vmatprep.subr.bf16.mxu1 %v1941_v2  ;;  %v1959_v20 = vld [vmem:[%s2062_s24 + $0x30] sm:$0xff]   ;;  %v1961_v22 = vld [vmem:[%s2062_s24 + $0x38] sm:$0xff]   ;;  %v1963_v24 = vld [vmem:[%s2062_s24 + $0x40] sm:$0xff]  }
  0x13   : > { %v1960_v21 = vld [vmem:[%s2062_s24 + $0x130] sm:$0xff]   ;;  %v1962_v23 = vld [vmem:[%s2062_s24 + $0x138] sm:$0xff]   ;;  %v1964_v25 = vld [vmem:[%s2062_s24 + $0x140] sm:$0xff]  }
  0x14   : > { %v1965_v26 = vld [vmem:[%s2062_s24 + $0x48] sm:$0xff]   ;;  %v1967_v28 = vld [vmem:[%s2062_s24 + $0x50] sm:$0xff]   ;;  %v1969_v30 = vld [vmem:[%s2062_s24 + $0x58] sm:$0xff]  }
  0x15   : > { %1776 = vmatpush3.bf16.msra.mxu0 %v1941_v2  ;;  %1925 = vmatpush3.bf16.msra.mxu1 %v1941_v2  ;;  %v1966_v27 = vld [vmem:[%s2062_s24 + $0x148] sm:$0xff]   ;;  %v1968_v29 = vld [vmem:[%s2062_s24 + $0x150] sm:$0xff]   ;;  %v1970_v31 = vld [vmem:[%s2062_s24 + $0x158] sm:$0xff]  }
  0x16   : > { %1777 = vmatprep.subr.bf16.mxu0 %v1942_v3  ;;  %1918 = vmatprep.subr.bf16.mxu1 %v1942_v3  ;;  %v1971_v32 = vld [vmem:[%s2062_s24 + $0x60] sm:$0xff]   ;;  %v1973_v34 = vld [vmem:[%s2062_s24 + $0x68] sm:$0xff]   ;;  %v1975_v36 = vld [vmem:[%s2062_s24 + $0x70] sm:$0xff]  }
  0x17   : > { %v1972_v33 = vld [vmem:[%s2062_s24 + $0x160] sm:$0xff]   ;;  %v1974_v35 = vld [vmem:[%s2062_s24 + $0x168] sm:$0xff]   ;;  %v1976_v37 = vld [vmem:[%s2062_s24 + $0x170] sm:$0xff]  }
  0x18   : > { %v1977_v38 = vld [vmem:[%s2062_s24 + $0x78] sm:$0xff]   ;;  %v1979_v40 = vld [vmem:[%s2062_s24 + $0x80] sm:$0xff]   ;;  %v1981_v42 = vld [vmem:[%s2062_s24 + $0x88] sm:$0xff]  }
  0x19   : > { %1778 = vmatpush3.bf16.msra.mxu0 %v1942_v3  ;;  %1926 = vmatpush3.bf16.msra.mxu1 %v1942_v3  ;;  %v1978_v39 = vld [vmem:[%s2062_s24 + $0x178] sm:$0xff]   ;;  %v1980_v41 = vld [vmem:[%s2062_s24 + $0x180] sm:$0xff]   ;;  %v1982_v43 = vld [vmem:[%s2062_s24 + $0x188] sm:$0xff]  }
  0x1a   : > { %1779 = vmatprep.subr.bf16.mxu0 %v1943_v6  ;;  %1919 = vmatprep.subr.bf16.mxu1 %v1943_v6  ;;  %v1983_v44 = vld [vmem:[%s2062_s24 + $0x90] sm:$0xff]   ;;  %v1985_v46 = vld [vmem:[%s2062_s24 + $0x98] sm:$0xff]   ;;  %v1987_v48 = vld [vmem:[%s2062_s24 + $0xa0] sm:$0xff]  }
  0x1b   : > { %v1984_v45 = vld [vmem:[%s2062_s24 + $0x190] sm:$0xff]   ;;  %v1986_v47 = vld [vmem:[%s2062_s24 + $0x198] sm:$0xff]   ;;  %v1988_v49 = vld [vmem:[%s2062_s24 + $0x1a0] sm:$0xff]  }
  0x1c   : > { %v1989_v50 = vld [vmem:[%s2062_s24 + $0xa8] sm:$0xff]   ;;  %v1991_v52 = vld [vmem:[%s2062_s24 + $0xb0] sm:$0xff]   ;;  %v1993_v54 = vld [vmem:[%s2062_s24 + $0xb8] sm:$0xff]  }
  0x1d   : > { %1780 = vmatpush3.bf16.msra.mxu0 %v1943_v6  ;;  %1927 = vmatpush3.bf16.msra.mxu1 %v1943_v6  ;;  %v1990_v51 = vld [vmem:[%s2062_s24 + $0x1a8] sm:$0xff]   ;;  %v1992_v53 = vld [vmem:[%s2062_s24 + $0x1b0] sm:$0xff]   ;;  %v1994_v55 = vld [vmem:[%s2062_s24 + $0x1b8] sm:$0xff]  }
  0x1e   : > { %1781 = vmatprep.subr.bf16.mxu0 %v1944_v7  ;;  %1920 = vmatprep.subr.bf16.mxu1 %v1944_v7  ;;  %v1995_v56 = vld [vmem:[%s2062_s24 + $0xc0] sm:$0xff]   ;;  %v1997_v58 = vld [vmem:[%s2062_s24 + $0xc8] sm:$0xff]   ;;  %v1999_v60 = vld [vmem:[%s2062_s24 + $0xd0] sm:$0xff]  }
  0x1f   : > { %v1996_v57 = vld [vmem:[%s2062_s24 + $0x1c0] sm:$0xff]   ;;  %v1998_v59 = vld [vmem:[%s2062_s24 + $0x1c8] sm:$0xff]   ;;  %v2000_v61 = vld [vmem:[%s2062_s24 + $0x1d0] sm:$0xff]  }
  0x20   : > { %v2001_v62 = vld [vmem:[%s2062_s24 + $0xd8] sm:$0xff]   ;;  %v2003_v0 = vld [vmem:[%s2062_s24 + $0xe0] sm:$0xff]   ;;  %v2005_v2 = vld [vmem:[%s2062_s24 + $0xe8] sm:$0xff]  }
  0x21   : > { %1782 = vmatpush3.bf16.msra.mxu0 %v1944_v7  ;;  %1928 = vmatpush3.bf16.msra.mxu1 %v1944_v7  ;;  %v2002_v63 = vld [vmem:[%s2062_s24 + $0x1d8] sm:$0xff]   ;;  %v2004_v1 = vld [vmem:[%s2062_s24 + $0x1e0] sm:$0xff]   ;;  %v2006_v3 = vld [vmem:[%s2062_s24 + $0x1e8] sm:$0xff]  }
  0x22   : > { %1783 = vmatprep.subr.bf16.mxu0 %v1945_v8  ;;  %1921 = vmatprep.subr.bf16.mxu1 %v1945_v8  ;;  %v2007_v4 = vld [vmem:[%s2062_s24 + $0xf0] sm:$0xff]   ;;  %v2009_v6 = vld [vmem:[%s2062_s24 + $0xf8] sm:$0xff]  }
  0x23   : > { %v2008_v5 = vld [vmem:[%s2062_s24 + $0x1f0] sm:$0xff]   ;;  %v2010_v7 = vld [vmem:[%s2062_s24 + $0x1f8] sm:$0xff]  }
  0x25   : > { %1784 = vmatpush3.bf16.msra.mxu0 %v1945_v8  ;;  %1929 = vmatpush3.bf16.msra.mxu1 %v1945_v8  ;;  %v2146_v8 = vld [vmem:[%s2415_s2] ss:$0 sm:$0xff] }
  0x26   : > { %1785 = vmatprep.subr.bf16.mxu0 %v1946_v9  ;;  %1922 = vmatprep.subr.bf16.mxu1 %v1946_v9 }
  0x29   : > { %1786 = vmatpush3.bf16.msra.mxu0 %v1946_v9  ;;  %1930 = vmatpush3.bf16.msra.mxu1 %v1946_v9 }
  0x2c   : > { %1788 = vmatmul.mubr.bf16.vlgmr.msra.gmra.mxu0 %v1949_v10  ;;  %1852 = vmatmul.mubr.bf16.vlgmr.msra.gmra.mxu1 %v1950_v11 }
  0x2d   : > { %1791 = vmatprep.mubr.bf16.mxu0 %v1951_v12  ;;  %1855 = vmatprep.mubr.bf16.mxu1 %v1952_v13 }
  0x34   : > { %1792 = vmatmul.mubr.bf16.gmra.mxu0 %v1953_v14  ;;  %1856 = vmatmul.mubr.bf16.gmra.mxu1 %v1954_v15 }
  0x35   : > { %1795 = vmatprep.mubr.bf16.mxu0 %v1955_v16  ;;  %1859 = vmatprep.mubr.bf16.mxu1 %v1956_v17 }
  0x3c   : > { %1796 = vmatmul.mubr.bf16.gmra.mxu0 %v1957_v18  ;;  %1860 = vmatmul.mubr.bf16.gmra.mxu1 %v1958_v19 }
  0x3d   : > { %1799 = vmatprep.mubr.bf16.mxu0 %v1959_v20  ;;  %1863 = vmatprep.mubr.bf16.mxu1 %v1960_v21 }
  0x44   : > { %1800 = vmatmul.mubr.bf16.gmra.mxu0 %v1961_v22  ;;  %1864 = vmatmul.mubr.bf16.gmra.mxu1 %v1962_v23 }
  0x45   : > { %1803 = vmatprep.mubr.bf16.mxu0 %v1963_v24  ;;  %1867 = vmatprep.mubr.bf16.mxu1 %v1964_v25 }
  0x4c   : > { %1804 = vmatmul.mubr.bf16.gmra.mxu0 %v1965_v26  ;;  %1868 = vmatmul.mubr.bf16.gmra.mxu1 %v1966_v27 }
  0x4d   : > { %1807 = vmatprep.mubr.bf16.mxu0 %v1967_v28  ;;  %1871 = vmatprep.mubr.bf16.mxu1 %v1968_v29 }
  0x54   : > { %1808 = vmatmul.mubr.bf16.gmra.mxu0 %v1969_v30  ;;  %1872 = vmatmul.mubr.bf16.gmra.mxu1 %v1970_v31 }
  0x55   : > { %1811 = vmatprep.mubr.bf16.mxu0 %v1971_v32  ;;  %1875 = vmatprep.mubr.bf16.mxu1 %v1972_v33 }
  0x5c   : > { %1812 = vmatmul.mubr.bf16.gmra.mxu0 %v1973_v34  ;;  %1876 = vmatmul.mubr.bf16.gmra.mxu1 %v1974_v35 }
  0x5d   : > { %1815 = vmatprep.mubr.bf16.mxu0 %v1975_v36  ;;  %1879 = vmatprep.mubr.bf16.mxu1 %v1976_v37 }
  0x64   : > { %1816 = vmatmul.mubr.bf16.gmra.mxu0 %v1977_v38  ;;  %1880 = vmatmul.mubr.bf16.gmra.mxu1 %v1978_v39 }
  0x65   : > { %1819 = vmatprep.mubr.bf16.mxu0 %v1979_v40  ;;  %1883 = vmatprep.mubr.bf16.mxu1 %v1980_v41 }
  0x6c   : > { %1820 = vmatmul.mubr.bf16.gmra.mxu0 %v1981_v42  ;;  %1884 = vmatmul.mubr.bf16.gmra.mxu1 %v1982_v43 }
  0x6d   : > { %1823 = vmatprep.mubr.bf16.mxu0 %v1983_v44  ;;  %1887 = vmatprep.mubr.bf16.mxu1 %v1984_v45 }
  0x74   : > { %1824 = vmatmul.mubr.bf16.gmra.mxu0 %v1985_v46  ;;  %1888 = vmatmul.mubr.bf16.gmra.mxu1 %v1986_v47 }
  0x75   : > { %1827 = vmatprep.mubr.bf16.mxu0 %v1987_v48  ;;  %1891 = vmatprep.mubr.bf16.mxu1 %v1988_v49 }
  0x7c   : > { %1828 = vmatmul.mubr.bf16.gmra.mxu0 %v1989_v50  ;;  %1892 = vmatmul.mubr.bf16.gmra.mxu1 %v1990_v51 }
  0x7d   : > { %1831 = vmatprep.mubr.bf16.mxu0 %v1991_v52  ;;  %1895 = vmatprep.mubr.bf16.mxu1 %v1992_v53 }
  0x84   : > { %1832 = vmatmul.mubr.bf16.gmra.mxu0 %v1993_v54  ;;  %1896 = vmatmul.mubr.bf16.gmra.mxu1 %v1994_v55 }
  0x85   : > { %1835 = vmatprep.mubr.bf16.mxu0 %v1995_v56  ;;  %1899 = vmatprep.mubr.bf16.mxu1 %v1996_v57 }
  0x8c   : > { %1836 = vmatmul.mubr.bf16.gmra.mxu0 %v1997_v58  ;;  %1900 = vmatmul.mubr.bf16.gmra.mxu1 %v1998_v59 }
  0x8d   : > { %1839 = vmatprep.mubr.bf16.mxu0 %v1999_v60  ;;  %1903 = vmatprep.mubr.bf16.mxu1 %v2000_v61 }
  0x94   : > { %1840 = vmatmul.mubr.bf16.gmra.mxu0 %v2001_v62  ;;  %1904 = vmatmul.mubr.bf16.gmra.mxu1 %v2002_v63 }
  0x95   : > { %1843 = vmatprep.mubr.bf16.mxu0 %v2003_v0  ;;  %1907 = vmatprep.mubr.bf16.mxu1 %v2004_v1 }
  0x9c   : > { %1844 = vmatmul.mubr.bf16.gmra.mxu0 %v2005_v2  ;;  %1908 = vmatmul.mubr.bf16.gmra.mxu1 %v2006_v3 }
  0x9d   : > { %1847 = vmatprep.mubr.bf16.mxu0 %v2007_v4  ;;  %1911 = vmatprep.mubr.bf16.mxu1 %v2008_v5 }
  0xa4   : > { %1848 = vmatmul.mubr.bf16.gmra.mxu0 %v2009_v6  ;;  %1912 = vmatmul.mubr.bf16.gmra.mxu1 %v2010_v7 }
  0xec   : > { %v1789_v9 = vpop.f32.mrf.mxu0  ;;  %v1853_v10 = vpop.f32.mrf.mxu1 }
  0xed   : > { %v801_v11 = vadd.f32 %v1789_v9, %v2146_v8  ;;  %v1057_v12 = vadd.f32 %v1853_v10, %v2146_v8 }
  0xee   : > { %v792_v13 = vpop.f32.mrf.mxu0  ;;  %v1048_v14 = vpop.f32.mrf.mxu1 }
  0xef   : > { %v1305_v15 = vmax.f32 %v801_v11, 0.0  ;;  %v1369_v16 = vmax.f32 %v1057_v12, 0.0  ;;  %v793_v17 = vadd.f32 %v2146_v8, %v792_v13  ;;  %v1049_v18 = vadd.f32 %v2146_v8, %v1048_v14 }
  0xf0   : > { %v1790_v19 = vpop.f32.mrf.mxu0  ;;  %v1854_v20 = vpop.f32.mrf.mxu1 }
  0xf1   : > { %1433 = vst [vmem:[%s2154_s14 + $0x10] sm:$0xff] %v1305_v15  ;;  %1497 = vst [vmem:[%s2154_s14 + $0x210] sm:$0xff] %v1369_v16  ;;  %v1303_v21 = vmax.f32 %v793_v17, 0.0  ;;  %v1367_v22 = vmax.f32 %v1049_v18, 0.0  ;;  %v804_v23 = vadd.f32 %v1790_v19, %v2146_v8  ;;  %v1060_v24 = vadd.f32 %v1854_v20, %v2146_v8 }
  0xf2   : > { %v795_v25 = vpop.f32.mrf.mxu0  ;;  %v1051_v26 = vpop.f32.mrf.mxu1 }
  0xf3   : > { %1431 = vst [vmem:[%s2154_s14] sm:$0xff] %v1303_v21  ;;  %1495 = vst [vmem:[%s2154_s14 + $0x200] sm:$0xff] %v1367_v22  ;;  %v1306_v27 = vmax.f32 %v804_v23, 0.0  ;;  %v1370_v28 = vmax.f32 %v1060_v24, 0.0  ;;  %v796_v29 = vadd.f32 %v2146_v8, %v795_v25  ;;  %v1052_v30 = vadd.f32 %v2146_v8, %v1051_v26 }
  0xf4   : > { %v1793_v31 = vpop.f32.mrf.mxu0  ;;  %v1857_v32 = vpop.f32.mrf.mxu1 }
  0xf5   : > { %1434 = vst [vmem:[%s2154_s14 + $0x18] sm:$0xff] %v1306_v27  ;;  %1498 = vst [vmem:[%s2154_s14 + $0x218] sm:$0xff] %v1370_v28  ;;  %v1304_v33 = vmax.f32 %v796_v29, 0.0  ;;  %v1368_v34 = vmax.f32 %v1052_v30, 0.0  ;;  %v817_v35 = vadd.f32 %v1793_v31, %v2146_v8  ;;  %v1073_v36 = vadd.f32 %v1857_v32, %v2146_v8 }
  0xf6   : > { %v808_v37 = vpop.f32.mrf.mxu0  ;;  %v1064_v38 = vpop.f32.mrf.mxu1 }
  0xf7   : > { %1432 = vst [vmem:[%s2154_s14 + $0x8] sm:$0xff] %v1304_v33  ;;  %1496 = vst [vmem:[%s2154_s14 + $0x208] sm:$0xff] %v1368_v34  ;;  %v1309_v39 = vmax.f32 %v817_v35, 0.0  ;;  %v1373_v40 = vmax.f32 %v1073_v36, 0.0  ;;  %v809_v41 = vadd.f32 %v2146_v8, %v808_v37  ;;  %v1065_v42 = vadd.f32 %v2146_v8, %v1064_v38 }
  0xf8   : > { %v1794_v43 = vpop.f32.mrf.mxu0  ;;  %v1858_v44 = vpop.f32.mrf.mxu1 }
  0xf9   : > { %1437 = vst [vmem:[%s2154_s14 + $0x30] sm:$0xff] %v1309_v39  ;;  %1501 = vst [vmem:[%s2154_s14 + $0x230] sm:$0xff] %v1373_v40  ;;  %v1307_v45 = vmax.f32 %v809_v41, 0.0  ;;  %v1371_v46 = vmax.f32 %v1065_v42, 0.0  ;;  %v820_v47 = vadd.f32 %v1794_v43, %v2146_v8  ;;  %v1076_v48 = vadd.f32 %v1858_v44, %v2146_v8 }
  0xfa   : > { %v811_v49 = vpop.f32.mrf.mxu0  ;;  %v1067_v50 = vpop.f32.mrf.mxu1 }
  0xfb   : > { %1435 = vst [vmem:[%s2154_s14 + $0x20] sm:$0xff] %v1307_v45  ;;  %1499 = vst [vmem:[%s2154_s14 + $0x220] sm:$0xff] %v1371_v46  ;;  %v1310_v51 = vmax.f32 %v820_v47, 0.0  ;;  %v1374_v52 = vmax.f32 %v1076_v48, 0.0  ;;  %v812_v53 = vadd.f32 %v2146_v8, %v811_v49  ;;  %v1068_v54 = vadd.f32 %v2146_v8, %v1067_v50 }
  0xfc   : > { %v1797_v55 = vpop.f32.mrf.mxu0  ;;  %v1861_v56 = vpop.f32.mrf.mxu1 }
  0xfd   : > { %1438 = vst [vmem:[%s2154_s14 + $0x38] sm:$0xff] %v1310_v51  ;;  %1502 = vst [vmem:[%s2154_s14 + $0x238] sm:$0xff] %v1374_v52  ;;  %v1308_v57 = vmax.f32 %v812_v53, 0.0  ;;  %v1372_v58 = vmax.f32 %v1068_v54, 0.0  ;;  %v833_v59 = vadd.f32 %v1797_v55, %v2146_v8  ;;  %v1089_v60 = vadd.f32 %v1861_v56, %v2146_v8 }
  0xfe   : > { %v824_v61 = vpop.f32.mrf.mxu0  ;;  %v1080_v62 = vpop.f32.mrf.mxu1 }
  0xff   : > { %1436 = vst [vmem:[%s2154_s14 + $0x28] sm:$0xff] %v1308_v57  ;;  %1500 = vst [vmem:[%s2154_s14 + $0x228] sm:$0xff] %v1372_v58  ;;  %v1313_v63 = vmax.f32 %v833_v59, 0.0  ;;  %v1377_v0 = vmax.f32 %v1089_v60, 0.0  ;;  %v825_v1 = vadd.f32 %v2146_v8, %v824_v61  ;;  %v1081_v2 = vadd.f32 %v2146_v8, %v1080_v62 }
 0x100   : > { %v1798_v3 = vpop.f32.mrf.mxu0  ;;  %v1862_v4 = vpop.f32.mrf.mxu1 }
 0x101   : > { %1441 = vst [vmem:[%s2154_s14 + $0x50] sm:$0xff] %v1313_v63  ;;  %1505 = vst [vmem:[%s2154_s14 + $0x250] sm:$0xff] %v1377_v0  ;;  %v1311_v5 = vmax.f32 %v825_v1, 0.0  ;;  %v1375_v6 = vmax.f32 %v1081_v2, 0.0  ;;  %v836_v7 = vadd.f32 %v1798_v3, %v2146_v8  ;;  %v1092_v9 = vadd.f32 %v1862_v4, %v2146_v8 }
 0x102   : > { %v827_v10 = vpop.f32.mrf.mxu0  ;;  %v1083_v11 = vpop.f32.mrf.mxu1 }
 0x103   : > { %1439 = vst [vmem:[%s2154_s14 + $0x40] sm:$0xff] %v1311_v5  ;;  %1503 = vst [vmem:[%s2154_s14 + $0x240] sm:$0xff] %v1375_v6  ;;  %v1314_v12 = vmax.f32 %v836_v7, 0.0  ;;  %v1378_v13 = vmax.f32 %v1092_v9, 0.0  ;;  %v828_v14 = vadd.f32 %v2146_v8, %v827_v10  ;;  %v1084_v15 = vadd.f32 %v2146_v8, %v1083_v11 }
 0x104   : > { %v1801_v16 = vpop.f32.mrf.mxu0  ;;  %v1865_v17 = vpop.f32.mrf.mxu1 }
 0x105   : > { %1442 = vst [vmem:[%s2154_s14 + $0x58] sm:$0xff] %v1314_v12  ;;  %1506 = vst [vmem:[%s2154_s14 + $0x258] sm:$0xff] %v1378_v13  ;;  %v1312_v18 = vmax.f32 %v828_v14, 0.0  ;;  %v1376_v19 = vmax.f32 %v1084_v15, 0.0  ;;  %v849_v20 = vadd.f32 %v1801_v16, %v2146_v8  ;;  %v1105_v21 = vadd.f32 %v1865_v17, %v2146_v8 }
 0x106   : > { %v840_v22 = vpop.f32.mrf.mxu0  ;;  %v1096_v23 = vpop.f32.mrf.mxu1 }
 0x107   : > { %1440 = vst [vmem:[%s2154_s14 + $0x48] sm:$0xff] %v1312_v18  ;;  %1504 = vst [vmem:[%s2154_s14 + $0x248] sm:$0xff] %v1376_v19  ;;  %v1317_v24 = vmax.f32 %v849_v20, 0.0  ;;  %v1381_v25 = vmax.f32 %v1105_v21, 0.0  ;;  %v841_v26 = vadd.f32 %v2146_v8, %v840_v22  ;;  %v1097_v27 = vadd.f32 %v2146_v8, %v1096_v23 }
 0x108   : > { %v1802_v28 = vpop.f32.mrf.mxu0  ;;  %v1866_v29 = vpop.f32.mrf.mxu1 }
 0x109   : > { %1445 = vst [vmem:[%s2154_s14 + $0x70] sm:$0xff] %v1317_v24  ;;  %1509 = vst [vmem:[%s2154_s14 + $0x270] sm:$0xff] %v1381_v25  ;;  %v1315_v30 = vmax.f32 %v841_v26, 0.0  ;;  %v1379_v31 = vmax.f32 %v1097_v27, 0.0  ;;  %v852_v32 = vadd.f32 %v1802_v28, %v2146_v8  ;;  %v1108_v33 = vadd.f32 %v1866_v29, %v2146_v8 }
 0x10a   : > { %v843_v34 = vpop.f32.mrf.mxu0  ;;  %v1099_v35 = vpop.f32.mrf.mxu1 }
 0x10b   : > { %1443 = vst [vmem:[%s2154_s14 + $0x60] sm:$0xff] %v1315_v30  ;;  %1507 = vst [vmem:[%s2154_s14 + $0x260] sm:$0xff] %v1379_v31  ;;  %v1318_v36 = vmax.f32 %v852_v32, 0.0  ;;  %v1382_v37 = vmax.f32 %v1108_v33, 0.0  ;;  %v844_v38 = vadd.f32 %v2146_v8, %v843_v34  ;;  %v1100_v39 = vadd.f32 %v2146_v8, %v1099_v35 }
 0x10c   : > { %v1805_v40 = vpop.f32.mrf.mxu0  ;;  %v1869_v41 = vpop.f32.mrf.mxu1 }
 0x10d   : > { %1446 = vst [vmem:[%s2154_s14 + $0x78] sm:$0xff] %v1318_v36  ;;  %1510 = vst [vmem:[%s2154_s14 + $0x278] sm:$0xff] %v1382_v37  ;;  %v1316_v42 = vmax.f32 %v844_v38, 0.0  ;;  %v1380_v43 = vmax.f32 %v1100_v39, 0.0  ;;  %v865_v44 = vadd.f32 %v1805_v40, %v2146_v8  ;;  %v1121_v45 = vadd.f32 %v1869_v41, %v2146_v8 }
 0x10e   : > { %v856_v46 = vpop.f32.mrf.mxu0  ;;  %v1112_v47 = vpop.f32.mrf.mxu1 }
 0x10f   : > { %1444 = vst [vmem:[%s2154_s14 + $0x68] sm:$0xff] %v1316_v42  ;;  %1508 = vst [vmem:[%s2154_s14 + $0x268] sm:$0xff] %v1380_v43  ;;  %v1321_v48 = vmax.f32 %v865_v44, 0.0  ;;  %v1385_v49 = vmax.f32 %v1121_v45, 0.0  ;;  %v857_v50 = vadd.f32 %v2146_v8, %v856_v46  ;;  %v1113_v51 = vadd.f32 %v2146_v8, %v1112_v47 }
 0x110   : > { %v1806_v52 = vpop.f32.mrf.mxu0  ;;  %v1870_v53 = vpop.f32.mrf.mxu1 }
 0x111   : > { %1449 = vst [vmem:[%s2154_s14 + $0x90] sm:$0xff] %v1321_v48  ;;  %1513 = vst [vmem:[%s2154_s14 + $0x290] sm:$0xff] %v1385_v49  ;;  %v1319_v54 = vmax.f32 %v857_v50, 0.0  ;;  %v1383_v55 = vmax.f32 %v1113_v51, 0.0  ;;  %v868_v56 = vadd.f32 %v1806_v52, %v2146_v8  ;;  %v1124_v57 = vadd.f32 %v1870_v53, %v2146_v8 }
 0x112   : > { %v859_v58 = vpop.f32.mrf.mxu0  ;;  %v1115_v59 = vpop.f32.mrf.mxu1 }
 0x113   : > { %1447 = vst [vmem:[%s2154_s14 + $0x80] sm:$0xff] %v1319_v54  ;;  %1511 = vst [vmem:[%s2154_s14 + $0x280] sm:$0xff] %v1383_v55  ;;  %v1322_v60 = vmax.f32 %v868_v56, 0.0  ;;  %v1386_v61 = vmax.f32 %v1124_v57, 0.0  ;;  %v860_v62 = vadd.f32 %v2146_v8, %v859_v58  ;;  %v1116_v63 = vadd.f32 %v2146_v8, %v1115_v59 }
 0x114   : > { %v1809_v0 = vpop.f32.mrf.mxu0  ;;  %v1873_v1 = vpop.f32.mrf.mxu1 }
 0x115   : > { %1450 = vst [vmem:[%s2154_s14 + $0x98] sm:$0xff] %v1322_v60  ;;  %1514 = vst [vmem:[%s2154_s14 + $0x298] sm:$0xff] %v1386_v61  ;;  %v1320_v2 = vmax.f32 %v860_v62, 0.0  ;;  %v1384_v3 = vmax.f32 %v1116_v63, 0.0  ;;  %v881_v4 = vadd.f32 %v1809_v0, %v2146_v8  ;;  %v1137_v5 = vadd.f32 %v1873_v1, %v2146_v8 }
 0x116   : > { %v872_v6 = vpop.f32.mrf.mxu0  ;;  %v1128_v7 = vpop.f32.mrf.mxu1 }
 0x117   : > { %1448 = vst [vmem:[%s2154_s14 + $0x88] sm:$0xff] %v1320_v2  ;;  %1512 = vst [vmem:[%s2154_s14 + $0x288] sm:$0xff] %v1384_v3  ;;  %v1325_v9 = vmax.f32 %v881_v4, 0.0  ;;  %v1389_v10 = vmax.f32 %v1137_v5, 0.0  ;;  %v873_v11 = vadd.f32 %v2146_v8, %v872_v6  ;;  %v1129_v12 = vadd.f32 %v2146_v8, %v1128_v7 }
 0x118   : > { %v1810_v13 = vpop.f32.mrf.mxu0  ;;  %v1874_v14 = vpop.f32.mrf.mxu1 }
 0x119   : > { %1453 = vst [vmem:[%s2154_s14 + $0xb0] sm:$0xff] %v1325_v9  ;;  %1517 = vst [vmem:[%s2154_s14 + $0x2b0] sm:$0xff] %v1389_v10  ;;  %v1323_v15 = vmax.f32 %v873_v11, 0.0  ;;  %v1387_v16 = vmax.f32 %v1129_v12, 0.0  ;;  %v884_v17 = vadd.f32 %v1810_v13, %v2146_v8  ;;  %v1140_v18 = vadd.f32 %v1874_v14, %v2146_v8 }
 0x11a   : > { %v875_v19 = vpop.f32.mrf.mxu0  ;;  %v1131_v20 = vpop.f32.mrf.mxu1 }
 0x11b   : > { %1451 = vst [vmem:[%s2154_s14 + $0xa0] sm:$0xff] %v1323_v15  ;;  %1515 = vst [vmem:[%s2154_s14 + $0x2a0] sm:$0xff] %v1387_v16  ;;  %v1326_v21 = vmax.f32 %v884_v17, 0.0  ;;  %v1390_v22 = vmax.f32 %v1140_v18, 0.0  ;;  %v876_v23 = vadd.f32 %v2146_v8, %v875_v19  ;;  %v1132_v24 = vadd.f32 %v2146_v8, %v1131_v20 }
 0x11c   : > { %v1813_v25 = vpop.f32.mrf.mxu0  ;;  %v1877_v26 = vpop.f32.mrf.mxu1 }
 0x11d   : > { %1454 = vst [vmem:[%s2154_s14 + $0xb8] sm:$0xff] %v1326_v21  ;;  %1518 = vst [vmem:[%s2154_s14 + $0x2b8] sm:$0xff] %v1390_v22  ;;  %v1324_v27 = vmax.f32 %v876_v23, 0.0  ;;  %v1388_v28 = vmax.f32 %v1132_v24, 0.0  ;;  %v897_v29 = vadd.f32 %v1813_v25, %v2146_v8  ;;  %v1153_v30 = vadd.f32 %v1877_v26, %v2146_v8 }
 0x11e   : > { %v888_v31 = vpop.f32.mrf.mxu0  ;;  %v1144_v32 = vpop.f32.mrf.mxu1 }
 0x11f   : > { %1452 = vst [vmem:[%s2154_s14 + $0xa8] sm:$0xff] %v1324_v27  ;;  %1516 = vst [vmem:[%s2154_s14 + $0x2a8] sm:$0xff] %v1388_v28  ;;  %v1329_v33 = vmax.f32 %v897_v29, 0.0  ;;  %v1393_v34 = vmax.f32 %v1153_v30, 0.0  ;;  %v889_v35 = vadd.f32 %v2146_v8, %v888_v31  ;;  %v1145_v36 = vadd.f32 %v2146_v8, %v1144_v32 }
 0x120   : > { %v1814_v37 = vpop.f32.mrf.mxu0  ;;  %v1878_v38 = vpop.f32.mrf.mxu1 }
 0x121   : > { %1457 = vst [vmem:[%s2154_s14 + $0xd0] sm:$0xff] %v1329_v33  ;;  %1521 = vst [vmem:[%s2154_s14 + $0x2d0] sm:$0xff] %v1393_v34  ;;  %v1327_v39 = vmax.f32 %v889_v35, 0.0  ;;  %v1391_v40 = vmax.f32 %v1145_v36, 0.0  ;;  %v900_v41 = vadd.f32 %v1814_v37, %v2146_v8  ;;  %v1156_v42 = vadd.f32 %v1878_v38, %v2146_v8 }
 0x122   : > { %v891_v43 = vpop.f32.mrf.mxu0  ;;  %v1147_v44 = vpop.f32.mrf.mxu1 }
 0x123   : > { %1455 = vst [vmem:[%s2154_s14 + $0xc0] sm:$0xff] %v1327_v39  ;;  %1519 = vst [vmem:[%s2154_s14 + $0x2c0] sm:$0xff] %v1391_v40  ;;  %v1330_v45 = vmax.f32 %v900_v41, 0.0  ;;  %v1394_v46 = vmax.f32 %v1156_v42, 0.0  ;;  %v892_v47 = vadd.f32 %v2146_v8, %v891_v43  ;;  %v1148_v48 = vadd.f32 %v2146_v8, %v1147_v44 }
 0x124   : > { %v1817_v49 = vpop.f32.mrf.mxu0  ;;  %v1881_v50 = vpop.f32.mrf.mxu1 }
 0x125   : > { %1458 = vst [vmem:[%s2154_s14 + $0xd8] sm:$0xff] %v1330_v45  ;;  %1522 = vst [vmem:[%s2154_s14 + $0x2d8] sm:$0xff] %v1394_v46  ;;  %v1328_v51 = vmax.f32 %v892_v47, 0.0  ;;  %v1392_v52 = vmax.f32 %v1148_v48, 0.0  ;;  %v913_v53 = vadd.f32 %v1817_v49, %v2146_v8  ;;  %v1169_v54 = vadd.f32 %v1881_v50, %v2146_v8 }
 0x126   : > { %v904_v55 = vpop.f32.mrf.mxu0  ;;  %v1160_v56 = vpop.f32.mrf.mxu1 }
 0x127   : > { %1456 = vst [vmem:[%s2154_s14 + $0xc8] sm:$0xff] %v1328_v51  ;;  %1520 = vst [vmem:[%s2154_s14 + $0x2c8] sm:$0xff] %v1392_v52  ;;  %v1333_v57 = vmax.f32 %v913_v53, 0.0  ;;  %v1397_v58 = vmax.f32 %v1169_v54, 0.0  ;;  %v905_v59 = vadd.f32 %v2146_v8, %v904_v55  ;;  %v1161_v60 = vadd.f32 %v2146_v8, %v1160_v56 }
 0x128   : > { %v1818_v61 = vpop.f32.mrf.mxu0  ;;  %v1882_v62 = vpop.f32.mrf.mxu1 }
 0x129   : > { %1461 = vst [vmem:[%s2154_s14 + $0xf0] sm:$0xff] %v1333_v57  ;;  %1525 = vst [vmem:[%s2154_s14 + $0x2f0] sm:$0xff] %v1397_v58  ;;  %v1331_v63 = vmax.f32 %v905_v59, 0.0  ;;  %v1395_v0 = vmax.f32 %v1161_v60, 0.0  ;;  %v916_v1 = vadd.f32 %v1818_v61, %v2146_v8  ;;  %v1172_v2 = vadd.f32 %v1882_v62, %v2146_v8 }
 0x12a   : > { %v907_v3 = vpop.f32.mrf.mxu0  ;;  %v1163_v4 = vpop.f32.mrf.mxu1 }
 0x12b   : > { %1459 = vst [vmem:[%s2154_s14 + $0xe0] sm:$0xff] %v1331_v63  ;;  %1523 = vst [vmem:[%s2154_s14 + $0x2e0] sm:$0xff] %v1395_v0  ;;  %v1334_v5 = vmax.f32 %v916_v1, 0.0  ;;  %v1398_v6 = vmax.f32 %v1172_v2, 0.0  ;;  %v908_v7 = vadd.f32 %v2146_v8, %v907_v3  ;;  %v1164_v9 = vadd.f32 %v2146_v8, %v1163_v4 }
 0x12c   : > { %v1821_v10 = vpop.f32.mrf.mxu0  ;;  %v1885_v11 = vpop.f32.mrf.mxu1 }
 0x12d   : > { %1462 = vst [vmem:[%s2154_s14 + $0xf8] sm:$0xff] %v1334_v5  ;;  %1526 = vst [vmem:[%s2154_s14 + $0x2f8] sm:$0xff] %v1398_v6  ;;  %v1332_v12 = vmax.f32 %v908_v7, 0.0  ;;  %v1396_v13 = vmax.f32 %v1164_v9, 0.0  ;;  %v929_v14 = vadd.f32 %v1821_v10, %v2146_v8  ;;  %v1185_v15 = vadd.f32 %v1885_v11, %v2146_v8 }
 0x12e   : > { %v920_v16 = vpop.f32.mrf.mxu0  ;;  %v1176_v17 = vpop.f32.mrf.mxu1 }
 0x12f   : > { %1460 = vst [vmem:[%s2154_s14 + $0xe8] sm:$0xff] %v1332_v12  ;;  %1524 = vst [vmem:[%s2154_s14 + $0x2e8] sm:$0xff] %v1396_v13  ;;  %v1337_v18 = vmax.f32 %v929_v14, 0.0  ;;  %v1401_v19 = vmax.f32 %v1185_v15, 0.0  ;;  %v921_v20 = vadd.f32 %v2146_v8, %v920_v16  ;;  %v1177_v21 = vadd.f32 %v2146_v8, %v1176_v17 }
 0x130   : > { %v1822_v22 = vpop.f32.mrf.mxu0  ;;  %v1886_v23 = vpop.f32.mrf.mxu1 }
 0x131   : > { %1465 = vst [vmem:[%s2154_s14 + $0x110] sm:$0xff] %v1337_v18  ;;  %1529 = vst [vmem:[%s2154_s14 + $0x310] sm:$0xff] %v1401_v19  ;;  %v1335_v24 = vmax.f32 %v921_v20, 0.0  ;;  %v1399_v25 = vmax.f32 %v1177_v21, 0.0  ;;  %v932_v26 = vadd.f32 %v1822_v22, %v2146_v8  ;;  %v1188_v27 = vadd.f32 %v1886_v23, %v2146_v8 }
 0x132   : > { %v923_v28 = vpop.f32.mrf.mxu0  ;;  %v1179_v29 = vpop.f32.mrf.mxu1 }
 0x133   : > { %1463 = vst [vmem:[%s2154_s14 + $0x100] sm:$0xff] %v1335_v24  ;;  %1527 = vst [vmem:[%s2154_s14 + $0x300] sm:$0xff] %v1399_v25  ;;  %v1338_v30 = vmax.f32 %v932_v26, 0.0  ;;  %v1402_v31 = vmax.f32 %v1188_v27, 0.0  ;;  %v924_v32 = vadd.f32 %v2146_v8, %v923_v28  ;;  %v1180_v33 = vadd.f32 %v2146_v8, %v1179_v29 }
 0x134   : > { %v1825_v34 = vpop.f32.mrf.mxu0  ;;  %v1889_v35 = vpop.f32.mrf.mxu1 }
 0x135   : > { %1466 = vst [vmem:[%s2154_s14 + $0x118] sm:$0xff] %v1338_v30  ;;  %1530 = vst [vmem:[%s2154_s14 + $0x318] sm:$0xff] %v1402_v31  ;;  %v1336_v36 = vmax.f32 %v924_v32, 0.0  ;;  %v1400_v37 = vmax.f32 %v1180_v33, 0.0  ;;  %v945_v38 = vadd.f32 %v1825_v34, %v2146_v8  ;;  %v1201_v39 = vadd.f32 %v1889_v35, %v2146_v8 }
 0x136   : > { %v936_v40 = vpop.f32.mrf.mxu0  ;;  %v1192_v41 = vpop.f32.mrf.mxu1 }
 0x137   : > { %1464 = vst [vmem:[%s2154_s14 + $0x108] sm:$0xff] %v1336_v36  ;;  %1528 = vst [vmem:[%s2154_s14 + $0x308] sm:$0xff] %v1400_v37  ;;  %v1341_v42 = vmax.f32 %v945_v38, 0.0  ;;  %v1405_v43 = vmax.f32 %v1201_v39, 0.0  ;;  %v937_v44 = vadd.f32 %v2146_v8, %v936_v40  ;;  %v1193_v45 = vadd.f32 %v2146_v8, %v1192_v41 }
 0x138   : > { %v1826_v46 = vpop.f32.mrf.mxu0  ;;  %v1890_v47 = vpop.f32.mrf.mxu1 }
 0x139   : > { %1469 = vst [vmem:[%s2154_s14 + $0x130] sm:$0xff] %v1341_v42  ;;  %1533 = vst [vmem:[%s2154_s14 + $0x330] sm:$0xff] %v1405_v43  ;;  %v1339_v48 = vmax.f32 %v937_v44, 0.0  ;;  %v1403_v49 = vmax.f32 %v1193_v45, 0.0  ;;  %v948_v50 = vadd.f32 %v1826_v46, %v2146_v8  ;;  %v1204_v51 = vadd.f32 %v1890_v47, %v2146_v8 }
 0x13a   : > { %v939_v52 = vpop.f32.mrf.mxu0  ;;  %v1195_v53 = vpop.f32.mrf.mxu1 }
 0x13b   : > { %1467 = vst [vmem:[%s2154_s14 + $0x120] sm:$0xff] %v1339_v48  ;;  %1531 = vst [vmem:[%s2154_s14 + $0x320] sm:$0xff] %v1403_v49  ;;  %v1342_v54 = vmax.f32 %v948_v50, 0.0  ;;  %v1406_v55 = vmax.f32 %v1204_v51, 0.0  ;;  %v940_v56 = vadd.f32 %v2146_v8, %v939_v52  ;;  %v1196_v57 = vadd.f32 %v2146_v8, %v1195_v53 }
 0x13c   : > { %v1829_v58 = vpop.f32.mrf.mxu0  ;;  %v1893_v59 = vpop.f32.mrf.mxu1 }
 0x13d   : > { %1470 = vst [vmem:[%s2154_s14 + $0x138] sm:$0xff] %v1342_v54  ;;  %1534 = vst [vmem:[%s2154_s14 + $0x338] sm:$0xff] %v1406_v55  ;;  %v1340_v60 = vmax.f32 %v940_v56, 0.0  ;;  %v1404_v61 = vmax.f32 %v1196_v57, 0.0  ;;  %v961_v62 = vadd.f32 %v1829_v58, %v2146_v8  ;;  %v1217_v63 = vadd.f32 %v1893_v59, %v2146_v8 }
 0x13e   : > { %v952_v0 = vpop.f32.mrf.mxu0  ;;  %v1208_v1 = vpop.f32.mrf.mxu1 }
 0x13f   : > { %1468 = vst [vmem:[%s2154_s14 + $0x128] sm:$0xff] %v1340_v60  ;;  %1532 = vst [vmem:[%s2154_s14 + $0x328] sm:$0xff] %v1404_v61  ;;  %v1345_v2 = vmax.f32 %v961_v62, 0.0  ;;  %v1409_v3 = vmax.f32 %v1217_v63, 0.0  ;;  %v953_v4 = vadd.f32 %v2146_v8, %v952_v0  ;;  %v1209_v5 = vadd.f32 %v2146_v8, %v1208_v1 }
 0x140   : > { %v1830_v6 = vpop.f32.mrf.mxu0  ;;  %v1894_v7 = vpop.f32.mrf.mxu1 }
 0x141   : > { %1473 = vst [vmem:[%s2154_s14 + $0x150] sm:$0xff] %v1345_v2  ;;  %1537 = vst [vmem:[%s2154_s14 + $0x350] sm:$0xff] %v1409_v3  ;;  %v1343_v9 = vmax.f32 %v953_v4, 0.0  ;;  %v1407_v10 = vmax.f32 %v1209_v5, 0.0  ;;  %v964_v11 = vadd.f32 %v1830_v6, %v2146_v8  ;;  %v1220_v12 = vadd.f32 %v1894_v7, %v2146_v8 }
 0x142   : > { %v955_v13 = vpop.f32.mrf.mxu0  ;;  %v1211_v14 = vpop.f32.mrf.mxu1 }
 0x143   : > { %1471 = vst [vmem:[%s2154_s14 + $0x140] sm:$0xff] %v1343_v9  ;;  %1535 = vst [vmem:[%s2154_s14 + $0x340] sm:$0xff] %v1407_v10  ;;  %v1346_v15 = vmax.f32 %v964_v11, 0.0  ;;  %v1410_v16 = vmax.f32 %v1220_v12, 0.0  ;;  %v956_v17 = vadd.f32 %v2146_v8, %v955_v13  ;;  %v1212_v18 = vadd.f32 %v2146_v8, %v1211_v14 }
 0x144   : > { %v1833_v19 = vpop.f32.mrf.mxu0  ;;  %v1897_v20 = vpop.f32.mrf.mxu1 }
 0x145   : > { %1474 = vst [vmem:[%s2154_s14 + $0x158] sm:$0xff] %v1346_v15  ;;  %1538 = vst [vmem:[%s2154_s14 + $0x358] sm:$0xff] %v1410_v16  ;;  %v1344_v21 = vmax.f32 %v956_v17, 0.0  ;;  %v1408_v22 = vmax.f32 %v1212_v18, 0.0  ;;  %v977_v23 = vadd.f32 %v1833_v19, %v2146_v8  ;;  %v1233_v24 = vadd.f32 %v1897_v20, %v2146_v8 }
 0x146   : > { %v968_v25 = vpop.f32.mrf.mxu0  ;;  %v1224_v26 = vpop.f32.mrf.mxu1 }
 0x147   : > { %1472 = vst [vmem:[%s2154_s14 + $0x148] sm:$0xff] %v1344_v21  ;;  %1536 = vst [vmem:[%s2154_s14 + $0x348] sm:$0xff] %v1408_v22  ;;  %v1349_v27 = vmax.f32 %v977_v23, 0.0  ;;  %v1413_v28 = vmax.f32 %v1233_v24, 0.0  ;;  %v969_v29 = vadd.f32 %v2146_v8, %v968_v25  ;;  %v1225_v30 = vadd.f32 %v2146_v8, %v1224_v26 }
 0x148   : > { %v1834_v31 = vpop.f32.mrf.mxu0  ;;  %v1898_v32 = vpop.f32.mrf.mxu1 }
 0x149   : > { %1477 = vst [vmem:[%s2154_s14 + $0x170] sm:$0xff] %v1349_v27  ;;  %1541 = vst [vmem:[%s2154_s14 + $0x370] sm:$0xff] %v1413_v28  ;;  %v1347_v33 = vmax.f32 %v969_v29, 0.0  ;;  %v1411_v34 = vmax.f32 %v1225_v30, 0.0  ;;  %v980_v35 = vadd.f32 %v1834_v31, %v2146_v8  ;;  %v1236_v36 = vadd.f32 %v1898_v32, %v2146_v8 }
 0x14a   : > { %v971_v37 = vpop.f32.mrf.mxu0  ;;  %v1227_v38 = vpop.f32.mrf.mxu1 }
 0x14b   : > { %1475 = vst [vmem:[%s2154_s14 + $0x160] sm:$0xff] %v1347_v33  ;;  %1539 = vst [vmem:[%s2154_s14 + $0x360] sm:$0xff] %v1411_v34  ;;  %v1350_v39 = vmax.f32 %v980_v35, 0.0  ;;  %v1414_v40 = vmax.f32 %v1236_v36, 0.0  ;;  %v972_v41 = vadd.f32 %v2146_v8, %v971_v37  ;;  %v1228_v42 = vadd.f32 %v2146_v8, %v1227_v38 }
 0x14c   : > { %v1837_v43 = vpop.f32.mrf.mxu0  ;;  %v1901_v44 = vpop.f32.mrf.mxu1 }
 0x14d   : > { %1478 = vst [vmem:[%s2154_s14 + $0x178] sm:$0xff] %v1350_v39  ;;  %1542 = vst [vmem:[%s2154_s14 + $0x378] sm:$0xff] %v1414_v40  ;;  %v1348_v45 = vmax.f32 %v972_v41, 0.0  ;;  %v1412_v46 = vmax.f32 %v1228_v42, 0.0  ;;  %v993_v47 = vadd.f32 %v1837_v43, %v2146_v8  ;;  %v1249_v48 = vadd.f32 %v1901_v44, %v2146_v8 }
 0x14e   : > { %v984_v49 = vpop.f32.mrf.mxu0  ;;  %v1240_v50 = vpop.f32.mrf.mxu1 }
 0x14f   : > { %1476 = vst [vmem:[%s2154_s14 + $0x168] sm:$0xff] %v1348_v45  ;;  %1540 = vst [vmem:[%s2154_s14 + $0x368] sm:$0xff] %v1412_v46  ;;  %v1353_v51 = vmax.f32 %v993_v47, 0.0  ;;  %v1417_v52 = vmax.f32 %v1249_v48, 0.0  ;;  %v985_v53 = vadd.f32 %v2146_v8, %v984_v49  ;;  %v1241_v54 = vadd.f32 %v2146_v8, %v1240_v50 }
 0x150   : > { %v1838_v55 = vpop.f32.mrf.mxu0  ;;  %v1902_v56 = vpop.f32.mrf.mxu1 }
 0x151   : > { %1481 = vst [vmem:[%s2154_s14 + $0x190] sm:$0xff] %v1353_v51  ;;  %1545 = vst [vmem:[%s2154_s14 + $0x390] sm:$0xff] %v1417_v52  ;;  %v1351_v57 = vmax.f32 %v985_v53, 0.0  ;;  %v1415_v58 = vmax.f32 %v1241_v54, 0.0  ;;  %v996_v59 = vadd.f32 %v1838_v55, %v2146_v8  ;;  %v1252_v60 = vadd.f32 %v1902_v56, %v2146_v8 }
 0x152   : > { %v987_v61 = vpop.f32.mrf.mxu0  ;;  %v1243_v62 = vpop.f32.mrf.mxu1 }
 0x153   : > { %1479 = vst [vmem:[%s2154_s14 + $0x180] sm:$0xff] %v1351_v57  ;;  %1543 = vst [vmem:[%s2154_s14 + $0x380] sm:$0xff] %v1415_v58  ;;  %v1354_v63 = vmax.f32 %v996_v59, 0.0  ;;  %v1418_v0 = vmax.f32 %v1252_v60, 0.0  ;;  %v988_v1 = vadd.f32 %v2146_v8, %v987_v61  ;;  %v1244_v2 = vadd.f32 %v2146_v8, %v1243_v62 }
 0x154   : > { %v1841_v3 = vpop.f32.mrf.mxu0  ;;  %v1905_v4 = vpop.f32.mrf.mxu1 }
 0x155   : > { %1482 = vst [vmem:[%s2154_s14 + $0x198] sm:$0xff] %v1354_v63  ;;  %1546 = vst [vmem:[%s2154_s14 + $0x398] sm:$0xff] %v1418_v0  ;;  %v1352_v5 = vmax.f32 %v988_v1, 0.0  ;;  %v1416_v6 = vmax.f32 %v1244_v2, 0.0  ;;  %v1009_v7 = vadd.f32 %v1841_v3, %v2146_v8  ;;  %v1265_v9 = vadd.f32 %v1905_v4, %v2146_v8 }
 0x156   : > { %v1000_v10 = vpop.f32.mrf.mxu0  ;;  %v1256_v11 = vpop.f32.mrf.mxu1 }
 0x157   : > { %1480 = vst [vmem:[%s2154_s14 + $0x188] sm:$0xff] %v1352_v5  ;;  %1544 = vst [vmem:[%s2154_s14 + $0x388] sm:$0xff] %v1416_v6  ;;  %v1357_v12 = vmax.f32 %v1009_v7, 0.0  ;;  %v1421_v13 = vmax.f32 %v1265_v9, 0.0  ;;  %v1001_v14 = vadd.f32 %v2146_v8, %v1000_v10  ;;  %v1257_v15 = vadd.f32 %v2146_v8, %v1256_v11 }
 0x158   : > { %v1842_v16 = vpop.f32.mrf.mxu0  ;;  %v1906_v17 = vpop.f32.mrf.mxu1 }
 0x159   : > { %1485 = vst [vmem:[%s2154_s14 + $0x1b0] sm:$0xff] %v1357_v12  ;;  %1549 = vst [vmem:[%s2154_s14 + $0x3b0] sm:$0xff] %v1421_v13  ;;  %v1355_v18 = vmax.f32 %v1001_v14, 0.0  ;;  %v1419_v19 = vmax.f32 %v1257_v15, 0.0  ;;  %v1012_v20 = vadd.f32 %v1842_v16, %v2146_v8  ;;  %v1268_v21 = vadd.f32 %v1906_v17, %v2146_v8 }
 0x15a   : > { %v1003_v22 = vpop.f32.mrf.mxu0  ;;  %v1259_v23 = vpop.f32.mrf.mxu1 }
 0x15b   : > { %1483 = vst [vmem:[%s2154_s14 + $0x1a0] sm:$0xff] %v1355_v18  ;;  %1547 = vst [vmem:[%s2154_s14 + $0x3a0] sm:$0xff] %v1419_v19  ;;  %v1358_v24 = vmax.f32 %v1012_v20, 0.0  ;;  %v1422_v25 = vmax.f32 %v1268_v21, 0.0  ;;  %v1004_v26 = vadd.f32 %v2146_v8, %v1003_v22  ;;  %v1260_v27 = vadd.f32 %v2146_v8, %v1259_v23 }
 0x15c   : > { %v1845_v28 = vpop.f32.mrf.mxu0  ;;  %v1909_v29 = vpop.f32.mrf.mxu1 }
 0x15d   : > { %1486 = vst [vmem:[%s2154_s14 + $0x1b8] sm:$0xff] %v1358_v24  ;;  %1550 = vst [vmem:[%s2154_s14 + $0x3b8] sm:$0xff] %v1422_v25  ;;  %v1356_v30 = vmax.f32 %v1004_v26, 0.0  ;;  %v1420_v31 = vmax.f32 %v1260_v27, 0.0  ;;  %v1025_v32 = vadd.f32 %v1845_v28, %v2146_v8  ;;  %v1281_v33 = vadd.f32 %v1909_v29, %v2146_v8 }
 0x15e   : > { %v1016_v34 = vpop.f32.mrf.mxu0  ;;  %v1272_v35 = vpop.f32.mrf.mxu1 }
 0x15f   : > { %1484 = vst [vmem:[%s2154_s14 + $0x1a8] sm:$0xff] %v1356_v30  ;;  %1548 = vst [vmem:[%s2154_s14 + $0x3a8] sm:$0xff] %v1420_v31  ;;  %v1361_v36 = vmax.f32 %v1025_v32, 0.0  ;;  %v1425_v37 = vmax.f32 %v1281_v33, 0.0  ;;  %v1017_v38 = vadd.f32 %v2146_v8, %v1016_v34  ;;  %v1273_v39 = vadd.f32 %v2146_v8, %v1272_v35 }
 0x160   : > { %v1846_v40 = vpop.f32.mrf.mxu0  ;;  %v1910_v41 = vpop.f32.mrf.mxu1 }
 0x161   : > { %1489 = vst [vmem:[%s2154_s14 + $0x1d0] sm:$0xff] %v1361_v36  ;;  %1553 = vst [vmem:[%s2154_s14 + $0x3d0] sm:$0xff] %v1425_v37  ;;  %v1359_v42 = vmax.f32 %v1017_v38, 0.0  ;;  %v1423_v43 = vmax.f32 %v1273_v39, 0.0  ;;  %v1028_v44 = vadd.f32 %v1846_v40, %v2146_v8  ;;  %v1284_v45 = vadd.f32 %v1910_v41, %v2146_v8 }
 0x162   : > { %v1019_v46 = vpop.f32.mrf.mxu0  ;;  %v1275_v47 = vpop.f32.mrf.mxu1 }
 0x163   : > { %1487 = vst [vmem:[%s2154_s14 + $0x1c0] sm:$0xff] %v1359_v42  ;;  %1551 = vst [vmem:[%s2154_s14 + $0x3c0] sm:$0xff] %v1423_v43  ;;  %v1362_v48 = vmax.f32 %v1028_v44, 0.0  ;;  %v1426_v49 = vmax.f32 %v1284_v45, 0.0  ;;  %v1020_v50 = vadd.f32 %v2146_v8, %v1019_v46  ;;  %v1276_v51 = vadd.f32 %v2146_v8, %v1275_v47 }
 0x164   : > { %v1849_v52 = vpop.f32.mrf.mxu0  ;;  %v1913_v53 = vpop.f32.mrf.mxu1 }
 0x165   : > { %1490 = vst [vmem:[%s2154_s14 + $0x1d8] sm:$0xff] %v1362_v48  ;;  %1554 = vst [vmem:[%s2154_s14 + $0x3d8] sm:$0xff] %v1426_v49  ;;  %v1360_v54 = vmax.f32 %v1020_v50, 0.0  ;;  %v1424_v55 = vmax.f32 %v1276_v51, 0.0  ;;  %v1041_v56 = vadd.f32 %v1849_v52, %v2146_v8  ;;  %v1297_v57 = vadd.f32 %v1913_v53, %v2146_v8 }
 0x166   : > { %v1032_v58 = vpop.f32.mrf.mxu0  ;;  %v1288_v59 = vpop.f32.mrf.mxu1 }
 0x167   : > { %1488 = vst [vmem:[%s2154_s14 + $0x1c8] sm:$0xff] %v1360_v54  ;;  %1552 = vst [vmem:[%s2154_s14 + $0x3c8] sm:$0xff] %v1424_v55  ;;  %v1365_v60 = vmax.f32 %v1041_v56, 0.0  ;;  %v1429_v61 = vmax.f32 %v1297_v57, 0.0  ;;  %v1033_v62 = vadd.f32 %v2146_v8, %v1032_v58  ;;  %v1289_v63 = vadd.f32 %v2146_v8, %v1288_v59 }
 0x168   : > { %v1850_v0 = vpop.f32.mrf.mxu0  ;;  %v1914_v1 = vpop.f32.mrf.mxu1 }
 0x169   : > { %1493 = vst [vmem:[%s2154_s14 + $0x1f0] sm:$0xff] %v1365_v60  ;;  %1557 = vst [vmem:[%s2154_s14 + $0x3f0] sm:$0xff] %v1429_v61  ;;  %v1363_v2 = vmax.f32 %v1033_v62, 0.0  ;;  %v1427_v3 = vmax.f32 %v1289_v63, 0.0  ;;  %v1044_v4 = vadd.f32 %v1850_v0, %v2146_v8  ;;  %v1300_v5 = vadd.f32 %v1914_v1, %v2146_v8 }
 0x16a   : > { %v1035_v6 = vpop.f32.mrf.mxu0  ;;  %v1291_v7 = vpop.f32.mrf.mxu1 }
 0x16b   : > { %1491 = vst [vmem:[%s2154_s14 + $0x1e0] sm:$0xff] %v1363_v2  ;;  %1555 = vst [vmem:[%s2154_s14 + $0x3e0] sm:$0xff] %v1427_v3  ;;  %v1366_v9 = vmax.f32 %v1044_v4, 0.0  ;;  %v1430_v10 = vmax.f32 %v1300_v5, 0.0  ;;  %v1036_v11 = vadd.f32 %v2146_v8, %v1035_v6  ;;  %v1292_v12 = vadd.f32 %v2146_v8, %v1291_v7 }
 0x16d   : > { %1494 = vst [vmem:[%s2154_s14 + $0x1f8] sm:$0xff] %v1366_v9  ;;  %1558 = vst [vmem:[%s2154_s14 + $0x3f8] sm:$0xff] %v1430_v10  ;;  %v1364_v13 = vmax.f32 %v1036_v11, 0.0  ;;  %v1428_v14 = vmax.f32 %v1292_v12, 0.0 }
 0x16f   : > { %1492 = vst [vmem:[%s2154_s14 + $0x1e8] sm:$0xff] %v1364_v13  ;;  %1556 = vst [vmem:[%s2154_s14 + $0x3e8] sm:$0xff] %v1428_v14 }
 0x170 PF: > { %s13_s12 = sadd.s32 1, %s2017_s12  }
 0x171   : > { %p10_p4 = scmp.ge.s32.totalorder %s13_s12, 4  }
 0x173   :  { %12 = sbr.rel (!%p10_p4) target bundleno = 1 (0x1), region = 62 }

// kernel: hmnet_ner_forward.7
= control target key start
LH: loop header
LB: loop body
LE: loop exit
PB: predicated region body
PF: predicated region fallthrough
CT: control target
= control target key end

     0   :  { %s1381_s1 = inlined_call_operand.vmem [shape: bf16[128,128], index: 1, kind: input, shape index: {}]   ;;  %s1382_s0 = inlined_call_operand.vmem [shape: bf16[512,128], index: 0, kind: input, shape index: {}]   ;;  %s1383_s2 = inlined_call_operand.vmem [shape: f32[1,128], index: 2, kind: input, shape index: {}]   ;;  %s1384_s3 = inlined_call_operand.vmem [shape: f32[512,128], index: 3, kind: output, shape index: {}]  }
   0x1   :  { %v940_v0 = vld [vmem:[%s1381_s1 + $0x38] sm:$0xff]   ;;  %v941_v1 = vld [vmem:[%s1381_s1 + $0x30] sm:$0xff]   ;;  %v942_v2 = vld [vmem:[%s1381_s1 + $0x28] sm:$0xff]  }
   0x2   :  { %844 = vmatprep.subr.bf16.mxu0 %v940_v0  ;;  %924 = vmatprep.subr.bf16.mxu1 %v940_v0  ;;  %v943_v3 = vld [vmem:[%s1381_s1 + $0x20] sm:$0xff]   ;;  %v944_v6 = vld [vmem:[%s1381_s1 + $0x18] sm:$0xff]   ;;  %v945_v7 = vld [vmem:[%s1381_s1 + $0x10] sm:$0xff]  }
   0x3   :  { %845 = vmatpush3.bf16.msra.mxu0 %v940_v0  ;;  %932 = vmatpush3.bf16.msra.mxu1 %v940_v0  ;;  %v948_v4 = vld [vmem:[%s1382_s0] sm:$0xff]   ;;  %v946_v8 = vld [vmem:[%s1381_s1 + $0x8] sm:$0xff]   ;;  %v952_v12 = vld [vmem:[%s1382_s0 + $0x10] sm:$0xff]  }
   0x4   :  { %846 = vmatprep.subr.bf16.mxu0 %v941_v1  ;;  %925 = vmatprep.subr.bf16.mxu1 %v941_v1  ;;  %v949_v5 = vld [vmem:[%s1382_s0 + $0x80] sm:$0xff]   ;;  %v950_v10 = vld [vmem:[%s1382_s0 + $0x8] sm:$0xff]   ;;  %v953_v13 = vld [vmem:[%s1382_s0 + $0x90] sm:$0xff]  }
   0x5   :  { %860 = vmatprep.mubr.bf16.mxu0 %v948_v4  ;;  %892 = vmatprep.mubr.bf16.mxu1 %v949_v5  ;;  %v947_v9 = vld [vmem:[%s1381_s1] sm:$0xff]   ;;  %v951_v11 = vld [vmem:[%s1382_s0 + $0x88] sm:$0xff]   ;;  %v954_v14 = vld [vmem:[%s1382_s0 + $0x18] sm:$0xff]  }
   0x6   :  { %v955_v15 = vld [vmem:[%s1382_s0 + $0x98] sm:$0xff]   ;;  %v956_v16 = vld [vmem:[%s1382_s0 + $0x20] sm:$0xff]   ;;  %v958_v18 = vld [vmem:[%s1382_s0 + $0x28] sm:$0xff]  }
   0x7   :  { %847 = vmatpush3.bf16.msra.mxu0 %v941_v1  ;;  %933 = vmatpush3.bf16.msra.mxu1 %v941_v1  ;;  %v957_v17 = vld [vmem:[%s1382_s0 + $0xa0] sm:$0xff]   ;;  %v959_v19 = vld [vmem:[%s1382_s0 + $0xa8] sm:$0xff]   ;;  %v960_v20 = vld [vmem:[%s1382_s0 + $0x30] sm:$0xff]  }
   0x8   :  { %848 = vmatprep.subr.bf16.mxu0 %v942_v2  ;;  %926 = vmatprep.subr.bf16.mxu1 %v942_v2  ;;  %v961_v21 = vld [vmem:[%s1382_s0 + $0xb0] sm:$0xff]   ;;  %v962_v22 = vld [vmem:[%s1382_s0 + $0x38] sm:$0xff]   ;;  %v964_v24 = vld [vmem:[%s1382_s0 + $0x40] sm:$0xff]  }
   0x9   :  { %v963_v23 = vld [vmem:[%s1382_s0 + $0xb8] sm:$0xff]   ;;  %v965_v25 = vld [vmem:[%s1382_s0 + $0xc0] sm:$0xff]   ;;  %v966_v26 = vld [vmem:[%s1382_s0 + $0x48] sm:$0xff]  }
   0xa   :  { %v967_v27 = vld [vmem:[%s1382_s0 + $0xc8] sm:$0xff]   ;;  %v968_v28 = vld [vmem:[%s1382_s0 + $0x50] sm:$0xff]   ;;  %v970_v30 = vld [vmem:[%s1382_s0 + $0x58] sm:$0xff]  }
   0xb   :  { %849 = vmatpush3.bf16.msra.mxu0 %v942_v2  ;;  %934 = vmatpush3.bf16.msra.mxu1 %v942_v2  ;;  %v969_v29 = vld [vmem:[%s1382_s0 + $0xd0] sm:$0xff]   ;;  %v971_v31 = vld [vmem:[%s1382_s0 + $0xd8] sm:$0xff]   ;;  %v972_v32 = vld [vmem:[%s1382_s0 + $0x60] sm:$0xff]  }
   0xc   :  { %850 = vmatprep.subr.bf16.mxu0 %v943_v3  ;;  %927 = vmatprep.subr.bf16.mxu1 %v943_v3  ;;  %v973_v33 = vld [vmem:[%s1382_s0 + $0xe0] sm:$0xff]   ;;  %v974_v34 = vld [vmem:[%s1382_s0 + $0x68] sm:$0xff]   ;;  %v976_v36 = vld [vmem:[%s1382_s0 + $0x70] sm:$0xff]  }
   0xd   :  { %v975_v35 = vld [vmem:[%s1382_s0 + $0xe8] sm:$0xff]   ;;  %v977_v37 = vld [vmem:[%s1382_s0 + $0xf0] sm:$0xff]   ;;  %v978_v38 = vld [vmem:[%s1382_s0 + $0x78] sm:$0xff]  }
   0xe   :  { %v979_v39 = vld [vmem:[%s1382_s0 + $0xf8] sm:$0xff]   ;;  %v1123_v40 = vld [vmem:[%s1383_s2] ss:$0 sm:$0xff] }
   0xf   :  { %851 = vmatpush3.bf16.msra.mxu0 %v943_v3  ;;  %935 = vmatpush3.bf16.msra.mxu1 %v943_v3 }
  0x10   :  { %852 = vmatprep.subr.bf16.mxu0 %v944_v6  ;;  %928 = vmatprep.subr.bf16.mxu1 %v944_v6 }
  0x13   :  { %853 = vmatpush3.bf16.msra.mxu0 %v944_v6  ;;  %936 = vmatpush3.bf16.msra.mxu1 %v944_v6 }
  0x14   :  { %854 = vmatprep.subr.bf16.mxu0 %v945_v7  ;;  %929 = vmatprep.subr.bf16.mxu1 %v945_v7 }
  0x17   :  { %855 = vmatpush3.bf16.msra.mxu0 %v945_v7  ;;  %937 = vmatpush3.bf16.msra.mxu1 %v945_v7 }
  0x18   :  { %856 = vmatprep.subr.bf16.mxu0 %v946_v8  ;;  %930 = vmatprep.subr.bf16.mxu1 %v946_v8 }
  0x1b   :  { %857 = vmatpush3.bf16.msra.mxu0 %v946_v8  ;;  %938 = vmatpush3.bf16.msra.mxu1 %v946_v8 }
  0x1c   :  { %858 = vmatprep.subr.bf16.mxu0 %v947_v9  ;;  %931 = vmatprep.subr.bf16.mxu1 %v947_v9 }
  0x1f   :  { %859 = vmatpush3.bf16.msra.mxu0 %v947_v9  ;;  %939 = vmatpush3.bf16.msra.mxu1 %v947_v9 }
  0x22   :  { %861 = vmatmul.mubr.bf16.vlgmr.msra.gmra.mxu0 %v950_v10  ;;  %893 = vmatmul.mubr.bf16.vlgmr.msra.gmra.mxu1 %v951_v11 }
  0x23   :  { %864 = vmatprep.mubr.bf16.mxu0 %v952_v12  ;;  %896 = vmatprep.mubr.bf16.mxu1 %v953_v13 }
  0x2a   :  { %865 = vmatmul.mubr.bf16.gmra.mxu0 %v954_v14  ;;  %897 = vmatmul.mubr.bf16.gmra.mxu1 %v955_v15 }
  0x2b   :  { %868 = vmatprep.mubr.bf16.mxu0 %v956_v16  ;;  %900 = vmatprep.mubr.bf16.mxu1 %v957_v17 }
  0x32   :  { %869 = vmatmul.mubr.bf16.gmra.mxu0 %v958_v18  ;;  %901 = vmatmul.mubr.bf16.gmra.mxu1 %v959_v19 }
  0x33   :  { %872 = vmatprep.mubr.bf16.mxu0 %v960_v20  ;;  %904 = vmatprep.mubr.bf16.mxu1 %v961_v21 }
  0x3a   :  { %873 = vmatmul.mubr.bf16.gmra.mxu0 %v962_v22  ;;  %905 = vmatmul.mubr.bf16.gmra.mxu1 %v963_v23 }
  0x3b   :  { %876 = vmatprep.mubr.bf16.mxu0 %v964_v24  ;;  %908 = vmatprep.mubr.bf16.mxu1 %v965_v25 }
  0x42   :  { %877 = vmatmul.mubr.bf16.gmra.mxu0 %v966_v26  ;;  %909 = vmatmul.mubr.bf16.gmra.mxu1 %v967_v27 }
  0x43   :  { %880 = vmatprep.mubr.bf16.mxu0 %v968_v28  ;;  %912 = vmatprep.mubr.bf16.mxu1 %v969_v29 }
  0x4a   :  { %881 = vmatmul.mubr.bf16.gmra.mxu0 %v970_v30  ;;  %913 = vmatmul.mubr.bf16.gmra.mxu1 %v971_v31 }
  0x4b   :  { %884 = vmatprep.mubr.bf16.mxu0 %v972_v32  ;;  %916 = vmatprep.mubr.bf16.mxu1 %v973_v33 }
  0x52   :  { %885 = vmatmul.mubr.bf16.gmra.mxu0 %v974_v34  ;;  %917 = vmatmul.mubr.bf16.gmra.mxu1 %v975_v35 }
  0x53   :  { %888 = vmatprep.mubr.bf16.mxu0 %v976_v36  ;;  %920 = vmatprep.mubr.bf16.mxu1 %v977_v37 }
  0x5a   :  { %889 = vmatmul.mubr.bf16.gmra.mxu0 %v978_v38  ;;  %921 = vmatmul.mubr.bf16.gmra.mxu1 %v979_v39 }
  0xe2   :  { %v862_v41 = vpop.f32.mrf.mxu0  ;;  %v894_v42 = vpop.f32.mrf.mxu1 }
  0xe3   :  { %v385_v43 = vadd.f32 %v862_v41, %v1123_v40  ;;  %v513_v44 = vadd.f32 %v894_v42, %v1123_v40 }
  0xe4   :  { %v376_v45 = vpop.f32.mrf.mxu0  ;;  %v504_v46 = vpop.f32.mrf.mxu1 }
  0xe5   :  { %v633_v47 = vmax.f32 %v385_v43, 0.0  ;;  %v665_v48 = vmax.f32 %v513_v44, 0.0  ;;  %v377_v49 = vadd.f32 %v1123_v40, %v376_v45  ;;  %v505_v50 = vadd.f32 %v1123_v40, %v504_v46 }
  0xe6   :  { %v863_v51 = vpop.f32.mrf.mxu0  ;;  %v895_v52 = vpop.f32.mrf.mxu1 }
  0xe7   :  { %697 = vst [vmem:[%s1384_s3 + $0x10] sm:$0xff] %v633_v47  ;;  %729 = vst [vmem:[%s1384_s3 + $0x110] sm:$0xff] %v665_v48  ;;  %v631_v53 = vmax.f32 %v377_v49, 0.0  ;;  %v663_v54 = vmax.f32 %v505_v50, 0.0  ;;  %v388_v55 = vadd.f32 %v863_v51, %v1123_v40  ;;  %v516_v56 = vadd.f32 %v895_v52, %v1123_v40 }
  0xe8   :  { %v379_v57 = vpop.f32.mrf.mxu0  ;;  %v507_v58 = vpop.f32.mrf.mxu1 }
  0xe9   :  { %695 = vst [vmem:[%s1384_s3] sm:$0xff] %v631_v53  ;;  %727 = vst [vmem:[%s1384_s3 + $0x100] sm:$0xff] %v663_v54  ;;  %v634_v59 = vmax.f32 %v388_v55, 0.0  ;;  %v666_v60 = vmax.f32 %v516_v56, 0.0  ;;  %v380_v61 = vadd.f32 %v1123_v40, %v379_v57  ;;  %v508_v62 = vadd.f32 %v1123_v40, %v507_v58 }
  0xea   :  { %v866_v63 = vpop.f32.mrf.mxu0  ;;  %v898_v0 = vpop.f32.mrf.mxu1 }
  0xeb   :  { %698 = vst [vmem:[%s1384_s3 + $0x18] sm:$0xff] %v634_v59  ;;  %730 = vst [vmem:[%s1384_s3 + $0x118] sm:$0xff] %v666_v60  ;;  %v632_v1 = vmax.f32 %v380_v61, 0.0  ;;  %v664_v2 = vmax.f32 %v508_v62, 0.0  ;;  %v401_v3 = vadd.f32 %v866_v63, %v1123_v40  ;;  %v529_v4 = vadd.f32 %v898_v0, %v1123_v40 }
  0xec   :  { %v392_v5 = vpop.f32.mrf.mxu0  ;;  %v520_v6 = vpop.f32.mrf.mxu1 }
  0xed   :  { %696 = vst [vmem:[%s1384_s3 + $0x8] sm:$0xff] %v632_v1  ;;  %728 = vst [vmem:[%s1384_s3 + $0x108] sm:$0xff] %v664_v2  ;;  %v637_v7 = vmax.f32 %v401_v3, 0.0  ;;  %v669_v8 = vmax.f32 %v529_v4, 0.0  ;;  %v393_v9 = vadd.f32 %v1123_v40, %v392_v5  ;;  %v521_v10 = vadd.f32 %v1123_v40, %v520_v6 }
  0xee   :  { %v867_v11 = vpop.f32.mrf.mxu0  ;;  %v899_v12 = vpop.f32.mrf.mxu1 }
  0xef   :  { %701 = vst [vmem:[%s1384_s3 + $0x30] sm:$0xff] %v637_v7  ;;  %733 = vst [vmem:[%s1384_s3 + $0x130] sm:$0xff] %v669_v8  ;;  %v635_v13 = vmax.f32 %v393_v9, 0.0  ;;  %v667_v14 = vmax.f32 %v521_v10, 0.0  ;;  %v404_v15 = vadd.f32 %v867_v11, %v1123_v40  ;;  %v532_v16 = vadd.f32 %v899_v12, %v1123_v40 }
  0xf0   :  { %v395_v17 = vpop.f32.mrf.mxu0  ;;  %v523_v18 = vpop.f32.mrf.mxu1 }
  0xf1   :  { %699 = vst [vmem:[%s1384_s3 + $0x20] sm:$0xff] %v635_v13  ;;  %731 = vst [vmem:[%s1384_s3 + $0x120] sm:$0xff] %v667_v14  ;;  %v638_v19 = vmax.f32 %v404_v15, 0.0  ;;  %v670_v20 = vmax.f32 %v532_v16, 0.0  ;;  %v396_v21 = vadd.f32 %v1123_v40, %v395_v17  ;;  %v524_v22 = vadd.f32 %v1123_v40, %v523_v18 }
  0xf2   :  { %v870_v23 = vpop.f32.mrf.mxu0  ;;  %v902_v24 = vpop.f32.mrf.mxu1 }
  0xf3   :  { %702 = vst [vmem:[%s1384_s3 + $0x38] sm:$0xff] %v638_v19  ;;  %734 = vst [vmem:[%s1384_s3 + $0x138] sm:$0xff] %v670_v20  ;;  %v636_v25 = vmax.f32 %v396_v21, 0.0  ;;  %v668_v26 = vmax.f32 %v524_v22, 0.0  ;;  %v417_v27 = vadd.f32 %v870_v23, %v1123_v40  ;;  %v545_v28 = vadd.f32 %v902_v24, %v1123_v40 }
  0xf4   :  { %v408_v29 = vpop.f32.mrf.mxu0  ;;  %v536_v30 = vpop.f32.mrf.mxu1 }
  0xf5   :  { %700 = vst [vmem:[%s1384_s3 + $0x28] sm:$0xff] %v636_v25  ;;  %732 = vst [vmem:[%s1384_s3 + $0x128] sm:$0xff] %v668_v26  ;;  %v641_v31 = vmax.f32 %v417_v27, 0.0  ;;  %v673_v32 = vmax.f32 %v545_v28, 0.0  ;;  %v409_v33 = vadd.f32 %v1123_v40, %v408_v29  ;;  %v537_v34 = vadd.f32 %v1123_v40, %v536_v30 }
  0xf6   :  { %v871_v35 = vpop.f32.mrf.mxu0  ;;  %v903_v36 = vpop.f32.mrf.mxu1 }
  0xf7   :  { %705 = vst [vmem:[%s1384_s3 + $0x50] sm:$0xff] %v641_v31  ;;  %737 = vst [vmem:[%s1384_s3 + $0x150] sm:$0xff] %v673_v32  ;;  %v639_v37 = vmax.f32 %v409_v33, 0.0  ;;  %v671_v38 = vmax.f32 %v537_v34, 0.0  ;;  %v420_v39 = vadd.f32 %v871_v35, %v1123_v40  ;;  %v548_v41 = vadd.f32 %v903_v36, %v1123_v40 }
  0xf8   :  { %v411_v42 = vpop.f32.mrf.mxu0  ;;  %v539_v43 = vpop.f32.mrf.mxu1 }
  0xf9   :  { %703 = vst [vmem:[%s1384_s3 + $0x40] sm:$0xff] %v639_v37  ;;  %735 = vst [vmem:[%s1384_s3 + $0x140] sm:$0xff] %v671_v38  ;;  %v642_v44 = vmax.f32 %v420_v39, 0.0  ;;  %v674_v45 = vmax.f32 %v548_v41, 0.0  ;;  %v412_v46 = vadd.f32 %v1123_v40, %v411_v42  ;;  %v540_v47 = vadd.f32 %v1123_v40, %v539_v43 }
  0xfa   :  { %v874_v48 = vpop.f32.mrf.mxu0  ;;  %v906_v49 = vpop.f32.mrf.mxu1 }
  0xfb   :  { %706 = vst [vmem:[%s1384_s3 + $0x58] sm:$0xff] %v642_v44  ;;  %738 = vst [vmem:[%s1384_s3 + $0x158] sm:$0xff] %v674_v45  ;;  %v640_v50 = vmax.f32 %v412_v46, 0.0  ;;  %v672_v51 = vmax.f32 %v540_v47, 0.0  ;;  %v433_v52 = vadd.f32 %v874_v48, %v1123_v40  ;;  %v561_v53 = vadd.f32 %v906_v49, %v1123_v40 }
  0xfc   :  { %v424_v54 = vpop.f32.mrf.mxu0  ;;  %v552_v55 = vpop.f32.mrf.mxu1 }
  0xfd   :  { %704 = vst [vmem:[%s1384_s3 + $0x48] sm:$0xff] %v640_v50  ;;  %736 = vst [vmem:[%s1384_s3 + $0x148] sm:$0xff] %v672_v51  ;;  %v645_v56 = vmax.f32 %v433_v52, 0.0  ;;  %v677_v57 = vmax.f32 %v561_v53, 0.0  ;;  %v425_v58 = vadd.f32 %v1123_v40, %v424_v54  ;;  %v553_v59 = vadd.f32 %v1123_v40, %v552_v55 }
  0xfe   :  { %v875_v60 = vpop.f32.mrf.mxu0  ;;  %v907_v61 = vpop.f32.mrf.mxu1 }
  0xff   :  { %709 = vst [vmem:[%s1384_s3 + $0x70] sm:$0xff] %v645_v56  ;;  %741 = vst [vmem:[%s1384_s3 + $0x170] sm:$0xff] %v677_v57  ;;  %v643_v62 = vmax.f32 %v425_v58, 0.0  ;;  %v675_v63 = vmax.f32 %v553_v59, 0.0  ;;  %v436_v0 = vadd.f32 %v875_v60, %v1123_v40  ;;  %v564_v1 = vadd.f32 %v907_v61, %v1123_v40 }
 0x100   :  { %v427_v2 = vpop.f32.mrf.mxu0  ;;  %v555_v3 = vpop.f32.mrf.mxu1 }
 0x101   :  { %707 = vst [vmem:[%s1384_s3 + $0x60] sm:$0xff] %v643_v62  ;;  %739 = vst [vmem:[%s1384_s3 + $0x160] sm:$0xff] %v675_v63  ;;  %v646_v4 = vmax.f32 %v436_v0, 0.0  ;;  %v678_v5 = vmax.f32 %v564_v1, 0.0  ;;  %v428_v6 = vadd.f32 %v1123_v40, %v427_v2  ;;  %v556_v7 = vadd.f32 %v1123_v40, %v555_v3 }
 0x102   :  { %v878_v8 = vpop.f32.mrf.mxu0  ;;  %v910_v9 = vpop.f32.mrf.mxu1 }
 0x103   :  { %710 = vst [vmem:[%s1384_s3 + $0x78] sm:$0xff] %v646_v4  ;;  %742 = vst [vmem:[%s1384_s3 + $0x178] sm:$0xff] %v678_v5  ;;  %v644_v10 = vmax.f32 %v428_v6, 0.0  ;;  %v676_v11 = vmax.f32 %v556_v7, 0.0  ;;  %v449_v12 = vadd.f32 %v878_v8, %v1123_v40  ;;  %v577_v13 = vadd.f32 %v910_v9, %v1123_v40 }
 0x104   :  { %v440_v14 = vpop.f32.mrf.mxu0  ;;  %v568_v15 = vpop.f32.mrf.mxu1 }
 0x105   :  { %708 = vst [vmem:[%s1384_s3 + $0x68] sm:$0xff] %v644_v10  ;;  %740 = vst [vmem:[%s1384_s3 + $0x168] sm:$0xff] %v676_v11  ;;  %v649_v16 = vmax.f32 %v449_v12, 0.0  ;;  %v681_v17 = vmax.f32 %v577_v13, 0.0  ;;  %v441_v18 = vadd.f32 %v1123_v40, %v440_v14  ;;  %v569_v19 = vadd.f32 %v1123_v40, %v568_v15 }
 0x106   :  { %v879_v20 = vpop.f32.mrf.mxu0  ;;  %v911_v21 = vpop.f32.mrf.mxu1 }
 0x107   :  { %713 = vst [vmem:[%s1384_s3 + $0x90] sm:$0xff] %v649_v16  ;;  %745 = vst [vmem:[%s1384_s3 + $0x190] sm:$0xff] %v681_v17  ;;  %v647_v22 = vmax.f32 %v441_v18, 0.0  ;;  %v679_v23 = vmax.f32 %v569_v19, 0.0  ;;  %v452_v24 = vadd.f32 %v879_v20, %v1123_v40  ;;  %v580_v25 = vadd.f32 %v911_v21, %v1123_v40 }
 0x108   :  { %v443_v26 = vpop.f32.mrf.mxu0  ;;  %v571_v27 = vpop.f32.mrf.mxu1 }
 0x109   :  { %711 = vst [vmem:[%s1384_s3 + $0x80] sm:$0xff] %v647_v22  ;;  %743 = vst [vmem:[%s1384_s3 + $0x180] sm:$0xff] %v679_v23  ;;  %v650_v28 = vmax.f32 %v452_v24, 0.0  ;;  %v682_v29 = vmax.f32 %v580_v25, 0.0  ;;  %v444_v30 = vadd.f32 %v1123_v40, %v443_v26  ;;  %v572_v31 = vadd.f32 %v1123_v40, %v571_v27 }
 0x10a   :  { %v882_v32 = vpop.f32.mrf.mxu0  ;;  %v914_v33 = vpop.f32.mrf.mxu1 }
 0x10b   :  { %714 = vst [vmem:[%s1384_s3 + $0x98] sm:$0xff] %v650_v28  ;;  %746 = vst [vmem:[%s1384_s3 + $0x198] sm:$0xff] %v682_v29  ;;  %v648_v34 = vmax.f32 %v444_v30, 0.0  ;;  %v680_v35 = vmax.f32 %v572_v31, 0.0  ;;  %v465_v36 = vadd.f32 %v882_v32, %v1123_v40  ;;  %v593_v37 = vadd.f32 %v914_v33, %v1123_v40 }
 0x10c   :  { %v456_v38 = vpop.f32.mrf.mxu0  ;;  %v584_v39 = vpop.f32.mrf.mxu1 }
 0x10d   :  { %712 = vst [vmem:[%s1384_s3 + $0x88] sm:$0xff] %v648_v34  ;;  %744 = vst [vmem:[%s1384_s3 + $0x188] sm:$0xff] %v680_v35  ;;  %v653_v41 = vmax.f32 %v465_v36, 0.0  ;;  %v685_v42 = vmax.f32 %v593_v37, 0.0  ;;  %v457_v43 = vadd.f32 %v1123_v40, %v456_v38  ;;  %v585_v44 = vadd.f32 %v1123_v40, %v584_v39 }
 0x10e   :  { %v883_v45 = vpop.f32.mrf.mxu0  ;;  %v915_v46 = vpop.f32.mrf.mxu1 }
 0x10f   :  { %717 = vst [vmem:[%s1384_s3 + $0xb0] sm:$0xff] %v653_v41  ;;  %749 = vst [vmem:[%s1384_s3 + $0x1b0] sm:$0xff] %v685_v42  ;;  %v651_v47 = vmax.f32 %v457_v43, 0.0  ;;  %v683_v48 = vmax.f32 %v585_v44, 0.0  ;;  %v468_v49 = vadd.f32 %v883_v45, %v1123_v40  ;;  %v596_v50 = vadd.f32 %v915_v46, %v1123_v40 }
 0x110   :  { %v459_v51 = vpop.f32.mrf.mxu0  ;;  %v587_v52 = vpop.f32.mrf.mxu1 }
 0x111   :  { %715 = vst [vmem:[%s1384_s3 + $0xa0] sm:$0xff] %v651_v47  ;;  %747 = vst [vmem:[%s1384_s3 + $0x1a0] sm:$0xff] %v683_v48  ;;  %v654_v53 = vmax.f32 %v468_v49, 0.0  ;;  %v686_v54 = vmax.f32 %v596_v50, 0.0  ;;  %v460_v55 = vadd.f32 %v1123_v40, %v459_v51  ;;  %v588_v56 = vadd.f32 %v1123_v40, %v587_v52 }
 0x112   :  { %v886_v57 = vpop.f32.mrf.mxu0  ;;  %v918_v58 = vpop.f32.mrf.mxu1 }
 0x113   :  { %718 = vst [vmem:[%s1384_s3 + $0xb8] sm:$0xff] %v654_v53  ;;  %750 = vst [vmem:[%s1384_s3 + $0x1b8] sm:$0xff] %v686_v54  ;;  %v652_v59 = vmax.f32 %v460_v55, 0.0  ;;  %v684_v60 = vmax.f32 %v588_v56, 0.0  ;;  %v481_v61 = vadd.f32 %v886_v57, %v1123_v40  ;;  %v609_v62 = vadd.f32 %v918_v58, %v1123_v40 }
 0x114   :  { %v472_v63 = vpop.f32.mrf.mxu0  ;;  %v600_v0 = vpop.f32.mrf.mxu1 }
 0x115   :  { %716 = vst [vmem:[%s1384_s3 + $0xa8] sm:$0xff] %v652_v59  ;;  %748 = vst [vmem:[%s1384_s3 + $0x1a8] sm:$0xff] %v684_v60  ;;  %v657_v1 = vmax.f32 %v481_v61, 0.0  ;;  %v689_v2 = vmax.f32 %v609_v62, 0.0  ;;  %v473_v3 = vadd.f32 %v1123_v40, %v472_v63  ;;  %v601_v4 = vadd.f32 %v1123_v40, %v600_v0 }
 0x116   :  { %v887_v5 = vpop.f32.mrf.mxu0  ;;  %v919_v6 = vpop.f32.mrf.mxu1 }
 0x117   :  { %721 = vst [vmem:[%s1384_s3 + $0xd0] sm:$0xff] %v657_v1  ;;  %753 = vst [vmem:[%s1384_s3 + $0x1d0] sm:$0xff] %v689_v2  ;;  %v655_v7 = vmax.f32 %v473_v3, 0.0  ;;  %v687_v8 = vmax.f32 %v601_v4, 0.0  ;;  %v484_v9 = vadd.f32 %v887_v5, %v1123_v40  ;;  %v612_v10 = vadd.f32 %v919_v6, %v1123_v40 }
 0x118   :  { %v475_v11 = vpop.f32.mrf.mxu0  ;;  %v603_v12 = vpop.f32.mrf.mxu1 }
 0x119   :  { %719 = vst [vmem:[%s1384_s3 + $0xc0] sm:$0xff] %v655_v7  ;;  %751 = vst [vmem:[%s1384_s3 + $0x1c0] sm:$0xff] %v687_v8  ;;  %v658_v13 = vmax.f32 %v484_v9, 0.0  ;;  %v690_v14 = vmax.f32 %v612_v10, 0.0  ;;  %v476_v15 = vadd.f32 %v1123_v40, %v475_v11  ;;  %v604_v16 = vadd.f32 %v1123_v40, %v603_v12 }
 0x11a   :  { %v890_v17 = vpop.f32.mrf.mxu0  ;;  %v922_v18 = vpop.f32.mrf.mxu1 }
 0x11b   :  { %722 = vst [vmem:[%s1384_s3 + $0xd8] sm:$0xff] %v658_v13  ;;  %754 = vst [vmem:[%s1384_s3 + $0x1d8] sm:$0xff] %v690_v14  ;;  %v656_v19 = vmax.f32 %v476_v15, 0.0  ;;  %v688_v20 = vmax.f32 %v604_v16, 0.0  ;;  %v497_v21 = vadd.f32 %v890_v17, %v1123_v40  ;;  %v625_v22 = vadd.f32 %v922_v18, %v1123_v40 }
 0x11c   :  { %v488_v23 = vpop.f32.mrf.mxu0  ;;  %v616_v24 = vpop.f32.mrf.mxu1 }
 0x11d   :  { %720 = vst [vmem:[%s1384_s3 + $0xc8] sm:$0xff] %v656_v19  ;;  %752 = vst [vmem:[%s1384_s3 + $0x1c8] sm:$0xff] %v688_v20  ;;  %v661_v25 = vmax.f32 %v497_v21, 0.0  ;;  %v693_v26 = vmax.f32 %v625_v22, 0.0  ;;  %v489_v27 = vadd.f32 %v1123_v40, %v488_v23  ;;  %v617_v28 = vadd.f32 %v1123_v40, %v616_v24 }
 0x11e   :  { %v891_v29 = vpop.f32.mrf.mxu0  ;;  %v923_v30 = vpop.f32.mrf.mxu1 }
 0x11f   :  { %725 = vst [vmem:[%s1384_s3 + $0xf0] sm:$0xff] %v661_v25  ;;  %757 = vst [vmem:[%s1384_s3 + $0x1f0] sm:$0xff] %v693_v26  ;;  %v659_v31 = vmax.f32 %v489_v27, 0.0  ;;  %v691_v32 = vmax.f32 %v617_v28, 0.0  ;;  %v500_v33 = vadd.f32 %v891_v29, %v1123_v40  ;;  %v628_v34 = vadd.f32 %v923_v30, %v1123_v40 }
 0x120   :  { %v491_v35 = vpop.f32.mrf.mxu0  ;;  %v619_v36 = vpop.f32.mrf.mxu1 }
 0x121   :  { %723 = vst [vmem:[%s1384_s3 + $0xe0] sm:$0xff] %v659_v31  ;;  %755 = vst [vmem:[%s1384_s3 + $0x1e0] sm:$0xff] %v691_v32  ;;  %v662_v37 = vmax.f32 %v500_v33, 0.0  ;;  %v694_v38 = vmax.f32 %v628_v34, 0.0  ;;  %v492_v39 = vadd.f32 %v1123_v40, %v491_v35  ;;  %v620_v41 = vadd.f32 %v1123_v40, %v619_v36 }
 0x123   :  { %726 = vst [vmem:[%s1384_s3 + $0xf8] sm:$0xff] %v662_v37  ;;  %758 = vst [vmem:[%s1384_s3 + $0x1f8] sm:$0xff] %v694_v38  ;;  %v660_v42 = vmax.f32 %v492_v39, 0.0  ;;  %v692_v43 = vmax.f32 %v620_v41, 0.0 }
 0x125   :  { %724 = vst [vmem:[%s1384_s3 + $0xe8] sm:$0xff] %v660_v42  ;;  %756 = vst [vmem:[%s1384_s3 + $0x1e8] sm:$0xff] %v692_v43 }

// kernel: hmnet_ner_forward.8
= control target key start
LH: loop header
LB: loop body
LE: loop exit
PB: predicated region body
PF: predicated region fallthrough
CT: control target
= control target key end

     0   :  { %s717_s1 = inlined_call_operand.vmem [shape: bf16[256,128], index: 1, kind: input, shape index: {}]   ;;  %s718_s0 = inlined_call_operand.vmem [shape: bf16[128,256], index: 0, kind: input, shape index: {}]   ;;  %s719_s2 = inlined_call_operand.vmem [shape: f32[1,128], index: 2, kind: input, shape index: {}]   ;;  %s720_s3 = inlined_call_operand.vmem [shape: f32[128,128], index: 3, kind: output, shape index: {}]  }
   0x1   :  { %v492_v0 = vld [vmem:[%s717_s1 + $0x78] sm:$0xff]   ;;  %v494_v2 = vld [vmem:[%s717_s1 + $0x70] sm:$0xff]   ;;  %v496_v4 = vld [vmem:[%s717_s1 + $0x68] sm:$0xff]  }
   0x2   :  { %v493_v1 = vld [vmem:[%s717_s1 + $0x38] sm:$0xff]   ;;  %412 = vmatprep.subr.bf16.mxu0 %v492_v0  ;;  %476 = vmatprep.subr.bf16.mxu1 %v492_v0  ;;  %v495_v3 = vld [vmem:[%s717_s1 + $0x30] sm:$0xff]   ;;  %v497_v5 = vld [vmem:[%s717_s1 + $0x28] sm:$0xff]  }
   0x3   :  { %413 = vmatpush3.bf16.msra.mxu0 %v493_v1  ;;  %484 = vmatpush3.bf16.msra.mxu1 %v493_v1  ;;  %v498_v6 = vld [vmem:[%s717_s1 + $0x60] sm:$0xff]   ;;  %v500_v8 = vld [vmem:[%s717_s1 + $0x58] sm:$0xff]   ;;  %v502_v10 = vld [vmem:[%s717_s1 + $0x50] sm:$0xff]  }
   0x4   :  { %414 = vmatprep.subr.bf16.mxu0 %v494_v2  ;;  %477 = vmatprep.subr.bf16.mxu1 %v494_v2  ;;  %v499_v7 = vld [vmem:[%s717_s1 + $0x20] sm:$0xff]   ;;  %v501_v9 = vld [vmem:[%s717_s1 + $0x18] sm:$0xff]   ;;  %v503_v13 = vld [vmem:[%s717_s1 + $0x10] sm:$0xff]  }
   0x5   :  { %v510_v11 = vld [vmem:[%s718_s0 + $0x4] ss:$8 sps:$4 sm:$0xff]   ;;  %v508_v18 = vld [vmem:[%s718_s0] ss:$8 sps:$4 sm:$0xff]   ;;  %v514_v20 = vld [vmem:[%s718_s0 + $0x14] ss:$8 sps:$4 sm:$0xff]  }
   0x6   :  { %v513_v12 = vld [vmem:[%s718_s0 + $0x44] ss:$8 sps:$4 sm:$0xff]   ;;  %278 = vmatprep.mubr.bf16.mxu0 %v510_v11  ;;  %v511_v19 = vld [vmem:[%s718_s0 + $0x40] ss:$8 sps:$4 sm:$0xff]   ;;  %v516_v21 = vld [vmem:[%s718_s0 + $0x54] ss:$8 sps:$4 sm:$0xff]  }
   0x7   :  { %415 = vmatpush3.bf16.msra.mxu0 %v495_v3  ;;  %485 = vmatpush3.bf16.msra.mxu1 %v495_v3  ;;  %v504_v14 = vld [vmem:[%s717_s1 + $0x48] sm:$0xff]   ;;  %v506_v16 = vld [vmem:[%s717_s1 + $0x40] sm:$0xff]   ;;  %v518_v22 = vld [vmem:[%s718_s0 + $0x10] ss:$8 sps:$4 sm:$0xff]  }
   0x8   :  { %416 = vmatprep.subr.bf16.mxu0 %v496_v4  ;;  %478 = vmatprep.subr.bf16.mxu1 %v496_v4  ;;  %v505_v15 = vld [vmem:[%s717_s1 + $0x8] sm:$0xff]   ;;  %v507_v17 = vld [vmem:[%s717_s1] sm:$0xff]   ;;  %v519_v23 = vld [vmem:[%s718_s0 + $0x50] ss:$8 sps:$4 sm:$0xff]  }
   0x9   :  { %310 = vmatprep.mubr.bf16.mxu1 %v513_v12  ;;  %v520_v24 = vld [vmem:[%s718_s0 + $0x24] ss:$8 sps:$4 sm:$0xff]   ;;  %v524_v26 = vld [vmem:[%s718_s0 + $0x20] ss:$8 sps:$4 sm:$0xff]   ;;  %v526_v28 = vld [vmem:[%s718_s0 + $0x34] ss:$8 sps:$4 sm:$0xff]  }
   0xa   :  { %v522_v25 = vld [vmem:[%s718_s0 + $0x64] ss:$8 sps:$4 sm:$0xff]   ;;  %v525_v27 = vld [vmem:[%s718_s0 + $0x60] ss:$8 sps:$4 sm:$0xff]   ;;  %v528_v29 = vld [vmem:[%s718_s0 + $0x74] ss:$8 sps:$4 sm:$0xff]  }
   0xb   :  { %417 = vmatpush3.bf16.msra.mxu0 %v497_v5  ;;  %486 = vmatpush3.bf16.msra.mxu1 %v497_v5  ;;  %v530_v30 = vld [vmem:[%s718_s0 + $0x30] ss:$8 sps:$4 sm:$0xff]   ;;  %v651_v34 = vld [vmem:[%s719_s2] ss:$0 sm:$0xff] }
   0xc   :  { %418 = vmatprep.subr.bf16.mxu0 %v498_v6  ;;  %479 = vmatprep.subr.bf16.mxu1 %v498_v6  ;;  %v531_v31 = vld [vmem:[%s718_s0 + $0x70] ss:$8 sps:$4 sm:$0xff]  }
   0xf   :  { %419 = vmatpush3.bf16.msra.mxu0 %v499_v7  ;;  %487 = vmatpush3.bf16.msra.mxu1 %v499_v7 }
  0x10   :  { %420 = vmatprep.subr.bf16.mxu0 %v500_v8  ;;  %480 = vmatprep.subr.bf16.mxu1 %v500_v8 }
  0x13   :  { %421 = vmatpush3.bf16.msra.mxu0 %v501_v9  ;;  %488 = vmatpush3.bf16.msra.mxu1 %v501_v9 }
  0x14   :  { %422 = vmatprep.subr.bf16.mxu0 %v502_v10  ;;  %481 = vmatprep.subr.bf16.mxu1 %v502_v10 }
  0x17   :  { %423 = vmatpush3.bf16.msra.mxu0 %v503_v13  ;;  %489 = vmatpush3.bf16.msra.mxu1 %v503_v13 }
  0x18   :  { %424 = vmatprep.subr.bf16.mxu0 %v504_v14  ;;  %482 = vmatprep.subr.bf16.mxu1 %v504_v14 }
  0x1b   :  { %425 = vmatpush3.bf16.msra.mxu0 %v505_v15  ;;  %490 = vmatpush3.bf16.msra.mxu1 %v505_v15 }
  0x1c   :  { %426 = vmatprep.subr.bf16.mxu0 %v506_v16  ;;  %483 = vmatprep.subr.bf16.mxu1 %v506_v16 }
  0x1f   :  { %427 = vmatpush3.bf16.msra.mxu0 %v507_v17  ;;  %491 = vmatpush3.bf16.msra.mxu1 %v507_v17 }
  0x22   :  { %279 = vmatmul.mubr.bf16.vlgmr.msra.gmra.mxu0 %v508_v18  ;;  %311 = vmatmul.mubr.bf16.vlgmr.msra.gmra.mxu1 %v511_v19 }
  0x23   :  { %286 = vmatprep.mubr.bf16.mxu0 %v514_v20  ;;  %318 = vmatprep.mubr.bf16.mxu1 %v516_v21 }
  0x2a   :  { %287 = vmatmul.mubr.bf16.gmra.mxu0 %v518_v22  ;;  %319 = vmatmul.mubr.bf16.gmra.mxu1 %v519_v23 }
  0x2b   :  { %294 = vmatprep.mubr.bf16.mxu0 %v520_v24  ;;  %326 = vmatprep.mubr.bf16.mxu1 %v522_v25 }
  0x32   :  { %295 = vmatmul.mubr.bf16.gmra.mxu0 %v524_v26  ;;  %327 = vmatmul.mubr.bf16.gmra.mxu1 %v525_v27 }
  0x33   :  { %302 = vmatprep.mubr.bf16.mxu0 %v526_v28  ;;  %334 = vmatprep.mubr.bf16.mxu1 %v528_v29 }
  0x3a   :  { %303 = vmatmul.mubr.bf16.gmra.mxu0 %v530_v30  ;;  %335 = vmatmul.mubr.bf16.gmra.mxu1 %v531_v31 }
  0xe2   :  { %v428_v32 = vpop.f32.mrf.mxu0  ;;  %v452_v33 = vpop.f32.mrf.mxu1 }
  0xe4   :  { %v429_v35 = vpop.f32.mrf.mxu0  ;;  %v453_v36 = vpop.f32.mrf.mxu1 }
  0xe5   :  { %v430_v37 = vadd.f32 %v429_v35, %v428_v32  ;;  %v454_v38 = vadd.f32 %v453_v36, %v452_v33 }
  0xe6   :  { %v431_v39 = vpop.f32.mrf.mxu0  ;;  %v455_v40 = vpop.f32.mrf.mxu1 }
  0xe7   :  { %v281_v41 = vadd.f32 %v430_v37, %v651_v34  ;;  %v313_v42 = vadd.f32 %v454_v38, %v651_v34 }
  0xe8   :  { %v432_v43 = vpop.f32.mrf.mxu0  ;;  %v456_v44 = vpop.f32.mrf.mxu1 }
  0xe9   :  { %v343_v45 = vmax.f32 %v281_v41, 0.0  ;;  %v351_v46 = vmax.f32 %v313_v42, 0.0  ;;  %v433_v47 = vadd.f32 %v432_v43, %v431_v39  ;;  %v457_v48 = vadd.f32 %v456_v44, %v455_v40 }
  0xea   :  { %v434_v49 = vpop.f32.mrf.mxu0  ;;  %v458_v50 = vpop.f32.mrf.mxu1 }
  0xeb   :  { %359 = vst [vmem:[%s720_s3] sm:$0xff] %v343_v45  ;;  %367 = vst [vmem:[%s720_s3 + $0x40] sm:$0xff] %v351_v46  ;;  %v284_v51 = vadd.f32 %v433_v47, %v651_v34  ;;  %v316_v52 = vadd.f32 %v457_v48, %v651_v34 }
  0xec   :  { %v435_v53 = vpop.f32.mrf.mxu0  ;;  %v459_v54 = vpop.f32.mrf.mxu1 }
  0xed   :  { %v344_v55 = vmax.f32 %v284_v51, 0.0  ;;  %v352_v56 = vmax.f32 %v316_v52, 0.0  ;;  %v436_v57 = vadd.f32 %v435_v53, %v434_v49  ;;  %v460_v58 = vadd.f32 %v459_v54, %v458_v50 }
  0xee   :  { %v437_v59 = vpop.f32.mrf.mxu0  ;;  %v461_v60 = vpop.f32.mrf.mxu1 }
  0xef   :  { %360 = vst [vmem:[%s720_s3 + $0x8] sm:$0xff] %v344_v55  ;;  %368 = vst [vmem:[%s720_s3 + $0x48] sm:$0xff] %v352_v56  ;;  %v289_v61 = vadd.f32 %v436_v57, %v651_v34  ;;  %v321_v62 = vadd.f32 %v460_v58, %v651_v34 }
  0xf0   :  { %v438_v63 = vpop.f32.mrf.mxu0  ;;  %v462_v0 = vpop.f32.mrf.mxu1 }
  0xf1   :  { %v345_v1 = vmax.f32 %v289_v61, 0.0  ;;  %v353_v2 = vmax.f32 %v321_v62, 0.0  ;;  %v439_v3 = vadd.f32 %v438_v63, %v437_v59  ;;  %v463_v4 = vadd.f32 %v462_v0, %v461_v60 }
  0xf2   :  { %v440_v5 = vpop.f32.mrf.mxu0  ;;  %v464_v6 = vpop.f32.mrf.mxu1 }
  0xf3   :  { %361 = vst [vmem:[%s720_s3 + $0x10] sm:$0xff] %v345_v1  ;;  %369 = vst [vmem:[%s720_s3 + $0x50] sm:$0xff] %v353_v2  ;;  %v292_v7 = vadd.f32 %v439_v3, %v651_v34  ;;  %v324_v8 = vadd.f32 %v463_v4, %v651_v34 }
  0xf4   :  { %v441_v9 = vpop.f32.mrf.mxu0  ;;  %v465_v10 = vpop.f32.mrf.mxu1 }
  0xf5   :  { %v346_v11 = vmax.f32 %v292_v7, 0.0  ;;  %v354_v12 = vmax.f32 %v324_v8, 0.0  ;;  %v442_v13 = vadd.f32 %v441_v9, %v440_v5  ;;  %v466_v14 = vadd.f32 %v465_v10, %v464_v6 }
  0xf6   :  { %v443_v15 = vpop.f32.mrf.mxu0  ;;  %v467_v16 = vpop.f32.mrf.mxu1 }
  0xf7   :  { %362 = vst [vmem:[%s720_s3 + $0x18] sm:$0xff] %v346_v11  ;;  %370 = vst [vmem:[%s720_s3 + $0x58] sm:$0xff] %v354_v12  ;;  %v297_v17 = vadd.f32 %v442_v13, %v651_v34  ;;  %v329_v18 = vadd.f32 %v466_v14, %v651_v34 }
  0xf8   :  { %v444_v19 = vpop.f32.mrf.mxu0  ;;  %v468_v20 = vpop.f32.mrf.mxu1 }
  0xf9   :  { %v347_v21 = vmax.f32 %v297_v17, 0.0  ;;  %v355_v22 = vmax.f32 %v329_v18, 0.0  ;;  %v445_v23 = vadd.f32 %v444_v19, %v443_v15  ;;  %v469_v24 = vadd.f32 %v468_v20, %v467_v16 }
  0xfa   :  { %v446_v25 = vpop.f32.mrf.mxu0  ;;  %v470_v26 = vpop.f32.mrf.mxu1 }
  0xfb   :  { %363 = vst [vmem:[%s720_s3 + $0x20] sm:$0xff] %v347_v21  ;;  %371 = vst [vmem:[%s720_s3 + $0x60] sm:$0xff] %v355_v22  ;;  %v300_v27 = vadd.f32 %v445_v23, %v651_v34  ;;  %v332_v28 = vadd.f32 %v469_v24, %v651_v34 }
  0xfc   :  { %v447_v29 = vpop.f32.mrf.mxu0  ;;  %v471_v30 = vpop.f32.mrf.mxu1 }
  0xfd   :  { %v348_v31 = vmax.f32 %v300_v27, 0.0  ;;  %v356_v32 = vmax.f32 %v332_v28, 0.0  ;;  %v448_v33 = vadd.f32 %v447_v29, %v446_v25  ;;  %v472_v35 = vadd.f32 %v471_v30, %v470_v26 }
  0xfe   :  { %v449_v36 = vpop.f32.mrf.mxu0  ;;  %v473_v37 = vpop.f32.mrf.mxu1 }
  0xff   :  { %364 = vst [vmem:[%s720_s3 + $0x28] sm:$0xff] %v348_v31  ;;  %372 = vst [vmem:[%s720_s3 + $0x68] sm:$0xff] %v356_v32  ;;  %v305_v38 = vadd.f32 %v448_v33, %v651_v34  ;;  %v337_v39 = vadd.f32 %v472_v35, %v651_v34 }
 0x100   :  { %v450_v40 = vpop.f32.mrf.mxu0  ;;  %v474_v41 = vpop.f32.mrf.mxu1 }
 0x101   :  { %v349_v42 = vmax.f32 %v305_v38, 0.0  ;;  %v357_v43 = vmax.f32 %v337_v39, 0.0  ;;  %v451_v44 = vadd.f32 %v450_v40, %v449_v36  ;;  %v475_v45 = vadd.f32 %v474_v41, %v473_v37 }
 0x103   :  { %365 = vst [vmem:[%s720_s3 + $0x30] sm:$0xff] %v349_v42  ;;  %373 = vst [vmem:[%s720_s3 + $0x70] sm:$0xff] %v357_v43  ;;  %v308_v46 = vadd.f32 %v451_v44, %v651_v34  ;;  %v340_v47 = vadd.f32 %v475_v45, %v651_v34 }
 0x105   :  { %v350_v48 = vmax.f32 %v308_v46, 0.0  ;;  %v358_v49 = vmax.f32 %v340_v47, 0.0 }
 0x107   :  { %366 = vst [vmem:[%s720_s3 + $0x38] sm:$0xff] %v350_v48  ;;  %374 = vst [vmem:[%s720_s3 + $0x78] sm:$0xff] %v358_v49 }

// kernel: hmnet_ner_forward.9
= control target key start
LH: loop header
LB: loop body
LE: loop exit
PB: predicated region body
PF: predicated region fallthrough
CT: control target
= control target key end

     0   :  { %s610_s1 = inlined_call_operand.vmem [shape: bf16[384,128], index: 1, kind: input, shape index: {}]   ;;  %s611_s0 = inlined_call_operand.vmem [shape: bf16[32,384], index: 0, kind: input, shape index: {}]   ;;  %s612_s2 = inlined_call_operand.vmem [shape: f32[1,128], index: 2, kind: input, shape index: {}]   ;;  %s613_s3 = inlined_call_operand.vmem [shape: f32[32,128], index: 3, kind: output, shape index: {}]  }
   0x1   :  { %v453_v0 = vld [vmem:[%s610_s1 + $0x78] sm:$0xff]   ;;  %v455_v2 = vld [vmem:[%s610_s1 + $0x70] sm:$0xff]   ;;  %v458_v5 = vld [vmem:[%s610_s1 + $0x68] sm:$0xff]  }
   0x2   :  { %v454_v1 = vld [vmem:[%s610_s1 + $0x38] sm:$0xff]   ;;  %395 = vmatprep.subr.bf16.mxu0 %v453_v0  ;;  %v457_v4 = vld [vmem:[%s610_s1 + $0x30] sm:$0xff]   ;;  %v460_v7 = vld [vmem:[%s610_s1 + $0x28] sm:$0xff]  }
   0x3   :  { %396 = vmatpush3.bf16.msra.mxu0 %v454_v1  ;;  %v456_v3 = vld [vmem:[%s610_s1 + $0xb8] sm:$0xff]   ;;  %v459_v6 = vld [vmem:[%s610_s1 + $0xb0] sm:$0xff]   ;;  %v461_v8 = vld [vmem:[%s610_s1 + $0x60] sm:$0xff]  }
   0x4   :  { %397 = vmatprep.subr.bf16.mxu0 %v455_v2  ;;  %433 = vmatprep.subr.bf16.mxu1 %v456_v3  ;;  %v462_v9 = vld [vmem:[%s610_s1 + $0xa8] sm:$0xff]   ;;  %v463_v10 = vld [vmem:[%s610_s1 + $0x20] sm:$0xff]   ;;  %v464_v11 = vld [vmem:[%s610_s1 + $0x58] sm:$0xff]  }
   0x5   :  { %434 = vmatpush3.bf16.msra.mxu1 %v456_v3  ;;  %v465_v12 = vld [vmem:[%s610_s1 + $0xa0] sm:$0xff]   ;;  %v466_v13 = vld [vmem:[%s610_s1 + $0x18] sm:$0xff]   ;;  %v467_v15 = vld [vmem:[%s610_s1 + $0x50] sm:$0xff]  }
   0x6   :  { %435 = vmatprep.subr.bf16.mxu1 %v459_v6  ;;  %v468_v14 = vld [vmem:[%s610_s1 + $0x98] sm:$0xff]   ;;  %v469_v16 = vld [vmem:[%s610_s1 + $0x10] sm:$0xff]   ;;  %v470_v18 = vld [vmem:[%s610_s1 + $0x48] sm:$0xff]  }
   0x7   :  { %398 = vmatpush3.bf16.msra.mxu0 %v457_v4  ;;  %v471_v17 = vld [vmem:[%s610_s1 + $0x90] sm:$0xff]   ;;  %v472_v19 = vld [vmem:[%s610_s1 + $0x8] sm:$0xff]   ;;  %v473_v20 = vld [vmem:[%s610_s1 + $0x40] sm:$0xff]  }
   0x8   :  { %399 = vmatprep.subr.bf16.mxu0 %v458_v5  ;;  %v474_v21 = vld [vmem:[%s610_s1 + $0x88] sm:$0xff]   ;;  %v478_v22 = vld [vmem:[%s611_s0 + $0x4] ss:$12 sps:$4 sm:$0xff]   ;;  %v364_v32 = vld [vmem:[%s612_s2] ss:$0 sm:$0xff] }
   0x9   :  { %436 = vmatpush3.bf16.msra.mxu1 %v459_v6  ;;  %v475_v23 = vld [vmem:[%s610_s1] sm:$0xff]   ;;  %286 = vmatprep.mubr.bf16.mxu0 %v478_v22  ;;  %v480_v24 = vld [vmem:[%s611_s0 + $0x8] ss:$12 sps:$4 sm:$0xff]  }
   0xa   :  { %437 = vmatprep.subr.bf16.mxu1 %v462_v9  ;;  %v479_v25 = vld [vmem:[%s610_s1 + $0x80] sm:$0xff]   ;;  %449 = vmatprep.mubr.bf16.mxu1 %v480_v24  ;;  %v482_v27 = vld [vmem:[%s611_s0 + $0x1c] ss:$12 sps:$4 sm:$0xff]  }
   0xb   :  { %400 = vmatpush3.bf16.msra.mxu0 %v460_v7  ;;  %v476_v26 = vld [vmem:[%s611_s0] ss:$12 sps:$4 sm:$0xff]   ;;  %v484_v29 = vld [vmem:[%s611_s0 + $0x18] ss:$12 sps:$4 sm:$0xff]  }
   0xc   :  { %401 = vmatprep.subr.bf16.mxu0 %v461_v8  ;;  %v481_v28 = vld [vmem:[%s611_s0 + $0x20] ss:$12 sps:$4 sm:$0xff]  }
   0xd   :  { %438 = vmatpush3.bf16.msra.mxu1 %v462_v9 }
   0xe   :  { %439 = vmatprep.subr.bf16.mxu1 %v465_v12 }
   0xf   :  { %402 = vmatpush3.bf16.msra.mxu0 %v463_v10 }
  0x10   :  { %403 = vmatprep.subr.bf16.mxu0 %v464_v11 }
  0x11   :  { %440 = vmatpush3.bf16.msra.mxu1 %v465_v12 }
  0x12   :  { %441 = vmatprep.subr.bf16.mxu1 %v468_v14 }
  0x13   :  { %404 = vmatpush3.bf16.msra.mxu0 %v466_v13 }
  0x14   :  { %405 = vmatprep.subr.bf16.mxu0 %v467_v15 }
  0x15   :  { %442 = vmatpush3.bf16.msra.mxu1 %v468_v14 }
  0x16   :  { %443 = vmatprep.subr.bf16.mxu1 %v471_v17 }
  0x17   :  { %406 = vmatpush3.bf16.msra.mxu0 %v469_v16 }
  0x18   :  { %407 = vmatprep.subr.bf16.mxu0 %v470_v18 }
  0x19   :  { %444 = vmatpush3.bf16.msra.mxu1 %v471_v17 }
  0x1a   :  { %445 = vmatprep.subr.bf16.mxu1 %v474_v21 }
  0x1b   :  { %408 = vmatpush3.bf16.msra.mxu0 %v472_v19 }
  0x1c   :  { %409 = vmatprep.subr.bf16.mxu0 %v473_v20 }
  0x1d   :  { %446 = vmatpush3.bf16.msra.mxu1 %v474_v21 }
  0x1e   :  { %447 = vmatprep.subr.bf16.mxu1 %v479_v25 }
  0x1f   :  { %410 = vmatpush3.bf16.msra.mxu0 %v475_v23 }
  0x21   :  { %448 = vmatpush3.bf16.msra.mxu1 %v479_v25 }
  0x22   :  { %287 = vmatmul.mubr.bf16.vlgmr.msra.gmra.mxu0 %v476_v26 }
  0x23   :  { %294 = vmatprep.mubr.bf16.mxu0 %v482_v27 }
  0x24   :  { %450 = vmatmul.mubr.bf16.vlgmr.msra.gmra.mxu1 %v481_v28 }
  0x2a   :  { %295 = vmatmul.mubr.bf16.gmra.mxu0 %v484_v29 }
  0xe2   :  { %v411_v30 = vpop.f32.mrf.mxu0 }
  0xe4   :  { %v412_v31 = vpop.f32.mrf.mxu0  ;;  %v451_v34 = vpop.f32.mrf.mxu1 }
  0xe5   :  { %v413_v33 = vadd.f32 %v412_v31, %v411_v30 }
  0xe6   :  { %v414_v35 = vpop.f32.mrf.mxu0  ;;  %v337_v37 = vpop.f32.mrf.mxu1 }
  0xe7   :  { %v289_v36 = vadd.f32 %v413_v33, %v364_v32 }
  0xe8   :  { %v415_v38 = vpop.f32.mrf.mxu0  ;;  %v452_v41 = vpop.f32.mrf.mxu1 }
  0xe9   :  { %v416_v39 = vadd.f32 %v415_v38, %v414_v35  ;;  %v338_v40 = vadd.f32 %v337_v37, %v289_v36 }
  0xea   :  { %v417_v42 = vpop.f32.mrf.mxu0  ;;  %v340_v45 = vpop.f32.mrf.mxu1 }
  0xeb   :  { %v352_v43 = vmax.f32 %v338_v40, 0.0  ;;  %v292_v44 = vadd.f32 %v416_v39, %v364_v32 }
  0xec   :  { %v418_v46 = vpop.f32.mrf.mxu0 }
  0xed   :  { %356 = vst [vmem:[%s613_s3] sm:$0xff] %v352_v43  ;;  %v419_v47 = vadd.f32 %v418_v46, %v417_v42  ;;  %v341_v48 = vadd.f32 %v340_v45, %v292_v44 }
  0xee   :  { %v420_v49 = vpop.f32.mrf.mxu0 }
  0xef   :  { %v297_v50 = vadd.f32 %v419_v47, %v364_v32  ;;  %v353_v51 = vmax.f32 %v341_v48, 0.0 }
  0xf0   :  { %v421_v52 = vpop.f32.mrf.mxu0 }
  0xf1   :  { %v346_v53 = vadd.f32 %v451_v34, %v297_v50  ;;  %357 = vst [vmem:[%s613_s3 + $0x8] sm:$0xff] %v353_v51  ;;  %v422_v54 = vadd.f32 %v421_v52, %v420_v49 }
  0xf3   :  { %v354_v55 = vmax.f32 %v346_v53, 0.0  ;;  %v300_v56 = vadd.f32 %v422_v54, %v364_v32 }
  0xf5   :  { %358 = vst [vmem:[%s613_s3 + $0x10] sm:$0xff] %v354_v55  ;;  %v349_v57 = vadd.f32 %v452_v41, %v300_v56 }
  0xf7   :  { %v355_v58 = vmax.f32 %v349_v57, 0.0 }
  0xf9   :  { %359 = vst [vmem:[%s613_s3 + $0x18] sm:$0xff] %v355_v58 }

// kernel: hmnet_ner_forward.10
= control target key start
LH: loop header
LB: loop body
LE: loop exit
PB: predicated region body
PF: predicated region fallthrough
CT: control target
= control target key end

     0   :  { %v1356_v14 = vmov 0   ;;  %v1357_v20 = vmov 0.0   ;;  %vm287_vm0 = vcmask 523264   ;;  %vm1358_vm1 = vmmov 0   ;;  %s1776_s1 = inlined_call_operand.vmem [shape: bf16[128,64], index: 1, kind: input, shape index: {}]   ;;  %s1777_s0 = inlined_call_operand.vmem [shape: bf16[32,128], index: 0, kind: input, shape index: {}]   ;;  %s1778_s3 = inlined_call_operand.vmem [shape: bf16[64,512], index: 3, kind: input, shape index: {}]   ;;  %s1779_s5 = inlined_call_operand.vmem [shape: bf16[4,128,8], index: 5, kind: input, shape index: {}]   ;;  %s1780_s2 = inlined_call_operand.vmem [shape: f32[1,64], index: 2, kind: input, shape index: {}]   ;;  %s1781_s4 = inlined_call_operand.vmem [shape: f32[1,512], index: 4, kind: input, shape index: {}]   ;;  %s1782_s6 = inlined_call_operand.vmem [shape: f32[1,8], index: 6, kind: input, shape index: {}]   ;;  %s1783_s7 = inlined_call_operand.vmem [shape: f32[2,4,8,128], index: 7, kind: output, shape index: {}]  }
   0x1   :  { %v1274_v0 = vld [vmem:[%s1776_s1 + $0x38] sm:$0xff]   ;;  %v1275_v1 = vld [vmem:[%s1776_s1 + $0x30] sm:$0xff]   ;;  %v1276_v2 = vld [vmem:[%s1776_s1 + $0x28] sm:$0xff]   ;;  %326 = vmatprep.mubr.bf16.mxu1 %v1356_v14  ;;  %1265 = vset.pattern.permute.xlu0 %v1356_v14  ;;  %v187_v59 = vlaneseq  ;;  %vm916_vm3 = vcmask 64544   ;;  %vm852_vm4 = vcmask 31744  }
   0x2   :  { %1154 = vmatprep.subr.bf16.mxu0 %v1274_v0  ;;  %v1277_v3 = vld [vmem:[%s1776_s1 + $0x20] sm:$0xff]   ;;  %v1278_v5 = vld [vmem:[%s1776_s1 + $0x18] sm:$0xff]   ;;  %v1279_v6 = vld [vmem:[%s1776_s1 + $0x10] sm:$0xff]  }
   0x3   :  { %1155 = vmatpush3.bf16.msra.mxu0 %v1274_v0  ;;  %v1282_v4 = vld [vmem:[%s1777_s0] sm:$0xff]   ;;  %v1280_v7 = vld [vmem:[%s1776_s1 + $0x8] sm:$0xff]   ;;  %v1309_v21 = vld [vmem:[%s1779_s5 + $0x78] sm:$0xff]   ;;  %v188_v62 = vshrl.u32 %v187_v59, 7 }
   0x4   :  { %1156 = vmatprep.subr.bf16.mxu0 %v1275_v1  ;;  %1170 = vmatprep.mubr.bf16.mxu0 %v1282_v4  ;;  %v1281_v8 = vld [vmem:[%s1776_s1] sm:$0xff]   ;;  %v1283_v9 = vld [vmem:[%s1777_s0 + $0x8] sm:$0xff]   ;;  %v1308_v44 = vld [vmem:[%s1779_s5 + $0x38] sm:$0xff]  }
   0x5   :  { %v1284_v10 = vld [vmem:[%s1778_s3 + $0x64] ss:$16 sps:$4 sm:$0xff]   ;;  %v1286_v11 = vld [vmem:[%s1778_s3 + $0x60] ss:$16 sps:$4 sm:$0xff]   ;;  %v1298_v19 = vld [vmem:[%s1778_s3 + $0x6c] ss:$16 sps:$4 sm:$0xff]  }
   0x6   :  { %302 = vmatprep.subr.bf16.mxu1 %v1284_v10  ;;  %v1287_v12 = vld [vmem:[%s1778_s3 + $0x44] ss:$16 sps:$4 sm:$0xff]   ;;  %v1289_v13 = vld [vmem:[%s1778_s3 + $0x40] ss:$16 sps:$4 sm:$0xff]   ;;  %v1296_v33 = vld [vmem:[%s1778_s3 + $0x68] ss:$16 sps:$4 sm:$0xff]  }
   0x7   :  { %1157 = vmatpush3.bf16.msra.mxu0 %v1275_v1  ;;  %303 = vmatpush1.bf16.msra.mxu1 %v1286_v11  ;;  %v1290_v15 = vld [vmem:[%s1778_s3 + $0x24] ss:$16 sps:$4 sm:$0xff]   ;;  %v1292_v16 = vld [vmem:[%s1778_s3 + $0x20] ss:$16 sps:$4 sm:$0xff]   ;;  %v1301_v35 = vld [vmem:[%s1778_s3 + $0x4c] ss:$16 sps:$4 sm:$0xff]  }
   0x8   :  { %1158 = vmatprep.subr.bf16.mxu0 %v1276_v2  ;;  %304 = vmatprep.subr.bf16.mxu1 %v1287_v12  ;;  %v1293_v17 = vld [vmem:[%s1778_s3 + $0x4] ss:$16 sps:$4 sm:$0xff]   ;;  %v1295_v18 = vld [vmem:[%s1778_s3] ss:$16 sps:$4 sm:$0xff]   ;;  %v1299_v36 = vld [vmem:[%s1778_s3 + $0x48] ss:$16 sps:$4 sm:$0xff]  }
   0x9   :  { %v989_v24 = vld [vmem:[%s1780_s2] ss:$0 sm:$0xff]  ;;  %v1304_v37 = vld [vmem:[%s1778_s3 + $0x2c] ss:$16 sps:$4 sm:$0xff]   ;;  %v1302_v40 = vld [vmem:[%s1778_s3 + $0x28] ss:$16 sps:$4 sm:$0xff]  }
   0xa   :  { %v1307_v42 = vld [vmem:[%s1778_s3 + $0xc] ss:$16 sps:$4 sm:$0xff]   ;;  %v1305_v43 = vld [vmem:[%s1778_s3 + $0x8] ss:$16 sps:$4 sm:$0xff]   ;;  %v1310_v45 = vld [vmem:[%s1779_s5 + $0x30] sm:$0xff]   ;;  %v193_v0 = vsub.s32 1, %v188_v62 }
   0xb   :  { %1159 = vmatpush3.bf16.msra.mxu0 %v1276_v2  ;;  %305 = vmatpush1.bf16.msra.mxu1 %v1289_v13  ;;  %v1311_v46 = vld [vmem:[%s1779_s5 + $0x70] sm:$0xff]   ;;  %v1312_v47 = vld [vmem:[%s1779_s5 + $0x28] sm:$0xff]   ;;  %v1314_v49 = vld [vmem:[%s1779_s5 + $0x20] sm:$0xff]   ;;  %v189_v2 = vsub.s32 0, %v188_v62 }
   0xc   :  { %1160 = vmatprep.subr.bf16.mxu0 %v1277_v3  ;;  %306 = vmatprep.subr.bf16.mxu1 %v1290_v15  ;;  %v1313_v48 = vld [vmem:[%s1779_s5 + $0x68] sm:$0xff]   ;;  %v1315_v50 = vld [vmem:[%s1779_s5 + $0x60] sm:$0xff]   ;;  %v1316_v51 = vld [vmem:[%s1779_s5 + $0x18] sm:$0xff]  }
   0xd   :  { %v1317_v52 = vld [vmem:[%s1779_s5 + $0x58] sm:$0xff]   ;;  %v1318_v53 = vld [vmem:[%s1779_s5 + $0x10] sm:$0xff]   ;;  %v1320_v55 = vld [vmem:[%s1779_s5 + $0x8] sm:$0xff]  }
   0xe   :  { %v1319_v54 = vld [vmem:[%s1779_s5 + $0x50] sm:$0xff]   ;;  %v1321_v56 = vld [vmem:[%s1779_s5 + $0x48] sm:$0xff]   ;;  %v1322_v57 = vld [vmem:[%s1779_s5] sm:$0xff]  }
   0xf   :  { %1161 = vmatpush3.bf16.msra.mxu0 %v1277_v3  ;;  %307 = vmatpush1.bf16.msra.mxu1 %v1292_v16  ;;  %v1323_v58 = vld [vmem:[%s1779_s5 + $0x40] sm:$0xff]  }
  0x10   :  { %1162 = vmatprep.subr.bf16.mxu0 %v1278_v5  ;;  %308 = vmatprep.subr.bf16.mxu1 %v1293_v17  ;;  %v185_v3 = vld [vmem:[%s1781_s4] sm:$0xf] }
  0x13   :  { %1163 = vmatpush3.bf16.msra.mxu0 %v1278_v5  ;;  %309 = vmatpush1.bf16.msra.mxu1 %v1295_v18  ;;  %v1572_v5 = vrot.slane %v185_v3, %v193_v0 }
  0x14   :  { %1164 = vmatprep.subr.bf16.mxu0 %v1279_v6  ;;  %355 = vmatprep.subr.bf16.mxu1 %v1298_v19 }
  0x17   :  { %1165 = vmatpush3.bf16.msra.mxu0 %v1279_v6  ;;  %v197_v6 = vsub.s32 2, %v188_v62 }
  0x18   :  { %1166 = vmatprep.subr.bf16.mxu0 %v1280_v7 }
  0x19   :  { %v1581_v12 = vrot.slane %v185_v3, %v197_v6 }
  0x1b   :  { %1167 = vmatpush3.bf16.msra.mxu0 %v1280_v7 }
  0x1c   :  { %1168 = vmatprep.subr.bf16.mxu0 %v1281_v8 }
  0x1f   :  { %1169 = vmatpush3.bf16.msra.mxu0 %v1281_v8  ;;  %v1576_v8 = vrot.slane %v185_v3, %v189_v2 }
  0x20   :  { %1174 = vmatprep.subr.bf16.mxu0 %v1357_v20 }
  0x22   :  { %1171 = vmatmul.mubr.bf16.vlgmr.msra.gmra.mxu0 %v1283_v9  ;;  %v201_v9 = vsub.s32 3, %v188_v62  ;;  %v1335_v62 = vld [vmem:[%s1779_s5 + $0x90] sm:$0xff]  }
  0x23   :  { %1175 = vmatpush3.bf16.msra.mxu0 %v1309_v21  ;;  %1190 = vmatprep.mubr.msk.bf16.mxu0 %vm1358_vm1, %v1357_v20 }
  0x24   :  { %1176 = vmatprep.subr.bf16.mxu0 %v1357_v20  ;;  %v1586_v15 = vrot.slane %v185_v3, %v201_v9  ;;  %v1337_v3 = vld [vmem:[%s1779_s5 + $0x88] sm:$0xff]  }
  0x27   :  { %1177 = vmatpush3.bf16.msra.mxu0 %v1311_v46 }
  0x28   :  { %1178 = vmatprep.subr.bf16.mxu0 %v1357_v20 }
  0x2b   :  { %1179 = vmatpush3.bf16.msra.mxu0 %v1313_v48  ;;  %v1331_v48 = vld [vmem:[%s1779_s5 + $0xa0] sm:$0xff]  }
  0x2c   :  { %1180 = vmatprep.subr.bf16.mxu0 %v1357_v20 }
  0x2f   :  { %1181 = vmatpush3.bf16.msra.mxu0 %v1315_v50 }
  0x30   :  { %1182 = vmatprep.subr.bf16.mxu0 %v1357_v20 }
  0x33   :  { %1183 = vmatpush3.bf16.msra.mxu0 %v1317_v52 }
  0x34   :  { %1184 = vmatprep.subr.bf16.mxu0 %v1357_v20 }
  0x37   :  { %1185 = vmatpush3.bf16.msra.mxu0 %v1319_v54 }
  0x38   :  { %1186 = vmatprep.subr.bf16.mxu0 %v1357_v20 }
  0x3b   :  { %1187 = vmatpush3.bf16.msra.mxu0 %v1321_v56  ;;  %v1333_v56 = vld [vmem:[%s1779_s5 + $0x98] sm:$0xff]  }
  0x3c   :  { %1188 = vmatprep.subr.bf16.mxu0 %v1357_v20 }
  0x3f   :  { %1189 = vmatpush3.bf16.msra.mxu0 %v1323_v58 }
  0x40   :  { %1214 = vmatprep.subr.bf16.mxu0 %v1357_v20 }
  0xe2   :  { %v1172_v22 = vpop.f32.mrf.mxu0 }
  0xe3   :  { %v157_v30 = vadd.f32 %v1172_v22, %v989_v24 }
  0xe4   :  { %v148_v23 = vpop.f32.mrf.mxu0 }
  0xe5   :  { %v149_v25 = vadd.f32 %v989_v24, %v148_v23 }
  0xe6   :  { %v1173_v26 = vpop.f32.mrf.mxu0 }
  0xe7   :  { %1340 = vtanh.f32 %v149_v25  ;;  %v160_v29 = vadd.f32 %v1173_v26, %v989_v24 }
  0xe8   :  { %v151_v27 = vpop.f32.mrf.mxu0 }
  0xe9   :  { %v152_v28 = vadd.f32 %v989_v24, %v151_v27 }
  0xeb   :  { %1342 = vtanh.f32 %v152_v28 }
  0xec   :  { %1344 = vtanh.f32 %v160_v29 }
  0xed   :  { %1346 = vtanh.f32 %v157_v30 }
  0xf4   :  { %v1341_v31 = vpop.eup %1340 }
  0xf8   :  { %v1343_v32 = vpop.eup %1342 }
  0xf9   :  { %v167_v34 = vpack.c.bf16 %v1343_v32, %v1341_v31  ;;  %v1345_v38 = vpop.eup %1344 }
  0xfa   :  { %v1347_v39 = vpop.eup %1346 }
  0xfb   :  { %1016 = vmatmul.mubr.msk.bf16.vlgmr.msra.gmra.mxu1 %vm287_vm0, %v167_v34  ;;  %v168_v41 = vpack.c.bf16 %v1345_v38, %v1347_v39  ;;  %v1326_v38 = vld [vmem:[%s1779_s5 + $0xf0] sm:$0xff]  }
  0xfc   :  { %356 = vmatpush1.bf16.msra.mxu1 %v1296_v33  ;;  %336 = vmatprep.mubr.bf16.mxu1 %v1356_v14  ;;  %v1324_v33 = vld [vmem:[%s1779_s5 + $0xf8] sm:$0xff]  }
  0xfd   :  { %357 = vmatprep.subr.bf16.mxu1 %v1301_v35 }
 0x100   :  { %358 = vmatpush1.bf16.msra.mxu1 %v1299_v36 }
 0x101   :  { %359 = vmatprep.subr.bf16.mxu1 %v1304_v37  ;;  %v1325_v37 = vld [vmem:[%s1779_s5 + $0xb8] sm:$0xff]  }
 0x103   :  { %1017 = vmatmul.mubr.msk.bf16.gmra.mxu1 %vm287_vm0, %v168_v41 }
 0x104   :  { %360 = vmatpush1.bf16.msra.mxu1 %v1302_v40  ;;  %379 = vmatprep.mubr.bf16.mxu1 %v1356_v14 }
 0x105   :  { %361 = vmatprep.subr.bf16.mxu1 %v1307_v42  ;;  %v1328_v42 = vld [vmem:[%s1779_s5 + $0xe8] sm:$0xff]  }
 0x108   :  { %362 = vmatpush1.bf16.msra.mxu1 %v1305_v43 }
 0x109   :  { %1194 = vmatprep.subr.bf16.mxu1 %v1357_v20 }
 0x10b   :  { %1018 = vmatmul.mubr.msk.bf16.vlgmr.msra.gmra.mxu1 %vm287_vm0, %v167_v34 }
 0x10c   :  { %389 = vmatprep.mubr.bf16.mxu1 %v1356_v14  ;;  %1195 = vmatpush3.bf16.msra.mxu1 %v1308_v44  ;;  %v1329_v44 = vld [vmem:[%s1779_s5 + $0xa8] sm:$0xff]  }
 0x10d   :  { %1196 = vmatprep.subr.bf16.mxu1 %v1357_v20 }
 0x110   :  { %1197 = vmatpush3.bf16.msra.mxu1 %v1310_v45  ;;  %v1330_v45 = vld [vmem:[%s1779_s5 + $0xe0] sm:$0xff]  }
 0x111   :  { %1198 = vmatprep.subr.bf16.mxu1 %v1357_v20 }
 0x113   :  { %1019 = vmatmul.mubr.msk.bf16.gmra.mxu1 %vm287_vm0, %v168_v41  ;;  %v1327_v41 = vld [vmem:[%s1779_s5 + $0xb0] sm:$0xff]  }
 0x114   :  { %1199 = vmatpush3.bf16.msra.mxu1 %v1312_v47  ;;  %1210 = vmatprep.mubr.msk.bf16.mxu1 %vm1358_vm1, %v1357_v20 }
 0x115   :  { %1200 = vmatprep.subr.bf16.mxu1 %v1357_v20 }
 0x118   :  { %1201 = vmatpush3.bf16.msra.mxu1 %v1314_v49  ;;  %v1332_v49 = vld [vmem:[%s1779_s5 + $0xd8] sm:$0xff]  }
 0x119   :  { %1202 = vmatprep.subr.bf16.mxu1 %v1357_v20 }
 0x11c   :  { %1203 = vmatpush3.bf16.msra.mxu1 %v1316_v51 }
 0x11d   :  { %1204 = vmatprep.subr.bf16.mxu1 %v1357_v20 }
 0x120   :  { %1205 = vmatpush3.bf16.msra.mxu1 %v1318_v53 }
 0x121   :  { %1206 = vmatprep.subr.bf16.mxu1 %v1357_v20 }
 0x124   :  { %1207 = vmatpush3.bf16.msra.mxu1 %v1320_v55 }
 0x125   :  { %1208 = vmatprep.subr.bf16.mxu1 %v1357_v20 }
 0x128   :  { %1209 = vmatpush3.bf16.msra.mxu1 %v1322_v57  ;;  %v1334_v57 = vld [vmem:[%s1779_s5 + $0xd0] sm:$0xff]  }
 0x129   :  { %1234 = vmatprep.subr.bf16.mxu1 %v1357_v20 }
 0x1bb   :  { %v328_v60 = vpop.f32.mrf.mxu1 }
 0x1bc   :  { %v1584_v14 = vadd.f32 %v328_v60, %v1576_v8 }
 0x1bd   :  { %v330_v61 = vpop.f32.mrf.mxu1 }
 0x1be   :  { %v1579_v11 = vadd.f32 %v330_v61, %v1572_v5 }
 0x1bf   :  { %v332_v63 = vpop.f32.mrf.mxu1 }
 0x1c0   :  { %v400_v17 = vadd.f32 %v1579_v11, %v1584_v14  ;;  %v1597_v22 = vadd.f32 %v332_v63, %v1576_v8  ;;  %v1336_v63 = vld [vmem:[%s1779_s5 + $0xc8] sm:$0xff]  }
 0x1c1   :  { %v334_v1 = vpop.f32.mrf.mxu1 }
 0x1c2   :  { %v1591_v18 = vadd.f32 %v334_v1, %v1572_v5 }
 0x1c3   :  { %v1570_v4 = vpop.f32.mrf.mxu1 }
 0x1c4   :  { %v401_v26 = vadd.f32 %v1591_v18, %v1597_v22  ;;  %v1669_v55 = vadd.f32 %v1570_v4, %v1576_v8  ;;  %v1338_v4 = vld [vmem:[%s1779_s5 + $0xc0] sm:$0xff]  }
 0x1c5   :  { %v1574_v7 = vpop.f32.mrf.mxu1 }
 0x1c6   :  { %v1663_v53 = vadd.f32 %v1574_v7, %v1572_v5  ;;  %v1339_v7 = vld [vmem:[%s1779_s5 + $0x80] sm:$0xff]  }
 0x1c7   :  { %v342_v10 = vpop.f32.mrf.mxu1 }
 0x1c8   :  { %v1654_v50 = vadd.f32 %v342_v10, %v1576_v8  ;;  %v402_v61 = vadd.f32 %v1663_v53, %v1669_v55 }
 0x1c9   :  { %v344_v13 = vpop.f32.mrf.mxu1 }
 0x1ca   :  { %v1645_v47 = vadd.f32 %v344_v13, %v1572_v5 }
 0x1cb   :  { %v381_v16 = vpop.f32.mrf.mxu1 }
 0x1cc   :  { %v1594_v19 = vadd.f32 %v381_v16, %v1581_v12  ;;  %v403_v54 = vadd.f32 %v1645_v47, %v1654_v50 }
 0x1cd   :  { %v383_v21 = vpop.f32.mrf.mxu1 }
 0x1ce   :  { %v404_v23 = vadd.f32 %v400_v17, %v1594_v19  ;;  %v1601_v24 = vadd.f32 %v383_v21, %v1586_v15 }
 0x1cf   :  { %v385_v25 = vpop.f32.mrf.mxu1 }
 0x1d0   :  { %v408_v27 = vadd.f32 %v404_v23, %v1601_v24  ;;  %v1607_v28 = vadd.f32 %v385_v25, %v1581_v12 }
 0x1d1   :  { %v387_v29 = vpop.f32.mrf.mxu1 }
 0x1d2   :  { %v412_v30 = vmul.f32 0.25, %v408_v27  ;;  %v405_v31 = vadd.f32 %v401_v26, %v1607_v28  ;;  %v1611_v32 = vadd.f32 %v387_v29, %v1586_v15 }
 0x1d3   :  { %v391_v40 = vpop.f32.mrf.mxu1 }
 0x1d4   :  { %v416_v34 = vpack.c.bf16 %v412_v30, %v412_v30  ;;  %v409_v35 = vadd.f32 %v405_v31, %v1611_v32  ;;  %v1678_v58 = vadd.f32 %v391_v40, %v1581_v12 }
 0x1d5   :  { %v393_v43 = vpop.f32.mrf.mxu1 }
 0x1d6   :  { %v413_v36 = vmul.f32 0.25, %v409_v35  ;;  %1211 = vmatmul.mubr.bf16.vlgmr.msra.gmra.mxu1 %v416_v34  ;;  %v406_v0 = vadd.f32 %v402_v61, %v1678_v58  ;;  %v1696_v1 = vadd.f32 %v393_v43, %v1586_v15 }
 0x1d7   :  { %1235 = vmatpush3.bf16.msra.mxu1 %v1324_v33  ;;  %1250 = vmatprep.mubr.msk.bf16.mxu1 %vm1358_vm1, %v1357_v20  ;;  %v395_v46 = vpop.f32.mrf.mxu1 }
 0x1d8   :  { %v433_v39 = vpack.c.bf16 %v413_v36, %v413_v36  ;;  %1236 = vmatprep.subr.bf16.mxu1 %v1357_v20  ;;  %v1657_v51 = vadd.f32 %v395_v46, %v1581_v12  ;;  %v410_v5 = vadd.f32 %v406_v0, %v1696_v1 }
 0x1d9   :  { %v397_v52 = vpop.f32.mrf.mxu1 }
 0x1da   :  { %1191 = vmatmul.mubr.bf16.vlgmr.msra.gmra.mxu0 %v433_v39  ;;  %v407_v59 = vadd.f32 %v403_v54, %v1657_v51  ;;  %v1682_v60 = vadd.f32 %v397_v52, %v1586_v15  ;;  %v414_v8 = vmul.f32 0.25, %v410_v5  ;;  %v1363_v5 = vmov 5  }
 0x1db   :  { %1215 = vmatpush3.bf16.msra.mxu0 %v1325_v37  ;;  %1237 = vmatpush3.bf16.msra.mxu1 %v1326_v38 }
 0x1dc   :  { %1216 = vmatprep.subr.bf16.mxu0 %v1357_v20  ;;  %1238 = vmatprep.subr.bf16.mxu1 %v1357_v20  ;;  %v411_v2 = vadd.f32 %v407_v59, %v1682_v60  ;;  %v627_v10 = vpack.c.bf16 %v414_v8, %v414_v8  ;;  %v1360_v59 = vmov 1  }
 0x1dd   :  { %1230 = vmatprep.mubr.msk.bf16.mxu0 %vm1358_vm1, %v1357_v20  ;;  %1266 = vset.pattern.permute.xlu1 %v1360_v59 }
 0x1de   :  { %v415_v6 = vmul.f32 0.25, %v411_v2 }
 0x1df   :  { %1217 = vmatpush3.bf16.msra.mxu0 %v1327_v41  ;;  %1239 = vmatpush3.bf16.msra.mxu1 %v1328_v42 }
 0x1e0   :  { %1218 = vmatprep.subr.bf16.mxu0 %v1357_v20  ;;  %1240 = vmatprep.subr.bf16.mxu1 %v1357_v20  ;;  %v734_v9 = vpack.c.bf16 %v415_v6, %v415_v6 }
 0x1e3   :  { %1219 = vmatpush3.bf16.msra.mxu0 %v1329_v44  ;;  %1241 = vmatpush3.bf16.msra.mxu1 %v1330_v45 }
 0x1e4   :  { %1220 = vmatprep.subr.bf16.mxu0 %v1357_v20  ;;  %1242 = vmatprep.subr.bf16.mxu1 %v1357_v20 }
 0x1e7   :  { %1221 = vmatpush3.bf16.msra.mxu0 %v1331_v48  ;;  %1243 = vmatpush3.bf16.msra.mxu1 %v1332_v49 }
 0x1e8   :  { %1222 = vmatprep.subr.bf16.mxu0 %v1357_v20  ;;  %1244 = vmatprep.subr.bf16.mxu1 %v1357_v20 }
 0x1eb   :  { %1223 = vmatpush3.bf16.msra.mxu0 %v1333_v56  ;;  %1245 = vmatpush3.bf16.msra.mxu1 %v1334_v57 }
 0x1ec   :  { %1224 = vmatprep.subr.bf16.mxu0 %v1357_v20  ;;  %1246 = vmatprep.subr.bf16.mxu1 %v1357_v20 }
 0x1ef   :  { %1225 = vmatpush3.bf16.msra.mxu0 %v1335_v62  ;;  %1247 = vmatpush3.bf16.msra.mxu1 %v1336_v63 }
 0x1f0   :  { %1226 = vmatprep.subr.bf16.mxu0 %v1357_v20  ;;  %1248 = vmatprep.subr.bf16.mxu1 %v1357_v20 }
 0x1f3   :  { %1227 = vmatpush3.bf16.msra.mxu0 %v1337_v3  ;;  %1249 = vmatpush3.bf16.msra.mxu1 %v1338_v4  ;;  %v1361_v3 = vmov 2   ;;  %v1362_v4 = vmov 4  }
 0x1f4   :  { %1228 = vmatprep.subr.bf16.mxu0 %v1357_v20  ;;  %v1100_v20 = vld [vmem:[%s1782_s6] ss:$0 sm:$0xff]  ;;  %s1359_s6 = smov 124  }
 0x1f6   :  { %1251 = vmatmul.mubr.bf16.vlgmr.msra.gmra.mxu1 %v734_v9  ;;  %v1364_v9 = vmov 3  }
 0x1f7   :  { %1229 = vmatpush3.bf16.msra.mxu0 %v1339_v7 }
 0x1fa   :  { %1231 = vmatmul.mubr.bf16.vlgmr.msra.gmra.mxu0 %v627_v10  ;;  %v1365_v10 = vmov 6  }
 0x296   :  { %v621_v12 = vpop.f32.mrf.mxu1 }
 0x298   :  { %v1212_v13 = vpop.f32.mrf.mxu1 }
 0x29a   :  { %v533_v15 = vpop.f32.mrf.mxu0  ;;  %v624_v16 = vpop.f32.mrf.mxu1 }
 0x29b   :  { %v622_v29 = vadd.f32 %v621_v12, %v533_v15  ;;  %v1366_v12 = vmov 7  }
 0x29c   :  { %v1192_v17 = vpop.f32.mrf.mxu0  ;;  %v1213_v21 = vpop.f32.mrf.mxu1 }
 0x29e   :  { %v536_v23 = vpop.f32.mrf.mxu0 }
 0x2a0   :  { %v1193_v25 = vpop.f32.mrf.mxu0 }
 0x2b6   :  { %v834_v26 = vpop.f32.mrf.mxu1 }
 0x2b8   :  { %v1252_v27 = vpop.f32.mrf.mxu1 }
 0x2ba   :  { %v727_v30 = vpop.f32.mrf.mxu0  ;;  %v837_v31 = vpop.f32.mrf.mxu1 }
 0x2bb   :  { %v733_v33 = vadd.f32 %v727_v30, %v622_v29 }
 0x2bc   :  { %v1232_v34 = vpop.f32.mrf.mxu0  ;;  %v1253_v35 = vpop.f32.mrf.mxu1 }
 0x2bd   :  { %v840_v36 = vadd.f32 %v834_v26, %v733_v33 }
 0x2be   :  { %v730_v37 = vpop.f32.mrf.mxu0 }
 0x2bf   :  { %v848_v38 = vadd.f32 %v1100_v20, %v840_v36 }
 0x2c0   :  { %v1233_v39 = vpop.f32.mrf.mxu0 }
 0x2c1   :  { %vm849_vm2 = vcmp.ge.f32.partialorder %v848_v38, 0.0  ;;  %v850_v40 = vmul.f32 0.01, %v848_v38 }
 0x2c3   :  { %v851_v41 = vsel %vm849_vm2, %v848_v38, %v850_v40 }
 0x2c4   :  { %v917_v42 = vsel %vm916_vm3, %v851_v41, -inf  ;;  %v853_v43 = vsel %vm852_vm4, %v851_v41, -inf }
 0x2c5   :  { %918 = vmax.xlane.f32.xlu0 %v917_v42 }
 0x2c9   :  { %854 = vmax.xlane.f32.xlu0 %v853_v43 }
 0x34e   :  { %v919_v44 = vpop.xlane.xlu0 %918 }
 0x34f   :  { %v920_v45 = vsub.f32 %v851_v41, %v919_v44 }
 0x351   :  { %v921_v46 = vmul.f32 1.442695, %v920_v45 }
 0x352   :  { %v855_v49 = vpop.xlane.xlu0 %854 }
 0x353   :  { %1348 = vpow2.f32 %v921_v46  ;;  %v856_v52 = vsub.f32 %v851_v41, %v855_v49 }
 0x355   :  { %v857_v54 = vmul.f32 1.442695, %v856_v52 }
 0x357   :  { %1350 = vpow2.f32 %v857_v54 }
 0x360   :  { %v1349_v48 = vpop.eup %1348 }
 0x361   :  { %924 = vrot.lane.b32.xlu1 %v1349_v48, %s1359_s6 }
 0x364   :  { %v1351_v56 = vpop.eup %1350 }
 0x365   :  { %v859_v57 = vsel %vm852_vm4, %v1351_v56, 0.0 }
 0x385   :  { %860 = vadd.xlane.f32.xlu1 %v859_v57 }
 0x3d3   :  { %v925_v61 = vpop.permute.xlu1 %924 }
 0x3d4   :  { %v927_v62 = vsel %vm852_vm4, %v925_v61, 0.0 }
 0x3d5   :  { %928 = vadd.xlane.f32.xlu0 %v927_v62 }
 0x40e   :  { %v861_v63 = vpop.xlane.xlu1 %860 }
 0x40f   :  { %1352 = vrcp.f32 %v861_v63 }
 0x41c   :  { %v1353_v0 = vpop.eup %1352 }
 0x41d   :  { %v863_v2 = vmul.f32 %v1353_v0, %v1351_v56 }
 0x41f   :  { %871 = vperm.xlu1 %1266, %v863_v2   ;;  %866 = vperm.xlu0 %1265, %v863_v2  }
 0x423   :  { %1267 = vset.pattern.permute.xlu1 %v1361_v3  ;;  %1268 = vset.pattern.permute.xlu0 %v1362_v4 }
 0x424   :  { %877 = vperm.xlu1 %1267, %v863_v2  }
 0x428   :  { %1269 = vset.pattern.permute.xlu1 %v1363_v5 }
 0x45e   :  { %v929_v6 = vpop.xlane.xlu0 %928 }
 0x45f   :  { %1354 = vrcp.f32 %v929_v6 }
 0x46c   :  { %v1355_v7 = vpop.eup %1354 }
 0x46d   :  { %v931_v8 = vmul.f32 %v1355_v7, %v1349_v48 }
 0x46f   :  { %939 = vperm.xlu1 %1269, %v931_v8   ;;  %934 = vperm.xlu0 %1268, %v931_v8  }
 0x473   :  { %1271 = vset.pattern.permute.xlu1 %v1364_v9  ;;  %1270 = vset.pattern.permute.xlu0 %v1365_v10 }
 0x474   :  { %883 = vperm.xlu1 %1271, %v863_v2   ;;  %945 = vperm.xlu0 %1270, %v931_v8  }
 0x478   :  { %1272 = vset.pattern.permute.xlu1 %v1366_v12  ;;  %1273 = vset.pattern.permute.xlu0 %v1366_v12 }
 0x479   :  { %951 = vperm.xlu1 %1272, %v931_v8  }
 0x49a   :  { %v872_v13 = vpop.permute.xlu1 %871  ;;  %v867_v15 = vpop.permute.xlu0 %866 }
 0x49b   :  { %v874_v16 = vmul.f32 %v872_v13, %v1579_v11  ;;  %v890_v17 = vmul.f32 %v872_v13, %v1591_v18  ;;  %v899_v21 = vmul.f32 %v872_v13, %v1663_v53  ;;  %v908_v23 = vmul.f32 %v872_v13, %v1645_v47 }
 0x49c   :  { %v869_v25 = vmul.f32 %v867_v15, %v1584_v14  ;;  %v889_v26 = vmul.f32 %v867_v15, %v1597_v22  ;;  %v898_v27 = vmul.f32 %v867_v15, %v1669_v55  ;;  %v907_v29 = vmul.f32 %v867_v15, %v1654_v50 }
 0x49e   :  { %v875_v31 = vadd.f32 %v874_v16, %v869_v25  ;;  %v891_v33 = vadd.f32 %v890_v17, %v889_v26  ;;  %v900_v20 = vadd.f32 %v899_v21, %v898_v27  ;;  %v909_v34 = vadd.f32 %v908_v23, %v907_v29 }
 0x49f   :  { %v878_v30 = vpop.permute.xlu1 %877 }
 0x4a0   :  { %v880_v35 = vmul.f32 %v878_v30, %v1594_v19  ;;  %v892_v36 = vmul.f32 %v878_v30, %v1607_v28  ;;  %v901_v37 = vmul.f32 %v878_v30, %v1678_v58  ;;  %v910_v38 = vmul.f32 %v878_v30, %v1657_v51 }
 0x4a2   :  { %v881_v52 = vadd.f32 %v880_v35, %v875_v31  ;;  %v893_v54 = vadd.f32 %v892_v36, %v891_v33  ;;  %v902_v56 = vadd.f32 %v901_v37, %v900_v20  ;;  %v911_v57 = vadd.f32 %v910_v38, %v909_v34 }
 0x4ea   :  { %v940_v39 = vpop.permute.xlu1 %939  ;;  %v935_v40 = vpop.permute.xlu0 %934 }
 0x4eb   :  { %v942_v41 = vmul.f32 %v940_v39, %v1579_v11  ;;  %v959_v42 = vmul.f32 %v940_v39, %v1591_v18  ;;  %v968_v43 = vmul.f32 %v940_v39, %v1663_v53  ;;  %v977_v44 = vmul.f32 %v940_v39, %v1645_v47 }
 0x4ec   :  { %v937_v45 = vmul.f32 %v935_v40, %v1584_v14  ;;  %v958_v46 = vmul.f32 %v935_v40, %v1597_v22  ;;  %v967_v48 = vmul.f32 %v935_v40, %v1669_v55  ;;  %v976_v49 = vmul.f32 %v935_v40, %v1654_v50 }
 0x4ee   :  { %v943_v11 = vadd.f32 %v942_v41, %v937_v45  ;;  %v960_v61 = vadd.f32 %v959_v42, %v958_v46  ;;  %v969_v18 = vadd.f32 %v968_v43, %v967_v48  ;;  %v978_v62 = vadd.f32 %v977_v44, %v976_v49 }
 0x4ef   :  { %v884_v59 = vpop.permute.xlu1 %883  ;;  %v946_v53 = vpop.permute.xlu0 %945 }
 0x4f0   :  { %v886_v47 = vmul.f32 %v884_v59, %v1601_v24  ;;  %v894_v14 = vmul.f32 %v884_v59, %v1611_v32  ;;  %v903_v22 = vmul.f32 %v884_v59, %v1696_v1  ;;  %v912_v55 = vmul.f32 %v884_v59, %v1682_v60 }
 0x4f1   :  { %v948_v50 = vmul.f32 %v946_v53, %v1594_v19  ;;  %v961_v63 = vmul.f32 %v946_v53, %v1607_v28  ;;  %v970_v0 = vmul.f32 %v946_v53, %v1678_v58  ;;  %v979_v2 = vmul.f32 %v946_v53, %v1657_v51 }
 0x4f2   :  { %v887_v3 = vadd.f32 %v886_v47, %v881_v52  ;;  %v895_v4 = vadd.f32 %v894_v14, %v893_v54  ;;  %v904_v5 = vadd.f32 %v903_v22, %v902_v56  ;;  %v913_v6 = vadd.f32 %v912_v55, %v911_v57 }
 0x4f3   :  { %v949_v19 = vadd.f32 %v948_v50, %v943_v11  ;;  %v962_v28 = vadd.f32 %v961_v63, %v960_v61  ;;  %v971_v51 = vadd.f32 %v970_v0, %v969_v18  ;;  %v980_v58 = vadd.f32 %v979_v2, %v978_v62 }
 0x4f4   :  { %888 = vst [vmem:[%s1783_s7] sm:$0xff] %v887_v3  ;;  %1101 = vst [vmem:[%s1783_s7 + $0x8] sm:$0xff] %v895_v4  ;;  %v952_v7 = vpop.permute.xlu1 %951 }
 0x4f5   :  { %1102 = vst [vmem:[%s1783_s7 + $0x10] sm:$0xff] %v904_v5  ;;  %1103 = vst [vmem:[%s1783_s7 + $0x18] sm:$0xff] %v913_v6  ;;  %v954_v8 = vmul.f32 %v952_v7, %v1601_v24  ;;  %v963_v9 = vmul.f32 %v952_v7, %v1611_v32  ;;  %v972_v10 = vmul.f32 %v952_v7, %v1696_v1 }
 0x4f6   :  { %v981_v12 = vmul.f32 %v952_v7, %v1682_v60 }
 0x4f7   :  { %v955_v13 = vadd.f32 %v954_v8, %v949_v19  ;;  %v964_v15 = vadd.f32 %v963_v9, %v962_v28  ;;  %v973_v16 = vadd.f32 %v972_v10, %v971_v51 }
 0x4f8   :  { %v982_v17 = vadd.f32 %v981_v12, %v980_v58 }
 0x4f9   :  { %1104 = vst [vmem:[%s1783_s7 + $0x20] sm:$0xff] %v955_v13  ;;  %1105 = vst [vmem:[%s1783_s7 + $0x28] sm:$0xff] %v964_v15 }
 0x4fa   :  { %1106 = vst [vmem:[%s1783_s7 + $0x30] sm:$0xff] %v973_v16  ;;  %1107 = vst [vmem:[%s1783_s7 + $0x38] sm:$0xff] %v982_v17 }

// kernel: div.27
= control target key start
LH: loop header
LB: loop body
LE: loop exit
PB: predicated region body
PF: predicated region fallthrough
CT: control target
= control target key end

     0   :  { %vm8_vm0 = vcmask 64512   ;;  %s42_s0 = inlined_call_operand.vmem [shape: f32[16], index: 0, kind: input, shape index: {}]   ;;  %s43_s1 = inlined_call_operand.vmem [shape: f32[2,8], index: 1, kind: output, shape index: {}]  }
   0x1   :  { %v5_v0 = vld [vmem:[%s42_s0] sm:$0x1]  ;;  %s25_s0 = smov 120  }
   0x2   :  { %6 = vst [vmem:[#allocation1] sm:$0x1] %v5_v0 }
   0x9   :  { %v10_v1 = vld [vmem:[#allocation1] sm:$0x1]  }
   0xa   :  { %v7_v2 = vld [vmem:[#allocation1] sm:$0x1]   ;;  %11 = vrot.lane.b32.xlu0 %v10_v1, %s25_s0 }
   0xb   :  { %9 = vst.msk [vmem:[#allocation0] sm:$0x1] %vm8_vm0, %v7_v2  }
  0x7c   :  { %v12_v3 = vpop.permute.xlu0 %11  }
  0x7d   :  { %15 = vst.msk [vmem:[#allocation0 + $0x1] sm:$0x1] %vm8_vm0, %v12_v3  }
  0x84   :  { %v20_v4 = vld [vmem:[#allocation0] sm:$0x3] }
  0x85   :  { %23 = vst [vmem:[%s43_s1] sm:$0x3] %v20_v4 }

// kernel: custom-call.26
= control target key start
LH: loop header
LB: loop body
LE: loop exit
PB: predicated region body
PF: predicated region fallthrough
CT: control target
= control target key end

     0   :  { %s6_s0 = inlined_call_operand.vmem [shape: s32[7,2,9], index: 0, kind: output, shape index: {}]  }

// kernel: hmnet_ner_forward.11
= control target key start
LH: loop header
LB: loop body
LE: loop exit
PB: predicated region body
PF: predicated region fallthrough
CT: control target
= control target key end

     0   :  { %v6136_v1 = vmov 0   ;;  %v6137_v2 = vmov 0.0   ;;  %vm179_vm0 = vcmask 130048   ;;  %vm123_vm1 = vcmask 523264   ;;  %s6139_s27 = smov 64   ;;  %s6140_s19 = smov 112   ;;  %s7572_s4 = inlined_call_operand.vmem [shape: bf16[2,64,192], index: 4, kind: input, shape index: {}]   ;;  %s7573_s2 = inlined_call_operand.vmem [shape: f32[2,2,4,16,16], index: 2, kind: input, shape index: {}]   ;;  %s7574_s0 = inlined_call_operand.vmem [shape: f32[16,64], index: 0, kind: input, shape index: {}]   ;;  %s7575_s5 = inlined_call_operand.vmem [shape: f32[2,1,192], index: 5, kind: input, shape index: {}]   ;;  %s7576_s1 = inlined_call_operand.vmem [shape: f32[2,1,24], index: 1, kind: input, shape index: {}]   ;;  %s7577_s3 = inlined_call_operand.vmem [shape: f32[2,2,4,16,16], index: 3, kind: input, shape index: {}]   ;;  %s7578_s6 = inlined_call_operand.vmem [shape: bf16[2,64,64], index: 6, kind: input, shape index: {}]   ;;  %s7579_s7 = inlined_call_operand.vmem [shape: f32[2,1,64], index: 7, kind: input, shape index: {}]   ;;  %s7580_s10 = inlined_call_operand.vmem [shape: bf16[2,64,256], index: 10, kind: input, shape index: {}]   ;;  %s7581_s8 = inlined_call_operand.vmem [shape: f32[2,1,64], index: 8, kind: input, shape index: {}]   ;;  %s7582_s9 = inlined_call_operand.vmem [shape: f32[2,1,64], index: 9, kind: input, shape index: {}]   ;;  %s7583_s12 = inlined_call_operand.vmem [shape: bf16[2,256,64], index: 12, kind: input, shape index: {}]   ;;  %s7584_s11 = inlined_call_operand.vmem [shape: f32[2,1,256], index: 11, kind: input, shape index: {}]   ;;  %s7585_s13 = inlined_call_operand.vmem [shape: f32[2,1,64], index: 13, kind: input, shape index: {}]   ;;  %s7586_s14 = inlined_call_operand.vmem [shape: f32[2,1,64], index: 14, kind: input, shape index: {}]   ;;  %s7587_s15 = inlined_call_operand.vmem [shape: f32[2,1,64], index: 15, kind: input, shape index: {}]   ;;  %s7588_s16 = inlined_call_operand.vmem [shape: bf16[64,128], index: 16, kind: input, shape index: {}]   ;;  %s7589_s17 = inlined_call_operand.vmem [shape: f32[1,128], index: 17, kind: input, shape index: {}]   ;;  %s7590_s18 = inlined_call_operand.vmem [shape: f32[16,128], index: 18, kind: output, shape index: {}]  }
   0x1   :  { %7604 = sst [smem:[#allocation3_spill]] %s7572_s4  ;;  %159 = vmatprep.mubr.bf16.mxu0 %v6136_v1  ;;  %5484 = vmatprep.subr.bf16.mxu1 %v6137_v2  ;;  %vm6138_vm2 = vmmov 0   ;;  %v73_v17 = vlaneseq  ;;  %v71_v20 = vld [vmem:[%s7575_s5] sm:$0x3]  ;;  %vm311_vm3 = vcmask 1043456   ;;  %vm288_vm4 = vcmask 64512  }
   0x2   :  { %7605 = sst [smem:[#allocation4_spill]] %s7573_s2  ;;  %5486 = vmatprep.mubr.msk.bf16.mxu1 %vm6138_vm2, %v6137_v2  ;;  %v6304_v28 = vld [vmem:[%s7576_s1] ss:$0 sm:$0xff]  ;;  %s7602_s2 = smov 48   ;;  %vm626_vm5 = vcmask 261248   ;;  %vm852_vm6 = vcmask 392448  }
   0x3   :  { %7606 = sst [smem:[#allocation5_spill]] %s7574_s0  ;;  %v74_v18 = vshrl.u32 %v73_v17, 7  ;;  %v176_v63 = vld [vmem:[%s7577_s3] sm:$0xff]  ;;  %s7600_s4 = smov 96   ;;  %vm1078_vm7 = vcmask 523648  }
   0x4   :  { %s7607_s29 = sld [smem:[#allocation3_spill]]  ;;  %s7598_s20 = smov 32  }
   0x5   :  { %s7608_s30 = sld [smem:[#allocation4_spill]]  ;;  %v6287_v19 = vsub.s32 0, %v74_v18  ;;  %v6312_v29 = vsub.s32 1, %v74_v18  ;;  %s7594_s22 = smov 16  }
   0x6   :  { %s7609_s0 = sld [smem:[#allocation5_spill]]  ;;  %s7596_s28 = smov 80  }
   0x7   :  { %v76_v21 = vrot.slane %v71_v20, %v6287_v19  ;;  %v6315_v30 = vrot.slane %v71_v20, %v6312_v29  ;;  %s7610_s21 = smov 16   ;;  %s7611_s23 = smov 48  }
   0x8   :  { %s7613_s25 = smov 32   ;;  %s7614_s24 = smov 80  }
   0xa   :  { %v5914_v0 = vld [vmem:[%s7607_s29 + $0x34] ss:$8 sps:$4 sm:$0xff]   ;;  %v5916_v3 = vld [vmem:[%s7607_s29 + $0x30] ss:$8 sps:$4 sm:$0xff]   ;;  %v5917_v4 = vld [vmem:[%s7607_s29 + $0x24] ss:$8 sps:$4 sm:$0xff]  }
   0xb   :  { %135 = vmatprep.subr.bf16.mxu0 %v5914_v0  ;;  %v5919_v5 = vld [vmem:[%s7607_s29 + $0x20] ss:$8 sps:$4 sm:$0xff]   ;;  %v5920_v6 = vld [vmem:[%s7607_s29 + $0x14] ss:$8 sps:$4 sm:$0xff]   ;;  %v5922_v7 = vld [vmem:[%s7607_s29 + $0x10] ss:$8 sps:$4 sm:$0xff]  }
   0xc   :  { %136 = vmatpush1.bf16.msra.mxu0 %v5916_v3  ;;  %v5923_v8 = vld [vmem:[%s7607_s29 + $0x4] ss:$8 sps:$4 sm:$0xff]   ;;  %v5925_v13 = vld [vmem:[%s7607_s29] ss:$8 sps:$4 sm:$0xff]   ;;  %v5021_v43 = vld [vmem:[%s7608_s30 + $0x10] sm:$0xff] }
   0xd   :  { %137 = vmatprep.subr.bf16.mxu0 %v5917_v4  ;;  %v173_v9 = vld [vmem:[%s7608_s30] sm:$0xff]  ;;  %v174_v10 = vld [vmem:[%s7608_s30 + $0x8] sm:$0xff]  ;;  %v5022_v44 = vld [vmem:[%s7608_s30 + $0x18] sm:$0xff] }
   0xe   :  { %v175_v11 = vpack.c.bf16 %v174_v10, %v173_v9  ;;  %v60_v14 = vld [vmem:[%s7609_s0] sm:$0xff]  ;;  %v61_v15 = vld [vmem:[%s7609_s0 + $0x8] sm:$0xff]  ;;  %v404_v45 = vpack.c.bf16 %v5022_v44, %v5021_v43 }
   0xf   :  { %v62_v16 = vpack.c.bf16 %v61_v15, %v60_v14  ;;  %v177_v0 = vld [vmem:[%s7577_s3 + $0x8] sm:$0xff] }
  0x10   :  { %138 = vmatpush1.bf16.msra.mxu0 %v5919_v5  ;;  %v184_v12 = vsel %vm179_vm0, %v175_v11, 0  ;;  %v415_v46 = vsel %vm179_vm0, %v404_v45, 0  ;;  %v178_v4 = vpack.c.bf16 %v177_v0, %v176_v63 }
  0x11   :  { %139 = vmatprep.subr.bf16.mxu0 %v5920_v6  ;;  %5485 = vmatpush3.bf16.xpose.msra.mxu1 %v184_v12 }
  0x12   :  { %5490 = vmatprep.subr.bf16.mxu1 %v6137_v2 }
  0x14   :  { %140 = vmatpush1.bf16.msra.mxu0 %v5922_v7 }
  0x15   :  { %141 = vmatprep.subr.bf16.mxu0 %v5923_v8 }
  0x18   :  { %142 = vmatpush1.bf16.msra.mxu0 %v5925_v13 }
  0x19   :  { %5508 = vmatprep.subr.bf16.mxu0 %v6137_v2 }
  0x1b   :  { %5015 = vmatmul.mubr.msk.bf16.vlgmr.msra.gmra.mxu0 %vm123_vm1, %v62_v16 }
  0x1c   :  { %5510 = vmatprep.mubr.msk.bf16.mxu0 %vm6138_vm2, %v6137_v2  ;;  %5509 = vmatpush3.bf16.xpose.msra.mxu0 %v415_v46 }
  0x1d   :  { %5520 = vmatprep.subr.bf16.mxu0 %v6137_v2 }
  0xdb   :  { %v161_v22 = vpop.f32.mrf.mxu0 }
  0xdc   :  { %v162_v23 = vadd.f32 %v161_v22, %v76_v21 }
  0xdd   :  { %v163_v24 = vpop.f32.mrf.mxu0 }
  0xde   :  { %v6293_v25 = vpack.c.bf16 %v162_v23, %v162_v23  ;;  %v164_v32 = vadd.f32 %v163_v24, %v6315_v30 }
  0xdf   :  { %v165_v26 = vpop.f32.mrf.mxu0 }
  0xe0   :  { %v6295_v27 = vadd.f32 %v165_v26, %v76_v21  ;;  %235 = vrot.lane.b32.xlu0 %v6293_v25, %s6139_s27  ;;  %5487 = vmatmul.mubr.msk.bf16.vlgmr.msra.gmra.mxu1 %vm179_vm0, %v6293_v25  ;;  %v6320_v34 = vpack.c.bf16 %v164_v32, %v164_v32 }
  0xe1   :  { %5492 = vmatprep.mubr.msk.bf16.mxu1 %vm6138_vm2, %v6137_v2  ;;  %v6374_v10 = vpop.f32.mrf.mxu0 }
  0xe2   :  { %v313_v35 = vsel %vm311_vm3, %v6320_v34, 0 }
  0xe4   :  { %281 = vrot.lane.b32.xlu0 %v6304_v28, %s6140_s19 }
  0xe8   :  { %459 = vrot.lane.b32.xlu0 %v6293_v25, %s7602_s2 }
 0x152   :  { %v236_v31 = vpop.permute.xlu0 %235 }
 0x153   :  { %v238_v33 = vsel %vm179_vm0, %v236_v31, 0 }
 0x154   :  { %5491 = vmatpush3.bf16.xpose.msra.mxu1 %v238_v33 }
 0x155   :  { %5496 = vmatprep.subr.bf16.mxu1 %v6137_v2 }
 0x156   :  { %v6339_v49 = vpop.permute.xlu0 %281 }
 0x15a   :  { %v460_v7 = vpop.permute.xlu0 %459 }
 0x15b   :  { %5493 = vmatmul.mubr.msk.bf16.vlgmr.msra.gmra.mxu1 %vm179_vm0, %v6293_v25  ;;  %v462_v9 = vsel %vm179_vm0, %v460_v7, 0 }
 0x15c   :  { %5497 = vmatpush3.bf16.msra.mxu1 %v313_v35  ;;  %5498 = vmatprep.mubr.msk.bf16.mxu1 %vm6138_vm2, %v6137_v2 }
 0x15d   :  { %5502 = vmatprep.subr.bf16.mxu1 %v6137_v2 }
 0x1a0   :  { %v220_v36 = vpop.f32.mrf.mxu1 }
 0x1a1   :  { %v226_v37 = vmul.f32 0.25, %v220_v36 }
 0x1a2   :  { %v5488_v38 = vpop.f32.mrf.mxu1 }
 0x1a3   :  { %v233_v39 = vadd.f32 %v6304_v28, %v226_v37 }
 0x1a4   :  { %v223_v40 = vpop.f32.mrf.mxu1 }
 0x1a5   :  { %v285_v41 = vsel %vm179_vm0, %v233_v39, -inf }
 0x1a6   :  { %286 = vmax.xlane.f32.xlu1 %v285_v41  ;;  %v5489_v42 = vpop.f32.mrf.mxu1  ;;  %v5023_v41 = vld [vmem:[%s7577_s3 + $0x10] sm:$0xff] }
 0x1a7   :  { %v5024_v42 = vld [vmem:[%s7577_s3 + $0x18] sm:$0xff] }
 0x1a8   :  { %v408_v43 = vpack.c.bf16 %v5024_v42, %v5023_v41 }
 0x21b   :  { %v274_v47 = vpop.f32.mrf.mxu1 }
 0x21c   :  { %v280_v48 = vmul.f32 0.25, %v274_v47 }
 0x21d   :  { %v5494_v50 = vpop.f32.mrf.mxu1 }
 0x21e   :  { %v284_v51 = vadd.f32 %v6339_v49, %v280_v48 }
 0x21f   :  { %v277_v52 = vpop.f32.mrf.mxu1 }
 0x220   :  { %v289_v53 = vsel %vm288_vm4, %v284_v51, -inf }
 0x221   :  { %290 = vmax.xlane.f32.xlu1 %v289_v53  ;;  %v5495_v54 = vpop.f32.mrf.mxu1 }
 0x222   :  { %v5029_v54 = vld [vmem:[%s7608_s30 + $0x20] sm:$0xff] }
 0x22f   :  { %v287_v55 = vpop.xlane.xlu1 %286 }
 0x232   :  { %409 = vrot.lane.b32.xlu1 %v6293_v25, %s6140_s19 }
 0x2aa   :  { %v291_v56 = vpop.xlane.xlu1 %290 }
 0x2ab   :  { %v292_v57 = vmax.f32 %v287_v55, %v291_v56  ;;  %v5030_v55 = vld [vmem:[%s7608_s30 + $0x28] sm:$0xff] }
 0x2ac   :  { %v631_v56 = vpack.c.bf16 %v5030_v55, %v5029_v54 }
 0x2ad   :  { %v296_v58 = vsub.f32 %v284_v51, %v292_v57  ;;  %v293_v61 = vsub.f32 %v233_v39, %v292_v57 }
 0x2ae   :  { %v410_v59 = vpop.permute.xlu1 %409 }
 0x2af   :  { %v297_v60 = vmul.f32 1.442695, %v296_v58  ;;  %5511 = vmatmul.mubr.msk.bf16.vlgmr.msra.gmra.mxu0 %vm179_vm0, %v410_v59  ;;  %v294_v62 = vmul.f32 1.442695, %v293_v61 }
 0x2b0   :  { %5522 = vmatprep.mubr.msk.bf16.mxu0 %vm6138_vm2, %v6137_v2 }
 0x2b1   :  { %6006 = vpow2.f32 %v297_v60 }
 0x2b2   :  { %6008 = vpow2.f32 %v294_v62  ;;  %v642_v62 = vsel %vm179_vm0, %v631_v56, 0 }
 0x2be   :  { %v6354_v3 = vpop.eup %6006 }
 0x2bf   :  { %v307_v5 = vpack.c.bf16 %v6354_v3, %v6354_v3  ;;  %v6362_v6 = vpop.eup %6008 }
 0x2c0   :  { %v306_v8 = vpack.c.bf16 %v6362_v6, %v6362_v6 }
 0x2c1   :  { %5499 = vmatmul.mubr.msk.bf16.vlgmr.msra.gmra.mxu1 %vm288_vm4, %v307_v5 }
 0x2c2   :  { %5503 = vmatpush3.bf16.msra.mxu1 %v178_v4  ;;  %5504 = vmatprep.mubr.msk.bf16.mxu1 %vm6138_vm2, %v6137_v2 }
 0x2c3   :  { %5514 = vmatprep.subr.bf16.mxu1 %v6137_v2 }
 0x2c9   :  { %5505 = vmatmul.mubr.msk.bf16.vlgmr.msra.gmra.mxu1 %vm179_vm0, %v306_v8 }
 0x2ca   :  { %5515 = vmatpush3.bf16.xpose.msra.mxu1 %v462_v9  ;;  %5516 = vmatprep.mubr.msk.bf16.mxu1 %vm6138_vm2, %v6137_v2 }
 0x2cb   :  { %5526 = vmatprep.subr.bf16.mxu1 %v6137_v2 }
 0x2d1   :  { %5517 = vmatmul.mubr.msk.bf16.vlgmr.msra.gmra.mxu1 %vm179_vm0, %v410_v59 }
 0x2d2   :  { %5528 = vmatprep.mubr.msk.bf16.mxu1 %vm6138_vm2, %v6137_v2  ;;  %5527 = vmatpush3.bf16.msra.mxu1 %v408_v43 }
 0x2d3   :  { %5538 = vmatprep.subr.bf16.mxu1 %v6137_v2 }
 0x36f   :  { %v451_v11 = vpop.f32.mrf.mxu0 }
 0x370   :  { %v457_v12 = vmul.f32 0.25, %v451_v11 }
 0x371   :  { %v5512_v13 = vpop.f32.mrf.mxu0 }
 0x372   :  { %v458_v14 = vadd.f32 %v6304_v28, %v457_v12 }
 0x373   :  { %v454_v15 = vpop.f32.mrf.mxu0 }
 0x374   :  { %v506_v16 = vsel %vm179_vm0, %v458_v14, -inf }
 0x375   :  { %507 = vmax.xlane.f32.xlu0 %v506_v16  ;;  %v5513_v17 = vpop.f32.mrf.mxu0 }
 0x381   :  { %v349_v18 = vpop.f32.mrf.mxu1 }
 0x383   :  { %v5500_v20 = vpop.f32.mrf.mxu1 }
 0x385   :  { %v352_v21 = vpop.f32.mrf.mxu1 }
 0x387   :  { %v5501_v22 = vpop.f32.mrf.mxu1 }
 0x389   :  { %v392_v23 = vpop.f32.mrf.mxu1 }
 0x38a   :  { %v6378_v24 = vadd.f32 %v392_v23, %v349_v18 }
 0x38b   :  { %529 = vrot.lane.b32.xlu0 %v6320_v34, %s6140_s19  ;;  %v5506_v26 = vpop.f32.mrf.mxu1 }
 0x38d   :  { %v395_v31 = vpop.f32.mrf.mxu1 }
 0x38f   :  { %636 = vrot.lane.b32.xlu0 %v6293_v25, %s7600_s4  ;;  %v5507_v32 = vpop.f32.mrf.mxu1 }
 0x391   :  { %v498_v33 = vpop.f32.mrf.mxu1 }
 0x392   :  { %v504_v35 = vmul.f32 0.25, %v498_v33 }
 0x393   :  { %v5518_v36 = vpop.f32.mrf.mxu1 }
 0x394   :  { %v505_v37 = vadd.f32 %v504_v35, %v6339_v49 }
 0x395   :  { %v501_v38 = vpop.f32.mrf.mxu1 }
 0x396   :  { %v509_v39 = vsel %vm288_vm4, %v505_v37, -inf  ;;  %v5032_v38 = vld [vmem:[%s7577_s3 + $0x28] sm:$0xff] }
 0x397   :  { %510 = vmax.xlane.f32.xlu1 %v509_v39  ;;  %v5519_v40 = vpop.f32.mrf.mxu1 }
 0x3a8   :  { %686 = vrot.lane.b32.xlu1 %v6293_v25, %s7598_s20 }
 0x3fe   :  { %v508_v44 = vpop.xlane.xlu0 %507 }
 0x402   :  { %v530_v45 = vpop.permute.xlu0 %529 }
 0x403   :  { %v535_v46 = vsel %vm311_vm3, %v530_v45, 0 }
 0x404   :  { %5521 = vmatpush3.bf16.msra.mxu0 %v535_v46 }
 0x405   :  { %5532 = vmatprep.subr.bf16.mxu0 %v6137_v2 }
 0x406   :  { %v637_v0 = vpop.permute.xlu0 %636 }
 0x420   :  { %v511_v47 = vpop.xlane.xlu1 %510 }
 0x421   :  { %v512_v48 = vmax.f32 %v508_v44, %v511_v47 }
 0x423   :  { %v513_v50 = vsub.f32 %v458_v14, %v512_v48  ;;  %v516_v51 = vsub.f32 %v505_v37, %v512_v48  ;;  %v5031_v37 = vld [vmem:[%s7577_s3 + $0x20] sm:$0xff] }
 0x424   :  { %v687_v58 = vpop.permute.xlu1 %686  ;;  %v635_v39 = vpack.c.bf16 %v5032_v38, %v5031_v37 }
 0x425   :  { %v514_v52 = vmul.f32 1.442695, %v513_v50  ;;  %v517_v53 = vmul.f32 1.442695, %v516_v51  ;;  %v689_v63 = vsel %vm179_vm0, %v687_v58, 0  ;;  %v5037_v50 = vld [vmem:[%s7608_s30 + $0x30] sm:$0xff] }
 0x427   :  { %6010 = vpow2.f32 %v514_v52 }
 0x428   :  { %6012 = vpow2.f32 %v517_v53 }
 0x434   :  { %v6403_v57 = vpop.eup %6010 }
 0x435   :  { %v6405_v59 = vpop.eup %6012  ;;  %v526_v60 = vpack.c.bf16 %v6403_v57, %v6403_v57 }
 0x436   :  { %v527_v61 = vpack.c.bf16 %v6405_v59, %v6405_v59 }
 0x437   :  { %5529 = vmatmul.mubr.msk.bf16.vlgmr.msra.gmra.mxu1 %vm179_vm0, %v526_v60 }
 0x438   :  { %5523 = vmatmul.mubr.msk.bf16.vlgmr.msra.gmra.mxu0 %vm288_vm4, %v527_v61  ;;  %5539 = vmatpush3.bf16.xpose.msra.mxu1 %v689_v63 }
 0x439   :  { %5533 = vmatpush3.bf16.xpose.msra.mxu0 %v642_v62  ;;  %5534 = vmatprep.mubr.msk.bf16.mxu0 %vm6138_vm2, %v6137_v2 }
 0x43a   :  { %5540 = vmatprep.mubr.msk.bf16.mxu1 %vm6138_vm2, %v6137_v2  ;;  %5544 = vmatprep.subr.bf16.mxu0 %v6137_v2 }
 0x43b   :  { %5550 = vmatprep.subr.bf16.mxu1 %v6137_v2 }
 0x43f   :  { %5541 = vmatmul.mubr.msk.bf16.vlgmr.msra.gmra.mxu1 %vm179_vm0, %v637_v0 }
 0x440   :  { %5535 = vmatmul.mubr.msk.bf16.vlgmr.msra.gmra.mxu0 %vm179_vm0, %v637_v0  ;;  %5552 = vmatprep.mubr.msk.bf16.mxu1 %vm6138_vm2, %v6137_v2 }
 0x441   :  { %5546 = vmatprep.mubr.msk.bf16.mxu0 %vm6138_vm2, %v6137_v2  ;;  %5551 = vmatpush3.bf16.msra.mxu1 %v635_v39 }
 0x442   :  { %5562 = vmatprep.subr.bf16.mxu1 %v6137_v2 }
 0x4f7   :  { %v614_v4 = vpop.f32.mrf.mxu1 }
 0x4f8   :  { %v571_v5 = vpop.f32.mrf.mxu0 }
 0x4f9   :  { %v6427_v7 = vadd.f32 %v614_v4, %v571_v5  ;;  %v5530_v8 = vpop.f32.mrf.mxu1 }
 0x4fa   :  { %v5524_v9 = vpop.f32.mrf.mxu0 }
 0x4fb   :  { %v617_v11 = vpop.f32.mrf.mxu1 }
 0x4fc   :  { %v574_v12 = vpop.f32.mrf.mxu0 }
 0x4fd   :  { %v5531_v13 = vpop.f32.mrf.mxu1 }
 0x4fe   :  { %v5525_v14 = vpop.f32.mrf.mxu0 }
 0x4ff   :  { %v725_v15 = vpop.f32.mrf.mxu1 }
 0x500   :  { %v678_v16 = vpop.f32.mrf.mxu0  ;;  %v731_v17 = vmul.f32 0.25, %v725_v15 }
 0x501   :  { %v684_v18 = vmul.f32 0.25, %v678_v16  ;;  %v5542_v20 = vpop.f32.mrf.mxu1 }
 0x502   :  { %v5536_v21 = vpop.f32.mrf.mxu0  ;;  %v732_v22 = vadd.f32 %v731_v17, %v6339_v49 }
 0x503   :  { %v728_v23 = vpop.f32.mrf.mxu1  ;;  %v685_v26 = vadd.f32 %v6304_v28, %v684_v18 }
 0x504   :  { %v681_v31 = vpop.f32.mrf.mxu0  ;;  %v736_v32 = vsel %vm288_vm4, %v732_v22, -inf }
 0x505   :  { %v733_v33 = vsel %vm179_vm0, %v685_v26, -inf  ;;  %737 = vmax.xlane.f32.xlu1 %v736_v32  ;;  %v5543_v35 = vpop.f32.mrf.mxu1 }
 0x506   :  { %734 = vmax.xlane.f32.xlu0 %v733_v33  ;;  %v5537_v36 = vpop.f32.mrf.mxu0  ;;  %v6486_v35 = vpack.c.bf16 %v6295_v27, %v6295_v27  ;;  %v6502_v27 = vld [vmem:[%s7576_s1 + $0x1] ss:$0 sm:$0xff] }
 0x516   :  { %912 = vrot.lane.b32.xlu1 %v6293_v25, %s7594_s22 }
 0x51c   :  { %755 = vrot.lane.b32.xlu0 %v6320_v34, %s7600_s4 }
 0x520   :  { %862 = vrot.lane.b32.xlu0 %v6293_v25, %s7596_s28  ;;  %v5038_v25 = vld [vmem:[%s7608_s30 + $0x38] sm:$0xff] }
 0x521   :  { %v857_v51 = vpack.c.bf16 %v5038_v25, %v5037_v50 }
 0x523   :  { %v868_v58 = vsel %vm179_vm0, %v857_v51, 0 }
 0x58e   :  { %v738_v40 = vpop.xlane.xlu1 %737 }
 0x58f   :  { %v735_v41 = vpop.xlane.xlu0 %734 }
 0x590   :  { %v739_v42 = vmax.f32 %v735_v41, %v738_v40 }
 0x592   :  { %v740_v43 = vsub.f32 %v685_v26, %v739_v42  ;;  %v743_v44 = vsub.f32 %v732_v22, %v739_v42  ;;  %v913_v53 = vpop.permute.xlu1 %912 }
 0x593   :  { %v756_v45 = vpop.permute.xlu0 %755  ;;  %v915_v60 = vsel %vm179_vm0, %v913_v53, 0 }
 0x594   :  { %v741_v46 = vmul.f32 1.442695, %v740_v43  ;;  %v744_v47 = vmul.f32 1.442695, %v743_v44  ;;  %v761_v48 = vsel %vm311_vm3, %v756_v45, 0 }
 0x595   :  { %5545 = vmatpush3.bf16.msra.mxu0 %v761_v48 }
 0x596   :  { %6014 = vpow2.f32 %v741_v46  ;;  %5556 = vmatprep.subr.bf16.mxu0 %v6137_v2  ;;  %v5047_v46 = vld [vmem:[%s7608_s30 + $0x48] sm:$0xff] }
 0x597   :  { %6016 = vpow2.f32 %v744_v47  ;;  %v863_v61 = vpop.permute.xlu0 %862 }
 0x5a3   :  { %v6454_v52 = vpop.eup %6014 }
 0x5a4   :  { %v6456_v54 = vpop.eup %6016  ;;  %v753_v55 = vpack.c.bf16 %v6454_v52, %v6454_v52 }
 0x5a5   :  { %v754_v56 = vpack.c.bf16 %v6456_v54, %v6456_v54 }
 0x5a6   :  { %5553 = vmatmul.mubr.msk.bf16.vlgmr.msra.gmra.mxu1 %vm179_vm0, %v753_v55 }
 0x5a7   :  { %5547 = vmatmul.mubr.msk.bf16.vlgmr.msra.gmra.mxu0 %vm288_vm4, %v754_v56  ;;  %5563 = vmatpush3.bf16.xpose.msra.mxu1 %v915_v60 }
 0x5a8   :  { %5557 = vmatpush3.bf16.xpose.msra.mxu0 %v868_v58  ;;  %5558 = vmatprep.mubr.msk.bf16.mxu0 %vm6138_vm2, %v6137_v2  ;;  %v168_v58 = vadd.f32 %v6374_v10, %v6315_v30 }
 0x5a9   :  { %5564 = vmatprep.mubr.msk.bf16.mxu1 %vm6138_vm2, %v6137_v2  ;;  %5568 = vmatprep.subr.bf16.mxu0 %v6137_v2 }
 0x5aa   :  { %5574 = vmatprep.subr.bf16.mxu1 %v6137_v2  ;;  %v6534_v60 = vpack.c.bf16 %v168_v58, %v168_v58 }
 0x5ac   :  { %v1223_v30 = vsel %vm311_vm3, %v6534_v60, 0 }
 0x5ae   :  { %5565 = vmatmul.mubr.msk.bf16.vlgmr.msra.gmra.mxu1 %vm179_vm0, %v863_v61 }
 0x5af   :  { %5559 = vmatmul.mubr.msk.bf16.vlgmr.msra.gmra.mxu0 %vm179_vm0, %v863_v61  ;;  %5576 = vmatprep.mubr.msk.bf16.mxu1 %vm6138_vm2, %v6137_v2 }
 0x5b0   :  { %5570 = vmatprep.mubr.msk.bf16.mxu0 %vm6138_vm2, %v6137_v2 }
 0x666   :  { %v840_v62 = vpop.f32.mrf.mxu1 }
 0x667   :  { %v797_v63 = vpop.f32.mrf.mxu0 }
 0x668   :  { %v6478_v0 = vadd.f32 %v840_v62, %v797_v63  ;;  %v5554_v4 = vpop.f32.mrf.mxu1 }
 0x669   :  { %v5548_v5 = vpop.f32.mrf.mxu0 }
 0x66a   :  { %v843_v8 = vpop.f32.mrf.mxu1 }
 0x66b   :  { %v800_v9 = vpop.f32.mrf.mxu0 }
 0x66c   :  { %v5555_v11 = vpop.f32.mrf.mxu1 }
 0x66d   :  { %v5549_v12 = vpop.f32.mrf.mxu0 }
 0x66e   :  { %v951_v13 = vpop.f32.mrf.mxu1 }
 0x66f   :  { %v904_v14 = vpop.f32.mrf.mxu0  ;;  %v957_v15 = vmul.f32 0.25, %v951_v13 }
 0x670   :  { %v910_v16 = vmul.f32 0.25, %v904_v14  ;;  %v5566_v17 = vpop.f32.mrf.mxu1 }
 0x671   :  { %v5560_v18 = vpop.f32.mrf.mxu0  ;;  %v958_v20 = vadd.f32 %v957_v15, %v6339_v49  ;;  %v5040_v49 = vld [vmem:[%s7577_s3 + $0x38] sm:$0xff] }
 0x672   :  { %v954_v21 = vpop.f32.mrf.mxu1  ;;  %v911_v22 = vadd.f32 %v6304_v28, %v910_v16  ;;  %v5039_v28 = vld [vmem:[%s7577_s3 + $0x30] sm:$0xff] }
 0x673   :  { %v907_v23 = vpop.f32.mrf.mxu0  ;;  %v962_v26 = vsel %vm288_vm4, %v958_v20, -inf  ;;  %v861_v36 = vpack.c.bf16 %v5040_v49, %v5039_v28  ;;  %v5048_v28 = vld [vmem:[%s7577_s3 + $0x40] sm:$0xff]  ;;  %v5049_v49 = vld [vmem:[%s7577_s3 + $0x48] sm:$0xff] }
 0x674   :  { %v959_v31 = vsel %vm179_vm0, %v911_v22, -inf  ;;  %963 = vmax.xlane.f32.xlu1 %v962_v26  ;;  %v5567_v32 = vpop.f32.mrf.mxu1 }
 0x675   :  { %960 = vmax.xlane.f32.xlu0 %v959_v31  ;;  %v5561_v33 = vpop.f32.mrf.mxu0  ;;  %5575 = vmatpush3.bf16.msra.mxu1 %v861_v36  ;;  %v1091_v36 = vpack.c.bf16 %v5049_v49, %v5048_v28  ;;  %v5057_v28 = vld [vmem:[%s7577_s3 + $0x50] sm:$0xff]  ;;  %v5058_v49 = vld [vmem:[%s7577_s3 + $0x58] sm:$0xff] }
 0x676   :  { %5586 = vmatprep.subr.bf16.mxu1 %v6137_v2 }
 0x685   :  { %1147 = vrot.lane.b32.xlu1 %v6486_v35, %s6139_s27 }
 0x68b   :  { %981 = vrot.lane.b32.xlu0 %v6320_v34, %s7596_s28  ;;  %v5046_v34 = vld [vmem:[%s7608_s30 + $0x40] sm:$0xff] }
 0x68c   :  { %v1087_v47 = vpack.c.bf16 %v5047_v46, %v5046_v34 }
 0x68e   :  { %v1096_v55 = vsel %vm179_vm0, %v1087_v47, 0 }
 0x68f   :  { %1193 = vrot.lane.b32.xlu0 %v6502_v27, %s6140_s19 }
 0x6fd   :  { %v964_v37 = vpop.xlane.xlu1 %963 }
 0x6fe   :  { %v961_v38 = vpop.xlane.xlu0 %960 }
 0x6ff   :  { %v965_v39 = vmax.f32 %v961_v38, %v964_v37 }
 0x701   :  { %v966_v40 = vsub.f32 %v911_v22, %v965_v39  ;;  %v969_v41 = vsub.f32 %v958_v20, %v965_v39  ;;  %v1148_v50 = vpop.permute.xlu1 %1147 }
 0x702   :  { %v982_v42 = vpop.permute.xlu0 %981  ;;  %v1150_v56 = vsel %vm179_vm0, %v1148_v50, 0 }
 0x703   :  { %v967_v43 = vmul.f32 1.442695, %v966_v40  ;;  %v970_v44 = vmul.f32 1.442695, %v969_v41  ;;  %v987_v45 = vsel %vm311_vm3, %v982_v42, 0 }
 0x704   :  { %5569 = vmatpush3.bf16.msra.mxu0 %v987_v45  ;;  %v5056_v45 = vld [vmem:[%s7608_s30 + $0x58] sm:$0xff] }
 0x705   :  { %6018 = vpow2.f32 %v967_v43  ;;  %5580 = vmatprep.subr.bf16.mxu0 %v6137_v2 }
 0x706   :  { %6020 = vpow2.f32 %v970_v44  ;;  %v6549_v13 = vpop.permute.xlu0 %1193  ;;  %v5055_v44 = vld [vmem:[%s7608_s30 + $0x50] sm:$0xff] }
 0x707   :  { %v1314_v34 = vpack.c.bf16 %v5056_v45, %v5055_v44 }
 0x712   :  { %v6514_v48 = vpop.eup %6018 }
 0x713   :  { %v6516_v25 = vpop.eup %6020  ;;  %v979_v51 = vpack.c.bf16 %v6514_v48, %v6514_v48 }
 0x714   :  { %v980_v53 = vpack.c.bf16 %v6516_v25, %v6516_v25 }
 0x715   :  { %5577 = vmatmul.mubr.msk.bf16.vlgmr.msra.gmra.mxu1 %vm179_vm0, %v979_v51 }
 0x716   :  { %5571 = vmatmul.mubr.msk.bf16.vlgmr.msra.gmra.mxu0 %vm288_vm4, %v980_v53  ;;  %5587 = vmatpush3.bf16.xpose.msra.mxu1 %v1150_v56 }
 0x717   :  { %5581 = vmatpush3.bf16.xpose.msra.mxu0 %v1096_v55  ;;  %5582 = vmatprep.mubr.msk.bf16.mxu0 %vm6138_vm2, %v6137_v2  ;;  %v1325_v55 = vsel %vm179_vm0, %v1314_v34, 0  ;;  %v5063_v34 = vld [vmem:[%s7608_s30 + $0x60] sm:$0xff] }
 0x718   :  { %5588 = vmatprep.mubr.msk.bf16.mxu1 %vm6138_vm2, %v6137_v2  ;;  %5592 = vmatprep.subr.bf16.mxu0 %v6137_v2 }
 0x719   :  { %5598 = vmatprep.subr.bf16.mxu1 %v6137_v2 }
 0x71d   :  { %5589 = vmatmul.mubr.msk.bf16.vlgmr.msra.gmra.mxu1 %vm179_vm0, %v6486_v35 }
 0x71e   :  { %5583 = vmatmul.mubr.msk.bf16.vlgmr.msra.gmra.mxu0 %vm179_vm0, %v6486_v35  ;;  %5600 = vmatprep.mubr.msk.bf16.mxu1 %vm6138_vm2, %v6137_v2 }
 0x71f   :  { %5593 = vmatpush3.bf16.msra.mxu0 %v1223_v30  ;;  %5594 = vmatprep.mubr.msk.bf16.mxu0 %vm6138_vm2, %v6137_v2 }
 0x720   :  { %5604 = vmatprep.subr.bf16.mxu0 %v6137_v2  ;;  %5599 = vmatpush3.bf16.msra.mxu1 %v1091_v36  ;;  %v1318_v36 = vpack.c.bf16 %v5058_v49, %v5057_v28 }
 0x721   :  { %5610 = vmatprep.subr.bf16.mxu1 %v6137_v2 }
 0x7d5   :  { %v1066_v10 = vpop.f32.mrf.mxu1 }
 0x7d6   :  { %v1023_v61 = vpop.f32.mrf.mxu0 }
 0x7d7   :  { %v6547_v62 = vadd.f32 %v1066_v10, %v1023_v61  ;;  %v5578_v63 = vpop.f32.mrf.mxu1 }
 0x7d8   :  { %v5572_v4 = vpop.f32.mrf.mxu0 }
 0x7d9   :  { %v1069_v5 = vpop.f32.mrf.mxu1 }
 0x7da   :  { %v1026_v8 = vpop.f32.mrf.mxu0 }
 0x7db   :  { %v5579_v9 = vpop.f32.mrf.mxu1 }
 0x7dc   :  { %v5573_v11 = vpop.f32.mrf.mxu0 }
 0x7dd   :  { %v1186_v12 = vpop.f32.mrf.mxu1 }
 0x7de   :  { %v1132_v14 = vpop.f32.mrf.mxu0  ;;  %v1192_v15 = vmul.f32 0.25, %v1186_v12 }
 0x7df   :  { %v1138_v16 = vmul.f32 0.25, %v1132_v14  ;;  %v5590_v17 = vpop.f32.mrf.mxu1 }
 0x7e0   :  { %v5584_v18 = vpop.f32.mrf.mxu0  ;;  %v1196_v20 = vadd.f32 %v6549_v13, %v1192_v15 }
 0x7e1   :  { %v1189_v21 = vpop.f32.mrf.mxu1  ;;  %v1145_v22 = vadd.f32 %v6502_v27, %v1138_v16 }
 0x7e2   :  { %v1135_v23 = vpop.f32.mrf.mxu0  ;;  %v1200_v26 = vsel %vm288_vm4, %v1196_v20, -inf }
 0x7e3   :  { %v1197_v31 = vsel %vm179_vm0, %v1145_v22, -inf  ;;  %1201 = vmax.xlane.f32.xlu1 %v1200_v26  ;;  %v5591_v32 = vpop.f32.mrf.mxu1 }
 0x7e4   :  { %1198 = vmax.xlane.f32.xlu0 %v1197_v31  ;;  %v5585_v33 = vpop.f32.mrf.mxu0 }
 0x7f4   :  { %1319 = vrot.lane.b32.xlu1 %v6486_v35, %s6140_s19 }
 0x7fa   :  { %1369 = vrot.lane.b32.xlu0 %v6486_v35, %s7602_s2 }
 0x86c   :  { %v1202_v37 = vpop.xlane.xlu1 %1201 }
 0x86d   :  { %v1199_v38 = vpop.xlane.xlu0 %1198 }
 0x86e   :  { %v1203_v39 = vmax.f32 %v1199_v38, %v1202_v37 }
 0x870   :  { %v1204_v40 = vsub.f32 %v1145_v22, %v1203_v39  ;;  %v1207_v41 = vsub.f32 %v1196_v20, %v1203_v39  ;;  %v1320_v58 = vpop.permute.xlu1 %1319 }
 0x871   :  { %v1370_v47 = vpop.permute.xlu0 %1369 }
 0x872   :  { %v1205_v42 = vmul.f32 1.442695, %v1204_v40  ;;  %v1208_v43 = vmul.f32 1.442695, %v1207_v41  ;;  %v1372_v56 = vsel %vm179_vm0, %v1370_v47, 0  ;;  %v5064_v47 = vld [vmem:[%s7608_s30 + $0x68] sm:$0xff] }
 0x874   :  { %6022 = vpow2.f32 %v1205_v42 }
 0x875   :  { %6024 = vpow2.f32 %v1208_v43 }
 0x881   :  { %v6572_v46 = vpop.eup %6022 }
 0x882   :  { %v6574_v50 = vpop.eup %6024  ;;  %v1217_v51 = vpack.c.bf16 %v6572_v46, %v6572_v46 }
 0x883   :  { %v1218_v53 = vpack.c.bf16 %v6574_v50, %v6574_v50 }
 0x884   :  { %5601 = vmatmul.mubr.msk.bf16.vlgmr.msra.gmra.mxu1 %vm179_vm0, %v1217_v51  ;;  %v1540_v51 = vpack.c.bf16 %v5064_v47, %v5063_v34 }
 0x885   :  { %5595 = vmatmul.mubr.msk.bf16.vlgmr.msra.gmra.mxu0 %vm288_vm4, %v1218_v53  ;;  %5611 = vmatpush3.bf16.xpose.msra.mxu1 %v1372_v56 }
 0x886   :  { %5605 = vmatpush3.bf16.xpose.msra.mxu0 %v1325_v55  ;;  %5606 = vmatprep.mubr.msk.bf16.mxu0 %vm6138_vm2, %v6137_v2 }
 0x887   :  { %5612 = vmatprep.mubr.msk.bf16.mxu1 %vm6138_vm2, %v6137_v2  ;;  %5616 = vmatprep.subr.bf16.mxu0 %v6137_v2 }
 0x888   :  { %5622 = vmatprep.subr.bf16.mxu1 %v6137_v2 }
 0x88c   :  { %5613 = vmatmul.mubr.msk.bf16.vlgmr.msra.gmra.mxu1 %vm179_vm0, %v1320_v58 }
 0x88d   :  { %5607 = vmatmul.mubr.msk.bf16.vlgmr.msra.gmra.mxu0 %vm179_vm0, %v1320_v58  ;;  %5624 = vmatprep.mubr.msk.bf16.mxu1 %vm6138_vm2, %v6137_v2 }
 0x88e   :  { %5618 = vmatprep.mubr.msk.bf16.mxu0 %vm6138_vm2, %v6137_v2  ;;  %5623 = vmatpush3.bf16.msra.mxu1 %v1318_v36 }
 0x88f   :  { %5634 = vmatprep.subr.bf16.mxu1 %v6137_v2 }
 0x944   :  { %v1302_v30 = vpop.f32.mrf.mxu1 }
 0x945   :  { %v1259_v10 = vpop.f32.mrf.mxu0 }
 0x946   :  { %v6596_v61 = vadd.f32 %v1302_v30, %v1259_v10  ;;  %v5602_v63 = vpop.f32.mrf.mxu1  ;;  %v1551_v10 = vsel %vm179_vm0, %v1540_v51, 0 }
 0x947   :  { %v5596_v4 = vpop.f32.mrf.mxu0 }
 0x948   :  { %v1305_v5 = vpop.f32.mrf.mxu1 }
 0x949   :  { %v1262_v8 = vpop.f32.mrf.mxu0 }
 0x94a   :  { %v5603_v9 = vpop.f32.mrf.mxu1 }
 0x94b   :  { %v5597_v11 = vpop.f32.mrf.mxu0 }
 0x94c   :  { %v1408_v12 = vpop.f32.mrf.mxu1 }
 0x94d   :  { %v1361_v14 = vpop.f32.mrf.mxu0  ;;  %v1414_v15 = vmul.f32 0.25, %v1408_v12 }
 0x94e   :  { %v1367_v16 = vmul.f32 0.25, %v1361_v14  ;;  %v5614_v17 = vpop.f32.mrf.mxu1 }
 0x94f   :  { %v5608_v18 = vpop.f32.mrf.mxu0  ;;  %v1415_v20 = vadd.f32 %v1414_v15, %v6549_v13 }
 0x950   :  { %v1411_v21 = vpop.f32.mrf.mxu1  ;;  %v1368_v22 = vadd.f32 %v6502_v27, %v1367_v16 }
 0x951   :  { %v1364_v23 = vpop.f32.mrf.mxu0  ;;  %v1419_v26 = vsel %vm288_vm4, %v1415_v20, -inf }
 0x952   :  { %v1416_v31 = vsel %vm179_vm0, %v1368_v22, -inf  ;;  %1420 = vmax.xlane.f32.xlu1 %v1419_v26  ;;  %v5615_v32 = vpop.f32.mrf.mxu1 }
 0x953   :  { %1417 = vmax.xlane.f32.xlu0 %v1416_v31  ;;  %v5609_v33 = vpop.f32.mrf.mxu0 }
 0x963   :  { %1595 = vrot.lane.b32.xlu1 %v6486_v35, %s7598_s20 }
 0x969   :  { %1439 = vrot.lane.b32.xlu0 %v6534_v60, %s6140_s19 }
 0x96d   :  { %1545 = vrot.lane.b32.xlu0 %v6486_v35, %s7600_s4 }
 0x9db   :  { %v1421_v37 = vpop.xlane.xlu1 %1420 }
 0x9dc   :  { %v1418_v38 = vpop.xlane.xlu0 %1417 }
 0x9dd   :  { %v1422_v39 = vmax.f32 %v1418_v38, %v1421_v37 }
 0x9df   :  { %v1423_v40 = vsub.f32 %v1368_v22, %v1422_v39  ;;  %v1426_v41 = vsub.f32 %v1415_v20, %v1422_v39  ;;  %v1596_v55 = vpop.permute.xlu1 %1595  ;;  %v5065_v39 = vld [vmem:[%s7577_s3 + $0x60] sm:$0xff] }
 0x9e0   :  { %v1440_v42 = vpop.permute.xlu0 %1439  ;;  %v1598_v63 = vsel %vm179_vm0, %v1596_v55, 0 }
 0x9e1   :  { %v1424_v43 = vmul.f32 1.442695, %v1423_v40  ;;  %v1427_v44 = vmul.f32 1.442695, %v1426_v41  ;;  %v1445_v45 = vsel %vm311_vm3, %v1440_v42, 0  ;;  %v5066_v40 = vld [vmem:[%s7577_s3 + $0x68] sm:$0xff] }
 0x9e2   :  { %5617 = vmatpush3.bf16.msra.mxu0 %v1445_v45  ;;  %v1544_v41 = vpack.c.bf16 %v5066_v40, %v5065_v39 }
 0x9e3   :  { %6026 = vpow2.f32 %v1424_v43  ;;  %5628 = vmatprep.subr.bf16.mxu0 %v6137_v2 }
 0x9e4   :  { %6028 = vpow2.f32 %v1427_v44  ;;  %v1546_v4 = vpop.permute.xlu0 %1545 }
 0x9f0   :  { %v6623_v53 = vpop.eup %6026 }
 0x9f1   :  { %v6625_v56 = vpop.eup %6028  ;;  %v1436_v58 = vpack.c.bf16 %v6623_v53, %v6623_v53 }
 0x9f2   :  { %v1437_v30 = vpack.c.bf16 %v6625_v56, %v6625_v56 }
 0x9f3   :  { %5625 = vmatmul.mubr.msk.bf16.vlgmr.msra.gmra.mxu1 %vm179_vm0, %v1436_v58 }
 0x9f4   :  { %5619 = vmatmul.mubr.msk.bf16.vlgmr.msra.gmra.mxu0 %vm288_vm4, %v1437_v30  ;;  %5635 = vmatpush3.bf16.xpose.msra.mxu1 %v1598_v63  ;;  %v5072_v30 = vld [vmem:[%s7608_s30 + $0x78] sm:$0xff] }
 0x9f5   :  { %5629 = vmatpush3.bf16.xpose.msra.mxu0 %v1551_v10  ;;  %5630 = vmatprep.mubr.msk.bf16.mxu0 %vm6138_vm2, %v6137_v2 }
 0x9f6   :  { %5636 = vmatprep.mubr.msk.bf16.mxu1 %vm6138_vm2, %v6137_v2  ;;  %5640 = vmatprep.subr.bf16.mxu0 %v6137_v2 }
 0x9f7   :  { %5646 = vmatprep.subr.bf16.mxu1 %v6137_v2 }
 0x9fb   :  { %5637 = vmatmul.mubr.msk.bf16.vlgmr.msra.gmra.mxu1 %vm179_vm0, %v1546_v4 }
 0x9fc   :  { %5631 = vmatmul.mubr.msk.bf16.vlgmr.msra.gmra.mxu0 %vm179_vm0, %v1546_v4  ;;  %5648 = vmatprep.mubr.msk.bf16.mxu1 %vm6138_vm2, %v6137_v2 }
 0x9fd   :  { %5642 = vmatprep.mubr.msk.bf16.mxu0 %vm6138_vm2, %v6137_v2  ;;  %5647 = vmatpush3.bf16.msra.mxu1 %v1544_v41 }
 0x9fe   :  { %5658 = vmatprep.subr.bf16.mxu1 %v6137_v2 }
 0xab3   :  { %v1524_v5 = vpop.f32.mrf.mxu1 }
 0xab4   :  { %v1481_v8 = vpop.f32.mrf.mxu0 }
 0xab5   :  { %v6647_v9 = vadd.f32 %v1524_v5, %v1481_v8  ;;  %v5626_v11 = vpop.f32.mrf.mxu1 }
 0xab6   :  { %v5620_v12 = vpop.f32.mrf.mxu0 }
 0xab7   :  { %v1527_v14 = vpop.f32.mrf.mxu1 }
 0xab8   :  { %v1484_v15 = vpop.f32.mrf.mxu0 }
 0xab9   :  { %v5627_v16 = vpop.f32.mrf.mxu1 }
 0xaba   :  { %v5621_v17 = vpop.f32.mrf.mxu0 }
 0xabb   :  { %v1634_v18 = vpop.f32.mrf.mxu1 }
 0xabc   :  { %v1587_v20 = vpop.f32.mrf.mxu0  ;;  %v1640_v21 = vmul.f32 0.25, %v1634_v18 }
 0xabd   :  { %v1593_v22 = vmul.f32 0.25, %v1587_v20  ;;  %v5638_v23 = vpop.f32.mrf.mxu1 }
 0xabe   :  { %v5632_v26 = vpop.f32.mrf.mxu0  ;;  %v1641_v31 = vadd.f32 %v1640_v21, %v6549_v13 }
 0xabf   :  { %v1637_v32 = vpop.f32.mrf.mxu1  ;;  %v1594_v33 = vadd.f32 %v6502_v27, %v1593_v22 }
 0xac0   :  { %v1590_v28 = vpop.f32.mrf.mxu0  ;;  %v1645_v49 = vsel %vm288_vm4, %v1641_v31, -inf }
 0xac1   :  { %v1642_v36 = vsel %vm179_vm0, %v1594_v33, -inf  ;;  %1646 = vmax.xlane.f32.xlu0 %v1645_v49  ;;  %v5639_v37 = vpop.f32.mrf.mxu1 }
 0xac2   :  { %1643 = vmax.xlane.f32.xlu1 %v1642_v36  ;;  %v5633_v38 = vpop.f32.mrf.mxu0 }
 0xad3   :  { %1820 = vrot.lane.b32.xlu1 %v6486_v35, %s7610_s21 }
 0xad7   :  { %1770 = vrot.lane.b32.xlu1 %v6486_v35, %s7596_s28  ;;  %1664 = vrot.lane.b32.xlu0 %v6534_v60, %s7600_s4  ;;  %v5071_v35 = vld [vmem:[%s7608_s30 + $0x70] sm:$0xff] }
 0xad8   :  { %v1765_v10 = vpack.c.bf16 %v5072_v30, %v5071_v35  ;;  %v746_v35 = vsel %vm179_vm0, %v6454_v52, 0.0  ;;  %v1213_v30 = vsel %vm288_vm4, %v6574_v50, 0.0 }
 0xada   :  { %v1776_v12 = vsel %vm179_vm0, %v1765_v10, 0 }
 0xb4a   :  { %v1647_v42 = vpop.xlane.xlu0 %1646 }
 0xb4b   :  { %v1644_v43 = vpop.xlane.xlu1 %1643 }
 0xb4c   :  { %v1648_v44 = vmax.f32 %v1644_v43, %v1647_v42 }
 0xb4e   :  { %v1649_v45 = vsub.f32 %v1594_v33, %v1648_v44  ;;  %v1652_v34 = vsub.f32 %v1641_v31, %v1648_v44  ;;  %v1665_v47 = vpop.permute.xlu0 %1664 }
 0xb4f   :  { %v1670_v51 = vsel %vm311_vm3, %v1665_v47, 0  ;;  %v1821_v4 = vpop.permute.xlu1 %1820  ;;  %v522_v47 = vsel %vm288_vm4, %v6405_v59, 0.0  ;;  %v5074_v59 = vld [vmem:[%s7577_s3 + $0x78] sm:$0xff] }
 0xb50   :  { %v1650_v55 = vmul.f32 1.442695, %v1649_v45  ;;  %v1653_v58 = vmul.f32 1.442695, %v1652_v34  ;;  %5641 = vmatpush3.bf16.msra.mxu0 %v1670_v51  ;;  %v1823_v14 = vsel %vm179_vm0, %v1821_v4, 0  ;;  %v519_v34 = vsel %vm179_vm0, %v6403_v57, 0.0 }
 0xb51   :  { %5652 = vmatprep.subr.bf16.mxu0 %v6137_v2  ;;  %v749_v51 = vsel %vm288_vm4, %v6456_v54, 0.0  ;;  %v5073_v57 = vld [vmem:[%s7577_s3 + $0x70] sm:$0xff]  ;;  %v972_v54 = vsel %vm179_vm0, %v6514_v48, 0.0 }
 0xb52   :  { %6030 = vpow2.f32 %v1650_v55  ;;  %v1769_v55 = vpack.c.bf16 %v5074_v59, %v5073_v57 }
 0xb53   :  { %6032 = vpow2.f32 %v1653_v58  ;;  %v1771_v15 = vpop.permute.xlu1 %1770  ;;  %v975_v58 = vsel %vm288_vm4, %v6516_v25, 0.0 }
 0xb5f   :  { %v6031_v63 = vpop.eup %6030 }
 0xb60   :  { %v6033_v5 = vpop.eup %6032  ;;  %v1662_v8 = vpack.c.bf16 %v6031_v63, %v6031_v63 }
 0xb61   :  { %v1663_v11 = vpack.c.bf16 %v6033_v5, %v6033_v5 }
 0xb62   :  { %5649 = vmatmul.mubr.msk.bf16.vlgmr.msra.gmra.mxu1 %vm179_vm0, %v1662_v8 }
 0xb63   :  { %5643 = vmatmul.mubr.msk.bf16.vlgmr.msra.gmra.mxu0 %vm288_vm4, %v1663_v11  ;;  %5659 = vmatpush3.bf16.xpose.msra.mxu1 %v1823_v14 }
 0xb64   :  { %5653 = vmatpush3.bf16.xpose.msra.mxu0 %v1776_v12  ;;  %5654 = vmatprep.mubr.msk.bf16.mxu0 %vm6138_vm2, %v6137_v2 }
 0xb65   :  { %5660 = vmatprep.mubr.msk.bf16.mxu1 %vm6138_vm2, %v6137_v2  ;;  %5664 = vmatprep.subr.bf16.mxu0 %v6137_v2 }
 0xb66   :  { %5670 = vmatprep.subr.bf16.mxu1 %v6137_v2 }
 0xb6a   :  { %5661 = vmatmul.mubr.msk.bf16.vlgmr.msra.gmra.mxu1 %vm179_vm0, %v1771_v15 }
 0xb6b   :  { %5655 = vmatmul.mubr.msk.bf16.vlgmr.msra.gmra.mxu0 %vm179_vm0, %v1771_v15  ;;  %5672 = vmatprep.mubr.msk.bf16.mxu1 %vm6138_vm2, %v6137_v2 }
 0xb6c   :  { %5666 = vmatprep.mubr.msk.bf16.mxu0 %vm6138_vm2, %v6137_v2  ;;  %5671 = vmatpush3.bf16.msra.mxu1 %v1769_v55 }
 0xc22   :  { %v1749_v16 = vpop.f32.mrf.mxu1 }
 0xc23   :  { %v1706_v17 = vpop.f32.mrf.mxu0 }
 0xc24   :  { %v6690_v18 = vadd.f32 %v1749_v16, %v1706_v17  ;;  %v5650_v20 = vpop.f32.mrf.mxu1 }
 0xc25   :  { %v5644_v21 = vpop.f32.mrf.mxu0 }
 0xc26   :  { %v1752_v22 = vpop.f32.mrf.mxu1 }
 0xc27   :  { %v1709_v23 = vpop.f32.mrf.mxu0 }
 0xc28   :  { %v5651_v26 = vpop.f32.mrf.mxu1 }
 0xc29   :  { %v5645_v31 = vpop.f32.mrf.mxu0 }
 0xc2a   :  { %v1859_v32 = vpop.f32.mrf.mxu1 }
 0xc2b   :  { %v1812_v33 = vpop.f32.mrf.mxu0  ;;  %v1865_v28 = vmul.f32 0.25, %v1859_v32 }
 0xc2c   :  { %v1818_v49 = vmul.f32 0.25, %v1812_v33  ;;  %v5662_v36 = vpop.f32.mrf.mxu1 }
 0xc2d   :  { %v5656_v37 = vpop.f32.mrf.mxu0  ;;  %v1866_v38 = vadd.f32 %v1865_v28, %v6549_v13  ;;  %v1432_v13 = vsel %vm288_vm4, %v6625_v56, 0.0  ;;  %v1658_v56 = vsel %vm288_vm4, %v6033_v5, 0.0  ;;  %v299_v28 = vsel %vm179_vm0, %v6362_v6, 0.0 }
 0xc2e   :  { %v1862_v39 = vpop.f32.mrf.mxu1  ;;  %v1819_v40 = vadd.f32 %v6502_v27, %v1818_v49  ;;  %v1429_v27 = vsel %vm179_vm0, %v6623_v53, 0.0  ;;  %v1655_v53 = vsel %vm179_vm0, %v6031_v63, 0.0 }
 0xc2f   :  { %v1815_v41 = vpop.f32.mrf.mxu0  ;;  %v1870_v42 = vsel %vm288_vm4, %v1866_v38, -inf }
 0xc30   :  { %v1867_v43 = vsel %vm179_vm0, %v1819_v40, -inf  ;;  %1871 = vmax.xlane.f32.xlu1 %v1870_v42  ;;  %v5663_v44 = vpop.f32.mrf.mxu1 }
 0xc31   :  { %1868 = vmax.xlane.f32.xlu0 %v1867_v43  ;;  %v5657_v45 = vpop.f32.mrf.mxu0 }
 0xc34   :  { %520 = vadd.xlane.f32.xlu1 %v519_v34 }
 0xc38   :  { %523 = vadd.xlane.f32.xlu1 %v522_v47 }
 0xc3c   :  { %1430 = vadd.xlane.f32.xlu1 %v1429_v27  ;;  %v5927_v27 = vld [vmem:[%s7578_s6 + $0x10] sm:$0xff]  }
 0xc40   :  { %1433 = vadd.xlane.f32.xlu1 %v1432_v13 }
 0xc44   :  { %750 = vadd.xlane.f32.xlu1 %v749_v51 }
 0xc47   :  { %1889 = vrot.lane.b32.xlu0 %v6534_v60, %s7596_s28  ;;  %v302_v60 = vsel %vm288_vm4, %v6354_v3, 0.0 }
 0xc48   :  { %1656 = vadd.xlane.f32.xlu1 %v1655_v53 }
 0xc4c   :  { %1659 = vadd.xlane.f32.xlu1 %v1658_v56 }
 0xc50   :  { %973 = vadd.xlane.f32.xlu1 %v972_v54 }
 0xc54   :  { %976 = vadd.xlane.f32.xlu1 %v975_v58 }
 0xc66   :  { %747 = vadd.xlane.f32.xlu0 %v746_v35 }
 0xc6a   :  { %303 = vadd.xlane.f32.xlu0 %v302_v60 }
 0xc6e   :  { %1214 = vadd.xlane.f32.xlu0 %v1213_v30 }
 0xcb9   :  { %v1872_v10 = vpop.xlane.xlu1 %1871 }
 0xcba   :  { %v1869_v63 = vpop.xlane.xlu0 %1868 }
 0xcbb   :  { %v1873_v48 = vmax.f32 %v1869_v63, %v1872_v10 }
 0xcbd   :  { %v1874_v4 = vsub.f32 %v1819_v40, %v1873_v48  ;;  %v1877_v5 = vsub.f32 %v1866_v38, %v1873_v48  ;;  %v521_v8 = vpop.xlane.xlu1 %520  ;;  %v1210_v38 = vsel %vm179_vm0, %v6572_v46, 0.0 }
 0xcbe   :  { %v1890_v25 = vpop.permute.xlu0 %1889 }
 0xcbf   :  { %v1875_v11 = vmul.f32 1.442695, %v1874_v4  ;;  %v1878_v12 = vmul.f32 1.442695, %v1877_v5  ;;  %v1895_v52 = vsel %vm311_vm3, %v1890_v25, 0  ;;  %v5928_v4 = vld [vmem:[%s7578_s6 + $0x8] sm:$0xff]  }
 0xcc0   :  { %5665 = vmatpush3.bf16.msra.mxu0 %v1895_v52 }
 0xcc1   :  { %6034 = vpow2.f32 %v1875_v11  ;;  %v524_v14 = vpop.xlane.xlu1 %523  ;;  %5676 = vmatprep.subr.bf16.mxu0 %v6137_v2 }
 0xcc2   :  { %6036 = vpow2.f32 %v1878_v12  ;;  %v525_v33 = vadd.f32 %v524_v14, %v521_v8 }
 0xcc5   :  { %v1431_v3 = vpop.xlane.xlu1 %1430 }
 0xcc9   :  { %v1434_v50 = vpop.xlane.xlu1 %1433 }
 0xcca   :  { %v1435_v15 = vadd.f32 %v1434_v50, %v1431_v3 }
 0xccc   :  { %6038 = vrcp.f32 %v1435_v15 }
 0xccd   :  { %v751_v16 = vpop.xlane.xlu1 %750  ;;  %6040 = vrcp.f32 %v525_v33  ;;  %v6134_v33 = vld [vmem:[%s7609_s0] sm:$0xff] }
 0xcce   :  { %v6035_v17 = vpop.eup %6034 }
 0xccf   :  { %v6037_v20 = vpop.eup %6036  ;;  %v1880_v21 = vsel %vm179_vm0, %v6035_v17, 0.0  ;;  %v1887_v22 = vpack.c.bf16 %v6035_v17, %v6035_v17 }
 0xcd0   :  { %1881 = vadd.xlane.f32.xlu1 %v1880_v21  ;;  %v1888_v23 = vpack.c.bf16 %v6037_v20, %v6037_v20  ;;  %v1883_v31 = vsel %vm288_vm4, %v6037_v20, 0.0 }
 0xcd1   :  { %5673 = vmatmul.mubr.msk.bf16.vlgmr.msra.gmra.mxu1 %vm179_vm0, %v1887_v22  ;;  %v1657_v26 = vpop.xlane.xlu1 %1656 }
 0xcd2   :  { %5667 = vmatmul.mubr.msk.bf16.vlgmr.msra.gmra.mxu0 %vm288_vm4, %v1888_v23  ;;  %2216 = vmatprep.mubr.bf16.mxu1 %v6136_v1  ;;  %v5079_v23 = vld [vmem:[%s7579_s7] ss:$0 sm:$0xff] }
 0xcd3   :  { %5684 = vmatprep.mubr.msk.bf16.mxu0 %vm6138_vm2, %v6137_v2 }
 0xcd4   :  { %1884 = vadd.xlane.f32.xlu1 %v1883_v31 }
 0xcd5   :  { %v1660_v32 = vpop.xlane.xlu1 %1659 }
 0xcd8   :  { %300 = vadd.xlane.f32.xlu1 %v299_v28 }
 0xcd9   :  { %v6039_v49 = vpop.eup %6038  ;;  %v974_v36 = vpop.xlane.xlu1 %973 }
 0xcda   :  { %v1531_v37 = vmul.f32 %v6039_v49, %v6647_v9  ;;  %v6041_v41 = vpop.eup %6040  ;;  %v1661_v9 = vadd.f32 %v1660_v32, %v1657_v26 }
 0xcdb   :  { %v621_v42 = vmul.f32 %v6041_v41, %v6427_v7 }
 0xcdc   :  { %1211 = vadd.xlane.f32.xlu1 %v1210_v38  ;;  %1533 = vrot.lane.b32.xlu0 %v1531_v37, %s7610_s21 }
 0xcdd   :  { %v977_v39 = vpop.xlane.xlu1 %976 }
 0xcde   :  { %v978_v40 = vadd.f32 %v977_v39, %v974_v36  ;;  %v6135_v39 = vld [vmem:[%s7609_s0 + $0x8] sm:$0xff] }
 0xce0   :  { %6042 = vrcp.f32 %v978_v40 }
 0xced   :  { %v6043_v43 = vpop.eup %6042  ;;  %623 = vrot.lane.b32.xlu1 %v621_v42, %s7610_s21 }
 0xcee   :  { %v1073_v6 = vmul.f32 %v6043_v43, %v6547_v62  ;;  %v5926_v62 = vld [vmem:[%s7578_s6 + $0x18] sm:$0xff]  }
 0xcef   :  { %v748_v44 = vpop.xlane.xlu0 %747  ;;  %5677 = vmatpush3.bf16.msra.mxu0 %v5926_v62  ;;  %v5932_v62 = vld [vmem:[%s7580_s10 + $0x34] ss:$8 sps:$4 sm:$0xff]  }
 0xcf0   :  { %v752_v45 = vadd.f32 %v751_v16, %v748_v44  ;;  %1075 = vrot.lane.b32.xlu0 %v1073_v6, %s7602_s2  ;;  %5678 = vmatprep.subr.bf16.mxu0 %v6137_v2 }
 0xcf1   :  { %2192 = vmatprep.subr.bf16.mxu1 %v5932_v62 }
 0xcf2   :  { %6044 = vrcp.f32 %v752_v45 }
 0xcf3   :  { %6046 = vrcp.f32 %v1661_v9  ;;  %5679 = vmatpush3.bf16.msra.mxu0 %v5927_v27  ;;  %v304_v51 = vpop.xlane.xlu0 %303  ;;  %v5930_v27 = vld [vmem:[%s7580_s10 + $0x30] ss:$8 sps:$4 sm:$0xff]  }
 0xcf4   :  { %5680 = vmatprep.subr.bf16.mxu0 %v6137_v2  ;;  %2193 = vmatpush1.bf16.msra.mxu1 %v5930_v27 }
 0xcf7   :  { %v1215_v59 = vpop.xlane.xlu0 %1214  ;;  %5681 = vmatpush3.bf16.msra.mxu0 %v5928_v4  ;;  %v5086_v4 = vld [vmem:[%s7582_s9] ss:$0 sm:$0xff] }
 0xcf8   :  { %5682 = vmatprep.subr.bf16.mxu0 %v6137_v2 }
 0xcff   :  { %v6045_v46 = vpop.eup %6044 }
 0xd00   :  { %v847_v34 = vmul.f32 %v6045_v46, %v6478_v0  ;;  %v6047_v47 = vpop.eup %6046 }
 0xd01   :  { %v1756_v7 = vmul.f32 %v6047_v47, %v6690_v18 }
 0xd02   :  { %849 = vrot.lane.b32.xlu1 %v847_v34, %s7598_s20 }
 0xd06   :  { %1758 = vrot.lane.b32.xlu1 %v1756_v7, %s7598_s20 }
 0xd4e   :  { %v1534_v58 = vpop.permute.xlu0 %1533 }
 0xd59   :  { %v1882_v0 = vpop.xlane.xlu1 %1881 }
 0xd5d   :  { %v1885_v13 = vpop.xlane.xlu1 %1884 }
 0xd61   :  { %v301_v18 = vpop.xlane.xlu1 %300 }
 0xd62   :  { %v305_v57 = vadd.f32 %v304_v51, %v301_v18  ;;  %v1076_v10 = vpop.permute.xlu0 %1075  ;;  %v5938_v51 = vld [vmem:[%s7580_s10 + $0x14] ss:$8 sps:$4 sm:$0xff]   ;;  %v5936_v18 = vld [vmem:[%s7580_s10 + $0x10] ss:$8 sps:$4 sm:$0xff]  }
 0xd64   :  { %6048 = vrcp.f32 %v305_v57  ;;  %v5941_v57 = vld [vmem:[%s7580_s10 + $0x4] ss:$8 sps:$4 sm:$0xff]  }
 0xd65   :  { %v1212_v55 = vpop.xlane.xlu1 %1211 }
 0xd66   :  { %v1216_v53 = vadd.f32 %v1215_v59, %v1212_v55  ;;  %v5939_v59 = vld [vmem:[%s7580_s10] ss:$8 sps:$4 sm:$0xff]  }
 0xd68   :  { %6050 = vrcp.f32 %v1216_v53 }
 0xd69   :  { %v624_v56 = vpop.permute.xlu1 %623 }
 0xd71   :  { %v6049_v54 = vpop.eup %6048 }
 0xd72   :  { %v399_v35 = vmul.f32 %v6049_v54, %v6378_v24  ;;  %v1886_v24 = vadd.f32 %v1885_v13, %v1882_v0  ;;  %v5935_v0 = vld [vmem:[%s7580_s10 + $0x24] ss:$8 sps:$4 sm:$0xff]   ;;  %v5933_v13 = vld [vmem:[%s7580_s10 + $0x20] ss:$8 sps:$4 sm:$0xff]  }
 0xd73   :  { %2194 = vmatprep.subr.bf16.mxu1 %v5935_v0 }
 0xd74   :  { %400 = vst.msk [vmem:[#allocation2] sm:$0xff] %vm179_vm0, %v399_v35  ;;  %v850_v60 = vpop.permute.xlu1 %849  ;;  %6052 = vrcp.f32 %v1886_v24  ;;  %2195 = vmatpush1.bf16.msra.mxu1 %v5933_v13 }
 0xd75   :  { %v6051_v30 = vpop.eup %6050  ;;  %627 = vst.msk [vmem:[#allocation2] sm:$0xff] %vm626_vm5, %v624_v56  ;;  %2196 = vmatprep.subr.bf16.mxu1 %v5938_v51 }
 0xd76   :  { %853 = vst.msk [vmem:[#allocation2] sm:$0xff] %vm852_vm6, %v850_v60  ;;  %v1309_v63 = vmul.f32 %v6051_v30, %v6596_v61  ;;  %v5929_v61 = vld [vmem:[%s7578_s6] sm:$0xff]  }
 0xd77   :  { %1079 = vst.msk [vmem:[#allocation2] sm:$0xff] %vm1078_vm7, %v1076_v10  ;;  %5683 = vmatpush3.bf16.msra.mxu0 %v5929_v61  ;;  %v5085_v10 = vld [vmem:[%s7581_s8] ss:$0 sm:$0xff] }
 0xd78   :  { %1310 = vst.msk [vmem:[#allocation2 + $0x8] sm:$0xff] %vm179_vm0, %v1309_v63  ;;  %v1759_v48 = vpop.permute.xlu1 %1758  ;;  %2197 = vmatpush1.bf16.msra.mxu1 %v5936_v18 }
 0xd79   :  { %1536 = vst.msk [vmem:[#allocation2 + $0x8] sm:$0xff] %vm626_vm5, %v1534_v58  ;;  %2198 = vmatprep.subr.bf16.mxu1 %v5941_v57 }
 0xd7a   :  { %1761 = vst.msk [vmem:[#allocation2 + $0x8] sm:$0xff] %vm852_vm6, %v1759_v48 }
 0xd7c   :  { %2199 = vmatpush1.bf16.msra.mxu1 %v5939_v59 }
 0xd7e   :  { %v1987_v20 = vld [vmem:[#allocation2] sm:$0xff] }
 0xd81   :  { %v6053_v12 = vpop.eup %6052 }
 0xd91   :  { %v1974_v5 = vpop.f32.mrf.mxu1 }
 0xd92   :  { %v1931_v8 = vpop.f32.mrf.mxu0 }
 0xd93   :  { %v1975_v25 = vadd.f32 %v1974_v5, %v1931_v8  ;;  %v5674_v11 = vpop.f32.mrf.mxu1 }
 0xd94   :  { %v5668_v52 = vpop.f32.mrf.mxu0  ;;  %v5942_v11 = vld [vmem:[%s7583_s12 + $0x78] sm:$0xff]  }
 0xd95   :  { %v1981_v14 = vmul.f32 %v6053_v12, %v1975_v25  ;;  %v1977_v3 = vpop.f32.mrf.mxu1  ;;  %v5943_v12 = vld [vmem:[%s7583_s12 + $0x38] sm:$0xff]   ;;  %5366 = vmatprep.subr.bf16.mxu0 %v5942_v11  ;;  %v5944_v52 = vld [vmem:[%s7583_s12 + $0x70] sm:$0xff]  }
 0xd96   :  { %v1934_v50 = vpop.f32.mrf.mxu0  ;;  %v5946_v3 = vld [vmem:[%s7583_s12 + $0x68] sm:$0xff]  }
 0xd97   :  { %1983 = vrot.lane.b32.xlu1 %v1981_v14, %s7602_s2  ;;  %v5675_v15 = vpop.f32.mrf.mxu1  ;;  %v5945_v14 = vld [vmem:[%s7583_s12 + $0x30] sm:$0xff]   ;;  %v5947_v50 = vld [vmem:[%s7583_s12 + $0x28] sm:$0xff]  }
 0xd98   :  { %v5669_v16 = vpop.f32.mrf.mxu0  ;;  %v5948_v15 = vld [vmem:[%s7583_s12 + $0x60] sm:$0xff]  }
 0xd99   :  { %v5949_v16 = vld [vmem:[%s7583_s12 + $0x20] sm:$0xff]  }
 0xe09   :  { %v1984_v17 = vpop.permute.xlu1 %1983 }
 0xe0a   :  { %1986 = vst.msk [vmem:[#allocation2 + $0x8] sm:$0xff] %vm1078_vm7, %v1984_v17  ;;  %v5950_v17 = vld [vmem:[%s7583_s12 + $0x58] sm:$0xff]  }
 0xe11   :  { %v1988_v21 = vld [vmem:[#allocation2 + $0x8] sm:$0xff] }
 0xe12   :  { %v1989_v22 = vpack.c.bf16 %v1988_v21, %v1987_v20  ;;  %v5951_v20 = vld [vmem:[%s7583_s12 + $0x18] sm:$0xff]   ;;  %v5952_v21 = vld [vmem:[%s7583_s12 + $0x50] sm:$0xff]  }
 0xe14   :  { %5685 = vmatmul.mubr.msk.bf16.vlgmr.msra.gmra.mxu0 %vm123_vm1, %v1989_v22  ;;  %v5953_v22 = vld [vmem:[%s7583_s12 + $0x10] sm:$0xff]  }
 0xe15   :  { %5367 = vmatpush3.bf16.msra.mxu0 %v5943_v12 }
 0xe16   :  { %5368 = vmatprep.subr.bf16.mxu0 %v5944_v52 }
 0xe19   :  { %5369 = vmatpush3.bf16.msra.mxu0 %v5945_v14 }
 0xe1a   :  { %5370 = vmatprep.subr.bf16.mxu0 %v5946_v3 }
 0xe1d   :  { %5371 = vmatpush3.bf16.msra.mxu0 %v5947_v50 }
 0xe1e   :  { %5372 = vmatprep.subr.bf16.mxu0 %v5948_v15 }
 0xe21   :  { %5373 = vmatpush3.bf16.msra.mxu0 %v5949_v16 }
 0xe22   :  { %5374 = vmatprep.subr.bf16.mxu0 %v5950_v17  ;;  %v5096_v17 = vld [vmem:[%s7585_s13] ss:$0 sm:$0xff] }
 0xe25   :  { %5375 = vmatpush3.bf16.msra.mxu0 %v5951_v20 }
 0xe26   :  { %5376 = vmatprep.subr.bf16.mxu0 %v5952_v21 }
 0xe29   :  { %5377 = vmatpush3.bf16.msra.mxu0 %v5953_v22 }
 0xed4   :  { %v2066_v26 = vpop.f32.mrf.mxu0 }
 0xed5   :  { %v2067_v31 = vadd.f32 %v5079_v23, %v2066_v26  ;;  %v5955_v26 = vld [vmem:[%s7583_s12 + $0x8] sm:$0xff]  }
 0xed6   :  { %v5686_v32 = vpop.f32.mrf.mxu0 }
 0xed7   :  { %v2073_v28 = vadd.f32 %v6134_v33, %v2067_v31  ;;  %v5956_v31 = vld [vmem:[%s7583_s12 + $0x40] sm:$0xff]  }
 0xed8   :  { %v2069_v49 = vpop.f32.mrf.mxu0  ;;  %v5957_v32 = vld [vmem:[%s7583_s12] sm:$0xff]  }
 0xed9   :  { %v2070_v36 = vadd.f32 %v5079_v23, %v2069_v49  ;;  %v2075_v37 = vsel %vm123_vm1, %v2073_v28, 0.0  ;;  %v5954_v23 = vld [vmem:[%s7583_s12 + $0x48] sm:$0xff]   ;;  %v2129_v33 = vld [vmem:[%s7584_s11] sm:$0x3] }
 0xeda   :  { %2076 = vadd.xlane.f32.xlu0 %v2075_v37  ;;  %v5687_v38 = vpop.f32.mrf.mxu0  ;;  %5378 = vmatprep.subr.bf16.mxu0 %v5954_v23  ;;  %v2138_v49 = vrot.slane %v2129_v33, %v6312_v29 }
 0xedb   :  { %v2074_v40 = vadd.f32 %v6135_v39, %v2070_v36  ;;  %5379 = vmatpush3.bf16.msra.mxu0 %v5955_v26 }
 0xedc   :  { %5380 = vmatprep.subr.bf16.mxu0 %v5956_v31 }
 0xedd   :  { %v2078_v41 = vsel %vm123_vm1, %v2074_v40, 0.0 }
 0xede   :  { %2079 = vadd.xlane.f32.xlu1 %v2078_v41 }
 0xedf   :  { %5381 = vmatpush3.bf16.msra.mxu0 %v5957_v32 }
 0xee0   :  { %5700 = vmatprep.subr.bf16.mxu0 %v6137_v2 }
 0xf63   :  { %v2077_v42 = vpop.xlane.xlu0 %2076 }
 0xf64   :  { %v2082_v43 = vmul.f32 0.015625, %v2077_v42 }
 0xf66   :  { %v2084_v6 = vsub.f32 %v2073_v28, %v2082_v43  ;;  %v2134_v28 = vrot.slane %v2129_v33, %v6287_v19 }
 0xf67   :  { %v2080_v44 = vpop.xlane.xlu1 %2079 }
 0xf68   :  { %v2083_v9 = vmul.f32 0.015625, %v2080_v44  ;;  %v2086_v45 = vmul.f32 %v2084_v6, %v2084_v6 }
 0xf6a   :  { %v2085_v46 = vsub.f32 %v2074_v40, %v2083_v9  ;;  %v2088_v34 = vsel %vm123_vm1, %v2086_v45, 0.0 }
 0xf6b   :  { %2089 = vadd.xlane.f32.xlu0 %v2088_v34 }
 0xf6c   :  { %v2087_v47 = vmul.f32 %v2085_v46, %v2085_v46 }
 0xf6e   :  { %v2091_v7 = vsel %vm123_vm1, %v2087_v47, 0.0 }
 0xf6f   :  { %2092 = vadd.xlane.f32.xlu0 %v2091_v7 }
 0xff4   :  { %v2090_v55 = vpop.xlane.xlu0 %2089 }
 0xff5   :  { %v2094_v53 = vmul.f32 0.015625, %v2090_v55 }
 0xff7   :  { %v2096_v56 = vadd.f32 1e-12, %v2094_v53 }
 0xff8   :  { %v2093_v54 = vpop.xlane.xlu0 %2092 }
 0xff9   :  { %6054 = vrsqrt.f32 %v2096_v56  ;;  %v2095_v58 = vmul.f32 0.015625, %v2093_v54 }
 0xffb   :  { %v2097_v35 = vadd.f32 1e-12, %v2095_v58 }
 0xffd   :  { %6056 = vrsqrt.f32 %v2097_v35 }
0x1006   :  { %v6055_v60 = vpop.eup %6054 }
0x1007   :  { %v2100_v30 = vmul.f32 %v6055_v60, %v2084_v6 }
0x1009   :  { %v2109_v24 = vmul.f32 %v5085_v10, %v2100_v30 }
0x100a   :  { %v6057_v63 = vpop.eup %6056 }
0x100b   :  { %v2101_v48 = vmul.f32 %v6057_v63, %v2085_v46  ;;  %v6819_v5 = vadd.f32 %v5086_v4, %v2109_v24 }
0x100d   :  { %v2110_v61 = vmul.f32 %v5085_v10, %v2101_v48 }
0x100f   :  { %v6821_v8 = vadd.f32 %v5086_v4, %v2110_v61 }
0x1011   :  { %v2120_v25 = vpack.c.bf16 %v6821_v8, %v6819_v5 }
0x1013   :  { %5095 = vmatmul.mubr.msk.bf16.vlgmr.msra.gmra.mxu1 %vm123_vm1, %v2120_v25 }
0x1014   :  { %2585 = vmatprep.mubr.bf16.mxu1 %v6136_v1 }
0x10d3   :  { %v2218_v36 = vpop.f32.mrf.mxu1 }
0x10d4   :  { %v2219_v37 = vadd.f32 %v2218_v36, %v2134_v28 }
0x10d5   :  { %v2220_v38 = vpop.f32.mrf.mxu1 }
0x10d6   :  { %v2227_v39 = vmul.f32 %v2219_v37, %v2219_v37  ;;  %v2221_v40 = vadd.f32 %v2220_v38, %v2138_v49 }
0x10d7   :  { %v2222_v41 = vpop.f32.mrf.mxu1 }
0x10d8   :  { %v2231_v42 = vmul.f32 %v2227_v39, %v2219_v37  ;;  %v2228_v43 = vmul.f32 %v2221_v40, %v2221_v40  ;;  %v2223_v6 = vadd.f32 %v2222_v41, %v2134_v28 }
0x10d9   :  { %v2224_v44 = vpop.f32.mrf.mxu1 }
0x10da   :  { %v2235_v9 = vmul.f32 0.044715, %v2231_v42  ;;  %v2232_v45 = vmul.f32 %v2228_v43, %v2221_v40  ;;  %v2229_v46 = vmul.f32 %v2223_v6, %v2223_v6  ;;  %v2225_v34 = vadd.f32 %v2224_v44, %v2138_v49 }
0x10dc   :  { %v2239_v47 = vadd.f32 %v2235_v9, %v2219_v37  ;;  %v2236_v7 = vmul.f32 0.044715, %v2232_v45  ;;  %v2233_v62 = vmul.f32 %v2229_v46, %v2223_v6  ;;  %v2230_v27 = vmul.f32 %v2225_v34, %v2225_v34  ;;  %v5958_v9 = vld [vmem:[%s7607_s29 + $0x70] ss:$8 sps:$4 sm:$0xff]   ;;  %v5963_v45 = vld [vmem:[%s7607_s29 + $0x64] ss:$8 sps:$4 sm:$0xff]  }
0x10dd   :  { %v5961_v46 = vld [vmem:[%s7607_s29 + $0x60] ss:$8 sps:$4 sm:$0xff]  }
0x10de   :  { %v2243_v0 = vmul.f32 0.7978846, %v2239_v47  ;;  %v2240_v13 = vadd.f32 %v2236_v7, %v2221_v40  ;;  %v2237_v51 = vmul.f32 0.044715, %v2233_v62  ;;  %v2234_v18 = vmul.f32 %v2230_v27, %v2225_v34  ;;  %v5964_v47 = vld [vmem:[%s7607_s29 + $0x50] ss:$8 sps:$4 sm:$0xff]  }
0x10df   :  { %v5969_v7 = vld [vmem:[%s7607_s29 + $0x44] ss:$8 sps:$4 sm:$0xff]   ;;  %v5967_v62 = vld [vmem:[%s7607_s29 + $0x40] ss:$8 sps:$4 sm:$0xff]  }
0x10e0   :  { %v2244_v57 = vmul.f32 0.7978846, %v2240_v13  ;;  %v2241_v59 = vadd.f32 %v2237_v51, %v2223_v6  ;;  %v2238_v55 = vmul.f32 0.044715, %v2234_v18  ;;  %6058 = vtanh.f32 %v2243_v0 }
0x10e2   :  { %6060 = vtanh.f32 %v2244_v57  ;;  %v2245_v53 = vmul.f32 0.7978846, %v2241_v59  ;;  %v2242_v56 = vadd.f32 %v2238_v55, %v2225_v34 }
0x10e4   :  { %6062 = vtanh.f32 %v2245_v53  ;;  %v2246_v54 = vmul.f32 0.7978846, %v2242_v56  ;;  %v5113_v53 = vld [vmem:[%s7586_s14] ss:$0 sm:$0xff] }
0x10e6   :  { %6064 = vtanh.f32 %v2246_v54  ;;  %v5133_v54 = vld [vmem:[%s7608_s30 + $0x80] sm:$0xff] }
0x10ed   :  { %v6059_v58 = vpop.eup %6058 }
0x10ee   :  { %v2251_v10 = vadd.f32 1.0, %v6059_v58  ;;  %v5134_v58 = vld [vmem:[%s7608_s30 + $0x88] sm:$0xff] }
0x10ef   :  { %v6061_v35 = vpop.eup %6060 }
0x10f0   :  { %v2252_v60 = vadd.f32 1.0, %v6061_v35  ;;  %v2255_v25 = vmul.f32 0.5, %v2251_v10 }
0x10f1   :  { %v6063_v30 = vpop.eup %6062 }
0x10f2   :  { %v2253_v63 = vadd.f32 1.0, %v6063_v30  ;;  %v2256_v61 = vmul.f32 0.5, %v2252_v60  ;;  %v2259_v3 = vmul.f32 %v2255_v25, %v2219_v37  ;;  %v5114_v30 = vld [vmem:[%s7587_s15] ss:$0 sm:$0xff]  ;;  %v5123_v25 = vld [vmem:[%s7575_s5 + $0x2] sm:$0x3] }
0x10f3   :  { %v6065_v48 = vpop.eup %6064 }
0x10f4   :  { %v2257_v24 = vmul.f32 0.5, %v2253_v63  ;;  %v2254_v4 = vadd.f32 1.0, %v6065_v48  ;;  %v2260_v52 = vmul.f32 %v2256_v61, %v2221_v40  ;;  %v2602_v63 = vpack.c.bf16 %v5134_v58, %v5133_v54 }
0x10f6   :  { %v2258_v11 = vmul.f32 0.5, %v2254_v4  ;;  %v2261_v12 = vmul.f32 %v2257_v24, %v2223_v6  ;;  %v2611_v61 = vsel %vm179_vm0, %v2602_v63, 0 }
0x10f8   :  { %v2262_v14 = vmul.f32 %v2258_v11, %v2225_v34  ;;  %v2263_v15 = vpack.c.bf16 %v2261_v12, %v2259_v3  ;;  %v5966_v34 = vld [vmem:[%s7607_s29 + $0x54] ss:$8 sps:$4 sm:$0xff]   ;;  %v2503_v11 = vrot.slane %v5123_v25, %v6287_v19  ;;  %v6945_v12 = vrot.slane %v5123_v25, %v6312_v29 }
0x10fa   :  { %v2264_v50 = vpack.c.bf16 %v2262_v14, %v2260_v52 }
0x10fc   :  { %2432 = vmatprep.mubr.bf16.mxu0 %v2264_v50 }
0x10fd   :  { %2433 = vmatmul.mubr.bf16.vlgmr.msra.gmra.mxu0 %v2263_v15 }
0x10fe   :  { %5702 = vmatprep.mubr.msk.bf16.mxu0 %vm6138_vm2, %v6137_v2 }
0x11bd   :  { %v5382_v16 = vpop.f32.mrf.mxu0 }
0x11bf   :  { %v5383_v20 = vpop.f32.mrf.mxu0 }
0x11c0   :  { %v5384_v21 = vadd.f32 %v5383_v20, %v5382_v16 }
0x11c1   :  { %v5385_v22 = vpop.f32.mrf.mxu0 }
0x11c2   :  { %v2435_v23 = vadd.f32 %v5384_v21, %v5096_v17 }
0x11c3   :  { %v5386_v26 = vpop.f32.mrf.mxu0 }
0x11c4   :  { %v5387_v31 = vadd.f32 %v5386_v26, %v5385_v22  ;;  %v2441_v32 = vadd.f32 %v2435_v23, %v6819_v5  ;;  %v6966_v22 = vld [vmem:[%s7576_s1] ss:$0 sm:$0xff] }
0x11c6   :  { %v2438_v33 = vadd.f32 %v5387_v31, %v5096_v17  ;;  %v2443_v28 = vsel %vm123_vm1, %v2441_v32, 0.0 }
0x11c7   :  { %2444 = vadd.xlane.f32.xlu1 %v2443_v28 }
0x11c8   :  { %v2442_v49 = vadd.f32 %v2438_v33, %v6821_v8  ;;  %v5960_v8 = vld [vmem:[%s7607_s29 + $0x74] ss:$8 sps:$4 sm:$0xff]   ;;  %s7612_s29 = smov 96  }
0x11c9   :  { %2561 = vmatprep.subr.bf16.mxu1 %v5960_v8  ;;  %v5135_v8 = vld [vmem:[%s7577_s3 + $0x80] sm:$0xff] }
0x11ca   :  { %v2446_v36 = vsel %vm123_vm1, %v2442_v49, 0.0  ;;  %2562 = vmatpush1.bf16.msra.mxu1 %v5958_v9  ;;  %v5136_v9 = vld [vmem:[%s7577_s3 + $0x88] sm:$0xff] }
0x11cb   :  { %2447 = vadd.xlane.f32.xlu0 %v2446_v36  ;;  %2563 = vmatprep.subr.bf16.mxu1 %v5963_v45  ;;  %v2606_v45 = vpack.c.bf16 %v5136_v9, %v5135_v8 }
0x11ce   :  { %2564 = vmatpush1.bf16.msra.mxu1 %v5961_v46 }
0x11cf   :  { %2565 = vmatprep.subr.bf16.mxu1 %v5966_v34 }
0x11d2   :  { %2566 = vmatpush1.bf16.msra.mxu1 %v5964_v47 }
0x11d3   :  { %2567 = vmatprep.subr.bf16.mxu1 %v5969_v7 }
0x11d6   :  { %2568 = vmatpush1.bf16.msra.mxu1 %v5967_v62 }
0x11d7   :  { %5688 = vmatprep.subr.bf16.mxu1 %v6137_v2 }
0x1250   :  { %v2445_v37 = vpop.xlane.xlu1 %2444 }
0x1251   :  { %v2449_v38 = vmul.f32 0.015625, %v2445_v37 }
0x1253   :  { %v2451_v39 = vsub.f32 %v2441_v32, %v2449_v38 }
0x1254   :  { %v2448_v40 = vpop.xlane.xlu0 %2447 }
0x1255   :  { %v2450_v41 = vmul.f32 0.015625, %v2448_v40  ;;  %v2453_v42 = vmul.f32 %v2451_v39, %v2451_v39 }
0x1257   :  { %v2452_v43 = vsub.f32 %v2442_v49, %v2450_v41  ;;  %v2455_v6 = vsel %vm123_vm1, %v2453_v42, 0.0 }
0x1258   :  { %2456 = vadd.xlane.f32.xlu1 %v2455_v6 }
0x1259   :  { %v2454_v5 = vmul.f32 %v2452_v43, %v2452_v43 }
0x125b   :  { %v2458_v44 = vsel %vm123_vm1, %v2454_v5, 0.0 }
0x125c   :  { %2459 = vadd.xlane.f32.xlu0 %v2458_v44 }
0x1272   :  { %2708 = vrot.lane.b32.xlu0 %v6966_v22, %s6140_s19 }
0x12e1   :  { %v2457_v27 = vpop.xlane.xlu1 %2456 }
0x12e2   :  { %v2461_v0 = vmul.f32 0.015625, %v2457_v27 }
0x12e4   :  { %v2463_v13 = vadd.f32 1e-12, %v2461_v0 }
0x12e5   :  { %v2460_v51 = vpop.xlane.xlu0 %2459 }
0x12e6   :  { %6066 = vrsqrt.f32 %v2463_v13  ;;  %v2462_v18 = vmul.f32 0.015625, %v2460_v51  ;;  %v5142_v13 = vld [vmem:[%s7608_s30 + $0x90] sm:$0xff]  ;;  %v5143_v51 = vld [vmem:[%s7608_s30 + $0x98] sm:$0xff] }
0x12e8   :  { %v2464_v57 = vadd.f32 1e-12, %v2462_v18  ;;  %v2829_v18 = vpack.c.bf16 %v5143_v51, %v5142_v13 }
0x12e9   :  { %v6982_v40 = vpop.permute.xlu0 %2708 }
0x12ea   :  { %6068 = vrsqrt.f32 %v2464_v57  ;;  %v2840_v54 = vsel %vm179_vm0, %v2829_v18, 0 }
0x12f3   :  { %v6067_v59 = vpop.eup %6066 }
0x12f4   :  { %v2467_v55 = vmul.f32 %v6067_v59, %v2451_v39 }
0x12f6   :  { %v2476_v60 = vmul.f32 %v5113_v53, %v2467_v55 }
0x12f7   :  { %v6069_v56 = vpop.eup %6068 }
0x12f8   :  { %v2468_v35 = vmul.f32 %v6069_v56, %v2452_v43  ;;  %v6929_v48 = vadd.f32 %v5114_v30, %v2476_v60 }
0x12fa   :  { %v2477_v10 = vmul.f32 %v5113_v53, %v2468_v35 }
0x12fc   :  { %v6931_v24 = vadd.f32 %v5114_v30, %v2477_v10 }
0x12fe   :  { %v2487_v4 = vpack.c.bf16 %v6931_v24, %v6929_v48 }
0x1300   :  { %5132 = vmatmul.mubr.msk.bf16.vlgmr.msra.gmra.mxu1 %vm123_vm1, %v2487_v4 }
0x1301   :  { %5689 = vmatpush3.bf16.xpose.msra.mxu1 %v2611_v61  ;;  %5690 = vmatprep.mubr.msk.bf16.mxu1 %vm6138_vm2, %v6137_v2 }
0x1302   :  { %5694 = vmatprep.subr.bf16.mxu1 %v6137_v2 }
0x13c0   :  { %v2587_v52 = vpop.f32.mrf.mxu1 }
0x13c1   :  { %v2588_v14 = vadd.f32 %v2587_v52, %v2503_v11 }
0x13c2   :  { %v2589_v3 = vpop.f32.mrf.mxu1 }
0x13c3   :  { %v6947_v50 = vpack.c.bf16 %v2588_v14, %v2588_v14  ;;  %v2590_v15 = vadd.f32 %v2589_v3, %v6945_v12 }
0x13c4   :  { %v2591_v16 = vpop.f32.mrf.mxu1 }
0x13c5   :  { %v6950_v17 = vpack.c.bf16 %v2590_v15, %v2590_v15  ;;  %v6952_v20 = vadd.f32 %v2591_v16, %v2503_v11  ;;  %2662 = vrot.lane.b32.xlu1 %v6947_v50, %s6139_s27  ;;  %5691 = vmatmul.mubr.msk.bf16.vlgmr.msra.gmra.mxu1 %vm179_vm0, %v6947_v50 }
0x13c6   :  { %5696 = vmatprep.mubr.msk.bf16.mxu1 %vm6138_vm2, %v6137_v2  ;;  %v6976_v31 = vpop.f32.mrf.mxu1 }
0x13c7   :  { %v2738_v21 = vsel %vm311_vm3, %v6950_v17, 0 }
0x13c8   :  { %5701 = vmatpush3.bf16.msra.mxu0 %v2738_v21 }
0x13c9   :  { %5712 = vmatprep.subr.bf16.mxu0 %v6137_v2 }
0x1437   :  { %v2663_v23 = vpop.permute.xlu1 %2662 }
0x1438   :  { %v2665_v26 = vsel %vm179_vm0, %v2663_v23, 0 }
0x1439   :  { %5695 = vmatpush3.bf16.xpose.msra.mxu1 %v2665_v26 }
0x143a   :  { %5706 = vmatprep.subr.bf16.mxu1 %v6137_v2 }
0x1440   :  { %5697 = vmatmul.mubr.msk.bf16.vlgmr.msra.gmra.mxu1 %vm179_vm0, %v6947_v50 }
0x1441   :  { %5708 = vmatprep.mubr.msk.bf16.mxu1 %vm6138_vm2, %v6137_v2  ;;  %5707 = vmatpush3.bf16.msra.mxu1 %v2606_v45 }
0x1442   :  { %5718 = vmatprep.subr.bf16.mxu1 %v6137_v2 }
0x1485   :  { %v2647_v32 = vpop.f32.mrf.mxu1 }
0x1486   :  { %v2653_v33 = vmul.f32 0.25, %v2647_v32 }
0x1487   :  { %v5692_v28 = vpop.f32.mrf.mxu1 }
0x1488   :  { %v2660_v49 = vadd.f32 %v6966_v22, %v2653_v33 }
0x1489   :  { %v2650_v36 = vpop.f32.mrf.mxu1 }
0x148a   :  { %v2712_v37 = vsel %vm179_vm0, %v2660_v49, -inf }
0x148b   :  { %2713 = vmax.xlane.f32.xlu1 %v2712_v37  ;;  %v5693_v38 = vpop.f32.mrf.mxu1 }
0x149c   :  { %2884 = vrot.lane.b32.xlu1 %v6947_v50, %s7611_s23 }
0x1500   :  { %v2701_v39 = vpop.f32.mrf.mxu1 }
0x1501   :  { %v2707_v41 = vmul.f32 0.25, %v2701_v39  ;;  %v5144_v39 = vld [vmem:[%s7577_s3 + $0x90] sm:$0xff] }
0x1502   :  { %v5698_v42 = vpop.f32.mrf.mxu1 }
0x1503   :  { %v2711_v43 = vadd.f32 %v6982_v40, %v2707_v41  ;;  %v5145_v41 = vld [vmem:[%s7577_s3 + $0x98] sm:$0xff] }
0x1504   :  { %v2704_v6 = vpop.f32.mrf.mxu1  ;;  %v2833_v42 = vpack.c.bf16 %v5145_v41, %v5144_v39 }
0x1505   :  { %v2715_v5 = vsel %vm288_vm4, %v2711_v43, -inf }
0x1506   :  { %2716 = vmax.xlane.f32.xlu0 %v2715_v5  ;;  %v5699_v44 = vpop.f32.mrf.mxu1 }
0x1514   :  { %v2714_v46 = vpop.xlane.xlu1 %2713 }
0x1518   :  { %v2885_v59 = vpop.permute.xlu1 %2884 }
0x1519   :  { %v2887_v58 = vsel %vm179_vm0, %v2885_v59, 0 }
0x151c   :  { %2834 = vrot.lane.b32.xlu0 %v6947_v50, %s6140_s19 }
0x158f   :  { %v2717_v34 = vpop.xlane.xlu0 %2716 }
0x1590   :  { %v2718_v47 = vmax.f32 %v2714_v46, %v2717_v34 }
0x1592   :  { %v2719_v7 = vsub.f32 %v2660_v49, %v2718_v47  ;;  %v2722_v62 = vsub.f32 %v2711_v43, %v2718_v47  ;;  %v5150_v47 = vld [vmem:[%s7608_s30 + $0xa0] sm:$0xff] }
0x1593   :  { %v2835_v35 = vpop.permute.xlu0 %2834 }
0x1594   :  { %v2720_v27 = vmul.f32 1.442695, %v2719_v7  ;;  %v2723_v0 = vmul.f32 1.442695, %v2722_v62  ;;  %v5151_v7 = vld [vmem:[%s7608_s30 + $0xa8] sm:$0xff] }
0x1595   :  { %v3055_v62 = vpack.c.bf16 %v5151_v7, %v5150_v47 }
0x1596   :  { %6070 = vpow2.f32 %v2720_v27 }
0x1597   :  { %6072 = vpow2.f32 %v2723_v0  ;;  %v3066_v59 = vsel %vm179_vm0, %v3055_v62, 0 }
0x15a3   :  { %v7001_v57 = vpop.eup %6070 }
0x15a4   :  { %v7003_v55 = vpop.eup %6072  ;;  %v2732_v53 = vpack.c.bf16 %v7001_v57, %v7001_v57 }
0x15a5   :  { %v2733_v56 = vpack.c.bf16 %v7003_v55, %v7003_v55 }
0x15a6   :  { %5709 = vmatmul.mubr.msk.bf16.vlgmr.msra.gmra.mxu1 %vm179_vm0, %v2732_v53 }
0x15a7   :  { %5703 = vmatmul.mubr.msk.bf16.vlgmr.msra.gmra.mxu0 %vm288_vm4, %v2733_v56  ;;  %5719 = vmatpush3.bf16.xpose.msra.mxu1 %v2887_v58 }
0x15a8   :  { %5713 = vmatpush3.bf16.xpose.msra.mxu0 %v2840_v54  ;;  %5714 = vmatprep.mubr.msk.bf16.mxu0 %vm6138_vm2, %v6137_v2 }
0x15a9   :  { %5720 = vmatprep.mubr.msk.bf16.mxu1 %vm6138_vm2, %v6137_v2  ;;  %5724 = vmatprep.subr.bf16.mxu0 %v6137_v2 }
0x15aa   :  { %5730 = vmatprep.subr.bf16.mxu1 %v6137_v2 }
0x15ae   :  { %5721 = vmatmul.mubr.msk.bf16.vlgmr.msra.gmra.mxu1 %vm179_vm0, %v2835_v35 }
0x15af   :  { %5715 = vmatmul.mubr.msk.bf16.vlgmr.msra.gmra.mxu0 %vm179_vm0, %v2835_v35  ;;  %5732 = vmatprep.mubr.msk.bf16.mxu1 %vm6138_vm2, %v6137_v2 }
0x15b0   :  { %5726 = vmatprep.mubr.msk.bf16.mxu0 %vm6138_vm2, %v6137_v2  ;;  %5731 = vmatpush3.bf16.msra.mxu1 %v2833_v42 }
0x15b1   :  { %5742 = vmatprep.subr.bf16.mxu1 %v6137_v2 }
0x1666   :  { %v2817_v60 = vpop.f32.mrf.mxu1 }
0x1667   :  { %v2774_v30 = vpop.f32.mrf.mxu0 }
0x1668   :  { %v7025_v10 = vadd.f32 %v2817_v60, %v2774_v30  ;;  %v5710_v63 = vpop.f32.mrf.mxu1 }
0x1669   :  { %v5704_v4 = vpop.f32.mrf.mxu0 }
0x166a   :  { %v2820_v61 = vpop.f32.mrf.mxu1 }
0x166b   :  { %v2777_v25 = vpop.f32.mrf.mxu0 }
0x166c   :  { %v5711_v11 = vpop.f32.mrf.mxu1 }
0x166d   :  { %v5705_v52 = vpop.f32.mrf.mxu0 }
0x166e   :  { %v2923_v14 = vpop.f32.mrf.mxu1 }
0x166f   :  { %v2876_v3 = vpop.f32.mrf.mxu0  ;;  %v2929_v15 = vmul.f32 0.25, %v2923_v14 }
0x1670   :  { %v2882_v16 = vmul.f32 0.25, %v2876_v3  ;;  %v5722_v21 = vpop.f32.mrf.mxu1 }
0x1671   :  { %v5716_v23 = vpop.f32.mrf.mxu0  ;;  %v2930_v26 = vadd.f32 %v2929_v15, %v6982_v40 }
0x1672   :  { %v2926_v32 = vpop.f32.mrf.mxu1  ;;  %v2883_v33 = vadd.f32 %v6966_v22, %v2882_v16 }
0x1673   :  { %v2879_v28 = vpop.f32.mrf.mxu0  ;;  %v2934_v49 = vsel %vm288_vm4, %v2930_v26, -inf }
0x1674   :  { %v2931_v36 = vsel %vm179_vm0, %v2883_v33, -inf  ;;  %2935 = vmax.xlane.f32.xlu0 %v2934_v49  ;;  %v5723_v37 = vpop.f32.mrf.mxu1 }
0x1675   :  { %2932 = vmax.xlane.f32.xlu1 %v2931_v36  ;;  %v5717_v38 = vpop.f32.mrf.mxu0  ;;  %v5152_v37 = vld [vmem:[%s7577_s3 + $0xa0] sm:$0xff] }
0x1676   :  { %v5153_v38 = vld [vmem:[%s7577_s3 + $0xa8] sm:$0xff] }
0x1677   :  { %v3059_v39 = vpack.c.bf16 %v5153_v38, %v5152_v37  ;;  %v7135_v37 = vpack.c.bf16 %v6952_v20, %v6952_v20  ;;  %v7151_v20 = vld [vmem:[%s7576_s1 + $0x1] ss:$0 sm:$0xff] }
0x1686   :  { %2954 = vrot.lane.b32.xlu1 %v6950_v17, %s6140_s19 }
0x168a   :  { %3060 = vrot.lane.b32.xlu1 %v6947_v50, %s7612_s29  ;;  %3110 = vrot.lane.b32.xlu0 %v6947_v50, %s7613_s25 }
0x16fd   :  { %v2936_v43 = vpop.xlane.xlu0 %2935 }
0x16fe   :  { %v2933_v6 = vpop.xlane.xlu1 %2932 }
0x16ff   :  { %v2937_v5 = vmax.f32 %v2933_v6, %v2936_v43 }
0x1701   :  { %v2938_v44 = vsub.f32 %v2883_v33, %v2937_v5  ;;  %v2941_v8 = vsub.f32 %v2930_v26, %v2937_v5  ;;  %v3111_v0 = vpop.permute.xlu0 %3110 }
0x1702   :  { %v2955_v9 = vpop.permute.xlu1 %2954  ;;  %v3113_v53 = vsel %vm179_vm0, %v3111_v0, 0 }
0x1703   :  { %v2939_v45 = vmul.f32 1.442695, %v2938_v44  ;;  %v2942_v46 = vmul.f32 1.442695, %v2941_v8  ;;  %v2960_v34 = vsel %vm311_vm3, %v2955_v9, 0 }
0x1704   :  { %5725 = vmatpush3.bf16.msra.mxu0 %v2960_v34 }
0x1705   :  { %6074 = vpow2.f32 %v2939_v45  ;;  %5736 = vmatprep.subr.bf16.mxu0 %v6137_v2 }
0x1706   :  { %6076 = vpow2.f32 %v2942_v46  ;;  %v3061_v56 = vpop.permute.xlu1 %3060  ;;  %v5159_v46 = vld [vmem:[%s7608_s30 + $0xb8] sm:$0xff] }
0x1712   :  { %v7052_v27 = vpop.eup %6074 }
0x1713   :  { %v7054_v13 = vpop.eup %6076  ;;  %v2951_v51 = vpack.c.bf16 %v7052_v27, %v7052_v27 }
0x1714   :  { %v2952_v18 = vpack.c.bf16 %v7054_v13, %v7054_v13 }
0x1715   :  { %5733 = vmatmul.mubr.msk.bf16.vlgmr.msra.gmra.mxu1 %vm179_vm0, %v2951_v51 }
0x1716   :  { %5727 = vmatmul.mubr.msk.bf16.vlgmr.msra.gmra.mxu0 %vm288_vm4, %v2952_v18  ;;  %5743 = vmatpush3.bf16.xpose.msra.mxu1 %v3113_v53 }
0x1717   :  { %5737 = vmatpush3.bf16.xpose.msra.mxu0 %v3066_v59  ;;  %5738 = vmatprep.mubr.msk.bf16.mxu0 %vm6138_vm2, %v6137_v2 }
0x1718   :  { %5744 = vmatprep.mubr.msk.bf16.mxu1 %vm6138_vm2, %v6137_v2  ;;  %5748 = vmatprep.subr.bf16.mxu0 %v6137_v2 }
0x1719   :  { %5754 = vmatprep.subr.bf16.mxu1 %v6137_v2 }
0x171d   :  { %5745 = vmatmul.mubr.msk.bf16.vlgmr.msra.gmra.mxu1 %vm179_vm0, %v3061_v56 }
0x171e   :  { %5739 = vmatmul.mubr.msk.bf16.vlgmr.msra.gmra.mxu0 %vm179_vm0, %v3061_v56  ;;  %5756 = vmatprep.mubr.msk.bf16.mxu1 %vm6138_vm2, %v6137_v2 }
0x171f   :  { %5750 = vmatprep.mubr.msk.bf16.mxu0 %vm6138_vm2, %v6137_v2  ;;  %5755 = vmatpush3.bf16.msra.mxu1 %v3059_v39 }
0x1720   :  { %5766 = vmatprep.subr.bf16.mxu1 %v6137_v2 }
0x17d5   :  { %v3039_v54 = vpop.f32.mrf.mxu1 }
0x17d6   :  { %v2996_v58 = vpop.f32.mrf.mxu0 }
0x17d7   :  { %v7076_v35 = vadd.f32 %v3039_v54, %v2996_v58  ;;  %v5734_v60 = vpop.f32.mrf.mxu1 }
0x17d8   :  { %v5728_v30 = vpop.f32.mrf.mxu0 }
0x17d9   :  { %v3042_v63 = vpop.f32.mrf.mxu1 }
0x17da   :  { %v2999_v4 = vpop.f32.mrf.mxu0 }
0x17db   :  { %v5735_v61 = vpop.f32.mrf.mxu1 }
0x17dc   :  { %v5729_v25 = vpop.f32.mrf.mxu0 }
0x17dd   :  { %v3149_v11 = vpop.f32.mrf.mxu1 }
0x17de   :  { %v3102_v52 = vpop.f32.mrf.mxu0  ;;  %v3155_v14 = vmul.f32 0.25, %v3149_v11 }
0x17df   :  { %v3108_v3 = vmul.f32 0.25, %v3102_v52  ;;  %v5746_v15 = vpop.f32.mrf.mxu1 }
0x17e0   :  { %v5740_v16 = vpop.f32.mrf.mxu0  ;;  %v3156_v21 = vadd.f32 %v3155_v14, %v6982_v40 }
0x17e1   :  { %v3152_v23 = vpop.f32.mrf.mxu1  ;;  %v3109_v26 = vadd.f32 %v6966_v22, %v3108_v3 }
0x17e2   :  { %v3105_v32 = vpop.f32.mrf.mxu0  ;;  %v3160_v33 = vsel %vm288_vm4, %v3156_v21, -inf }
0x17e3   :  { %v3157_v28 = vsel %vm179_vm0, %v3109_v26, -inf  ;;  %3161 = vmax.xlane.f32.xlu0 %v3160_v33  ;;  %v5747_v49 = vpop.f32.mrf.mxu1 }
0x17e4   :  { %3158 = vmax.xlane.f32.xlu1 %v3157_v28  ;;  %v5741_v36 = vpop.f32.mrf.mxu0 }
0x17f5   :  { %3335 = vrot.lane.b32.xlu1 %v6947_v50, %s7610_s21 }
0x17f9   :  { %3285 = vrot.lane.b32.xlu1 %v6947_v50, %s7614_s24  ;;  %3179 = vrot.lane.b32.xlu0 %v6950_v17, %s7612_s29  ;;  %v5158_v50 = vld [vmem:[%s7608_s30 + $0xb0] sm:$0xff] }
0x17fa   :  { %v3280_v34 = vpack.c.bf16 %v5159_v46, %v5158_v50 }
0x17fc   :  { %v3291_v18 = vsel %vm179_vm0, %v3280_v34, 0 }
0x186c   :  { %v3162_v41 = vpop.xlane.xlu0 %3161 }
0x186d   :  { %v3159_v42 = vpop.xlane.xlu1 %3158 }
0x186e   :  { %v3163_v43 = vmax.f32 %v3159_v42, %v3162_v41 }
0x1870   :  { %v3164_v6 = vsub.f32 %v3109_v26, %v3163_v43  ;;  %v3167_v5 = vsub.f32 %v3156_v21, %v3163_v43  ;;  %v3180_v44 = vpop.permute.xlu0 %3179 }
0x1871   :  { %v3185_v8 = vsel %vm311_vm3, %v3180_v44, 0  ;;  %v3336_v7 = vpop.permute.xlu1 %3335 }
0x1872   :  { %v3165_v9 = vmul.f32 1.442695, %v3164_v6  ;;  %v3168_v45 = vmul.f32 1.442695, %v3167_v5  ;;  %5749 = vmatpush3.bf16.msra.mxu0 %v3185_v8  ;;  %v3338_v59 = vsel %vm179_vm0, %v3336_v7, 0 }
0x1873   :  { %5760 = vmatprep.subr.bf16.mxu0 %v6137_v2 }
0x1874   :  { %6078 = vpow2.f32 %v3165_v9 }
0x1875   :  { %6080 = vpow2.f32 %v3168_v45  ;;  %v3286_v53 = vpop.permute.xlu1 %3285  ;;  %v5168_v45 = vld [vmem:[%s7608_s30 + $0xc8] sm:$0xff] }
0x1881   :  { %v7103_v47 = vpop.eup %6078 }
0x1882   :  { %v7105_v62 = vpop.eup %6080  ;;  %v3177_v0 = vpack.c.bf16 %v7103_v47, %v7103_v47 }
0x1883   :  { %v3178_v51 = vpack.c.bf16 %v7105_v62, %v7105_v62 }
0x1884   :  { %5757 = vmatmul.mubr.msk.bf16.vlgmr.msra.gmra.mxu1 %vm179_vm0, %v3177_v0 }
0x1885   :  { %5751 = vmatmul.mubr.msk.bf16.vlgmr.msra.gmra.mxu0 %vm288_vm4, %v3178_v51  ;;  %5767 = vmatpush3.bf16.xpose.msra.mxu1 %v3338_v59 }
0x1886   :  { %5761 = vmatpush3.bf16.xpose.msra.mxu0 %v3291_v18  ;;  %5762 = vmatprep.mubr.msk.bf16.mxu0 %vm6138_vm2, %v6137_v2 }
0x1887   :  { %5768 = vmatprep.mubr.msk.bf16.mxu1 %vm6138_vm2, %v6137_v2  ;;  %5772 = vmatprep.subr.bf16.mxu0 %v6137_v2 }
0x1888   :  { %5778 = vmatprep.subr.bf16.mxu1 %v6137_v2 }
0x188c   :  { %5769 = vmatmul.mubr.msk.bf16.vlgmr.msra.gmra.mxu1 %vm179_vm0, %v3286_v53 }
0x188d   :  { %5763 = vmatmul.mubr.msk.bf16.vlgmr.msra.gmra.mxu0 %vm179_vm0, %v3286_v53  ;;  %5780 = vmatprep.mubr.msk.bf16.mxu1 %vm6138_vm2, %v6137_v2  ;;  %v2594_v53 = vadd.f32 %v6976_v31, %v6945_v12 }
0x188e   :  { %5774 = vmatprep.mubr.msk.bf16.mxu0 %vm6138_vm2, %v6137_v2 }
0x1944   :  { %v3264_v56 = vpop.f32.mrf.mxu1 }
0x1945   :  { %v3221_v54 = vpop.f32.mrf.mxu0 }
0x1946   :  { %v7127_v58 = vadd.f32 %v3264_v56, %v3221_v54  ;;  %v5758_v60 = vpop.f32.mrf.mxu1  ;;  %v7183_v56 = vpack.c.bf16 %v2594_v53, %v2594_v53 }
0x1947   :  { %v5752_v30 = vpop.f32.mrf.mxu0 }
0x1948   :  { %v3267_v63 = vpop.f32.mrf.mxu1  ;;  %v3644_v12 = vsel %vm311_vm3, %v7183_v56, 0 }
0x1949   :  { %v3224_v4 = vpop.f32.mrf.mxu0 }
0x194a   :  { %v5759_v61 = vpop.f32.mrf.mxu1 }
0x194b   :  { %v5753_v25 = vpop.f32.mrf.mxu0 }
0x194c   :  { %v3374_v11 = vpop.f32.mrf.mxu1 }
0x194d   :  { %v3327_v52 = vpop.f32.mrf.mxu0  ;;  %v3380_v14 = vmul.f32 0.25, %v3374_v11 }
0x194e   :  { %v3333_v3 = vmul.f32 0.25, %v3327_v52  ;;  %v5770_v15 = vpop.f32.mrf.mxu1 }
0x194f   :  { %v5764_v16 = vpop.f32.mrf.mxu0  ;;  %v3381_v21 = vadd.f32 %v3380_v14, %v6982_v40  ;;  %v5161_v40 = vld [vmem:[%s7577_s3 + $0xb8] sm:$0xff] }
0x1950   :  { %v3377_v23 = vpop.f32.mrf.mxu1  ;;  %v3334_v26 = vadd.f32 %v6966_v22, %v3333_v3  ;;  %v5160_v22 = vld [vmem:[%s7577_s3 + $0xb0] sm:$0xff] }
0x1951   :  { %v3330_v32 = vpop.f32.mrf.mxu0  ;;  %v3385_v33 = vsel %vm288_vm4, %v3381_v21, -inf  ;;  %v3284_v38 = vpack.c.bf16 %v5161_v40, %v5160_v22 }
0x1952   :  { %v3382_v28 = vsel %vm179_vm0, %v3334_v26, -inf  ;;  %3386 = vmax.xlane.f32.xlu1 %v3385_v33  ;;  %v5771_v49 = vpop.f32.mrf.mxu1 }
0x1953   :  { %3383 = vmax.xlane.f32.xlu0 %v3382_v28  ;;  %v5765_v36 = vpop.f32.mrf.mxu0  ;;  %5779 = vmatpush3.bf16.msra.mxu1 %v3284_v38  ;;  %v5169_v38 = vld [vmem:[%s7577_s3 + $0xc0] sm:$0xff] }
0x1954   :  { %5790 = vmatprep.subr.bf16.mxu1 %v6137_v2 }
0x1963   :  { %3568 = vrot.lane.b32.xlu1 %v7135_v37, %s6139_s27 }
0x1969   :  { %3404 = vrot.lane.b32.xlu0 %v6950_v17, %s7614_s24  ;;  %v5167_v17 = vld [vmem:[%s7608_s30 + $0xc0] sm:$0xff] }
0x196a   :  { %v3508_v50 = vpack.c.bf16 %v5168_v45, %v5167_v17  ;;  %v5176_v17 = vld [vmem:[%s7608_s30 + $0xd0] sm:$0xff]  ;;  %v5177_v45 = vld [vmem:[%s7608_s30 + $0xd8] sm:$0xff] }
0x196c   :  { %v3517_v18 = vsel %vm179_vm0, %v3508_v50, 0  ;;  %v3735_v50 = vpack.c.bf16 %v5177_v45, %v5176_v17 }
0x196d   :  { %3614 = vrot.lane.b32.xlu0 %v7151_v20, %s6140_s19 }
0x196e   :  { %v3746_v53 = vsel %vm179_vm0, %v3735_v50, 0 }
0x19db   :  { %v3387_v39 = vpop.xlane.xlu1 %3386 }
0x19dc   :  { %v3384_v41 = vpop.xlane.xlu0 %3383 }
0x19dd   :  { %v3388_v42 = vmax.f32 %v3384_v41, %v3387_v39  ;;  %v5170_v39 = vld [vmem:[%s7577_s3 + $0xc8] sm:$0xff] }
0x19de   :  { %v3512_v41 = vpack.c.bf16 %v5170_v39, %v5169_v38 }
0x19df   :  { %v3389_v43 = vsub.f32 %v3334_v26, %v3388_v42  ;;  %v3392_v6 = vsub.f32 %v3381_v21, %v3388_v42  ;;  %v3569_v34 = vpop.permute.xlu1 %3568 }
0x19e0   :  { %v3405_v5 = vpop.permute.xlu0 %3404  ;;  %v3571_v59 = vsel %vm179_vm0, %v3569_v34, 0 }
0x19e1   :  { %v3390_v44 = vmul.f32 1.442695, %v3389_v43  ;;  %v3393_v8 = vmul.f32 1.442695, %v3392_v6  ;;  %v3410_v9 = vsel %vm311_vm3, %v3405_v5, 0 }
0x19e2   :  { %5773 = vmatpush3.bf16.msra.mxu0 %v3410_v9 }
0x19e3   :  { %6082 = vpow2.f32 %v3390_v44  ;;  %5784 = vmatprep.subr.bf16.mxu0 %v6137_v2 }
0x19e4   :  { %6084 = vpow2.f32 %v3393_v8  ;;  %v7198_v14 = vpop.permute.xlu0 %3614 }
0x19f0   :  { %v7163_v46 = vpop.eup %6082 }
0x19f1   :  { %v7165_v7 = vpop.eup %6084  ;;  %v3402_v0 = vpack.c.bf16 %v7163_v46, %v7163_v46 }
0x19f2   :  { %v3403_v51 = vpack.c.bf16 %v7165_v7, %v7165_v7 }
0x19f3   :  { %5781 = vmatmul.mubr.msk.bf16.vlgmr.msra.gmra.mxu1 %vm179_vm0, %v3402_v0 }
0x19f4   :  { %5775 = vmatmul.mubr.msk.bf16.vlgmr.msra.gmra.mxu0 %vm288_vm4, %v3403_v51  ;;  %5791 = vmatpush3.bf16.xpose.msra.mxu1 %v3571_v59 }
0x19f5   :  { %5785 = vmatpush3.bf16.xpose.msra.mxu0 %v3517_v18  ;;  %5786 = vmatprep.mubr.msk.bf16.mxu0 %vm6138_vm2, %v6137_v2 }
0x19f6   :  { %5792 = vmatprep.mubr.msk.bf16.mxu1 %vm6138_vm2, %v6137_v2  ;;  %5796 = vmatprep.subr.bf16.mxu0 %v6137_v2 }
0x19f7   :  { %5802 = vmatprep.subr.bf16.mxu1 %v6137_v2 }
0x19fb   :  { %5793 = vmatmul.mubr.msk.bf16.vlgmr.msra.gmra.mxu1 %vm179_vm0, %v7135_v37 }
0x19fc   :  { %5787 = vmatmul.mubr.msk.bf16.vlgmr.msra.gmra.mxu0 %vm179_vm0, %v7135_v37  ;;  %5804 = vmatprep.mubr.msk.bf16.mxu1 %vm6138_vm2, %v6137_v2 }
0x19fd   :  { %5797 = vmatpush3.bf16.msra.mxu0 %v3644_v12  ;;  %5798 = vmatprep.mubr.msk.bf16.mxu0 %vm6138_vm2, %v6137_v2 }
0x19fe   :  { %5808 = vmatprep.subr.bf16.mxu0 %v6137_v2  ;;  %5803 = vmatpush3.bf16.msra.mxu1 %v3512_v41  ;;  %v5178_v41 = vld [vmem:[%s7577_s3 + $0xd0] sm:$0xff] }
0x19ff   :  { %5814 = vmatprep.subr.bf16.mxu1 %v6137_v2 }
0x1ab3   :  { %v3489_v31 = vpop.f32.mrf.mxu1 }
0x1ab4   :  { %v3446_v54 = vpop.f32.mrf.mxu0 }
0x1ab5   :  { %v7196_v60 = vadd.f32 %v3489_v31, %v3446_v54  ;;  %v5782_v30 = vpop.f32.mrf.mxu1 }
0x1ab6   :  { %v5776_v63 = vpop.f32.mrf.mxu0 }
0x1ab7   :  { %v3492_v4 = vpop.f32.mrf.mxu1 }
0x1ab8   :  { %v3449_v61 = vpop.f32.mrf.mxu0 }
0x1ab9   :  { %v5783_v25 = vpop.f32.mrf.mxu1 }
0x1aba   :  { %v5777_v11 = vpop.f32.mrf.mxu0 }
0x1abb   :  { %v3607_v52 = vpop.f32.mrf.mxu1 }
0x1abc   :  { %v3553_v3 = vpop.f32.mrf.mxu0  ;;  %v3613_v15 = vmul.f32 0.25, %v3607_v52 }
0x1abd   :  { %v3559_v16 = vmul.f32 0.25, %v3553_v3  ;;  %v5794_v21 = vpop.f32.mrf.mxu1 }
0x1abe   :  { %v5788_v23 = vpop.f32.mrf.mxu0  ;;  %v3617_v26 = vadd.f32 %v7198_v14, %v3613_v15 }
0x1abf   :  { %v3610_v32 = vpop.f32.mrf.mxu1  ;;  %v3566_v33 = vadd.f32 %v7151_v20, %v3559_v16 }
0x1ac0   :  { %v3556_v28 = vpop.f32.mrf.mxu0  ;;  %v3621_v49 = vsel %vm288_vm4, %v3617_v26, -inf }
0x1ac1   :  { %v3618_v36 = vsel %vm179_vm0, %v3566_v33, -inf  ;;  %3622 = vmax.xlane.f32.xlu0 %v3621_v49  ;;  %v5795_v22 = vpop.f32.mrf.mxu1 }
0x1ac2   :  { %3619 = vmax.xlane.f32.xlu1 %v3618_v36  ;;  %v5789_v40 = vpop.f32.mrf.mxu0 }
0x1ad3   :  { %3740 = vrot.lane.b32.xlu1 %v7135_v37, %s6140_s19 }
0x1ad7   :  { %3790 = vrot.lane.b32.xlu0 %v7135_v37, %s7611_s23 }
0x1b4a   :  { %v3623_v42 = vpop.xlane.xlu0 %3622 }
0x1b4b   :  { %v3620_v43 = vpop.xlane.xlu1 %3619 }
0x1b4c   :  { %v3624_v6 = vmax.f32 %v3620_v43, %v3623_v42  ;;  %v5179_v42 = vld [vmem:[%s7577_s3 + $0xd8] sm:$0xff] }
0x1b4d   :  { %v3739_v43 = vpack.c.bf16 %v5179_v42, %v5178_v41 }
0x1b4e   :  { %v3625_v5 = vsub.f32 %v3566_v33, %v3624_v6  ;;  %v3628_v44 = vsub.f32 %v3617_v26, %v3624_v6  ;;  %v3791_v0 = vpop.permute.xlu0 %3790 }
0x1b4f   :  { %v3793_v12 = vsel %vm179_vm0, %v3791_v0, 0  ;;  %v3741_v31 = vpop.permute.xlu1 %3740 }
0x1b50   :  { %v3626_v8 = vmul.f32 1.442695, %v3625_v5  ;;  %v3629_v9 = vmul.f32 1.442695, %v3628_v44 }
0x1b52   :  { %6086 = vpow2.f32 %v3626_v8 }
0x1b53   :  { %6088 = vpow2.f32 %v3629_v9 }
0x1b5f   :  { %v7221_v34 = vpop.eup %6086 }
0x1b60   :  { %v7223_v51 = vpop.eup %6088  ;;  %v3638_v18 = vpack.c.bf16 %v7221_v34, %v7221_v34 }
0x1b61   :  { %v3639_v59 = vpack.c.bf16 %v7223_v51, %v7223_v51 }
0x1b62   :  { %5805 = vmatmul.mubr.msk.bf16.vlgmr.msra.gmra.mxu1 %vm179_vm0, %v3638_v18  ;;  %v5184_v18 = vld [vmem:[%s7608_s30 + $0xe0] sm:$0xff] }
0x1b63   :  { %5799 = vmatmul.mubr.msk.bf16.vlgmr.msra.gmra.mxu0 %vm288_vm4, %v3639_v59  ;;  %5815 = vmatpush3.bf16.xpose.msra.mxu1 %v3793_v12  ;;  %v5185_v59 = vld [vmem:[%s7608_s30 + $0xe8] sm:$0xff] }
0x1b64   :  { %5809 = vmatpush3.bf16.xpose.msra.mxu0 %v3746_v53  ;;  %5810 = vmatprep.mubr.msk.bf16.mxu0 %vm6138_vm2, %v6137_v2  ;;  %v3961_v53 = vpack.c.bf16 %v5185_v59, %v5184_v18 }
0x1b65   :  { %5816 = vmatprep.mubr.msk.bf16.mxu1 %vm6138_vm2, %v6137_v2  ;;  %5820 = vmatprep.subr.bf16.mxu0 %v6137_v2 }
0x1b66   :  { %5826 = vmatprep.subr.bf16.mxu1 %v6137_v2 }
0x1b6a   :  { %5817 = vmatmul.mubr.msk.bf16.vlgmr.msra.gmra.mxu1 %vm179_vm0, %v3741_v31 }
0x1b6b   :  { %5811 = vmatmul.mubr.msk.bf16.vlgmr.msra.gmra.mxu0 %vm179_vm0, %v3741_v31  ;;  %5828 = vmatprep.mubr.msk.bf16.mxu1 %vm6138_vm2, %v6137_v2 }
0x1b6c   :  { %5822 = vmatprep.mubr.msk.bf16.mxu0 %vm6138_vm2, %v6137_v2  ;;  %5827 = vmatpush3.bf16.msra.mxu1 %v3739_v43 }
0x1b6d   :  { %5838 = vmatprep.subr.bf16.mxu1 %v6137_v2 }
0x1c22   :  { %v3723_v54 = vpop.f32.mrf.mxu1 }
0x1c23   :  { %v3680_v30 = vpop.f32.mrf.mxu0 }
0x1c24   :  { %v7245_v63 = vadd.f32 %v3723_v54, %v3680_v30  ;;  %v5806_v4 = vpop.f32.mrf.mxu1 }
0x1c25   :  { %v5800_v61 = vpop.f32.mrf.mxu0 }
0x1c26   :  { %v3726_v25 = vpop.f32.mrf.mxu1  ;;  %v3972_v61 = vsel %vm179_vm0, %v3961_v53, 0 }
0x1c27   :  { %v3683_v11 = vpop.f32.mrf.mxu0 }
0x1c28   :  { %v5807_v52 = vpop.f32.mrf.mxu1 }
0x1c29   :  { %v5801_v3 = vpop.f32.mrf.mxu0 }
0x1c2a   :  { %v3829_v15 = vpop.f32.mrf.mxu1 }
0x1c2b   :  { %v3782_v16 = vpop.f32.mrf.mxu0  ;;  %v3835_v21 = vmul.f32 0.25, %v3829_v15 }
0x1c2c   :  { %v3788_v23 = vmul.f32 0.25, %v3782_v16  ;;  %v5818_v26 = vpop.f32.mrf.mxu1 }
0x1c2d   :  { %v5812_v32 = vpop.f32.mrf.mxu0  ;;  %v3836_v33 = vadd.f32 %v3835_v21, %v7198_v14 }
0x1c2e   :  { %v3789_v28 = vadd.f32 %v7151_v20, %v3788_v23  ;;  %v3832_v49 = vpop.f32.mrf.mxu1 }
0x1c2f   :  { %v3785_v36 = vpop.f32.mrf.mxu0  ;;  %v3840_v22 = vsel %vm288_vm4, %v3836_v33, -inf }
0x1c30   :  { %v3837_v40 = vsel %vm179_vm0, %v3789_v28, -inf  ;;  %3841 = vmax.xlane.f32.xlu0 %v3840_v22  ;;  %v5819_v38 = vpop.f32.mrf.mxu1 }
0x1c31   :  { %3838 = vmax.xlane.f32.xlu1 %v3837_v40  ;;  %v5813_v39 = vpop.f32.mrf.mxu0 }
0x1c42   :  { %4016 = vrot.lane.b32.xlu1 %v7135_v37, %s7613_s25 }
0x1c46   :  { %3966 = vrot.lane.b32.xlu1 %v7135_v37, %s7612_s29  ;;  %3860 = vrot.lane.b32.xlu0 %v7183_v56, %s6140_s19 }
0x1cb9   :  { %v3842_v6 = vpop.xlane.xlu0 %3841 }
0x1cba   :  { %v3839_v5 = vpop.xlane.xlu1 %3838 }
0x1cbb   :  { %v3843_v44 = vmax.f32 %v3839_v5, %v3842_v6 }
0x1cbd   :  { %v3844_v8 = vsub.f32 %v3789_v28, %v3843_v44  ;;  %v3847_v9 = vsub.f32 %v3836_v33, %v3843_v44  ;;  %v3861_v17 = vpop.permute.xlu0 %3860 }
0x1cbe   :  { %v3866_v45 = vsel %vm311_vm3, %v3861_v17, 0  ;;  %v4017_v31 = vpop.permute.xlu1 %4016  ;;  %v5187_v17 = vld [vmem:[%s7577_s3 + $0xe8] sm:$0xff] }
0x1cbf   :  { %v3845_v50 = vmul.f32 1.442695, %v3844_v8  ;;  %v3848_v0 = vmul.f32 1.442695, %v3847_v9  ;;  %5821 = vmatpush3.bf16.msra.mxu0 %v3866_v45  ;;  %v4019_v25 = vsel %vm179_vm0, %v4017_v31, 0  ;;  %v5186_v9 = vld [vmem:[%s7577_s3 + $0xe0] sm:$0xff] }
0x1cc0   :  { %5832 = vmatprep.subr.bf16.mxu0 %v6137_v2  ;;  %v3965_v45 = vpack.c.bf16 %v5187_v17, %v5186_v9 }
0x1cc1   :  { %6090 = vpow2.f32 %v3845_v50 }
0x1cc2   :  { %6092 = vpow2.f32 %v3848_v0  ;;  %v3967_v11 = vpop.permute.xlu1 %3966 }
0x1cce   :  { %v7272_v12 = vpop.eup %6090 }
0x1ccf   :  { %v7274_v54 = vpop.eup %6092  ;;  %v3857_v30 = vpack.c.bf16 %v7272_v12, %v7272_v12 }
0x1cd0   :  { %v3858_v4 = vpack.c.bf16 %v7274_v54, %v7274_v54 }
0x1cd1   :  { %5829 = vmatmul.mubr.msk.bf16.vlgmr.msra.gmra.mxu1 %vm179_vm0, %v3857_v30 }
0x1cd2   :  { %5823 = vmatmul.mubr.msk.bf16.vlgmr.msra.gmra.mxu0 %vm288_vm4, %v3858_v4  ;;  %5839 = vmatpush3.bf16.xpose.msra.mxu1 %v4019_v25  ;;  %v5192_v25 = vld [vmem:[%s7608_s30 + $0xf0] sm:$0xff] }
0x1cd3   :  { %5833 = vmatpush3.bf16.xpose.msra.mxu0 %v3972_v61  ;;  %5834 = vmatprep.mubr.msk.bf16.mxu0 %vm6138_vm2, %v6137_v2 }
0x1cd4   :  { %5840 = vmatprep.mubr.msk.bf16.mxu1 %vm6138_vm2, %v6137_v2  ;;  %5844 = vmatprep.subr.bf16.mxu0 %v6137_v2 }
0x1cd5   :  { %5850 = vmatprep.subr.bf16.mxu1 %v6137_v2 }
0x1cd9   :  { %5841 = vmatmul.mubr.msk.bf16.vlgmr.msra.gmra.mxu1 %vm179_vm0, %v3967_v11 }
0x1cda   :  { %5835 = vmatmul.mubr.msk.bf16.vlgmr.msra.gmra.mxu0 %vm179_vm0, %v3967_v11  ;;  %5852 = vmatprep.mubr.msk.bf16.mxu1 %vm6138_vm2, %v6137_v2 }
0x1cdb   :  { %5846 = vmatprep.mubr.msk.bf16.mxu0 %vm6138_vm2, %v6137_v2  ;;  %5851 = vmatpush3.bf16.msra.mxu1 %v3965_v45 }
0x1cdc   :  { %5862 = vmatprep.subr.bf16.mxu1 %v6137_v2 }
0x1d91   :  { %v3945_v52 = vpop.f32.mrf.mxu1 }
0x1d92   :  { %v3902_v3 = vpop.f32.mrf.mxu0 }
0x1d93   :  { %v7296_v15 = vadd.f32 %v3945_v52, %v3902_v3  ;;  %v5830_v16 = vpop.f32.mrf.mxu1 }
0x1d94   :  { %v5824_v21 = vpop.f32.mrf.mxu0 }
0x1d95   :  { %v3948_v23 = vpop.f32.mrf.mxu1 }
0x1d96   :  { %v3905_v26 = vpop.f32.mrf.mxu0 }
0x1d97   :  { %v5831_v32 = vpop.f32.mrf.mxu1 }
0x1d98   :  { %v5825_v33 = vpop.f32.mrf.mxu0 }
0x1d99   :  { %v4055_v28 = vpop.f32.mrf.mxu1 }
0x1d9a   :  { %v4008_v49 = vpop.f32.mrf.mxu0  ;;  %v4061_v36 = vmul.f32 0.25, %v4055_v28 }
0x1d9b   :  { %v4014_v22 = vmul.f32 0.25, %v4008_v49  ;;  %v5842_v40 = vpop.f32.mrf.mxu1 }
0x1d9c   :  { %v4062_v38 = vadd.f32 %v4061_v36, %v7198_v14  ;;  %v5836_v39 = vpop.f32.mrf.mxu0 }
0x1d9d   :  { %v4058_v41 = vpop.f32.mrf.mxu1  ;;  %v4015_v42 = vadd.f32 %v7151_v20, %v4014_v22 }
0x1d9e   :  { %v4011_v43 = vpop.f32.mrf.mxu0  ;;  %v4066_v6 = vsel %vm288_vm4, %v4062_v38, -inf }
0x1d9f   :  { %v4063_v5 = vsel %vm179_vm0, %v4015_v42, -inf  ;;  %4067 = vmax.xlane.f32.xlu1 %v4066_v6  ;;  %v5843_v44 = vpop.f32.mrf.mxu1 }
0x1da0   :  { %4064 = vmax.xlane.f32.xlu0 %v4063_v5  ;;  %v5837_v8 = vpop.f32.mrf.mxu0 }
0x1db0   :  { %4241 = vrot.lane.b32.xlu1 %v7135_v37, %s7610_s21 }
0x1db6   :  { %4085 = vrot.lane.b32.xlu0 %v7183_v56, %s7612_s29 }
0x1dba   :  { %4191 = vrot.lane.b32.xlu0 %v7135_v37, %s7614_s24  ;;  %v5193_v37 = vld [vmem:[%s7608_s30 + $0xf8] sm:$0xff] }
0x1dbb   :  { %v4186_v11 = vpack.c.bf16 %v5193_v37, %v5192_v25  ;;  %v3398_v25 = vsel %vm288_vm4, %v7165_v7, 0.0 }
0x1dbd   :  { %v4197_v26 = vsel %vm179_vm0, %v4186_v11, 0 }
0x1e28   :  { %v4068_v50 = vpop.xlane.xlu1 %4067 }
0x1e29   :  { %v4065_v0 = vpop.xlane.xlu0 %4064 }
0x1e2a   :  { %v4069_v18 = vmax.f32 %v4065_v0, %v4068_v50 }
0x1e2c   :  { %v4070_v59 = vsub.f32 %v4015_v42, %v4069_v18  ;;  %v4073_v53 = vsub.f32 %v4062_v38, %v4069_v18  ;;  %v4242_v3 = vpop.permute.xlu1 %4241 }
0x1e2d   :  { %v4086_v31 = vpop.permute.xlu0 %4085  ;;  %v4244_v32 = vsel %vm179_vm0, %v4242_v3, 0 }
0x1e2e   :  { %v4071_v30 = vmul.f32 1.442695, %v4070_v59  ;;  %v4074_v4 = vmul.f32 1.442695, %v4073_v53  ;;  %v4091_v61 = vsel %vm311_vm3, %v4086_v31, 0 }
0x1e2f   :  { %5845 = vmatpush3.bf16.msra.mxu0 %v4091_v61  ;;  %v3170_v61 = vsel %vm179_vm0, %v7103_v47, 0.0 }
0x1e30   :  { %6094 = vpow2.f32 %v4071_v30  ;;  %5856 = vmatprep.subr.bf16.mxu0 %v6137_v2  ;;  %v2944_v30 = vsel %vm179_vm0, %v7052_v27, 0.0  ;;  %v5194_v27 = vld [vmem:[%s7577_s3 + $0xf0] sm:$0xff] }
0x1e31   :  { %6096 = vpow2.f32 %v4074_v4  ;;  %v4192_v33 = vpop.permute.xlu0 %4191  ;;  %v2947_v4 = vsel %vm288_vm4, %v7054_v13, 0.0  ;;  %v5195_v13 = vld [vmem:[%s7577_s3 + $0xf8] sm:$0xff] }
0x1e3d   :  { %v7323_v52 = vpop.eup %6094 }
0x1e3e   :  { %v6097_v16 = vpop.eup %6096  ;;  %v4083_v21 = vpack.c.bf16 %v7323_v52, %v7323_v52  ;;  %v4076_v37 = vsel %vm179_vm0, %v7323_v52, 0.0 }
0x1e3f   :  { %v4084_v23 = vpack.c.bf16 %v6097_v16, %v6097_v16  ;;  %v4079_v47 = vsel %vm288_vm4, %v6097_v16, 0.0 }
0x1e40   :  { %5853 = vmatmul.mubr.msk.bf16.vlgmr.msra.gmra.mxu1 %vm179_vm0, %v4083_v21 }
0x1e41   :  { %5847 = vmatmul.mubr.msk.bf16.vlgmr.msra.gmra.mxu0 %vm288_vm4, %v4084_v23  ;;  %5863 = vmatpush3.bf16.xpose.msra.mxu1 %v4244_v32 }
0x1e42   :  { %5857 = vmatpush3.bf16.xpose.msra.mxu0 %v4197_v26  ;;  %5858 = vmatprep.mubr.msk.bf16.mxu0 %vm6138_vm2, %v6137_v2 }
0x1e43   :  { %5864 = vmatprep.mubr.msk.bf16.mxu1 %vm6138_vm2, %v6137_v2  ;;  %5868 = vmatprep.subr.bf16.mxu0 %v6137_v2 }
0x1e44   :  { %5874 = vmatprep.subr.bf16.mxu1 %v6137_v2 }
0x1e48   :  { %5865 = vmatmul.mubr.msk.bf16.vlgmr.msra.gmra.mxu1 %vm179_vm0, %v4192_v33 }
0x1e49   :  { %5859 = vmatmul.mubr.msk.bf16.vlgmr.msra.gmra.mxu0 %vm179_vm0, %v4192_v33  ;;  %5876 = vmatprep.mubr.msk.bf16.mxu1 %vm6138_vm2, %v6137_v2 }
0x1e4a   :  { %5870 = vmatprep.mubr.msk.bf16.mxu0 %vm6138_vm2, %v6137_v2 }
0x1f00   :  { %v4170_v28 = vpop.f32.mrf.mxu1 }
0x1f01   :  { %v4127_v49 = vpop.f32.mrf.mxu0 }
0x1f02   :  { %v7343_v36 = vadd.f32 %v4170_v28, %v4127_v49  ;;  %v5854_v22 = vpop.f32.mrf.mxu1 }
0x1f03   :  { %v5848_v40 = vpop.f32.mrf.mxu0 }
0x1f04   :  { %v4173_v38 = vpop.f32.mrf.mxu1 }
0x1f05   :  { %v4130_v39 = vpop.f32.mrf.mxu0 }
0x1f06   :  { %v5855_v41 = vpop.f32.mrf.mxu1 }
0x1f07   :  { %v5849_v42 = vpop.f32.mrf.mxu0 }
0x1f08   :  { %v4280_v43 = vpop.f32.mrf.mxu1 }
0x1f09   :  { %v4233_v6 = vpop.f32.mrf.mxu0  ;;  %v4286_v5 = vmul.f32 0.25, %v4280_v43 }
0x1f0a   :  { %v4239_v44 = vmul.f32 0.25, %v4233_v6  ;;  %v5866_v8 = vpop.f32.mrf.mxu1 }
0x1f0b   :  { %v5860_v9 = vpop.f32.mrf.mxu0  ;;  %v4287_v17 = vadd.f32 %v4286_v5, %v7198_v14  ;;  %v3853_v14 = vsel %vm288_vm4, %v7274_v54, 0.0  ;;  %v3173_v54 = vsel %vm288_vm4, %v7105_v62, 0.0  ;;  %v3631_v62 = vsel %vm179_vm0, %v7221_v34, 0.0 }
0x1f0c   :  { %v4240_v45 = vadd.f32 %v7151_v20, %v4239_v44  ;;  %v4283_v50 = vpop.f32.mrf.mxu1  ;;  %v3850_v20 = vsel %vm179_vm0, %v7272_v12, 0.0  ;;  %v4190_v12 = vpack.c.bf16 %v5195_v13, %v5194_v27  ;;  %v2725_v9 = vsel %vm179_vm0, %v7001_v57, 0.0 }
0x1f0d   :  { %v4236_v0 = vpop.f32.mrf.mxu0  ;;  %v4291_v18 = vsel %vm288_vm4, %v4287_v17, -inf }
0x1f0e   :  { %v4288_v59 = vsel %vm179_vm0, %v4240_v45, -inf  ;;  %4292 = vmax.xlane.f32.xlu0 %v4291_v18  ;;  %v5867_v53 = vpop.f32.mrf.mxu1  ;;  %5875 = vmatpush3.bf16.msra.mxu1 %v4190_v12  ;;  %v3634_v18 = vsel %vm288_vm4, %v7223_v51, 0.0 }
0x1f0f   :  { %4289 = vmax.xlane.f32.xlu1 %v4288_v59  ;;  %v5861_v31 = vpop.f32.mrf.mxu0 }
0x1f13   :  { %2945 = vadd.xlane.f32.xlu1 %v2944_v30 }
0x1f17   :  { %2948 = vadd.xlane.f32.xlu1 %v2947_v4 }
0x1f1b   :  { %3851 = vadd.xlane.f32.xlu1 %v3850_v20 }
0x1f1f   :  { %3854 = vadd.xlane.f32.xlu1 %v3853_v14 }
0x1f23   :  { %3171 = vadd.xlane.f32.xlu1 %v3170_v61 }
0x1f24   :  { %4310 = vrot.lane.b32.xlu0 %v7183_v56, %s7614_s24  ;;  %v3395_v56 = vsel %vm179_vm0, %v7163_v46, 0.0 }
0x1f27   :  { %3174 = vadd.xlane.f32.xlu1 %v3173_v54 }
0x1f2b   :  { %4080 = vadd.xlane.f32.xlu1 %v4079_v47 }
0x1f2f   :  { %3396 = vadd.xlane.f32.xlu1 %v3395_v56 }
0x1f33   :  { %3399 = vadd.xlane.f32.xlu1 %v3398_v25 }
0x1f43   :  { %4077 = vadd.xlane.f32.xlu0 %v4076_v37 }
0x1f47   :  { %3632 = vadd.xlane.f32.xlu0 %v3631_v62 }
0x1f97   :  { %v4293_v11 = vpop.xlane.xlu0 %4292 }
0x1f98   :  { %v4290_v3 = vpop.xlane.xlu1 %4289 }
0x1f99   :  { %v4294_v16 = vmax.f32 %v4290_v3, %v4293_v11 }
0x1f9b   :  { %v4295_v21 = vsub.f32 %v4240_v45, %v4294_v16  ;;  %v4298_v23 = vsub.f32 %v4287_v17, %v4294_v16  ;;  %v4311_v26 = vpop.permute.xlu0 %4310 }
0x1f9c   :  { %v2946_v46 = vpop.xlane.xlu1 %2945  ;;  %v4316_v32 = vsel %vm311_vm3, %v4311_v26, 0  ;;  %v5972_v26 = vld [vmem:[%s7578_s6 + $0x28] sm:$0xff]  }
0x1f9d   :  { %v4296_v33 = vmul.f32 1.442695, %v4295_v21  ;;  %v4299_v7 = vmul.f32 1.442695, %v4298_v23  ;;  %5869 = vmatpush3.bf16.msra.mxu0 %v4316_v32 }
0x1f9e   :  { %5880 = vmatprep.subr.bf16.mxu0 %v6137_v2 }
0x1f9f   :  { %6098 = vpow2.f32 %v4296_v33 }
0x1fa0   :  { %6100 = vpow2.f32 %v4299_v7  ;;  %v2949_v52 = vpop.xlane.xlu1 %2948 }
0x1fa1   :  { %v2950_v28 = vadd.f32 %v2949_v52, %v2946_v46 }
0x1fa3   :  { %6102 = vrcp.f32 %v2950_v28 }
0x1fa4   :  { %v3852_v34 = vpop.xlane.xlu1 %3851 }
0x1fa8   :  { %v3855_v49 = vpop.xlane.xlu1 %3854 }
0x1fa9   :  { %v3856_v45 = vadd.f32 %v3855_v49, %v3852_v34 }
0x1fab   :  { %6104 = vrcp.f32 %v3856_v45 }
0x1fac   :  { %v6099_v22 = vpop.eup %6098  ;;  %v3172_v40 = vpop.xlane.xlu1 %3171 }
0x1fad   :  { %v6101_v38 = vpop.eup %6100  ;;  %v4301_v39 = vsel %vm179_vm0, %v6099_v22, 0.0  ;;  %v4308_v41 = vpack.c.bf16 %v6099_v22, %v6099_v22 }
0x1fae   :  { %4302 = vadd.xlane.f32.xlu1 %v4301_v39  ;;  %v4309_v42 = vpack.c.bf16 %v6101_v38, %v6101_v38  ;;  %v4304_v5 = vsel %vm288_vm4, %v6101_v38, 0.0 }
0x1faf   :  { %5877 = vmatmul.mubr.msk.bf16.vlgmr.msra.gmra.mxu1 %vm179_vm0, %v4308_v41 }
0x1fb0   :  { %v6103_v43 = vpop.eup %6102  ;;  %5871 = vmatmul.mubr.msk.bf16.vlgmr.msra.gmra.mxu0 %vm288_vm4, %v4309_v42  ;;  %v3175_v6 = vpop.xlane.xlu1 %3174  ;;  %4642 = vmatprep.mubr.bf16.mxu1 %v6136_v1  ;;  %v2728_v1 = vsel %vm288_vm4, %v7003_v55, 0.0 }
0x1fb1   :  { %v3046_v44 = vmul.f32 %v6103_v43, %v7076_v35  ;;  %5888 = vmatprep.mubr.msk.bf16.mxu0 %vm6138_vm2, %v6137_v2  ;;  %v3176_v35 = vadd.f32 %v3175_v6, %v3172_v40  ;;  %v5209_v6 = vld [vmem:[%s7579_s7 + $0x1] ss:$0 sm:$0xff] }
0x1fb2   :  { %4305 = vadd.xlane.f32.xlu1 %v4304_v5 }
0x1fb3   :  { %3048 = vrot.lane.b32.xlu0 %v3046_v44, %s7610_s21 }
0x1fb4   :  { %v4081_v8 = vpop.xlane.xlu1 %4080 }
0x1fb6   :  { %2726 = vadd.xlane.f32.xlu1 %v2725_v9 }
0x1fb8   :  { %v3397_v17 = vpop.xlane.xlu1 %3396  ;;  %v6105_v59 = vpop.eup %6104 }
0x1fb9   :  { %v3952_v4 = vmul.f32 %v6105_v59, %v7296_v15  ;;  %v5971_v15 = vld [vmem:[%s7578_s6 + $0x30] sm:$0xff]  }
0x1fba   :  { %2729 = vadd.xlane.f32.xlu1 %v2728_v1 }
0x1fbc   :  { %v3400_v50 = vpop.xlane.xlu1 %3399 }
0x1fbd   :  { %v3401_v0 = vadd.f32 %v3400_v50, %v3397_v17 }
0x1fbe   :  { %3635 = vadd.xlane.f32.xlu1 %v3634_v18 }
0x1fbf   :  { %6106 = vrcp.f32 %v3401_v0 }
0x1fc0   :  { %6108 = vrcp.f32 %v3176_v35 }
0x1fcc   :  { %v6107_v53 = vpop.eup %6106  ;;  %v4078_v57 = vpop.xlane.xlu0 %4077 }
0x1fcd   :  { %v4082_v31 = vadd.f32 %v4081_v8, %v4078_v57  ;;  %v3496_v30 = vmul.f32 %v6107_v53, %v7196_v60  ;;  %v6109_v55 = vpop.eup %6108  ;;  %v5970_v60 = vld [vmem:[%s7578_s6 + $0x38] sm:$0xff]  }
0x1fce   :  { %v3271_v20 = vmul.f32 %v6109_v55, %v7127_v58  ;;  %5881 = vmatpush3.bf16.msra.mxu0 %v5970_v60  ;;  %v5977_v60 = vld [vmem:[%s7580_s10 + $0x60] ss:$8 sps:$4 sm:$0xff]  }
0x1fcf   :  { %6110 = vrcp.f32 %v4082_v31  ;;  %3498 = vrot.lane.b32.xlu0 %v3496_v30, %s7611_s23  ;;  %3954 = vrot.lane.b32.xlu1 %v3952_v4, %s7610_s21 }
0x1fd0   :  { %5882 = vmatprep.subr.bf16.mxu0 %v6137_v2  ;;  %v3633_v12 = vpop.xlane.xlu0 %3632 }
0x1fd2   :  { %5883 = vmatpush3.bf16.msra.mxu0 %v5971_v15  ;;  %v5982_v15 = vld [vmem:[%s7580_s10 + $0x54] ss:$8 sps:$4 sm:$0xff]  }
0x1fd3   :  { %3273 = vrot.lane.b32.xlu1 %v3271_v20, %s7613_s25  ;;  %5884 = vmatprep.subr.bf16.mxu0 %v6137_v2 }
0x1fd6   :  { %5885 = vmatpush3.bf16.msra.mxu0 %v5972_v26 }
0x1fd7   :  { %5886 = vmatprep.subr.bf16.mxu0 %v6137_v2 }
0x1fdc   :  { %v6111_v51 = vpop.eup %6110 }
0x1fdd   :  { %v4177_v14 = vmul.f32 %v6111_v51, %v7343_v36  ;;  %v5974_v51 = vld [vmem:[%s7580_s10 + $0x70] ss:$8 sps:$4 sm:$0xff]  }
0x1fdf   :  { %4179 = vrot.lane.b32.xlu1 %v4177_v14, %s7613_s25  ;;  %v5979_v14 = vld [vmem:[%s7580_s10 + $0x64] ss:$8 sps:$4 sm:$0xff]  }
0x2025   :  { %v3049_v37 = vpop.permute.xlu0 %3048 }
0x2037   :  { %v4303_v58 = vpop.xlane.xlu1 %4302 }
0x203b   :  { %v4306_v61 = vpop.xlane.xlu1 %4305 }
0x203f   :  { %v2727_v27 = vpop.xlane.xlu1 %2726 }
0x2041   :  { %v3499_v16 = vpop.permute.xlu0 %3498 }
0x2043   :  { %v2730_v36 = vpop.xlane.xlu1 %2729 }
0x2044   :  { %v2731_v13 = vadd.f32 %v2730_v36, %v2727_v27  ;;  %v5985_v27 = vld [vmem:[%s7580_s10 + $0x44] ss:$8 sps:$4 sm:$0xff]  }
0x2046   :  { %6112 = vrcp.f32 %v2731_v13 }
0x2047   :  { %v3636_v54 = vpop.xlane.xlu1 %3635 }
0x2048   :  { %v3637_v47 = vadd.f32 %v3636_v54, %v3633_v12 }
0x204a   :  { %6114 = vrcp.f32 %v3637_v47 }
0x204b   :  { %v3955_v56 = vpop.permute.xlu1 %3954 }
0x204f   :  { %v3274_v11 = vpop.permute.xlu1 %3273 }
0x2053   :  { %v6113_v25 = vpop.eup %6112  ;;  %v4180_v23 = vpop.permute.xlu1 %4179 }
0x2054   :  { %v2824_v62 = vmul.f32 %v6113_v25, %v7025_v10  ;;  %v4307_v10 = vadd.f32 %v4306_v61, %v4303_v58  ;;  %v5980_v58 = vld [vmem:[%s7580_s10 + $0x50] ss:$8 sps:$4 sm:$0xff]   ;;  %v5983_v61 = vld [vmem:[%s7580_s10 + $0x40] ss:$8 sps:$4 sm:$0xff]  }
0x2056   :  { %2825 = vst.msk [vmem:[#allocation2] sm:$0xff] %vm179_vm0, %v2824_v62  ;;  %6116 = vrcp.f32 %v4307_v10  ;;  %v5216_v62 = vld [vmem:[%s7581_s8 + $0x1] ss:$0 sm:$0xff] }
0x2057   :  { %v6115_v3 = vpop.eup %6114  ;;  %3051 = vst.msk [vmem:[#allocation2] sm:$0xff] %vm626_vm5, %v3049_v37 }
0x2058   :  { %v3730_v21 = vmul.f32 %v6115_v3, %v7245_v63  ;;  %3276 = vst.msk [vmem:[#allocation2] sm:$0xff] %vm852_vm6, %v3274_v11  ;;  %v5973_v63 = vld [vmem:[%s7578_s6 + $0x20] sm:$0xff]  }
0x2059   :  { %3501 = vst.msk [vmem:[#allocation2] sm:$0xff] %vm1078_vm7, %v3499_v16  ;;  %5887 = vmatpush3.bf16.msra.mxu0 %v5973_v63 }
0x205a   :  { %3731 = vst.msk [vmem:[#allocation2 + $0x8] sm:$0xff] %vm179_vm0, %v3730_v21  ;;  %v5218_v21 = vld [vmem:[%s7582_s9 + $0x1] ss:$0 sm:$0xff] }
0x205b   :  { %3957 = vst.msk [vmem:[#allocation2 + $0x8] sm:$0xff] %vm626_vm5, %v3955_v56 }
0x205c   :  { %4182 = vst.msk [vmem:[#allocation2 + $0x8] sm:$0xff] %vm852_vm6, %v4180_v23 }
0x2060   :  { %v4408_v41 = vld [vmem:[#allocation2] sm:$0xff] }
0x2063   :  { %v6117_v52 = vpop.eup %6116 }
0x206f   :  { %v4395_v46 = vpop.f32.mrf.mxu1 }
0x2070   :  { %v4352_v32 = vpop.f32.mrf.mxu0 }
0x2071   :  { %v4396_v33 = vadd.f32 %v4395_v46, %v4352_v32  ;;  %v5878_v7 = vpop.f32.mrf.mxu1  ;;  %v5986_v46 = vld [vmem:[%s7583_s12 + $0xf8] sm:$0xff]  }
0x2072   :  { %v5872_v28 = vpop.f32.mrf.mxu0  ;;  %v5987_v32 = vld [vmem:[%s7583_s12 + $0xb8] sm:$0xff]   ;;  %5457 = vmatprep.subr.bf16.mxu0 %v5986_v46  ;;  %v5989_v7 = vld [vmem:[%s7583_s12 + $0xb0] sm:$0xff]  }
0x2073   :  { %v4402_v34 = vmul.f32 %v6117_v52, %v4396_v33  ;;  %v4398_v49 = vpop.f32.mrf.mxu1  ;;  %v5988_v33 = vld [vmem:[%s7583_s12 + $0xf0] sm:$0xff]   ;;  %v5990_v52 = vld [vmem:[%s7583_s12 + $0xe8] sm:$0xff]  }
0x2074   :  { %v4355_v22 = vpop.f32.mrf.mxu0  ;;  %v5991_v28 = vld [vmem:[%s7583_s12 + $0xa8] sm:$0xff]   ;;  %v5993_v49 = vld [vmem:[%s7583_s12 + $0xa0] sm:$0xff]  }
0x2075   :  { %4404 = vrot.lane.b32.xlu1 %v4402_v34, %s7611_s23  ;;  %v5879_v40 = vpop.f32.mrf.mxu1  ;;  %v5992_v34 = vld [vmem:[%s7583_s12 + $0xe0] sm:$0xff]   ;;  %v5994_v22 = vld [vmem:[%s7583_s12 + $0xd8] sm:$0xff]  }
0x2076   :  { %v5873_v38 = vpop.f32.mrf.mxu0  ;;  %v5995_v40 = vld [vmem:[%s7583_s12 + $0x98] sm:$0xff]  }
0x2077   :  { %v5996_v38 = vld [vmem:[%s7583_s12 + $0xd0] sm:$0xff]  }
0x20e7   :  { %v4405_v39 = vpop.permute.xlu1 %4404 }
0x20e8   :  { %4407 = vst.msk [vmem:[#allocation2 + $0x8] sm:$0xff] %vm1078_vm7, %v4405_v39  ;;  %v5997_v39 = vld [vmem:[%s7583_s12 + $0x90] sm:$0xff]  }
0x20ef   :  { %v4409_v42 = vld [vmem:[#allocation2 + $0x8] sm:$0xff] }
0x20f0   :  { %v4410_v43 = vpack.c.bf16 %v4409_v42, %v4408_v41  ;;  %v5998_v41 = vld [vmem:[%s7583_s12 + $0xc8] sm:$0xff]  }
0x20f1   :  { %v5999_v42 = vld [vmem:[%s7583_s12 + $0x88] sm:$0xff]  }
0x20f2   :  { %5889 = vmatmul.mubr.msk.bf16.vlgmr.msra.gmra.mxu0 %vm123_vm1, %v4410_v43  ;;  %v6000_v43 = vld [vmem:[%s7583_s12 + $0xc0] sm:$0xff]  }
0x20f3   :  { %5458 = vmatpush3.bf16.msra.mxu0 %v5987_v32 }
0x20f4   :  { %5459 = vmatprep.subr.bf16.mxu0 %v5988_v33 }
0x20f7   :  { %5460 = vmatpush3.bf16.msra.mxu0 %v5989_v7 }
0x20f8   :  { %5461 = vmatprep.subr.bf16.mxu0 %v5990_v52 }
0x20fb   :  { %5462 = vmatpush3.bf16.msra.mxu0 %v5991_v28  ;;  %v5270_v28 = vld [vmem:[%s7585_s13 + $0x1] ss:$0 sm:$0xff] }
0x20fc   :  { %5463 = vmatprep.subr.bf16.mxu0 %v5992_v34 }
0x20ff   :  { %5464 = vmatpush3.bf16.msra.mxu0 %v5993_v49 }
0x2100   :  { %5465 = vmatprep.subr.bf16.mxu0 %v5994_v22 }
0x2103   :  { %5466 = vmatpush3.bf16.msra.mxu0 %v5995_v40 }
0x2104   :  { %5467 = vmatprep.subr.bf16.mxu0 %v5996_v38 }
0x2107   :  { %5468 = vmatpush3.bf16.msra.mxu0 %v5997_v39 }
0x2108   :  { %5469 = vmatprep.subr.bf16.mxu0 %v5998_v41 }
0x210b   :  { %5470 = vmatpush3.bf16.msra.mxu0 %v5999_v42 }
0x210c   :  { %5471 = vmatprep.subr.bf16.mxu0 %v6000_v43 }
0x21b2   :  { %v4489_v5 = vpop.f32.mrf.mxu0 }
0x21b3   :  { %v4490_v44 = vadd.f32 %v5209_v6, %v4489_v5  ;;  %v5227_v5 = vld [vmem:[%s7584_s11 + $0x2] sm:$0x3] }
0x21b4   :  { %v5890_v8 = vpop.f32.mrf.mxu0 }
0x21b5   :  { %v4496_v9 = vadd.f32 %v4490_v44, %v6929_v48  ;;  %v4560_v44 = vrot.slane %v5227_v5, %v6287_v19  ;;  %v4564_v8 = vrot.slane %v5227_v5, %v6312_v29 }
0x21b6   :  { %v4492_v17 = vpop.f32.mrf.mxu0 }
0x21b7   :  { %v4493_v45 = vadd.f32 %v5209_v6, %v4492_v17  ;;  %v4498_v1 = vsel %vm123_vm1, %v4496_v9, 0.0  ;;  %v6001_v6 = vld [vmem:[%s7583_s12 + $0x80] sm:$0xff]  }
0x21b8   :  { %4499 = vadd.xlane.f32.xlu0 %v4498_v1  ;;  %v5891_v50 = vpop.f32.mrf.mxu0  ;;  %5472 = vmatpush3.bf16.msra.mxu0 %v6001_v6 }
0x21b9   :  { %v4497_v35 = vadd.f32 %v4493_v45, %v6931_v24  ;;  %v5976_v24 = vld [vmem:[%s7580_s10 + $0x74] ss:$8 sps:$4 sm:$0xff]  }
0x21ba   :  { %4618 = vmatprep.subr.bf16.mxu1 %v5976_v24 }
0x21bb   :  { %v4501_v0 = vsel %vm123_vm1, %v4497_v35, 0.0  ;;  %4619 = vmatpush1.bf16.msra.mxu1 %v5974_v51 }
0x21bc   :  { %4502 = vadd.xlane.f32.xlu1 %v4501_v0  ;;  %4620 = vmatprep.subr.bf16.mxu1 %v5979_v14 }
0x21bf   :  { %4621 = vmatpush1.bf16.msra.mxu1 %v5977_v60 }
0x21c0   :  { %4622 = vmatprep.subr.bf16.mxu1 %v5982_v15 }
0x21c3   :  { %4623 = vmatpush1.bf16.msra.mxu1 %v5980_v58 }
0x21c4   :  { %4624 = vmatprep.subr.bf16.mxu1 %v5985_v27 }
0x21c7   :  { %4625 = vmatpush1.bf16.msra.mxu1 %v5983_v61 }
0x21c8   :  { %5892 = vmatprep.subr.bf16.mxu1 %v6137_v2 }
0x2241   :  { %v4500_v18 = vpop.xlane.xlu0 %4499 }
0x2242   :  { %v4504_v59 = vmul.f32 0.015625, %v4500_v18 }
0x2244   :  { %v4506_v53 = vsub.f32 %v4496_v9, %v4504_v59 }
0x2245   :  { %v4503_v57 = vpop.xlane.xlu1 %4502 }
0x2246   :  { %v4505_v31 = vmul.f32 0.015625, %v4503_v57  ;;  %v4508_v30 = vmul.f32 %v4506_v53, %v4506_v53 }
0x2248   :  { %v4507_v4 = vsub.f32 %v4497_v35, %v4505_v31  ;;  %v4510_v48 = vsel %vm123_vm1, %v4508_v30, 0.0 }
0x2249   :  { %4511 = vadd.xlane.f32.xlu0 %v4510_v48 }
0x224a   :  { %v4509_v55 = vmul.f32 %v4507_v4, %v4507_v4 }
0x224c   :  { %v4513_v20 = vsel %vm123_vm1, %v4509_v55, 0.0 }
0x224d   :  { %4514 = vadd.xlane.f32.xlu0 %v4513_v20 }
0x22d2   :  { %v4512_v36 = vpop.xlane.xlu0 %4511 }
0x22d3   :  { %v4516_v13 = vmul.f32 0.015625, %v4512_v36 }
0x22d5   :  { %v4518_v12 = vadd.f32 1e-12, %v4516_v13 }
0x22d6   :  { %v4515_v54 = vpop.xlane.xlu0 %4514 }
0x22d7   :  { %6118 = vrsqrt.f32 %v4518_v12  ;;  %v4517_v47 = vmul.f32 0.015625, %v4515_v54 }
0x22d9   :  { %v4519_v56 = vadd.f32 1e-12, %v4517_v47 }
0x22db   :  { %6120 = vrsqrt.f32 %v4519_v56 }
0x22e4   :  { %v6119_v25 = vpop.eup %6118 }
0x22e5   :  { %v4522_v37 = vmul.f32 %v6119_v25, %v4506_v53 }
0x22e7   :  { %v4532_v3 = vmul.f32 %v5216_v62, %v4522_v37 }
0x22e8   :  { %v6121_v11 = vpop.eup %6120 }
0x22e9   :  { %v4523_v16 = vmul.f32 %v6121_v11, %v4507_v4  ;;  %v7470_v10 = vadd.f32 %v5218_v21, %v4532_v3 }
0x22eb   :  { %v4533_v23 = vmul.f32 %v5216_v62, %v4523_v16 }
0x22ed   :  { %v7472_v26 = vadd.f32 %v5218_v21, %v4533_v23 }
0x22ef   :  { %v4544_v63 = vpack.c.bf16 %v7472_v26, %v7470_v10 }
0x22f1   :  { %5236 = vmatmul.mubr.msk.bf16.vlgmr.msra.gmra.mxu1 %vm123_vm1, %v4544_v63 }
0x22f2   :  { %5900 = vmatprep.mubr.msk.bf16.mxu1 %vm6138_vm2, %v6137_v2 }
0x23b1   :  { %v4644_v9 = vpop.f32.mrf.mxu1 }
0x23b2   :  { %v4645_v17 = vadd.f32 %v4644_v9, %v4560_v44 }
0x23b3   :  { %v4646_v45 = vpop.f32.mrf.mxu1 }
0x23b4   :  { %v4653_v1 = vmul.f32 %v4645_v17, %v4645_v17  ;;  %v4647_v50 = vadd.f32 %v4646_v45, %v4564_v8 }
0x23b5   :  { %v4648_v35 = vpop.f32.mrf.mxu1 }
0x23b6   :  { %v4657_v0 = vmul.f32 %v4653_v1, %v4645_v17  ;;  %v4654_v18 = vmul.f32 %v4647_v50, %v4647_v50  ;;  %v4649_v59 = vadd.f32 %v4648_v35, %v4560_v44 }
0x23b7   :  { %v4650_v53 = vpop.f32.mrf.mxu1 }
0x23b8   :  { %v4661_v57 = vmul.f32 0.044715, %v4657_v0  ;;  %v4658_v31 = vmul.f32 %v4654_v18, %v4647_v50  ;;  %v4655_v30 = vmul.f32 %v4649_v59, %v4649_v59  ;;  %v4651_v4 = vadd.f32 %v4650_v53, %v4564_v8  ;;  %v6003_v18 = vld [vmem:[%s7588_s16 + $0x10] sm:$0xff]   ;;  %v6005_v53 = vld [vmem:[%s7588_s16] sm:$0xff]  }
0x23ba   :  { %v4665_v48 = vadd.f32 %v4661_v57, %v4645_v17  ;;  %v4662_v55 = vmul.f32 0.044715, %v4658_v31  ;;  %v4659_v20 = vmul.f32 %v4655_v30, %v4649_v59  ;;  %v4656_v19 = vmul.f32 %v4651_v4, %v4651_v4 }
0x23bc   :  { %v4669_v24 = vmul.f32 0.7978846, %v4665_v48  ;;  %v4666_v29 = vadd.f32 %v4662_v55, %v4647_v50  ;;  %v4663_v51 = vmul.f32 0.044715, %v4659_v20  ;;  %v4660_v14 = vmul.f32 %v4656_v19, %v4651_v4 }
0x23be   :  { %v4670_v60 = vmul.f32 0.7978846, %v4666_v29  ;;  %v4667_v15 = vadd.f32 %v4663_v51, %v4649_v59  ;;  %v4664_v58 = vmul.f32 0.044715, %v4660_v14  ;;  %6122 = vtanh.f32 %v4669_v24  ;;  %v5288_v24 = vld [vmem:[%s7586_s14 + $0x1] ss:$0 sm:$0xff] }
0x23bf   :  { %v5290_v14 = vld [vmem:[%s7587_s15 + $0x1] ss:$0 sm:$0xff] }
0x23c0   :  { %6124 = vtanh.f32 %v4670_v60  ;;  %v4671_v61 = vmul.f32 0.7978846, %v4667_v15  ;;  %v4668_v27 = vadd.f32 %v4664_v58, %v4651_v4 }
0x23c2   :  { %6126 = vtanh.f32 %v4671_v61  ;;  %v4672_v36 = vmul.f32 0.7978846, %v4668_v27  ;;  %v5291_v27 = vld [vmem:[%s7589_s17] ss:$0 sm:$0xff] }
0x23c4   :  { %6128 = vtanh.f32 %v4672_v36 }
0x23cb   :  { %v6123_v13 = vpop.eup %6122 }
0x23cc   :  { %v4677_v56 = vadd.f32 1.0, %v6123_v13 }
0x23cd   :  { %v6125_v12 = vpop.eup %6124 }
0x23ce   :  { %v4678_v54 = vadd.f32 1.0, %v6125_v12  ;;  %v4681_v16 = vmul.f32 0.5, %v4677_v56 }
0x23cf   :  { %v6127_v47 = vpop.eup %6126 }
0x23d0   :  { %v4679_v25 = vadd.f32 1.0, %v6127_v47  ;;  %v4682_v3 = vmul.f32 0.5, %v4678_v54  ;;  %v4685_v32 = vmul.f32 %v4681_v16, %v4645_v17 }
0x23d1   :  { %v6129_v37 = vpop.eup %6128 }
0x23d2   :  { %v4683_v62 = vmul.f32 0.5, %v4679_v25  ;;  %v4680_v11 = vadd.f32 1.0, %v6129_v37  ;;  %v4686_v63 = vmul.f32 %v4682_v3, %v4647_v50 }
0x23d4   :  { %v4684_v21 = vmul.f32 0.5, %v4680_v11  ;;  %v4687_v23 = vmul.f32 %v4683_v62, %v4649_v59  ;;  %v6004_v59 = vld [vmem:[%s7588_s16 + $0x8] sm:$0xff]  }
0x23d6   :  { %v4688_v46 = vmul.f32 %v4684_v21, %v4651_v4  ;;  %v4689_v7 = vpack.c.bf16 %v4687_v23, %v4685_v32 }
0x23d8   :  { %v4690_v33 = vpack.c.bf16 %v4688_v46, %v4686_v63 }
0x23da   :  { %4860 = vmatprep.mubr.bf16.mxu0 %v4690_v33 }
0x23db   :  { %4861 = vmatmul.mubr.bf16.vlgmr.msra.gmra.mxu0 %v4689_v7 }
0x249b   :  { %v5473_v52 = vpop.f32.mrf.mxu0 }
0x249d   :  { %v5474_v34 = vpop.f32.mrf.mxu0 }
0x249e   :  { %v5475_v49 = vadd.f32 %v5474_v34, %v5473_v52 }
0x249f   :  { %v5476_v22 = vpop.f32.mrf.mxu0 }
0x24a0   :  { %v4863_v40 = vadd.f32 %v5475_v49, %v5270_v28 }
0x24a1   :  { %v5477_v38 = vpop.f32.mrf.mxu0 }
0x24a2   :  { %v5478_v39 = vadd.f32 %v5477_v38, %v5476_v22  ;;  %v4869_v41 = vadd.f32 %v4863_v40, %v7470_v10 }
0x24a4   :  { %v4866_v42 = vadd.f32 %v5478_v39, %v5270_v28  ;;  %v4871_v43 = vsel %vm123_vm1, %v4869_v41, 0.0 }
0x24a5   :  { %4872 = vadd.xlane.f32.xlu0 %v4871_v43 }
0x24a6   :  { %v4870_v6 = vadd.f32 %v4866_v42, %v7472_v26  ;;  %v6002_v26 = vld [vmem:[%s7588_s16 + $0x18] sm:$0xff]  }
0x24a7   :  { %5893 = vmatpush3.bf16.msra.mxu1 %v6002_v26 }
0x24a8   :  { %v4874_v5 = vsel %vm123_vm1, %v4870_v6, 0.0  ;;  %5894 = vmatprep.subr.bf16.mxu1 %v6137_v2 }
0x24a9   :  { %4875 = vadd.xlane.f32.xlu1 %v4874_v5 }
0x24ab   :  { %5895 = vmatpush3.bf16.msra.mxu1 %v6003_v18 }
0x24ac   :  { %5896 = vmatprep.subr.bf16.mxu1 %v6137_v2 }
0x24af   :  { %5897 = vmatpush3.bf16.msra.mxu1 %v6004_v59 }
0x24b0   :  { %5898 = vmatprep.subr.bf16.mxu1 %v6137_v2 }
0x24b3   :  { %5899 = vmatpush3.bf16.msra.mxu1 %v6005_v53 }
0x252e   :  { %v4873_v44 = vpop.xlane.xlu0 %4872 }
0x252f   :  { %v4877_v8 = vmul.f32 0.015625, %v4873_v44 }
0x2531   :  { %v4879_v9 = vsub.f32 %v4869_v41, %v4877_v8 }
0x2532   :  { %v4876_v17 = vpop.xlane.xlu1 %4875 }
0x2533   :  { %v4878_v45 = vmul.f32 0.015625, %v4876_v17  ;;  %v4881_v1 = vmul.f32 %v4879_v9, %v4879_v9 }
0x2535   :  { %v4880_v50 = vsub.f32 %v4870_v6, %v4878_v45  ;;  %v4883_v35 = vsel %vm123_vm1, %v4881_v1, 0.0 }
0x2536   :  { %4884 = vadd.xlane.f32.xlu0 %v4883_v35 }
0x2537   :  { %v4882_v10 = vmul.f32 %v4880_v50, %v4880_v50 }
0x2539   :  { %v4886_v0 = vsel %vm123_vm1, %v4882_v10, 0.0 }
0x253a   :  { %4887 = vadd.xlane.f32.xlu1 %v4886_v0 }
0x25bf   :  { %v4885_v57 = vpop.xlane.xlu0 %4884 }
0x25c0   :  { %v4889_v31 = vmul.f32 0.015625, %v4885_v57 }
0x25c2   :  { %v4891_v30 = vadd.f32 1e-12, %v4889_v31 }
0x25c3   :  { %v4888_v4 = vpop.xlane.xlu1 %4887 }
0x25c4   :  { %6130 = vrsqrt.f32 %v4891_v30  ;;  %v4890_v48 = vmul.f32 0.015625, %v4888_v4 }
0x25c6   :  { %v4892_v55 = vadd.f32 1e-12, %v4890_v48 }
0x25c8   :  { %6132 = vrsqrt.f32 %v4892_v55 }
0x25d1   :  { %v6131_v20 = vpop.eup %6130 }
0x25d2   :  { %v4895_v19 = vmul.f32 %v6131_v20, %v4879_v9 }
0x25d4   :  { %v4905_v29 = vmul.f32 %v5288_v24, %v4895_v19 }
0x25d5   :  { %v6133_v2 = vpop.eup %6132 }
0x25d6   :  { %v4896_v51 = vmul.f32 %v6133_v2, %v4880_v50  ;;  %v4915_v15 = vadd.f32 %v5290_v14, %v4905_v29 }
0x25d8   :  { %v4906_v60 = vmul.f32 %v5288_v24, %v4896_v51 }
0x25da   :  { %v4916_v58 = vadd.f32 %v5290_v14, %v4906_v60 }
0x25dc   :  { %v4917_v61 = vpack.c.bf16 %v4916_v58, %v4915_v15 }
0x25de   :  { %5901 = vmatmul.mubr.msk.bf16.vlgmr.msra.gmra.mxu1 %vm123_vm1, %v4917_v61 }
0x269e   :  { %v4994_v36 = vpop.f32.mrf.mxu1 }
0x269f   :  { %v4995_v13 = vadd.f32 %v5291_v27, %v4994_v36 }
0x26a0   :  { %v5902_v12 = vpop.f32.mrf.mxu1 }
0x26a1   :  { %5001 = vst [vmem:[%s7590_s18] sm:$0xff] %v4995_v13 }
0x26a2   :  { %v4997_v54 = vpop.f32.mrf.mxu1 }
0x26a3   :  { %v4998_v47 = vadd.f32 %v5291_v27, %v4997_v54 }
0x26a4   :  { %v5903_v56 = vpop.f32.mrf.mxu1 }
0x26a5   :  { %5002 = vst [vmem:[%s7590_s18 + $0x8] sm:$0xff] %v4998_v47 }

</bundles_post_ra>
